<compile_context>
chip_gen: v7x
topology: tpu7x:2x2x1
jax: 0.10.0
libtpu: 0.0.40
codegen_flags: <defaults>
</compile_context>

<pallas_src>
import math

import jax
import jax.numpy as jnp
from jax.experimental import pallas as pl
from jax.experimental.pallas import tpu as pltpu


HIDDEN = (1024, 2048, 512)


def _round_up(x: int, m: int) -> int:
    return ((x + m - 1) // m) * m


def _fused_mlp_kernel(x_ref,
                      w1_ref, b1_ref, w2_ref, b2_ref,
                      w3_ref, b3_ref, w4_ref, b4_ref,
                      o_ref):
    """One batch tile of the full 4-layer MLP; all weights resident in VMEM.

    MXU matmuls consume bf16 operands and accumulate in f32
    (preferred_element_type); bias add + ReLU are done in f32, then the
    activation is cast back to the weight dtype for the next MXU pass.
    """
    cdt = w1_ref.dtype  # MXU input dtype (bf16)

    h = x_ref[...]
    h = jnp.dot(h, w1_ref[...], preferred_element_type=jnp.float32) + b1_ref[...]
    h = jnp.maximum(h, 0.0).astype(cdt)
    h = jnp.dot(h, w2_ref[...], preferred_element_type=jnp.float32) + b2_ref[...]
    h = jnp.maximum(h, 0.0).astype(cdt)
    h = jnp.dot(h, w3_ref[...], preferred_element_type=jnp.float32) + b3_ref[...]
    h = jnp.maximum(h, 0.0).astype(cdt)
    h = jnp.dot(h, w4_ref[...], preferred_element_type=jnp.float32) + b4_ref[...]
    o_ref[...] = h.astype(o_ref.dtype)


def finn_encoder_fused(x, packed, out_features: int, *, tm_target: int = 256):
    """y = MLP(x) with all four Linear layers fused into one pallas_call.

    `packed` = [(W1,b1),...,(W4,b4)] with W* already padded + cast to the MXU
    compute dtype (bf16) and b* padded + kept in f32, shapes:
      W1:(K1p,1024) W2:(1024,2048) W3:(2048,512) W4:(512,Np), b*: (1, fan_out).
    """
    (w1, b1), (w2, b2), (w3, b3), (w4, b4) = packed
    M, K1 = x.shape
    K1_pad = w1.shape[0]
    N_pad = w4.shape[1]
    assert K1 <= K1_pad and out_features <= N_pad

    # Batch tile: multiple of 8 (sublane); cap at tm_target for VMEM headroom.
    tm = tm_target if M >= tm_target else _round_up(M, 8)
    M_pad = _round_up(M, tm)

    # Pad input to (M_pad, K1_pad) with zeros (inert: padded W1 rows are zero
    # too) and cast to the MXU compute dtype once here.
    xp = x.astype(w1.dtype)
    if (M_pad, K1_pad) != (M, K1):
        xp = jnp.pad(xp, ((0, M_pad - M), (0, K1_pad - K1)))

    grid = (M_pad // tm,)

    def resident(arr):
        # Full-array block with a constant block index -> loaded once, stays
        # resident in VMEM across all batch-tile grid steps.
        return pl.BlockSpec(arr.shape, lambda i: (0, 0))

    # Explicit VMEM budget: double-buffered weights/biases + f32 activations
    # for a tile + margin; capped well below v7x's 64 MiB physical VMEM.
    weight_bytes = sum(w.size * w.dtype.itemsize + b.size * b.dtype.itemsize
                       for (w, b) in packed)
    act_bytes = tm * (K1_pad + sum(HIDDEN) + N_pad) * 4
    vmem_limit = int(min(2 * weight_bytes + 6 * act_bytes + (8 << 20), 48 << 20))

    flops = 2 * M_pad * (K1_pad * HIDDEN[0] + HIDDEN[0] * HIDDEN[1]
                         + HIDDEN[1] * HIDDEN[2] + HIDDEN[2] * N_pad)
    bytes_accessed = (xp.size * xp.dtype.itemsize + weight_bytes
                      + M_pad * N_pad * 4)
    cost = pl.CostEstimate(flops=flops, transcendentals=0,
                           bytes_accessed=bytes_accessed)

    y = pl.pallas_call(
        _fused_mlp_kernel,
        out_shape=jax.ShapeDtypeStruct((M_pad, N_pad), jnp.float32),
        grid_spec=pltpu.PrefetchScalarGridSpec(
            num_scalar_prefetch=0,
            grid=grid,
            in_specs=[
                pl.BlockSpec((tm, K1_pad), lambda i: (i, 0)),  # x batch tile
                resident(w1), resident(b1),
                resident(w2), resident(b2),
                resident(w3), resident(b3),
                resident(w4), resident(b4),
            ],
            out_specs=pl.BlockSpec((tm, N_pad), lambda i: (i, 0)),
        ),
        compiler_params=pltpu.CompilerParams(
            dimension_semantics=("parallel",),  # lets v7x split batch tiles over 2 TCs
            vmem_limit_bytes=vmem_limit),
        cost_estimate=cost,
    )(xp, w1, b1, w2, b2, w3, b3, w4, b4)

    # Strip batch / output-lane padding.
    return y[:M, :out_features]


class FinnEncoder:
    """JAX/Pallas port of the PyTorch FinnEncoder (Linear/ReLU MLP)."""

    HIDDEN = HIDDEN

    def __init__(self, input_size: int, output_size: int, key,
                 param_dtype=jnp.float32, compute_dtype=jnp.bfloat16):
        self.input_size = input_size
        self.output_size = output_size

        dims = [input_size, *self.HIDDEN, output_size]
        self.params = []
        for fan_in, fan_out in zip(dims[:-1], dims[1:]):
            key, kw, kb = jax.random.split(key, 3)
            bound = 1.0 / math.sqrt(fan_in)  # PyTorch nn.Linear default init range
            w = jax.random.uniform(kw, (fan_in, fan_out), param_dtype, -bound, bound)
            b = jax.random.uniform(kb, (fan_out,), param_dtype, -bound, bound)
            self.params.append((w, b))

        # Pre-pack once: pad input/output dims to lane multiples (hidden dims
        # 1024/2048/512 are already lane-aligned), cast weights to bf16 for the
        # MXU, keep biases in f32 for the f32 epilogue.
        k1_pad = _round_up(max(input_size, 128), 128)
        n_pad = _round_up(max(output_size, 128), 128)
        padded = [k1_pad, *self.HIDDEN, n_pad]
        self.packed = []
        for (w, b), d_in, d_out in zip(self.params, padded[:-1], padded[1:]):
            wp = jnp.zeros((d_in, d_out), compute_dtype)
            wp = wp.at[:w.shape[0], :w.shape[1]].set(w.astype(compute_dtype))
            bp = jnp.zeros((1, d_out), jnp.float32)
            bp = bp.at[0, :b.shape[0]].set(b.astype(jnp.float32))
            self.packed.append((wp, bp))

    def __call__(self, x):
        if x.ndim != 2 or x.shape[1] != self.input_size:
            raise ValueError(
                f"expected shape (*, {self.input_size}), got {tuple(x.shape)}")
        return finn_encoder_fused(x, self.packed, self.output_size)


if __name__ == "__main__":
    key = jax.random.PRNGKey(0)
    k_model, k_x = jax.random.split(key)

    B, INPUT_SIZE, OUTPUT_SIZE = 2, 32, 8  # batch, fingerprint length, flow length

    model = FinnEncoder(INPUT_SIZE, OUTPUT_SIZE, k_model)
    x = jax.random.normal(k_x, (B, INPUT_SIZE), dtype=jnp.float32)

    y = model(x)
    jax.block_until_ready(y)
    assert y.shape == (B, OUTPUT_SIZE), y.shape

    # Pure-JAX reference with the same numerics (bf16 MXU inputs, f32 accumulate,
    # f32 bias + ReLU) as the fused kernel.
    ref = x.astype(jnp.bfloat16)
    n_layers = len(model.params)
    for idx, (w, b) in enumerate(model.params):
        ref = jnp.dot(ref, w.astype(jnp.bfloat16),
                      preferred_element_type=jnp.float32) + b.astype(jnp.float32)
        if idx < n_layers - 1:
            ref = jnp.maximum(ref, 0.0).astype(jnp.bfloat16)
    assert jnp.allclose(y, ref, atol=2e-2, rtol=2e-2), (y, ref)

    print("KERNEL_OK")
</pallas_src>

<mosaic_0001>
module attributes {stable_mosaic.version = 11 : i64} {
  func.func @_fused_mlp_kernel(%arg0: i32, %arg1: memref<8x128xbf16, #tpu.memory_space<vmem>>, %arg2: memref<128x1024xbf16, #tpu.memory_space<vmem>>, %arg3: memref<1x1024xf32, #tpu.memory_space<vmem>>, %arg4: memref<1024x2048xbf16, #tpu.memory_space<vmem>>, %arg5: memref<1x2048xf32, #tpu.memory_space<vmem>>, %arg6: memref<2048x512xbf16, #tpu.memory_space<vmem>>, %arg7: memref<1x512xf32, #tpu.memory_space<vmem>>, %arg8: memref<512x128xbf16, #tpu.memory_space<vmem>>, %arg9: memref<1x128xf32, #tpu.memory_space<vmem>>, %arg10: memref<8x128xf32, #tpu.memory_space<vmem>>) attributes {dimension_semantics = [#tpu.dimension_semantics<parallel>], iteration_bounds = array<i64: 1>, scalar_prefetch = 0 : i64, scratch_operands = 0 : i64, tpu.core_type = #tpu.core_type<tc>, window_params = [{transform_indices = @transform_0, window_bounds = array<i64: 8, 128>}, {pipeline_mode = #tpu.pipeline_mode<synchronous>, transform_indices = @transform_1, window_bounds = array<i64: 128, 1024>}, {pipeline_mode = #tpu.pipeline_mode<synchronous>, transform_indices = @transform_2, window_bounds = array<i64: 1, 1024>}, {pipeline_mode = #tpu.pipeline_mode<synchronous>, transform_indices = @transform_3, window_bounds = array<i64: 1024, 2048>}, {pipeline_mode = #tpu.pipeline_mode<synchronous>, transform_indices = @transform_4, window_bounds = array<i64: 1, 2048>}, {pipeline_mode = #tpu.pipeline_mode<synchronous>, transform_indices = @transform_5, window_bounds = array<i64: 2048, 512>}, {pipeline_mode = #tpu.pipeline_mode<synchronous>, transform_indices = @transform_6, window_bounds = array<i64: 1, 512>}, {pipeline_mode = #tpu.pipeline_mode<synchronous>, transform_indices = @transform_7, window_bounds = array<i64: 512, 128>}, {pipeline_mode = #tpu.pipeline_mode<synchronous>, transform_indices = @transform_8, window_bounds = array<i64: 1, 128>}, {transform_indices = @transform_9, window_bounds = array<i64: 8, 128>}]} {
    %c0 = arith.constant 0 : index
    %c0_0 = arith.constant 0 : index
    %0 = vector.load %arg1[%c0, %c0_0] : memref<8x128xbf16, #tpu.memory_space<vmem>>, vector<8x128xbf16>
    %c0_1 = arith.constant 0 : index
    %c0_2 = arith.constant 0 : index
    %1 = vector.load %arg2[%c0_1, %c0_2] : memref<128x1024xbf16, #tpu.memory_space<vmem>>, vector<128x1024xbf16>
    %cst = arith.constant dense<0.000000e+00> : vector<8x1024xf32>
    %2 = tpu.matmul %0, %1, %cst {dimension_numbers = #tpu.dot_dimension_numbers<[1], [0], [0], [1], [0, 0, 1, 1], [], []>} : vector<8x128xbf16>, vector<128x1024xbf16>, vector<8x1024xf32> -> vector<8x1024xf32>
    %c0_3 = arith.constant 0 : index
    %c0_4 = arith.constant 0 : index
    %3 = vector.load %arg3[%c0_3, %c0_4] : memref<1x1024xf32, #tpu.memory_space<vmem>>, vector<1x1024xf32>
    %4 = vector.broadcast %3 : vector<1x1024xf32> to vector<8x1024xf32>
    %5 = arith.addf %2, %4 : vector<8x1024xf32>
    %cst_5 = arith.constant 0.000000e+00 : f32
    %6 = vector.broadcast %cst_5 : f32 to vector<8x1024xf32>
    %7 = arith.maximumf %5, %6 : vector<8x1024xf32>
    %8 = arith.truncf %7 : vector<8x1024xf32> to vector<8x1024xbf16>
    %c0_6 = arith.constant 0 : index
    %c0_7 = arith.constant 0 : index
    %9 = vector.load %arg4[%c0_6, %c0_7] : memref<1024x2048xbf16, #tpu.memory_space<vmem>>, vector<1024x2048xbf16>
    %cst_8 = arith.constant dense<0.000000e+00> : vector<8x2048xf32>
    %10 = tpu.matmul %8, %9, %cst_8 {dimension_numbers = #tpu.dot_dimension_numbers<[1], [0], [0], [1], [0, 0, 1, 1], [], []>} : vector<8x1024xbf16>, vector<1024x2048xbf16>, vector<8x2048xf32> -> vector<8x2048xf32>
    %c0_9 = arith.constant 0 : index
    %c0_10 = arith.constant 0 : index
    %11 = vector.load %arg5[%c0_9, %c0_10] : memref<1x2048xf32, #tpu.memory_space<vmem>>, vector<1x2048xf32>
    %12 = vector.broadcast %11 : vector<1x2048xf32> to vector<8x2048xf32>
    %13 = arith.addf %10, %12 : vector<8x2048xf32>
    %cst_11 = arith.constant 0.000000e+00 : f32
    %14 = vector.broadcast %cst_11 : f32 to vector<8x2048xf32>
    %15 = arith.maximumf %13, %14 : vector<8x2048xf32>
    %16 = arith.truncf %15 : vector<8x2048xf32> to vector<8x2048xbf16>
    %c0_12 = arith.constant 0 : index
    %c0_13 = arith.constant 0 : index
    %17 = vector.load %arg6[%c0_12, %c0_13] : memref<2048x512xbf16, #tpu.memory_space<vmem>>, vector<2048x512xbf16>
    %cst_14 = arith.constant dense<0.000000e+00> : vector<8x512xf32>
    %18 = tpu.matmul %16, %17, %cst_14 {dimension_numbers = #tpu.dot_dimension_numbers<[1], [0], [0], [1], [0, 0, 1, 1], [], []>} : vector<8x2048xbf16>, vector<2048x512xbf16>, vector<8x512xf32> -> vector<8x512xf32>
    %c0_15 = arith.constant 0 : index
    %c0_16 = arith.constant 0 : index
    %19 = vector.load %arg7[%c0_15, %c0_16] : memref<1x512xf32, #tpu.memory_space<vmem>>, vector<1x512xf32>
    %20 = vector.broadcast %19 : vector<1x512xf32> to vector<8x512xf32>
    %21 = arith.addf %18, %20 : vector<8x512xf32>
    %cst_17 = arith.constant 0.000000e+00 : f32
    %22 = vector.broadcast %cst_17 : f32 to vector<8x512xf32>
    %23 = arith.maximumf %21, %22 : vector<8x512xf32>
    %24 = arith.truncf %23 : vector<8x512xf32> to vector<8x512xbf16>
    %c0_18 = arith.constant 0 : index
    %c0_19 = arith.constant 0 : index
    %25 = vector.load %arg8[%c0_18, %c0_19] : memref<512x128xbf16, #tpu.memory_space<vmem>>, vector<512x128xbf16>
    %cst_20 = arith.constant dense<0.000000e+00> : vector<8x128xf32>
    %26 = tpu.matmul %24, %25, %cst_20 {dimension_numbers = #tpu.dot_dimension_numbers<[1], [0], [0], [1], [0, 0, 1, 1], [], []>} : vector<8x512xbf16>, vector<512x128xbf16>, vector<8x128xf32> -> vector<8x128xf32>
    %c0_21 = arith.constant 0 : index
    %c0_22 = arith.constant 0 : index
    %27 = vector.load %arg9[%c0_21, %c0_22] : memref<1x128xf32, #tpu.memory_space<vmem>>, vector<1x128xf32>
    %28 = vector.broadcast %27 : vector<1x128xf32> to vector<8x128xf32>
    %29 = arith.addf %26, %28 : vector<8x128xf32>
    %c0_23 = arith.constant 0 : index
    %c0_24 = arith.constant 0 : index
    %30 = vector.load %arg10[%c0_23, %c0_24] : memref<8x128xf32, #tpu.memory_space<vmem>>, vector<8x128xf32>
    tpu.vector_store %arg10[%c0_23, %c0_24], %29 {strides = array<i32>} : memref<8x128xf32, #tpu.memory_space<vmem>>, vector<8x128xf32>,
    return
  }
  func.func @transform_0(%arg0: i32) -> (i32, i32) {
    %c0_i32 = arith.constant 0 : i32
    %c0_i32_0 = arith.constant 0 : i32
    return %arg0, %c0_i32 : i32, i32
  }
  func.func @transform_1(%arg0: i32) -> (i32, i32) {
    %c0_i32 = arith.constant 0 : i32
    %c0_i32_0 = arith.constant 0 : i32
    %c0_i32_1 = arith.constant 0 : i32
    return %c0_i32, %c0_i32_0 : i32, i32
  }
  func.func @transform_2(%arg0: i32) -> (i32, i32) {
    %c0_i32 = arith.constant 0 : i32
    %c0_i32_0 = arith.constant 0 : i32
    %c0_i32_1 = arith.constant 0 : i32
    return %c0_i32, %c0_i32_0 : i32, i32
  }
  func.func @transform_3(%arg0: i32) -> (i32, i32) {
    %c0_i32 = arith.constant 0 : i32
    %c0_i32_0 = arith.constant 0 : i32
    %c0_i32_1 = arith.constant 0 : i32
    return %c0_i32, %c0_i32_0 : i32, i32
  }
  func.func @transform_4(%arg0: i32) -> (i32, i32) {
    %c0_i32 = arith.constant 0 : i32
    %c0_i32_0 = arith.constant 0 : i32
    %c0_i32_1 = arith.constant 0 : i32
    return %c0_i32, %c0_i32_0 : i32, i32
  }
  func.func @transform_5(%arg0: i32) -> (i32, i32) {
    %c0_i32 = arith.constant 0 : i32
    %c0_i32_0 = arith.constant 0 : i32
    %c0_i32_1 = arith.constant 0 : i32
    return %c0_i32, %c0_i32_0 : i32, i32
  }
  func.func @transform_6(%arg0: i32) -> (i32, i32) {
    %c0_i32 = arith.constant 0 : i32
    %c0_i32_0 = arith.constant 0 : i32
    %c0_i32_1 = arith.constant 0 : i32
    return %c0_i32, %c0_i32_0 : i32, i32
  }
  func.func @transform_7(%arg0: i32) -> (i32, i32) {
    %c0_i32 = arith.constant 0 : i32
    %c0_i32_0 = arith.constant 0 : i32
    %c0_i32_1 = arith.constant 0 : i32
    return %c0_i32, %c0_i32_0 : i32, i32
  }
  func.func @transform_8(%arg0: i32) -> (i32, i32) {
    %c0_i32 = arith.constant 0 : i32
    %c0_i32_0 = arith.constant 0 : i32
    %c0_i32_1 = arith.constant 0 : i32
    return %c0_i32, %c0_i32_0 : i32, i32
  }
  func.func @transform_9(%arg0: i32) -> (i32, i32) {
    %c0_i32 = arith.constant 0 : i32
    %c0_i32_0 = arith.constant 0 : i32
    return %arg0, %c0_i32 : i32, i32
  }
}

</mosaic_0001>

<bundles_post_ra>
// kernel: tpu_custom_call.1
= control target key start
LH: loop header
LB: loop body
LE: loop exit
PB: predicated region body
PF: predicated region fallthrough
CT: control target
= control target key end

     0   :  { %14 = vsyncpa [#allocation3], 0  ;;  %s15776_s0 = inlined_call_operand.hbm [shape: bf16[8,128], index: 0, kind: input, shape index: {}]   ;;  %s15777_s1 = inlined_call_operand.hbm [shape: bf16[128,1024], index: 1, kind: input, shape index: {}]   ;;  %s15778_s2 = inlined_call_operand.hbm [shape: f32[1,1024], index: 2, kind: input, shape index: {}]   ;;  %s15779_s3 = inlined_call_operand.hbm [shape: bf16[1024,2048], index: 3, kind: input, shape index: {}]   ;;  %s15780_s4 = inlined_call_operand.hbm [shape: f32[1,2048], index: 4, kind: input, shape index: {}]   ;;  %s15781_s5 = inlined_call_operand.hbm [shape: bf16[2048,512], index: 5, kind: input, shape index: {}]   ;;  %s15782_s6 = inlined_call_operand.hbm [shape: f32[1,512], index: 6, kind: input, shape index: {}]   ;;  %s15783_s7 = inlined_call_operand.hbm [shape: bf16[512,128], index: 7, kind: input, shape index: {}]   ;;  %s15784_s8 = inlined_call_operand.hbm [shape: f32[1,128], index: 8, kind: input, shape index: {}]   ;;  %s15785_s9 = inlined_call_operand.hbm [shape: f32[8,128], index: 9, kind: output, shape index: {}]  }
   0x1   :  { %15 = vsyncpa [#allocation6], 0 }
   0x2   :  { %16 = vsyncpa [#allocation9], 0 }
   0x3   :  { %17 = vsyncpa [#allocation12], 0 }
   0x4   :  { %18 = vsyncpa [#allocation15], 0 }
   0x5   :  { %19 = vsyncpa [#allocation4], 0  ;;  %s15348_s30 = smov [#allocation5]   ;;  %s15116_s13 = scalar_lea.hbm %s15777_s1, 8192 }
   0x6   :  { %s35_s10 = sshll.u32 %s15348_s30, 4  ;;  %p15117_p0 = scmp.ne.s32.totalorder %s15777_s1, %s15116_s13  ;;  %s36_s10 = int_to_ptr.vmem [resolvable:$true] %s35_s10 }
   0x7   :  { %p15120_p1 = scmp.lt.u32.totalorder %s15116_s13, %s15777_s1 }
   0x9   :  { %p15122_p2 = pnand %p15120_p1, %p15117_p0 }
   0xb   :  { %15125 = shalt.err (!%p15122_p2)
}
   0xc   :  { %s15126_s18 = scalar_lea.vmem %s36_s10, 8192  ;;  %p15131_p4 = scmp.lt.s32.totalorder %s36_s10, %s36_s10 }
   0xd   :  { %p15127_p3 = scmp.ne.s32.totalorder %s36_s10, %s15126_s18  ;;  %p15132_p5 = scmp.lt.s32.totalorder %s15126_s18, %s15126_s18 }
   0xf   :  { %p15133_p6 = por %p15132_p5, %p15131_p4 }
  0x11   :  { %p15134_p7 = pnand %p15133_p6, %p15127_p3 }
  0x13   :  { %15137 = shalt.err (!%p15134_p7)
}
  0x14   :  { %s15349_s19 = smov 512   ;;  %s15350_s20 = smov 32  }
  0x15   :  { %41 = dma.hbm_to_vmem [thread:$0]  %s15777_s1, 8192, %s36_s10, [#allocation6], %s15349_s19, %s15349_s19, %s15350_s20  }
  0x16   :  { %s15351_s23 = smov [#allocation8]   ;;  %s15138_s27 = scalar_lea.hbm %s15779_s3, 131072 }
  0x17   :  { %s57_s24 = sshll.u32 %s15351_s23, 4  ;;  %p15139_p8 = scmp.ne.s32.totalorder %s15779_s3, %s15138_s27  ;;  %s58_s24 = int_to_ptr.vmem [resolvable:$true] %s57_s24 }
  0x18   :  { %p15142_p9 = scmp.lt.u32.totalorder %s15138_s27, %s15779_s3 }
  0x1a   :  { %p15144_p10 = pnand %p15142_p9, %p15139_p8 }
  0x1c   :  { %15147 = shalt.err (!%p15144_p10)
}
  0x1d   :  { %s15148_s12 = scalar_lea.vmem %s58_s24, 131072  ;;  %p15153_p12 = scmp.lt.s32.totalorder %s58_s24, %s58_s24 }
  0x1e   :  { %p15149_p11 = scmp.ne.s32.totalorder %s58_s24, %s15148_s12  ;;  %p15154_p13 = scmp.lt.s32.totalorder %s15148_s12, %s15148_s12 }
  0x20   :  { %p15155_p0 = por %p15154_p13, %p15153_p12 }
  0x22   :  { %p15156_p1 = pnand %p15155_p0, %p15149_p11 }
  0x24   :  { %15159 = shalt.err (!%p15156_p1)
}
  0x25   :  { %s15352_s1 = smov 1024   ;;  %s15353_s10 = smov 64  }
  0x26   :  { %63 = dma.hbm_to_vmem [thread:$0]  %s15779_s3, 131072, %s58_s24, [#allocation9], %s15352_s1, %s15352_s1, %s15353_s10  }
  0x27   :  { %s15354_s15 = smov [#allocation11]   ;;  %s15160_s19 = scalar_lea.hbm %s15781_s5, 65536 }
  0x28   :  { %s79_s16 = sshll.u32 %s15354_s15, 4  ;;  %p15161_p2 = scmp.ne.s32.totalorder %s15781_s5, %s15160_s19  ;;  %s80_s16 = int_to_ptr.vmem [resolvable:$true] %s79_s16 }
  0x29   :  { %p15164_p3 = scmp.lt.u32.totalorder %s15160_s19, %s15781_s5 }
  0x2b   :  { %p15166_p4 = pnand %p15164_p3, %p15161_p2 }
  0x2d   :  { %15169 = shalt.err (!%p15166_p4)
}
  0x2e   :  { %s15170_s25 = scalar_lea.vmem %s80_s16, 65536  ;;  %p15175_p6 = scmp.lt.s32.totalorder %s80_s16, %s80_s16 }
  0x2f   :  { %p15171_p5 = scmp.ne.s32.totalorder %s80_s16, %s15170_s25  ;;  %p15176_p7 = scmp.lt.s32.totalorder %s15170_s25, %s15170_s25 }
  0x31   :  { %p15177_p8 = por %p15176_p7, %p15175_p6 }
  0x33   :  { %p15178_p9 = pnand %p15177_p8, %p15171_p5 }
  0x35   :  { %15181 = shalt.err (!%p15178_p9)
}
  0x36   :  { %s15355_s3 = smov 256   ;;  %s15356_s24 = smov 16  }
  0x37   :  { %85 = dma.hbm_to_vmem [thread:$0]  %s15781_s5, 65536, %s80_s16, [#allocation12], %s15355_s3, %s15355_s3, %s15356_s24  }
  0x38   :  { %s15357_s28 = smov [#allocation14]   ;;  %s15182_s12 = scalar_lea.hbm %s15783_s7, 4096 }
  0x39   :  { %s101_s29 = sshll.u32 %s15357_s28, 4  ;;  %p15183_p10 = scmp.ne.s32.totalorder %s15783_s7, %s15182_s12  ;;  %s102_s29 = int_to_ptr.vmem [resolvable:$true] %s101_s29 }
  0x3a   :  { %p15186_p11 = scmp.lt.u32.totalorder %s15182_s12, %s15783_s7 }
  0x3c   :  { %p15188_p12 = pnand %p15186_p11, %p15183_p10 }
  0x3e   :  { %15191 = shalt.err (!%p15188_p12)
}
  0x3f   :  { %s15192_s17 = scalar_lea.vmem %s102_s29, 4096  ;;  %p15197_p0 = scmp.lt.s32.totalorder %s102_s29, %s102_s29 }
  0x40   :  { %p15193_p13 = scmp.ne.s32.totalorder %s102_s29, %s15192_s17  ;;  %p15198_p1 = scmp.lt.s32.totalorder %s15192_s17, %s15192_s17 }
  0x42   :  { %p15199_p2 = por %p15198_p1, %p15197_p0 }
  0x44   :  { %p15200_p3 = pnand %p15199_p2, %p15193_p13 }
  0x46   :  { %15203 = shalt.err (!%p15200_p3)
}
  0x47   :  { %s15358_s5 = smov 4   ;;  %s15359_s19 = smov [#allocation2]  }
  0x48   :  { %107 = dma.hbm_to_vmem [thread:$0]  %s15783_s7, 4096, %s102_s29, [#allocation15], %s15353_s10, %s15353_s10, %s15358_s5  }
  0x49   :  { %s26_s20 = sshll.u32 %s15359_s19, 4  ;;  %s15360_s21 = smov [#allocation7]   ;;  %s27_s20 = int_to_ptr.vmem [resolvable:$true] %s26_s20 }
  0x4a   :  { %s48_s22 = sshll.u32 %s15360_s21, 4  ;;  %s15204_s3 = scalar_lea.hbm %s15776_s0, 64  ;;  %s49_s22 = int_to_ptr.vmem [resolvable:$true] %s48_s22 }
  0x4b   :  { %p15205_p4 = scmp.ne.s32.totalorder %s15776_s0, %s15204_s3  ;;  %p15208_p5 = scmp.lt.u32.totalorder %s15204_s3, %s15776_s0 }
  0x4d   :  { %p15210_p6 = pnand %p15208_p5, %p15205_p4 }
  0x4f   :  { %15213 = shalt.err (!%p15210_p6)
}
  0x50   :  { %s15214_s7 = scalar_lea.vmem %s27_s20, 64  ;;  %p15219_p8 = scmp.lt.s32.totalorder %s27_s20, %s27_s20 }
  0x51   :  { %p15215_p7 = scmp.ne.s32.totalorder %s27_s20, %s15214_s7  ;;  %p15220_p9 = scmp.lt.s32.totalorder %s15214_s7, %s15214_s7 }
  0x53   :  { %p15221_p10 = por %p15220_p9, %p15219_p8 }
  0x55   :  { %p15222_p11 = pnand %p15221_p10, %p15215_p7 }
  0x57   :  { %15225 = shalt.err (!%p15222_p11)
}
  0x58   :  { %29 = dma.hbm_to_vmem [thread:$0]  %s15776_s0, 64, %s27_s20, [#allocation3]  }
  0x59   :  { %s15226_s12 = scalar_lea.hbm %s15778_s2, 128 }
  0x5a   :  { %p15227_p12 = scmp.ne.s32.totalorder %s15778_s2, %s15226_s12  ;;  %p15230_p13 = scmp.lt.u32.totalorder %s15226_s12, %s15778_s2 }
  0x5c   :  { %p15232_p0 = pnand %p15230_p13, %p15227_p12 }
  0x5e   :  { %15235 = shalt.err (!%p15232_p0)
}
  0x5f   :  { %s15236_s17 = scalar_lea.vmem %s49_s22, 128  ;;  %p15241_p2 = scmp.lt.s32.totalorder %s49_s22, %s49_s22 }
  0x60   :  { %p15237_p1 = scmp.ne.s32.totalorder %s49_s22, %s15236_s17  ;;  %p15242_p3 = scmp.lt.s32.totalorder %s15236_s17, %s15236_s17 }
  0x62   :  { %p15243_p4 = por %p15242_p3, %p15241_p2 }
  0x64   :  { %p15244_p5 = pnand %p15243_p4, %p15237_p1 }
  0x66   :  { %15247 = shalt.err (!%p15244_p5)
}
  0x67   :  { %51 = dma.hbm_to_vmem [thread:$0]  %s15778_s2, 128, %s49_s22, [#allocation6]  }
  0x68   :  { %s15361_s16 = smov [#allocation10]   ;;  %s15362_s19 = smov [#allocation13]  }
  0x69   :  { %s70_s18 = sshll.u32 %s15361_s16, 4  ;;  %s92_s20 = sshll.u32 %s15362_s19, 4  ;;  %s71_s18 = int_to_ptr.vmem [resolvable:$true] %s70_s18  ;;  %s93_s20 = int_to_ptr.vmem [resolvable:$true] %s92_s20 }
  0x6a   :  { %s15248_s25 = scalar_lea.hbm %s15780_s4, 256 }
  0x6b   :  { %p15249_p6 = scmp.ne.s32.totalorder %s15780_s4, %s15248_s25  ;;  %p15252_p7 = scmp.lt.u32.totalorder %s15248_s25, %s15780_s4 }
  0x6d   :  { %p15254_p8 = pnand %p15252_p7, %p15249_p6 }
  0x6f   :  { %15257 = shalt.err (!%p15254_p8)
}
  0x70   :  { %s15258_s2 = scalar_lea.vmem %s71_s18, 256  ;;  %p15263_p10 = scmp.lt.s32.totalorder %s71_s18, %s71_s18 }
  0x71   :  { %p15259_p9 = scmp.ne.s32.totalorder %s71_s18, %s15258_s2  ;;  %p15264_p11 = scmp.lt.s32.totalorder %s15258_s2, %s15258_s2 }
  0x73   :  { %p15265_p12 = por %p15264_p11, %p15263_p10 }
  0x75   :  { %p15266_p13 = pnand %p15265_p12, %p15259_p9 }
  0x77   :  { %15269 = shalt.err (!%p15266_p13)
}
  0x78   :  { %73 = dma.hbm_to_vmem [thread:$0]  %s15780_s4, 256, %s71_s18, [#allocation9]  }
  0x79   :  { %s15270_s29 = scalar_lea.hbm %s15782_s6, 64 }
  0x7a   :  { %p15271_p0 = scmp.ne.s32.totalorder %s15782_s6, %s15270_s29  ;;  %p15274_p1 = scmp.lt.u32.totalorder %s15270_s29, %s15782_s6 }
  0x7c   :  { %p15276_p2 = pnand %p15274_p1, %p15271_p0 }
  0x7e   :  { %15279 = shalt.err (!%p15276_p2)
}
  0x7f   :  { %s15280_s13 = scalar_lea.vmem %s93_s20, 64  ;;  %p15285_p4 = scmp.lt.s32.totalorder %s93_s20, %s93_s20 }
  0x80   :  { %p15281_p3 = scmp.ne.s32.totalorder %s93_s20, %s15280_s13  ;;  %p15286_p5 = scmp.lt.s32.totalorder %s15280_s13, %s15280_s13 }
  0x82   :  { %p15287_p6 = por %p15286_p5, %p15285_p4 }
  0x84   :  { %p15288_p7 = pnand %p15287_p6, %p15281_p3 }
  0x86   :  { %15291 = shalt.err (!%p15288_p7)
}
  0x87   :  { %95 = dma.hbm_to_vmem [thread:$0]  %s15782_s6, 64, %s93_s20, [#allocation12]  }
  0x88   :  { %s15363_s15 = smov [#allocation16]   ;;  %s15292_s16 = scalar_lea.hbm %s15784_s8, 16 }
  0x89   :  { %s114_s17 = sshll.u32 %s15363_s15, 4  ;;  %p15293_p8 = scmp.ne.s32.totalorder %s15784_s8, %s15292_s16  ;;  %s115_s17 = int_to_ptr.vmem [resolvable:$true] %s114_s17 }
  0x8a   :  { %p15296_p9 = scmp.lt.u32.totalorder %s15292_s16, %s15784_s8 }
  0x8c   :  { %p15298_p10 = pnand %p15296_p9, %p15293_p8 }
  0x8e   :  { %15301 = shalt.err (!%p15298_p10)
}
  0x8f   :  { %s15302_s25 = scalar_lea.vmem %s115_s17, 16  ;;  %s15306_s6 = scalar_lea.vmem %s115_s17, 32 }
  0x90   :  { %p15303_p11 = scmp.ne.s32.totalorder %s115_s17, %s15302_s25  ;;  %p15307_p12 = scmp.lt.s32.totalorder %s115_s17, %s115_s17 }
  0x91   :  { %p15308_p13 = scmp.lt.s32.totalorder %s15306_s6, %s15302_s25 }
  0x93   :  { %p15309_p0 = por %p15308_p13, %p15307_p12 }
  0x95   :  { %p15310_p1 = pnand %p15309_p0, %p15303_p11 }
  0x97   :  { %15313 = shalt.err (!%p15310_p1)
}
  0x98   :  { %117 = dma.hbm_to_vmem [thread:$0]  %s15784_s8, 16, %s115_s17, [#allocation15]  }
  0x99   :  { %15336 = dma.done.wait [#allocation3], 64  }
  0x9a   :  { %15337 = vsyncadd [#allocation3], 4294967232 }
  0x9b   :  { %15338 = dma.done.wait [#allocation6], 8320  }
  0x9c   :  { %15339 = vsyncadd [#allocation6], 4294958976 }
  0x9d   :  { %15340 = dma.done.wait [#allocation9], 131328  }
  0x9e   :  { %15341 = vsyncadd [#allocation9], 4294835968 }
  0x9f   :  { %15342 = dma.done.wait [#allocation12], 65600  }
  0xa0   :  { %15343 = vsyncadd [#allocation12], 4294901696 }
  0xa1   :  { %15344 = dma.done.wait [#allocation15], 4112  }
  0xa2   :  { %15345 = vsyncadd [#allocation15], 4294963184  ;;  %v15364_v0 = vmov 0   ;;  %v147_v1 = vld [vmem:[#allocation5] sm:$0xff]  ;;  %v148_v14 = vld [vmem:[#allocation5 + $0x8] sm:$0xff]  ;;  %s15365_s8 = smov [#allocation17]  }
  0xa3   :  { %605 = vmatprep.mubr.bf16.mxu0 %v15364_v0  ;;  %646 = vmatprep.mubr.bf16.mxu1 %v15364_v0  ;;  %v151_v2 = vld [vmem:[#allocation5 + $0x20] sm:$0xff]  ;;  %v152_v15 = vld [vmem:[#allocation5 + $0x28] sm:$0xff]  ;;  %v149_v58 = vld [vmem:[#allocation5 + $0x10] sm:$0xff]  ;;  %s12433_s24 = sshll.u32 %s15365_s8, 4  ;;  %s12434_s24 = int_to_ptr.vmem [resolvable:$true] %s12433_s24 }
  0xa4   :  { %v155_v3 = vld [vmem:[#allocation5 + $0x40] sm:$0xff]  ;;  %v12447_v4 = vcombine.high %v147_v1, %v151_v2  ;;  %v12446_v5 = vcombine.low %v147_v1, %v151_v2  ;;  %v156_v16 = vld [vmem:[#allocation5 + $0x48] sm:$0xff]  ;;  %v12449_v18 = vcombine.high %v148_v14, %v152_v15  ;;  %v12448_v19 = vcombine.low %v148_v14, %v152_v15  ;;  %v153_v59 = vld [vmem:[#allocation5 + $0x30] sm:$0xff]  ;;  %s15314_s26 = scalar_lea.vmem %s12434_s24, 128  ;;  %p15319_p3 = scmp.lt.s32.totalorder %s12434_s24, %s12434_s24 }
  0xa5   :  { %v159_v6 = vld [vmem:[#allocation5 + $0x60] sm:$0xff]  ;;  %v160_v17 = vld [vmem:[#allocation5 + $0x68] sm:$0xff]  ;;  %v12451_v1 = vcombine.high %v149_v58, %v153_v59  ;;  %p15315_p2 = scmp.ne.s32.totalorder %s12434_s24, %s15314_s26  ;;  %p15320_p4 = scmp.lt.s32.totalorder %s15314_s26, %s15314_s26 }
  0xa6   :  { %v12455_v7 = vcombine.high %v155_v3, %v159_v6  ;;  %v163_v8 = vld [vmem:[#allocation5 + $0x80] sm:$0xff]  ;;  %573 = vmatprep.subr.bf16.mxu0 %v12447_v4  ;;  %v12454_v10 = vcombine.low %v155_v3, %v159_v6  ;;  %v12457_v20 = vcombine.high %v156_v16, %v160_v17  ;;  %v164_v22 = vld [vmem:[#allocation5 + $0x88] sm:$0xff]  ;;  %614 = vmatprep.subr.bf16.mxu1 %v12449_v18  ;;  %v157_v3 = vld [vmem:[#allocation5 + $0x50] sm:$0xff] }
  0xa7   :  { %v167_v9 = vld [vmem:[#allocation5 + $0xa0] sm:$0xff]  ;;  %574 = vmatpush1.bf16.msra.mxu0 %v12446_v5  ;;  %v168_v23 = vld [vmem:[#allocation5 + $0xa8] sm:$0xff]  ;;  %615 = vmatpush1.bf16.msra.mxu1 %v12448_v19  ;;  %v12456_v27 = vcombine.low %v156_v16, %v160_v17  ;;  %v161_v4 = vld [vmem:[#allocation5 + $0x70] sm:$0xff]  ;;  %p15321_p5 = por %p15320_p4, %p15319_p3 }
  0xa8   :  { %575 = vmatprep.subr.bf16.mxu0 %v12455_v7  ;;  %v12463_v11 = vcombine.high %v163_v8, %v167_v9  ;;  %v171_v12 = vld [vmem:[#allocation5 + $0xc0] sm:$0xff]  ;;  %v12462_v21 = vcombine.low %v163_v8, %v167_v9  ;;  %616 = vmatprep.subr.bf16.mxu1 %v12457_v20  ;;  %v12465_v28 = vcombine.high %v164_v22, %v168_v23  ;;  %v172_v30 = vld [vmem:[#allocation5 + $0xc8] sm:$0xff]  ;;  %v15529_v6 = vld [vmem:[#allocation2] sm:$0xf] }
  0xa9   :  { %v175_v13 = vld [vmem:[#allocation5 + $0xe0] sm:$0xff]  ;;  %v176_v31 = vld [vmem:[#allocation5 + $0xe8] sm:$0xff]  ;;  %v12464_v35 = vcombine.low %v164_v22, %v168_v23  ;;  %v12450_v7 = vcombine.low %v149_v58, %v153_v59  ;;  %v150_v8 = vld [vmem:[#allocation5 + $0x18] sm:$0xff]  ;;  %v12458_v15 = vcombine.low %v157_v3, %v161_v4  ;;  %p15322_p6 = pnand %p15321_p5, %p15315_p2 }
  0xaa   :  { %v12471_v24 = vcombine.high %v171_v12, %v175_v13  ;;  %v179_v25 = vld [vmem:[#allocation5 + $0x100] sm:$0xff]  ;;  %v12470_v29 = vcombine.low %v171_v12, %v175_v13  ;;  %v12473_v36 = vcombine.high %v172_v30, %v176_v31  ;;  %v180_v38 = vld [vmem:[#allocation5 + $0x108] sm:$0xff]  ;;  %v12472_v43 = vcombine.low %v172_v30, %v176_v31  ;;  %v154_v9 = vld [vmem:[#allocation5 + $0x38] sm:$0xff] }
  0xab   :  { %576 = vmatpush1.bf16.msra.mxu0 %v12454_v10  ;;  %v183_v26 = vld [vmem:[#allocation5 + $0x120] sm:$0xff]  ;;  %617 = vmatpush1.bf16.msra.mxu1 %v12456_v27  ;;  %v184_v39 = vld [vmem:[#allocation5 + $0x128] sm:$0xff]  ;;  %v12459_v10 = vcombine.high %v157_v3, %v161_v4  ;;  %v165_v12 = vld [vmem:[#allocation5 + $0x90] sm:$0xff]  ;;  %v12453_v14 = vcombine.high %v150_v8, %v154_v9 }
  0xac   :  { %577 = vmatprep.subr.bf16.mxu0 %v12463_v11  ;;  %v12479_v32 = vcombine.high %v179_v25, %v183_v26  ;;  %v187_v33 = vld [vmem:[#allocation5 + $0x140] sm:$0xff]  ;;  %618 = vmatprep.subr.bf16.mxu1 %v12465_v28  ;;  %v12478_v37 = vcombine.low %v179_v25, %v183_v26  ;;  %v12481_v44 = vcombine.high %v180_v38, %v184_v39  ;;  %v188_v46 = vld [vmem:[#allocation5 + $0x148] sm:$0xff]  ;;  %v169_v13 = vld [vmem:[#allocation5 + $0xb0] sm:$0xff] }
  0xad   :  { %v191_v34 = vld [vmem:[#allocation5 + $0x160] sm:$0xff]  ;;  %v192_v47 = vld [vmem:[#allocation5 + $0x168] sm:$0xff]  ;;  %v12480_v51 = vcombine.low %v180_v38, %v184_v39  ;;  %v158_v16 = vld [vmem:[#allocation5 + $0x58] sm:$0xff]  ;;  %v12467_v18 = vcombine.high %v165_v12, %v169_v13  ;;  %v12466_v23 = vcombine.low %v165_v12, %v169_v13 }
  0xae   :  { %v12487_v40 = vcombine.high %v187_v33, %v191_v34  ;;  %v195_v41 = vld [vmem:[#allocation5 + $0x180] sm:$0xff]  ;;  %v12486_v45 = vcombine.low %v187_v33, %v191_v34  ;;  %v12489_v52 = vcombine.high %v188_v46, %v192_v47  ;;  %v196_v54 = vld [vmem:[#allocation5 + $0x188] sm:$0xff]  ;;  %v12488_v57 = vcombine.low %v188_v46, %v192_v47  ;;  %v162_v17 = vld [vmem:[#allocation5 + $0x78] sm:$0xff] }
  0xaf   :  { %578 = vmatpush1.bf16.msra.mxu0 %v12462_v21  ;;  %v199_v42 = vld [vmem:[#allocation5 + $0x1a0] sm:$0xff]  ;;  %619 = vmatpush1.bf16.msra.mxu1 %v12464_v35  ;;  %v200_v55 = vld [vmem:[#allocation5 + $0x1a8] sm:$0xff]  ;;  %v173_v19 = vld [vmem:[#allocation5 + $0xd0] sm:$0xff]  ;;  %v12452_v21 = vcombine.low %v150_v8, %v154_v9  ;;  %v12461_v22 = vcombine.high %v158_v16, %v162_v17 }
  0xb0   :  { %579 = vmatprep.subr.bf16.mxu0 %v12471_v24  ;;  %620 = vmatprep.subr.bf16.mxu1 %v12473_v36  ;;  %v12495_v48 = vcombine.high %v195_v41, %v199_v42  ;;  %v203_v49 = vld [vmem:[#allocation5 + $0x1c0] sm:$0xff]  ;;  %v12494_v53 = vcombine.low %v195_v41, %v199_v42  ;;  %v12497_v60 = vcombine.high %v196_v54, %v200_v55  ;;  %v204_v62 = vld [vmem:[#allocation5 + $0x1c8] sm:$0xff]  ;;  %v177_v20 = vld [vmem:[#allocation5 + $0xf0] sm:$0xff] }
  0xb1   :  { %v207_v50 = vld [vmem:[#allocation5 + $0x1e0] sm:$0xff]  ;;  %v208_v63 = vld [vmem:[#allocation5 + $0x1e8] sm:$0xff]  ;;  %v12496_v2 = vcombine.low %v196_v54, %v200_v55  ;;  %v181_v24 = vld [vmem:[#allocation5 + $0x110] sm:$0xff]  ;;  %v12475_v28 = vcombine.high %v173_v19, %v177_v20  ;;  %v12474_v33 = vcombine.low %v173_v19, %v177_v20 }
  0xb2   :  { %v12503_v56 = vcombine.high %v203_v49, %v207_v50  ;;  %v12502_v61 = vcombine.low %v203_v49, %v207_v50  ;;  %v12505_v5 = vcombine.high %v204_v62, %v208_v63  ;;  %v12504_v11 = vcombine.low %v204_v62, %v208_v63  ;;  %v185_v25 = vld [vmem:[#allocation5 + $0x130] sm:$0xff]  ;;  %v166_v26 = vld [vmem:[#allocation5 + $0x98] sm:$0xff]  ;;  %v761_v58 = vld [vmem:[#allocation8 + $0x40] sm:$0xff] }
  0xb3   :  { %580 = vmatpush1.bf16.msra.mxu0 %v12470_v29  ;;  %621 = vmatpush1.bf16.msra.mxu1 %v12472_v43  ;;  %v170_v27 = vld [vmem:[#allocation5 + $0xb8] sm:$0xff]  ;;  %v12460_v29 = vcombine.low %v158_v16, %v162_v17  ;;  %v189_v34 = vld [vmem:[#allocation5 + $0x150] sm:$0xff]  ;;  %v12483_v36 = vcombine.high %v181_v24, %v185_v25  ;;  %v12482_v41 = vcombine.low %v181_v24, %v185_v25  ;;  %v777_v3 = vld [vmem:[#allocation8 + $0xc0] sm:$0xff] }
  0xb4   :  { %581 = vmatprep.subr.bf16.mxu0 %v12479_v32  ;;  %622 = vmatprep.subr.bf16.mxu1 %v12481_v44  ;;  %v174_v30 = vld [vmem:[#allocation5 + $0xd8] sm:$0xff]  ;;  %v12469_v32 = vcombine.high %v166_v26, %v170_v27  ;;  %v193_v35 = vld [vmem:[#allocation5 + $0x170] sm:$0xff]  ;;  %v793_v12 = vld [vmem:[#allocation8 + $0x140] sm:$0xff] }
  0xb5   :  { %v178_v31 = vld [vmem:[#allocation5 + $0xf8] sm:$0xff]  ;;  %v197_v42 = vld [vmem:[#allocation5 + $0x190] sm:$0xff]  ;;  %v801_v19 = vld [vmem:[#allocation8 + $0x180] sm:$0xff] }
  0xb6   :  { %v182_v38 = vld [vmem:[#allocation5 + $0x118] sm:$0xff]  ;;  %v201_v43 = vld [vmem:[#allocation5 + $0x1b0] sm:$0xff]  ;;  %v12476_v44 = vcombine.low %v174_v30, %v178_v31  ;;  %v809_v20 = vld [vmem:[#allocation8 + $0x1c0] sm:$0xff] }
  0xb7   :  { %582 = vmatpush1.bf16.msra.mxu0 %v12478_v37  ;;  %623 = vmatpush1.bf16.msra.mxu1 %v12480_v51  ;;  %v12468_v37 = vcombine.low %v166_v26, %v170_v27  ;;  %v186_v39 = vld [vmem:[#allocation5 + $0x138] sm:$0xff]  ;;  %v205_v49 = vld [vmem:[#allocation5 + $0x1d0] sm:$0xff]  ;;  %v12499_v51 = vcombine.high %v197_v42, %v201_v43  ;;  %v817_v27 = vld [vmem:[#allocation8 + $0x200] sm:$0xff] }
  0xb8   :  { %583 = vmatprep.subr.bf16.mxu0 %v12487_v40  ;;  %624 = vmatprep.subr.bf16.mxu1 %v12489_v52  ;;  %v12477_v40 = vcombine.high %v174_v30, %v178_v31  ;;  %v194_v46 = vld [vmem:[#allocation5 + $0x178] sm:$0xff]  ;;  %v12485_v47 = vcombine.high %v182_v38, %v186_v39  ;;  %v209_v50 = vld [vmem:[#allocation5 + $0x1f0] sm:$0xff]  ;;  %v12484_v52 = vcombine.low %v182_v38, %v186_v39 }
  0xb9   :  { %v202_v54 = vld [vmem:[#allocation5 + $0x1b8] sm:$0xff]  ;;  %v12507_v59 = vcombine.high %v205_v49, %v209_v50  ;;  %v762_v8 = vld [vmem:[#allocation8 + $0x48] sm:$0xff] }
  0xba   :  { %v210_v62 = vld [vmem:[#allocation5 + $0x1f8] sm:$0xff]  ;;  %v778_v16 = vld [vmem:[#allocation8 + $0xc8] sm:$0xff] }
  0xbb   :  { %584 = vmatpush1.bf16.msra.mxu0 %v12486_v45  ;;  %625 = vmatpush1.bf16.msra.mxu1 %v12488_v57  ;;  %v190_v45 = vld [vmem:[#allocation5 + $0x158] sm:$0xff]  ;;  %v753_v57 = vld [vmem:[#allocation8] sm:$0xff]  ;;  %v794_v24 = vld [vmem:[#allocation8 + $0x148] sm:$0xff] }
  0xbc   :  { %585 = vmatprep.subr.bf16.mxu0 %v12495_v48  ;;  %626 = vmatprep.subr.bf16.mxu1 %v12497_v60  ;;  %v12490_v48 = vcombine.low %v189_v34, %v193_v35  ;;  %v12493_v55 = vcombine.high %v190_v45, %v194_v46  ;;  %v12492_v60 = vcombine.low %v190_v45, %v194_v46  ;;  %v802_v31 = vld [vmem:[#allocation8 + $0x188] sm:$0xff] }
  0xbd   :  { %v12511_v4 = vcombine.high %v753_v57, %v761_v58  ;;  %v818_v39 = vld [vmem:[#allocation8 + $0x208] sm:$0xff] }
  0xbe   :  { %v834_v45 = vld [vmem:[#allocation8 + $0x288] sm:$0xff] }
  0xbf   :  { %586 = vmatpush1.bf16.msra.mxu0 %v12494_v53  ;;  %627 = vmatpush1.bf16.msra.mxu1 %v12496_v2  ;;  %v198_v53 = vld [vmem:[#allocation5 + $0x198] sm:$0xff]  ;;  %v769_v2 = vld [vmem:[#allocation8 + $0x80] sm:$0xff]  ;;  %v842_v46 = vld [vmem:[#allocation8 + $0x2c8] sm:$0xff] }
  0xc0   :  { %587 = vmatprep.subr.bf16.mxu0 %v12503_v56  ;;  %628 = vmatprep.subr.bf16.mxu1 %v12505_v5  ;;  %v12498_v56 = vcombine.low %v197_v42, %v201_v43  ;;  %v12501_v63 = vcombine.high %v198_v53, %v202_v54  ;;  %v12500_v5 = vcombine.low %v198_v53, %v202_v54  ;;  %v849_v42 = vld [vmem:[#allocation8 + $0x300] sm:$0xff]  ;;  %v850_v53 = vld [vmem:[#allocation8 + $0x308] sm:$0xff] }
  0xc1   :  { %v12527_v13 = vcombine.high %v769_v2, %v777_v3  ;;  %v857_v43 = vld [vmem:[#allocation8 + $0x340] sm:$0xff]  ;;  %v858_v54 = vld [vmem:[#allocation8 + $0x348] sm:$0xff] }
  0xc3   :  { %588 = vmatpush1.bf16.msra.mxu0 %v12502_v61  ;;  %629 = vmatpush1.bf16.msra.mxu1 %v12504_v11  ;;  %v206_v61 = vld [vmem:[#allocation5 + $0x1d8] sm:$0xff]  ;;  %v785_v11 = vld [vmem:[#allocation8 + $0x100] sm:$0xff] }
  0xc4   :  { %655 = vmatprep.subr.bf16.mxu0 %v12451_v1  ;;  %696 = vmatprep.subr.bf16.mxu1 %v12453_v14  ;;  %v12506_v1 = vcombine.low %v205_v49, %v209_v50  ;;  %v12509_v9 = vcombine.high %v206_v61, %v210_v62  ;;  %v12508_v14 = vcombine.low %v206_v61, %v210_v62  ;;  %v865_v49 = vld [vmem:[#allocation8 + $0x380] sm:$0xff]  ;;  %v866_v61 = vld [vmem:[#allocation8 + $0x388] sm:$0xff] }
  0xc5   :  { %v12542_v26 = vcombine.low %v785_v11, %v793_v12  ;;  %v873_v50 = vld [vmem:[#allocation8 + $0x3c0] sm:$0xff]  ;;  %v874_v62 = vld [vmem:[#allocation8 + $0x3c8] sm:$0xff] }
  0xc6   :  { %606 = vmatmul.mubr.bf16.vlgmr.msra.gmra.mrb[0].mxu0 %v15529_v6  ;;  %647 = vmatmul.mubr.bf16.vlgmr.msra.gmra.mrb[0].mxu1 %v15529_v6 }
  0xc7   :  { %656 = vmatpush1.bf16.msra.mxu0 %v12450_v7  ;;  %687 = vmatprep.mubr.bf16.mxu0 %v15364_v0  ;;  %v754_v7 = vld [vmem:[#allocation8 + $0x8] sm:$0xff] }
  0xc8   :  { %657 = vmatprep.subr.bf16.mxu0 %v12459_v10  ;;  %697 = vmatpush1.bf16.msra.mxu1 %v12452_v21  ;;  %v12510_v10 = vcombine.low %v753_v57, %v761_v58  ;;  %v12513_v17 = vcombine.high %v754_v7, %v762_v8  ;;  %v12543_v21 = vcombine.high %v785_v11, %v793_v12  ;;  %v881_v57 = vld [vmem:[#allocation8 + $0x400] sm:$0xff] }
  0xc9   :  { %728 = vmatprep.mubr.bf16.mxu1 %v15364_v0  ;;  %698 = vmatprep.subr.bf16.mxu1 %v12461_v22  ;;  %v12491_v0 = vcombine.high %v189_v34, %v193_v35  ;;  %v12512_v22 = vcombine.low %v754_v7, %v762_v8  ;;  %v12558_v34 = vcombine.low %v801_v19, %v809_v20  ;;  %v833_v35 = vld [vmem:[#allocation8 + $0x280] sm:$0xff]  ;;  %v882_v7 = vld [vmem:[#allocation8 + $0x408] sm:$0xff] }
  0xca   :  { %v889_v58 = vld [vmem:[#allocation8 + $0x440] sm:$0xff]  ;;  %v890_v8 = vld [vmem:[#allocation8 + $0x448] sm:$0xff] }
  0xcb   :  { %658 = vmatpush1.bf16.msra.mxu0 %v12458_v15  ;;  %v770_v15 = vld [vmem:[#allocation8 + $0x88] sm:$0xff]  ;;  %v913_v11 = vld [vmem:[#allocation8 + $0x500] sm:$0xff] }
  0xcc   :  { %659 = vmatprep.subr.bf16.mxu0 %v12467_v18  ;;  %699 = vmatpush1.bf16.msra.mxu1 %v12460_v29  ;;  %v12526_v18 = vcombine.low %v769_v2, %v777_v3  ;;  %v12529_v25 = vcombine.high %v770_v15, %v778_v16  ;;  %v12559_v29 = vcombine.high %v801_v19, %v809_v20  ;;  %v897_v2 = vld [vmem:[#allocation8 + $0x480] sm:$0xff] }
  0xcd   :  { %700 = vmatprep.subr.bf16.mxu1 %v12469_v32  ;;  %v12528_v30 = vcombine.low %v770_v15, %v778_v16  ;;  %v810_v32 = vld [vmem:[#allocation8 + $0x1c8] sm:$0xff]  ;;  %v905_v3 = vld [vmem:[#allocation8 + $0x4c0] sm:$0xff] }
  0xce   :  { %v921_v12 = vld [vmem:[#allocation8 + $0x540] sm:$0xff]  ;;  %v898_v15 = vld [vmem:[#allocation8 + $0x488] sm:$0xff] }
  0xcf   :  { %660 = vmatpush1.bf16.msra.mxu0 %v12466_v23  ;;  %v786_v23 = vld [vmem:[#allocation8 + $0x108] sm:$0xff]  ;;  %v929_v19 = vld [vmem:[#allocation8 + $0x580] sm:$0xff] }
  0xd0   :  { %661 = vmatprep.subr.bf16.mxu0 %v12475_v28  ;;  %701 = vmatpush1.bf16.msra.mxu1 %v12468_v37  ;;  %v825_v28 = vld [vmem:[#allocation8 + $0x240] sm:$0xff]  ;;  %v12544_v38 = vcombine.low %v786_v23, %v794_v24  ;;  %v906_v16 = vld [vmem:[#allocation8 + $0x4c8] sm:$0xff] }
  0xd1   :  { %702 = vmatprep.subr.bf16.mxu1 %v12477_v40  ;;  %v12575_v37 = vcombine.high %v817_v27, %v825_v28  ;;  %v826_v40 = vld [vmem:[#allocation8 + $0x248] sm:$0xff]  ;;  %v937_v20 = vld [vmem:[#allocation8 + $0x5c0] sm:$0xff] }
  0xd3   :  { %662 = vmatpush1.bf16.msra.mxu0 %v12474_v33  ;;  %v12545_v33 = vcombine.high %v786_v23, %v794_v24  ;;  %v914_v23 = vld [vmem:[#allocation8 + $0x508] sm:$0xff] }
  0xd4   :  { %663 = vmatprep.subr.bf16.mxu0 %v12483_v36  ;;  %703 = vmatpush1.bf16.msra.mxu1 %v12476_v44  ;;  %v841_v36 = vld [vmem:[#allocation8 + $0x2c0] sm:$0xff]  ;;  %v12560_v44 = vcombine.low %v802_v31, %v810_v32  ;;  %v922_v24 = vld [vmem:[#allocation8 + $0x548] sm:$0xff] }
  0xd5   :  { %704 = vmatprep.subr.bf16.mxu1 %v12485_v47  ;;  %v12577_v47 = vcombine.high %v818_v39, %v826_v40 }
  0xd7   :  { %664 = vmatpush1.bf16.msra.mxu0 %v12482_v41  ;;  %v12574_v41 = vcombine.low %v817_v27, %v825_v28  ;;  %v945_v27 = vld [vmem:[#allocation8 + $0x600] sm:$0xff] }
  0xd8   :  { %665 = vmatprep.subr.bf16.mxu0 %v12491_v0  ;;  %705 = vmatpush1.bf16.msra.mxu1 %v12484_v52  ;;  %v12591_v0 = vcombine.high %v833_v35, %v841_v36  ;;  %v12576_v52 = vcombine.low %v818_v39, %v826_v40  ;;  %v953_v28 = vld [vmem:[#allocation8 + $0x640] sm:$0xff]  ;;  %v946_v39 = vld [vmem:[#allocation8 + $0x608] sm:$0xff] }
  0xd9   :  { %706 = vmatprep.subr.bf16.mxu1 %v12493_v55  ;;  %v12593_v55 = vcombine.high %v834_v45, %v842_v46  ;;  %v954_v40 = vld [vmem:[#allocation8 + $0x648] sm:$0xff] }
  0xdb   :  { %666 = vmatpush1.bf16.msra.mxu0 %v12490_v48  ;;  %v12590_v48 = vcombine.low %v833_v35, %v841_v36  ;;  %v961_v35 = vld [vmem:[#allocation8 + $0x680] sm:$0xff] }
  0xdc   :  { %667 = vmatprep.subr.bf16.mxu0 %v12499_v51  ;;  %707 = vmatpush1.bf16.msra.mxu1 %v12492_v60  ;;  %v12607_v51 = vcombine.high %v849_v42, %v857_v43  ;;  %v12592_v60 = vcombine.low %v834_v45, %v842_v46  ;;  %v969_v36 = vld [vmem:[#allocation8 + $0x6c0] sm:$0xff] }
  0xdd   :  { %708 = vmatprep.subr.bf16.mxu1 %v12501_v63  ;;  %v12609_v63 = vcombine.high %v850_v53, %v858_v54  ;;  %v977_v45 = vld [vmem:[#allocation8 + $0x700] sm:$0xff] }
  0xde   :  { %v985_v46 = vld [vmem:[#allocation8 + $0x740] sm:$0xff] }
  0xdf   :  { %668 = vmatpush1.bf16.msra.mxu0 %v12498_v56  ;;  %v12606_v56 = vcombine.low %v849_v42, %v857_v43  ;;  %v12719_v42 = vcombine.high %v961_v35, %v969_v36 }
  0xe0   :  { %669 = vmatprep.subr.bf16.mxu0 %v12507_v59  ;;  %709 = vmatpush1.bf16.msra.mxu1 %v12500_v5  ;;  %v12623_v59 = vcombine.high %v865_v49, %v873_v50  ;;  %v12608_v5 = vcombine.low %v850_v53, %v858_v54  ;;  %v993_v53 = vld [vmem:[#allocation8 + $0x780] sm:$0xff] }
  0xe1   :  { %710 = vmatprep.subr.bf16.mxu1 %v12509_v9  ;;  %v12625_v9 = vcombine.high %v866_v61, %v874_v62  ;;  %v1001_v54 = vld [vmem:[#allocation8 + $0x7c0] sm:$0xff] }
  0xe3   :  { %670 = vmatpush1.bf16.msra.mxu0 %v12506_v1  ;;  %v12622_v1 = vcombine.low %v865_v49, %v873_v50  ;;  %v12735_v49 = vcombine.high %v977_v45, %v985_v46  ;;  %v12704_v50 = vcombine.low %v946_v39, %v954_v40 }
  0xe4   :  { %6981 = vmatprep.subr.bf16.mxu0 %v12511_v4  ;;  %711 = vmatpush1.bf16.msra.mxu1 %v12508_v14  ;;  %v12639_v4 = vcombine.high %v881_v57, %v889_v58  ;;  %v12624_v14 = vcombine.low %v866_v61, %v874_v62  ;;  %v1009_v62 = vld [vmem:[#allocation8 + $0x800] sm:$0xff] }
  0xe5   :  { %7145 = vmatprep.subr.bf16.mxu1 %v12513_v17  ;;  %v12641_v17 = vcombine.high %v882_v7, %v890_v8 }
  0xe6   :  { %688 = vmatmul.mubr.bf16.vlgmr.msra.gmra.mrb[4].mxu0 %v15529_v6 }
  0xe7   :  { %6982 = vmatpush1.bf16.msra.mxu0 %v12510_v10  ;;  %729 = vmatmul.mubr.bf16.vlgmr.msra.gmra.mrb[4].mxu1 %v15529_v6  ;;  %v12561_v6 = vcombine.high %v802_v31, %v810_v32  ;;  %v12638_v10 = vcombine.low %v881_v57, %v889_v58  ;;  %v930_v31 = vld [vmem:[#allocation8 + $0x588] sm:$0xff]  ;;  %v12751_v57 = vcombine.high %v993_v53, %v1001_v54 }
  0xe8   :  { %6983 = vmatprep.subr.bf16.mxu0 %v12527_v13  ;;  %7146 = vmatpush1.bf16.msra.mxu1 %v12512_v22  ;;  %v12655_v13 = vcombine.high %v897_v2, %v905_v3  ;;  %v12640_v22 = vcombine.low %v882_v7, %v890_v8  ;;  %v938_v32 = vld [vmem:[#allocation8 + $0x5c8] sm:$0xff] }
  0xe9   :  { %7147 = vmatprep.subr.bf16.mxu1 %v12529_v25  ;;  %v12657_v25 = vcombine.high %v898_v15, %v906_v16  ;;  %v12688_v43 = vcombine.low %v930_v31, %v938_v32 }
  0xeb   :  { %6984 = vmatpush1.bf16.msra.mxu0 %v12526_v18  ;;  %v12654_v18 = vcombine.low %v897_v2, %v905_v3  ;;  %v12750_v2 = vcombine.low %v993_v53, %v1001_v54  ;;  %v1018_v3 = vld [vmem:[#allocation8 + $0x848] sm:$0xff] }
  0xec   :  { %6985 = vmatprep.subr.bf16.mxu0 %v12543_v21  ;;  %7148 = vmatpush1.bf16.msra.mxu1 %v12528_v30  ;;  %v12671_v21 = vcombine.high %v913_v11, %v921_v12  ;;  %v12656_v30 = vcombine.low %v898_v15, %v906_v16  ;;  %v15542_v15 = vld [vmem:[#allocation7] sm:$0xff] }
  0xed   :  { %7149 = vmatprep.subr.bf16.mxu1 %v12545_v33  ;;  %v12673_v33 = vcombine.high %v914_v23, %v922_v24 }
  0xef   :  { %6986 = vmatpush1.bf16.msra.mxu0 %v12542_v26  ;;  %v12670_v26 = vcombine.low %v913_v11, %v921_v12  ;;  %v213_v12 = vlaneseq }
  0xf0   :  { %6987 = vmatprep.subr.bf16.mxu0 %v12559_v29  ;;  %7150 = vmatpush1.bf16.msra.mxu1 %v12544_v38  ;;  %v12687_v29 = vcombine.high %v929_v19, %v937_v20  ;;  %v12672_v38 = vcombine.low %v914_v23, %v922_v24 }
  0xf1   :  { %7151 = vmatprep.subr.bf16.mxu1 %v12561_v6  ;;  %v12689_v6 = vcombine.high %v930_v31, %v938_v32 }
  0xf3   :  { %6988 = vmatpush1.bf16.msra.mxu0 %v12558_v34  ;;  %v12686_v34 = vcombine.low %v929_v19, %v937_v20 }
  0xf4   :  { %6989 = vmatprep.subr.bf16.mxu0 %v12575_v37  ;;  %7152 = vmatpush1.bf16.msra.mxu1 %v12560_v44  ;;  %v12703_v37 = vcombine.high %v945_v27, %v953_v28  ;;  %v962_v44 = vld [vmem:[#allocation8 + $0x688] sm:$0xff] }
  0xf5   :  { %7153 = vmatprep.subr.bf16.mxu1 %v12577_v47  ;;  %v12718_v47 = vcombine.low %v961_v35, %v969_v36  ;;  %v1049_v35 = vld [vmem:[#allocation8 + $0x940] sm:$0xff]  ;;  %v1042_v36 = vld [vmem:[#allocation8 + $0x908] sm:$0xff] }
  0xf7   :  { %6990 = vmatpush1.bf16.msra.mxu0 %v12574_v41  ;;  %v12702_v41 = vcombine.low %v945_v27, %v953_v28  ;;  %v1026_v27 = vld [vmem:[#allocation8 + $0x888] sm:$0xff] }
  0xf8   :  { %6991 = vmatprep.subr.bf16.mxu0 %v12591_v0  ;;  %7154 = vmatpush1.bf16.msra.mxu1 %v12576_v52  ;;  %v12705_v0 = vcombine.high %v946_v39, %v954_v40  ;;  %v978_v52 = vld [vmem:[#allocation8 + $0x708] sm:$0xff] }
  0xf9   :  { %7155 = vmatprep.subr.bf16.mxu1 %v12593_v55  ;;  %v12734_v55 = vcombine.low %v977_v45, %v985_v46  ;;  %v1057_v46 = vld [vmem:[#allocation8 + $0x980] sm:$0xff] }
  0xfb   :  { %6992 = vmatpush1.bf16.msra.mxu0 %v12590_v48  ;;  %v970_v48 = vld [vmem:[#allocation8 + $0x6c8] sm:$0xff] }
  0xfc   :  { %6993 = vmatprep.subr.bf16.mxu0 %v12607_v51  ;;  %7156 = vmatpush1.bf16.msra.mxu1 %v12592_v60  ;;  %v12721_v51 = vcombine.high %v962_v44, %v970_v48  ;;  %v12720_v58 = vcombine.low %v962_v44, %v970_v48  ;;  %v1002_v60 = vld [vmem:[#allocation8 + $0x7c8] sm:$0xff] }
  0xfd   :  { %7157 = vmatprep.subr.bf16.mxu1 %v12609_v63  ;;  %v1017_v63 = vld [vmem:[#allocation8 + $0x840] sm:$0xff]  ;;  %v1058_v48 = vld [vmem:[#allocation8 + $0x988] sm:$0xff] }
  0xff   :  { %6994 = vmatpush1.bf16.msra.mxu0 %v12606_v56  ;;  %v986_v56 = vld [vmem:[#allocation8 + $0x748] sm:$0xff] }
 0x100   :  { %6995 = vmatprep.subr.bf16.mxu0 %v12623_v59  ;;  %7158 = vmatpush1.bf16.msra.mxu1 %v12608_v5  ;;  %v994_v59 = vld [vmem:[#allocation8 + $0x788] sm:$0xff]  ;;  %v12737_v61 = vcombine.high %v978_v52, %v986_v56  ;;  %v12767_v5 = vcombine.high %v1009_v62, %v1017_v63  ;;  %v12736_v8 = vcombine.low %v978_v52, %v986_v56  ;;  %v1073_v56 = vld [vmem:[#allocation8 + $0xa00] sm:$0xff] }
 0x101   :  { %7159 = vmatprep.subr.bf16.mxu1 %v12625_v9  ;;  %v12753_v9 = vcombine.high %v994_v59, %v1002_v60  ;;  %v1066_v52 = vld [vmem:[#allocation8 + $0x9c8] sm:$0xff] }
 0x103   :  { %6996 = vmatpush1.bf16.msra.mxu0 %v12622_v1  ;;  %v1010_v1 = vld [vmem:[#allocation8 + $0x808] sm:$0xff] }
 0x104   :  { %6997 = vmatprep.subr.bf16.mxu0 %v12639_v4  ;;  %7160 = vmatpush1.bf16.msra.mxu1 %v12624_v14  ;;  %v12766_v4 = vcombine.low %v1009_v62, %v1017_v63  ;;  %v12768_v7 = vcombine.low %v1010_v1, %v1018_v3  ;;  %v12769_v11 = vcombine.high %v1010_v1, %v1018_v3  ;;  %v1089_v1 = vld [vmem:[#allocation8 + $0xa80] sm:$0xff]  ;;  %v1090_v3 = vld [vmem:[#allocation8 + $0xa88] sm:$0xff] }
 0x105   :  { %7161 = vmatprep.subr.bf16.mxu1 %v12641_v17  ;;  %v12816_v63 = vcombine.low %v1058_v48, %v1066_v52 }
 0x107   :  { %6998 = vmatpush1.bf16.msra.mxu0 %v12638_v10  ;;  %v12752_v10 = vcombine.low %v994_v59, %v1002_v60  ;;  %v12817_v60 = vcombine.high %v1058_v48, %v1066_v52  ;;  %v1169_v52 = vld [vmem:[#allocation8 + $0xd00] sm:$0xff] }
 0x108   :  { %6999 = vmatprep.subr.bf16.mxu0 %v12655_v13  ;;  %7162 = vmatpush1.bf16.msra.mxu1 %v12640_v22  ;;  %v15537_v13 = vshrl.u32 %v213_v12, 7  ;;  %v1106_v12 = vld [vmem:[#allocation8 + $0xb08] sm:$0xff] }
 0x109   :  { %7163 = vmatprep.subr.bf16.mxu1 %v12657_v25  ;;  %v1025_v25 = vld [vmem:[#allocation8 + $0x880] sm:$0xff] }
 0x10a   :  { %v15540_v14 = vsub.s32 0, %v15537_v13  ;;  %v15545_v16 = vsub.s32 1, %v15537_v13  ;;  %v15552_v20 = vsub.s32 3, %v15537_v13 }
 0x10b   :  { %7000 = vmatpush1.bf16.msra.mxu0 %v12654_v18 }
 0x10c   :  { %7001 = vmatprep.subr.bf16.mxu0 %v12671_v21  ;;  %7164 = vmatpush1.bf16.msra.mxu1 %v12656_v30  ;;  %v216_v17 = vrot.slane %v15542_v15, %v15540_v14  ;;  %v220_v18 = vrot.slane %v15542_v15, %v15545_v16  ;;  %v1034_v30 = vld [vmem:[#allocation8 + $0x8c8] sm:$0xff]  ;;  %v228_v32 = vrot.slane %v15542_v15, %v15552_v20 }
 0x10d   :  { %7165 = vmatprep.subr.bf16.mxu1 %v12673_v33  ;;  %v12785_v40 = vcombine.high %v1026_v27, %v1034_v30  ;;  %v12784_v45 = vcombine.low %v1026_v27, %v1034_v30 }
 0x10f   :  { %7002 = vmatpush1.bf16.msra.mxu0 %v12670_v26  ;;  %v1033_v26 = vld [vmem:[#allocation8 + $0x8c0] sm:$0xff] }
 0x110   :  { %7003 = vmatprep.subr.bf16.mxu0 %v12687_v29  ;;  %7166 = vmatpush1.bf16.msra.mxu1 %v12672_v38  ;;  %v12783_v39 = vcombine.high %v1025_v25, %v1033_v26  ;;  %v12782_v44 = vcombine.low %v1025_v25, %v1033_v26  ;;  %v1122_v25 = vld [vmem:[#allocation8 + $0xb88] sm:$0xff] }
 0x111   :  { %7167 = vmatprep.subr.bf16.mxu1 %v12689_v6  ;;  %v1050_v6 = vld [vmem:[#allocation8 + $0x948] sm:$0xff] }
 0x113   :  { %7004 = vmatpush1.bf16.msra.mxu0 %v12686_v34  ;;  %v1041_v34 = vld [vmem:[#allocation8 + $0x900] sm:$0xff] }
 0x114   :  { %7005 = vmatprep.subr.bf16.mxu0 %v12703_v37  ;;  %7168 = vmatpush1.bf16.msra.mxu1 %v12688_v43  ;;  %v12798_v54 = vcombine.low %v1041_v34, %v1049_v35 }
 0x115   :  { %7169 = vmatprep.subr.bf16.mxu1 %v12705_v0 }
 0x117   :  { %7006 = vmatpush1.bf16.msra.mxu0 %v12702_v41 }
 0x118   :  { %7007 = vmatprep.subr.bf16.mxu0 %v12719_v42  ;;  %7170 = vmatpush1.bf16.msra.mxu1 %v12704_v50  ;;  %v12799_v50 = vcombine.high %v1041_v34, %v1049_v35 }
 0x119   :  { %7171 = vmatprep.subr.bf16.mxu1 %v12721_v51  ;;  %v12801_v51 = vcombine.high %v1042_v36, %v1050_v6 }
 0x11b   :  { %7008 = vmatpush1.bf16.msra.mxu0 %v12718_v47  ;;  %v1065_v47 = vld [vmem:[#allocation8 + $0x9c0] sm:$0xff] }
 0x11c   :  { %7009 = vmatprep.subr.bf16.mxu0 %v12735_v49  ;;  %7172 = vmatpush1.bf16.msra.mxu1 %v12720_v58  ;;  %v1074_v58 = vld [vmem:[#allocation8 + $0xa08] sm:$0xff]  ;;  %v12815_v59 = vcombine.high %v1057_v46, %v1065_v47  ;;  %v12814_v62 = vcombine.low %v1057_v46, %v1065_v47  ;;  %v1161_v46 = vld [vmem:[#allocation8 + $0xcc0] sm:$0xff] }
 0x11d   :  { %7173 = vmatprep.subr.bf16.mxu1 %v12737_v61  ;;  %v1082_v61 = vld [vmem:[#allocation8 + $0xa48] sm:$0xff] }
 0x11e   :  { %v1154_v47 = vld [vmem:[#allocation8 + $0xc88] sm:$0xff] }
 0x11f   :  { %7010 = vmatpush1.bf16.msra.mxu0 %v12734_v55  ;;  %v12800_v55 = vcombine.low %v1042_v36, %v1050_v6  ;;  %v1138_v36 = vld [vmem:[#allocation8 + $0xc08] sm:$0xff] }
 0x120   :  { %7011 = vmatprep.subr.bf16.mxu0 %v12751_v57  ;;  %7174 = vmatpush1.bf16.msra.mxu1 %v12736_v8  ;;  %v1081_v57 = vld [vmem:[#allocation8 + $0xa40] sm:$0xff] }
 0x121   :  { %7175 = vmatprep.subr.bf16.mxu1 %v12753_v9  ;;  %v12830_v8 = vcombine.low %v1073_v56, %v1081_v57  ;;  %v12832_v9 = vcombine.low %v1074_v58, %v1082_v61 }
 0x123   :  { %7012 = vmatpush1.bf16.msra.mxu0 %v12750_v2  ;;  %v1097_v2 = vld [vmem:[#allocation8 + $0xac0] sm:$0xff] }
 0x124   :  { %7022 = vmatprep.subr.bf16.mxu0 %v12767_v5  ;;  %7176 = vmatpush1.bf16.msra.mxu1 %v12752_v10  ;;  %v12833_v5 = vcombine.high %v1074_v58, %v1082_v61  ;;  %v1105_v10 = vld [vmem:[#allocation8 + $0xb00] sm:$0xff]  ;;  %v1170_v58 = vld [vmem:[#allocation8 + $0xd08] sm:$0xff] }
 0x125   :  { %7186 = vmatprep.subr.bf16.mxu1 %v12769_v11  ;;  %v1113_v11 = vld [vmem:[#allocation8 + $0xb40] sm:$0xff] }
 0x126   :  { %v12863_v26 = vcombine.high %v1105_v10, %v1113_v11 }
 0x199   :  { %v607_v19 = vpop.f32.mrb[0].mxu0  ;;  %v15558_v37 = vpop.f32.mrb[0].mxu1 }
 0x19a   :  { %v608_v21 = vadd.f32 %v607_v19, %v216_v17  ;;  %v609_v22 = vpop.f32.mrb[1].mxu0  ;;  %v650_v41 = vpop.f32.mrb[1].mxu1  ;;  %v12847_v17 = vcombine.high %v1089_v1, %v1097_v2  ;;  %v1114_v19 = vld [vmem:[#allocation8 + $0xb48] sm:$0xff] }
 0x19b   :  { %v610_v23 = vadd.f32 %v609_v22, %v220_v18  ;;  %v611_v24 = vpop.f32.mrb[2].mxu0  ;;  %v651_v42 = vadd.f32 %v650_v41, %v228_v32  ;;  %v652_v43 = vpop.f32.mrb[2].mxu1  ;;  %v12865_v27 = vcombine.high %v1106_v12, %v1114_v19  ;;  %v12864_v30 = vcombine.low %v1106_v12, %v1114_v19  ;;  %v1145_v32 = vld [vmem:[#allocation8 + $0xc40] sm:$0xff]  ;;  %v1202_v19 = vld [vmem:[#allocation8 + $0xe08] sm:$0xff] }
 0x19c   :  { %v737_v28 = vmax.f32 %v608_v21, 0.0  ;;  %v612_v29 = vpop.f32.mrb[3].mxu0  ;;  %v653_v0 = vpop.f32.mrb[3].mxu1  ;;  %v12846_v21 = vcombine.low %v1089_v1, %v1097_v2  ;;  %v1129_v24 = vld [vmem:[#allocation8 + $0xbc0] sm:$0xff] }
 0x19d   :  { %v738_v31 = vmax.f32 %v610_v23, 0.0  ;;  %v740_v49 = vmax.f32 %v651_v42, 0.0  ;;  %v1121_v23 = vld [vmem:[#allocation8 + $0xb80] sm:$0xff]  ;;  %v12862_v29 = vcombine.low %v1105_v10, %v1113_v11 }
 0x19e   :  { %v15560_v38 = vpack.c.bf16 %v737_v28, %v737_v28  ;;  %v1130_v28 = vld [vmem:[#allocation8 + $0xbc8] sm:$0xff]  ;;  %v12879_v34 = vcombine.high %v1121_v23, %v1129_v24  ;;  %v12878_v41 = vcombine.low %v1121_v23, %v1129_v24  ;;  %v1153_v43 = vld [vmem:[#allocation8 + $0xc80] sm:$0xff] }
 0x19f   :  { %v15556_v33 = vpack.c.bf16 %v738_v31, %v738_v31  ;;  %v15566_v53 = vpack.c.bf16 %v740_v49, %v740_v49  ;;  %v1137_v31 = vld [vmem:[#allocation8 + $0xc00] sm:$0xff]  ;;  %v12881_v35 = vcombine.high %v1122_v25, %v1130_v28  ;;  %v12880_v42 = vcombine.low %v1122_v25, %v1130_v28  ;;  %v1162_v49 = vld [vmem:[#allocation8 + $0xcc8] sm:$0xff] }
 0x1a0   :  { %v12912_v1 = vcombine.low %v1154_v47, %v1162_v49  ;;  %v1185_v2 = vld [vmem:[#allocation8 + $0xd80] sm:$0xff]  ;;  %v1218_v28 = vld [vmem:[#allocation8 + $0xe88] sm:$0xff] }
 0x1a1   :  { %7013 = vmatprep.mubr.bf16.mxu0 %v15556_v33  ;;  %7177 = vmatprep.mubr.bf16.mxu1 %v15556_v33  ;;  %v1201_v11 = vld [vmem:[#allocation8 + $0xe00] sm:$0xff] }
 0x1a2   :  { %7014 = vmatmul.mubr.bf16.vlgmr.msra.gmra.mrb[8].mxu0 %v15560_v38  ;;  %7178 = vmatmul.mubr.bf16.vlgmr.msra.gmra.mrb[8].mxu1 %v15560_v38  ;;  %v1209_v12 = vld [vmem:[#allocation8 + $0xe40] sm:$0xff] }
 0x1a3   :  { %7023 = vmatpush1.bf16.msra.mxu0 %v12766_v4  ;;  %7187 = vmatpush1.bf16.msra.mxu1 %v12768_v7  ;;  %v12831_v4 = vcombine.high %v1073_v56, %v1081_v57  ;;  %v1098_v7 = vld [vmem:[#allocation8 + $0xac8] sm:$0xff]  ;;  %v12911_v56 = vcombine.high %v1153_v43, %v1161_v46  ;;  %v12913_v57 = vcombine.high %v1154_v47, %v1162_v49  ;;  %v1257_v49 = vld [vmem:[#allocation8 + $0xfc0] sm:$0xff] }
 0x1a4   :  { %7024 = vmatprep.subr.bf16.mxu0 %v12783_v39  ;;  %7188 = vmatprep.subr.bf16.mxu1 %v12785_v40  ;;  %v12849_v18 = vcombine.high %v1090_v3, %v1098_v7  ;;  %v12848_v22 = vcombine.low %v1090_v3, %v1098_v7  ;;  %v1146_v39 = vld [vmem:[#allocation8 + $0xc48] sm:$0xff]  ;;  %v1193_v3 = vld [vmem:[#allocation8 + $0xdc0] sm:$0xff]  ;;  %v12959_v24 = vcombine.high %v1201_v11, %v1209_v12 }
 0x1a5   :  { %7054 = vmatprep.mubr.bf16.mxu0 %v15566_v53  ;;  %7218 = vmatprep.mubr.bf16.mxu1 %v15566_v53 }
 0x1a7   :  { %7025 = vmatpush1.bf16.msra.mxu0 %v12782_v44  ;;  %7189 = vmatpush1.bf16.msra.mxu1 %v12784_v45  ;;  %v12895_v44 = vcombine.high %v1137_v31, %v1145_v32  ;;  %v12897_v45 = vcombine.high %v1138_v36, %v1146_v39 }
 0x1a8   :  { %7026 = vmatprep.subr.bf16.mxu0 %v12799_v50  ;;  %7190 = vmatprep.subr.bf16.mxu1 %v12801_v51  ;;  %v12894_v50 = vcombine.low %v1137_v31, %v1145_v32  ;;  %v12896_v51 = vcombine.low %v1138_v36, %v1146_v39  ;;  %v12958_v31 = vcombine.low %v1201_v11, %v1209_v12  ;;  %v1233_v36 = vld [vmem:[#allocation8 + $0xf00] sm:$0xff]  ;;  %v1290_v11 = vld [vmem:[#allocation8 + $0x10c8] sm:$0xff] }
 0x1a9   :  { %v1241_v39 = vld [vmem:[#allocation8 + $0xf40] sm:$0xff] }
 0x1ab   :  { %7027 = vmatpush1.bf16.msra.mxu0 %v12798_v54  ;;  %7191 = vmatpush1.bf16.msra.mxu1 %v12800_v55  ;;  %v1177_v54 = vld [vmem:[#allocation8 + $0xd40] sm:$0xff] }
 0x1ac   :  { %7028 = vmatprep.subr.bf16.mxu0 %v12815_v59  ;;  %7192 = vmatprep.subr.bf16.mxu1 %v12817_v60  ;;  %v1178_v60 = vld [vmem:[#allocation8 + $0xd48] sm:$0xff] }
 0x1ad   :  { %v12929_v7 = vcombine.high %v1170_v58, %v1178_v60  ;;  %v12928_v10 = vcombine.low %v1170_v58, %v1178_v60 }
 0x1af   :  { %7029 = vmatpush1.bf16.msra.mxu0 %v12814_v62  ;;  %7193 = vmatpush1.bf16.msra.mxu1 %v12816_v63  ;;  %v12910_v63 = vcombine.low %v1153_v43, %v1161_v46  ;;  %v15582_v43 = vsub.s32 5, %v15537_v13  ;;  %v12991_v46 = vcombine.high %v1233_v36, %v1241_v39 }
 0x1b0   :  { %7030 = vmatprep.subr.bf16.mxu0 %v12831_v4  ;;  %7194 = vmatprep.subr.bf16.mxu1 %v12833_v5  ;;  %v1186_v4 = vld [vmem:[#allocation8 + $0xd88] sm:$0xff]  ;;  %v12927_v5 = vcombine.high %v1169_v52, %v1177_v54 }
 0x1b3   :  { %7031 = vmatpush1.bf16.msra.mxu0 %v12830_v8  ;;  %7195 = vmatpush1.bf16.msra.mxu1 %v12832_v9  ;;  %v1194_v8 = vld [vmem:[#allocation8 + $0xdc8] sm:$0xff]  ;;  %v12926_v9 = vcombine.low %v1169_v52, %v1177_v54  ;;  %v236_v52 = vrot.slane %v15542_v15, %v15582_v43 }
 0x1b4   :  { %7032 = vmatprep.subr.bf16.mxu0 %v12847_v17  ;;  %7196 = vmatprep.subr.bf16.mxu1 %v12849_v18  ;;  %v12943_v17 = vcombine.high %v1185_v2, %v1193_v3  ;;  %v12945_v18 = vcombine.high %v1186_v4, %v1194_v8  ;;  %v12944_v23 = vcombine.low %v1186_v4, %v1194_v8  ;;  %v1281_v8 = vld [vmem:[#allocation8 + $0x1080] sm:$0xff] }
 0x1b7   :  { %7033 = vmatpush1.bf16.msra.mxu0 %v12846_v21  ;;  %7197 = vmatpush1.bf16.msra.mxu1 %v12848_v22  ;;  %v1210_v21 = vld [vmem:[#allocation8 + $0xe48] sm:$0xff]  ;;  %v12942_v22 = vcombine.low %v1185_v2, %v1193_v3 }
 0x1b8   :  { %7034 = vmatprep.subr.bf16.mxu0 %v12863_v26  ;;  %7198 = vmatprep.subr.bf16.mxu1 %v12865_v27  ;;  %v12961_v25 = vcombine.high %v1202_v19, %v1210_v21  ;;  %v1217_v26 = vld [vmem:[#allocation8 + $0xe80] sm:$0xff]  ;;  %v12960_v32 = vcombine.low %v1202_v19, %v1210_v21 }
 0x1b9   :  { %v15570_v40 = vpop.f32.mrb[4].mxu0  ;;  %v1225_v27 = vld [vmem:[#allocation8 + $0xec0] sm:$0xff] }
 0x1ba   :  { %v15572_v6 = vpop.f32.mrb[5].mxu0  ;;  %v15574_v55 = vpop.f32.mrb[4].mxu1 }
 0x1bb   :  { %7035 = vmatpush1.bf16.msra.mxu0 %v12862_v29  ;;  %7199 = vmatpush1.bf16.msra.mxu1 %v12864_v30  ;;  %v693_v0 = vpop.f32.mrb[6].mxu0  ;;  %v15576_v59 = vpop.f32.mrb[5].mxu1  ;;  %v1226_v29 = vld [vmem:[#allocation8 + $0xec8] sm:$0xff]  ;;  %v15579_v30 = vsub.s32 2, %v15537_v13  ;;  %v692_v2 = vadd.f32 %v15572_v6, %v236_v52  ;;  %v1345_v52 = vld [vmem:[#allocation8 + $0x1280] sm:$0xff] }
 0x1bc   :  { %7036 = vmatprep.subr.bf16.mxu0 %v12879_v34  ;;  %7200 = vmatprep.subr.bf16.mxu1 %v12881_v35  ;;  %v694_v48 = vpop.f32.mrb[7].mxu0  ;;  %v734_v61 = vpop.f32.mrb[6].mxu1  ;;  %v12975_v34 = vcombine.high %v1217_v26, %v1225_v27  ;;  %v12977_v35 = vcombine.high %v1218_v28, %v1226_v29 }
 0x1bd   :  { %v735_v62 = vpop.f32.mrb[7].mxu1  ;;  %v224_v0 = vrot.slane %v15542_v15, %v15579_v30  ;;  %v1249_v48 = vld [vmem:[#allocation8 + $0xf80] sm:$0xff]  ;;  %v742_v12 = vmax.f32 %v692_v2, 0.0  ;;  %v1362_v2 = vld [vmem:[#allocation8 + $0x1308] sm:$0xff] }
 0x1be   :  { %v13007_v58 = vcombine.high %v1249_v48, %v1257_v49  ;;  %v1265_v61 = vld [vmem:[#allocation8 + $0x1000] sm:$0xff]  ;;  %v13006_v4 = vcombine.low %v1249_v48, %v1257_v49 }
 0x1bf   :  { %7037 = vmatpush1.bf16.msra.mxu0 %v12878_v41  ;;  %7201 = vmatpush1.bf16.msra.mxu1 %v12880_v42  ;;  %v1234_v41 = vld [vmem:[#allocation8 + $0xf08] sm:$0xff]  ;;  %v649_v54 = vadd.f32 %v15558_v37, %v224_v0  ;;  %v1273_v62 = vld [vmem:[#allocation8 + $0x1040] sm:$0xff] }
 0x1c0   :  { %7038 = vmatprep.subr.bf16.mxu0 %v12895_v44  ;;  %7202 = vmatprep.subr.bf16.mxu1 %v12897_v45  ;;  %v1242_v42 = vld [vmem:[#allocation8 + $0xf48] sm:$0xff]  ;;  %v12974_v44 = vcombine.low %v1217_v26, %v1225_v27  ;;  %v12976_v45 = vcombine.low %v1218_v28, %v1226_v29  ;;  %v13023_v37 = vcombine.high %v1265_v61, %v1273_v62 }
 0x1c1   :  { %v12993_v47 = vcombine.high %v1234_v41, %v1242_v42  ;;  %v739_v3 = vmax.f32 %v649_v54, 0.0  ;;  %v15592_v26 = vpack.c.bf16 %v742_v12, %v742_v12  ;;  %v1353_v54 = vld [vmem:[#allocation8 + $0x12c0] sm:$0xff] }
 0x1c3   :  { %7039 = vmatpush1.bf16.msra.mxu0 %v12894_v50  ;;  %7203 = vmatpush1.bf16.msra.mxu1 %v12896_v51  ;;  %v1250_v50 = vld [vmem:[#allocation8 + $0xf88] sm:$0xff] }
 0x1c4   :  { %7040 = vmatprep.subr.bf16.mxu0 %v12911_v56  ;;  %7204 = vmatprep.subr.bf16.mxu1 %v12913_v57  ;;  %v1258_v51 = vld [vmem:[#allocation8 + $0xfc8] sm:$0xff]  ;;  %v12990_v56 = vcombine.low %v1233_v36, %v1241_v39  ;;  %v12992_v57 = vcombine.low %v1234_v41, %v1242_v42 }
 0x1c5   :  { %v13009_v60 = vcombine.high %v1250_v50, %v1258_v51  ;;  %v1322_v36 = vld [vmem:[#allocation8 + $0x11c8] sm:$0xff] }
 0x1c7   :  { %7041 = vmatpush1.bf16.msra.mxu0 %v12910_v63  ;;  %7205 = vmatpush1.bf16.msra.mxu1 %v12912_v1  ;;  %v1266_v63 = vld [vmem:[#allocation8 + $0x1008] sm:$0xff] }
 0x1c8   :  { %7042 = vmatprep.subr.bf16.mxu0 %v12927_v5  ;;  %7206 = vmatprep.subr.bf16.mxu1 %v12929_v7  ;;  %v1274_v1 = vld [vmem:[#allocation8 + $0x1048] sm:$0xff]  ;;  %v13008_v5 = vcombine.low %v1250_v50, %v1258_v51 }
 0x1c9   :  { %v13025_v7 = vcombine.high %v1266_v63, %v1274_v1  ;;  %v13024_v6 = vcombine.low %v1266_v63, %v1274_v1  ;;  %v1361_v63 = vld [vmem:[#allocation8 + $0x1300] sm:$0xff] }
 0x1ca   :  { %v1369_v1 = vld [vmem:[#allocation8 + $0x1340] sm:$0xff] }
 0x1cb   :  { %7043 = vmatpush1.bf16.msra.mxu0 %v12926_v9  ;;  %7207 = vmatpush1.bf16.msra.mxu1 %v12928_v10  ;;  %v1289_v9 = vld [vmem:[#allocation8 + $0x10c0] sm:$0xff]  ;;  %v1282_v10 = vld [vmem:[#allocation8 + $0x1088] sm:$0xff]  ;;  %v13118_v12 = vcombine.low %v1361_v63, %v1369_v1 }
 0x1cc   :  { %7044 = vmatprep.subr.bf16.mxu0 %v12943_v17  ;;  %7208 = vmatprep.subr.bf16.mxu1 %v12945_v18  ;;  %v15590_v17 = vpack.c.bf16 %v739_v3, %v739_v3  ;;  %v13022_v18 = vcombine.low %v1265_v61, %v1273_v62  ;;  %v13039_v19 = vcombine.high %v1281_v8, %v1289_v9  ;;  %v1370_v3 = vld [vmem:[#allocation8 + $0x1348] sm:$0xff] }
 0x1cd   :  { %v13041_v21 = vcombine.high %v1282_v10, %v1290_v11  ;;  %v13038_v27 = vcombine.low %v1281_v8, %v1289_v9  ;;  %v13040_v28 = vcombine.low %v1282_v10, %v1290_v11  ;;  %v13103_v61 = vcombine.high %v1345_v52, %v1353_v54  ;;  %v1377_v8 = vld [vmem:[#allocation8 + $0x1380] sm:$0xff]  ;;  %v1378_v10 = vld [vmem:[#allocation8 + $0x1388] sm:$0xff] }
 0x1ce   :  { %v1385_v9 = vld [vmem:[#allocation8 + $0x13c0] sm:$0xff]  ;;  %v1386_v11 = vld [vmem:[#allocation8 + $0x13c8] sm:$0xff] }
 0x1cf   :  { %7045 = vmatpush1.bf16.msra.mxu0 %v12942_v22  ;;  %7209 = vmatpush1.bf16.msra.mxu1 %v12944_v23  ;;  %v1297_v22 = vld [vmem:[#allocation8 + $0x1100] sm:$0xff] }
 0x1d0   :  { %7046 = vmatprep.subr.bf16.mxu0 %v12959_v24  ;;  %7210 = vmatprep.subr.bf16.mxu1 %v12961_v25  ;;  %v1305_v23 = vld [vmem:[#allocation8 + $0x1140] sm:$0xff]  ;;  %v1298_v24 = vld [vmem:[#allocation8 + $0x1108] sm:$0xff] }
 0x1d1   :  { %v1306_v25 = vld [vmem:[#allocation8 + $0x1148] sm:$0xff]  ;;  %v13055_v29 = vcombine.high %v1297_v22, %v1305_v23  ;;  %v13054_v39 = vcombine.low %v1297_v22, %v1305_v23  ;;  %v1401_v22 = vld [vmem:[#allocation8 + $0x1440] sm:$0xff] }
 0x1d2   :  { %v13056_v41 = vcombine.low %v1298_v24, %v1306_v25  ;;  %v1394_v23 = vld [vmem:[#allocation8 + $0x1408] sm:$0xff] }
 0x1d3   :  { %7047 = vmatpush1.bf16.msra.mxu0 %v12958_v31  ;;  %7211 = vmatpush1.bf16.msra.mxu1 %v12960_v32  ;;  %v13057_v31 = vcombine.high %v1298_v24, %v1306_v25  ;;  %v1313_v32 = vld [vmem:[#allocation8 + $0x1180] sm:$0xff]  ;;  %v1402_v24 = vld [vmem:[#allocation8 + $0x1448] sm:$0xff]  ;;  %v13134_v25 = vcombine.low %v1377_v8, %v1385_v9 }
 0x1d4   :  { %7048 = vmatprep.subr.bf16.mxu0 %v12975_v34  ;;  %7212 = vmatprep.subr.bf16.mxu1 %v12977_v35  ;;  %v1321_v34 = vld [vmem:[#allocation8 + $0x11c0] sm:$0xff]  ;;  %v1314_v35 = vld [vmem:[#allocation8 + $0x1188] sm:$0xff] }
 0x1d5   :  { %v13071_v42 = vcombine.high %v1313_v32, %v1321_v34  ;;  %v13073_v0 = vcombine.high %v1314_v35, %v1322_v36  ;;  %v13070_v48 = vcombine.low %v1313_v32, %v1321_v34  ;;  %v13072_v49 = vcombine.low %v1314_v35, %v1322_v36  ;;  %v1417_v32 = vld [vmem:[#allocation8 + $0x14c0] sm:$0xff]  ;;  %v1410_v34 = vld [vmem:[#allocation8 + $0x1488] sm:$0xff] }
 0x1d6   :  { %v1418_v35 = vld [vmem:[#allocation8 + $0x14c8] sm:$0xff] }
 0x1d7   :  { %7049 = vmatpush1.bf16.msra.mxu0 %v12974_v44  ;;  %7213 = vmatpush1.bf16.msra.mxu1 %v12976_v45  ;;  %v1329_v44 = vld [vmem:[#allocation8 + $0x1200] sm:$0xff] }
 0x1d8   :  { %7050 = vmatprep.subr.bf16.mxu0 %v12991_v46  ;;  %7214 = vmatprep.subr.bf16.mxu1 %v12993_v47  ;;  %v1337_v45 = vld [vmem:[#allocation8 + $0x1240] sm:$0xff]  ;;  %v1330_v46 = vld [vmem:[#allocation8 + $0x1208] sm:$0xff] }
 0x1d9   :  { %v1338_v47 = vld [vmem:[#allocation8 + $0x1248] sm:$0xff]  ;;  %v13087_v50 = vcombine.high %v1329_v44, %v1337_v45 }
 0x1da   :  { %v13089_v51 = vcombine.high %v1330_v46, %v1338_v47 }
 0x1db   :  { %7051 = vmatpush1.bf16.msra.mxu0 %v12990_v56  ;;  %7215 = vmatpush1.bf16.msra.mxu1 %v12992_v57  ;;  %v1346_v56 = vld [vmem:[#allocation8 + $0x1288] sm:$0xff] }
 0x1dc   :  { %7052 = vmatprep.subr.bf16.mxu0 %v13007_v58  ;;  %7216 = vmatprep.subr.bf16.mxu1 %v13009_v60  ;;  %v1354_v57 = vld [vmem:[#allocation8 + $0x12c8] sm:$0xff]  ;;  %v13086_v58 = vcombine.low %v1329_v44, %v1337_v45  ;;  %v13088_v60 = vcombine.low %v1330_v46, %v1338_v47  ;;  %v1433_v44 = vld [vmem:[#allocation8 + $0x1540] sm:$0xff] }
 0x1dd   :  { %v13105_v62 = vcombine.high %v1346_v56, %v1354_v57  ;;  %v1426_v45 = vld [vmem:[#allocation8 + $0x1508] sm:$0xff] }
 0x1de   :  { %v1434_v46 = vld [vmem:[#allocation8 + $0x1548] sm:$0xff] }
 0x1df   :  { %7053 = vmatpush1.bf16.msra.mxu0 %v13006_v4  ;;  %7217 = vmatpush1.bf16.msra.mxu1 %v13008_v5  ;;  %v13102_v4 = vcombine.low %v1345_v52, %v1353_v54  ;;  %v13104_v5 = vcombine.low %v1346_v56, %v1354_v57  ;;  %v1449_v52 = vld [vmem:[#allocation8 + $0x15c0] sm:$0xff]  ;;  %v1442_v54 = vld [vmem:[#allocation8 + $0x1588] sm:$0xff] }
 0x1e0   :  { %7063 = vmatprep.subr.bf16.mxu0 %v13023_v37  ;;  %7227 = vmatprep.subr.bf16.mxu1 %v13025_v7  ;;  %v13119_v37 = vcombine.high %v1361_v63, %v1369_v1  ;;  %v13121_v7 = vcombine.high %v1362_v2, %v1370_v3  ;;  %v1450_v56 = vld [vmem:[#allocation8 + $0x15c8] sm:$0xff]  ;;  %v1465_v63 = vld [vmem:[#allocation8 + $0x1640] sm:$0xff] }
 0x1e1   :  { %v1458_v1 = vld [vmem:[#allocation8 + $0x1608] sm:$0xff] }
 0x1e2   :  { %7055 = vmatmul.mubr.bf16.vlgmr.msra.gmra.mrb[8].mxu0 %v15590_v17  ;;  %7219 = vmatmul.mubr.bf16.vlgmr.msra.gmra.mrb[8].mxu1 %v15590_v17 }
 0x1e3   :  { %7064 = vmatpush1.bf16.msra.mxu0 %v13022_v18  ;;  %7228 = vmatpush1.bf16.msra.mxu1 %v13024_v6  ;;  %v13120_v18 = vcombine.low %v1362_v2, %v1370_v3  ;;  %v13135_v6 = vcombine.high %v1377_v8, %v1385_v9  ;;  %v1466_v2 = vld [vmem:[#allocation8 + $0x1648] sm:$0xff]  ;;  %v1481_v8 = vld [vmem:[#allocation8 + $0x16c0] sm:$0xff] }
 0x1e4   :  { %7065 = vmatprep.subr.bf16.mxu0 %v13039_v19  ;;  %7229 = vmatprep.subr.bf16.mxu1 %v13041_v21  ;;  %v13137_v19 = vcombine.high %v1378_v10, %v1386_v11  ;;  %v1393_v21 = vld [vmem:[#allocation8 + $0x1400] sm:$0xff]  ;;  %v1474_v9 = vld [vmem:[#allocation8 + $0x1688] sm:$0xff] }
 0x1e5   :  { %7095 = vmatprep.mubr.bf16.mxu0 %v15592_v26  ;;  %7259 = vmatprep.mubr.bf16.mxu1 %v15592_v26  ;;  %v13150_v36 = vcombine.low %v1393_v21, %v1401_v22 }
 0x1e7   :  { %7066 = vmatpush1.bf16.msra.mxu0 %v13038_v27  ;;  %7230 = vmatpush1.bf16.msra.mxu1 %v13040_v28  ;;  %v13136_v27 = vcombine.low %v1378_v10, %v1386_v11  ;;  %v13151_v28 = vcombine.high %v1393_v21, %v1401_v22  ;;  %v1482_v10 = vld [vmem:[#allocation8 + $0x16c8] sm:$0xff]  ;;  %v15599_v11 = vsub.s32 4, %v15537_v13  ;;  %v1489_v21 = vld [vmem:[#allocation8 + $0x1700] sm:$0xff] }
 0x1e8   :  { %7067 = vmatprep.subr.bf16.mxu0 %v13055_v29  ;;  %7231 = vmatprep.subr.bf16.mxu1 %v13057_v31  ;;  %v13153_v29 = vcombine.high %v1394_v23, %v1402_v24  ;;  %v1409_v31 = vld [vmem:[#allocation8 + $0x1480] sm:$0xff] }
 0x1e9   :  { %v13166_v47 = vcombine.low %v1409_v31, %v1417_v32  ;;  %v1497_v22 = vld [vmem:[#allocation8 + $0x1740] sm:$0xff] }
 0x1eb   :  { %7068 = vmatpush1.bf16.msra.mxu0 %v13054_v39  ;;  %7232 = vmatpush1.bf16.msra.mxu1 %v13056_v41  ;;  %v13152_v39 = vcombine.low %v1394_v23, %v1402_v24  ;;  %v13167_v41 = vcombine.high %v1409_v31, %v1417_v32  ;;  %v1490_v23 = vld [vmem:[#allocation8 + $0x1708] sm:$0xff]  ;;  %v13247_v31 = vcombine.high %v1489_v21, %v1497_v22 }
 0x1ec   :  { %7069 = vmatprep.subr.bf16.mxu0 %v13071_v42  ;;  %7233 = vmatprep.subr.bf16.mxu1 %v13073_v0  ;;  %v13169_v42 = vcombine.high %v1410_v34, %v1418_v35  ;;  %v1425_v0 = vld [vmem:[#allocation8 + $0x1500] sm:$0xff]  ;;  %v1498_v24 = vld [vmem:[#allocation8 + $0x1748] sm:$0xff] }
 0x1ed   :  { %v13182_v57 = vcombine.low %v1425_v0, %v1433_v44  ;;  %v13249_v32 = vcombine.high %v1490_v23, %v1498_v24 }
 0x1ef   :  { %7070 = vmatpush1.bf16.msra.mxu0 %v13070_v48  ;;  %7234 = vmatpush1.bf16.msra.mxu1 %v13072_v49  ;;  %v13168_v48 = vcombine.low %v1410_v34, %v1418_v35  ;;  %v13183_v49 = vcombine.high %v1425_v0, %v1433_v44  ;;  %v1505_v34 = vld [vmem:[#allocation8 + $0x1780] sm:$0xff]  ;;  %v13248_v44 = vcombine.low %v1490_v23, %v1498_v24  ;;  %v1578_v23 = vld [vmem:[#allocation8 + $0x19c8] sm:$0xff] }
 0x1f0   :  { %7071 = vmatprep.subr.bf16.mxu0 %v13087_v50  ;;  %7235 = vmatprep.subr.bf16.mxu1 %v13089_v51  ;;  %v13185_v50 = vcombine.high %v1426_v45, %v1434_v46  ;;  %v1441_v51 = vld [vmem:[#allocation8 + $0x1580] sm:$0xff] }
 0x1f1   :  { %v13198_v3 = vcombine.low %v1441_v51, %v1449_v52  ;;  %v1513_v35 = vld [vmem:[#allocation8 + $0x17c0] sm:$0xff] }
 0x1f3   :  { %7072 = vmatpush1.bf16.msra.mxu0 %v13086_v58  ;;  %7236 = vmatpush1.bf16.msra.mxu1 %v13088_v60  ;;  %v13184_v58 = vcombine.low %v1426_v45, %v1434_v46  ;;  %v13199_v60 = vcombine.high %v1441_v51, %v1449_v52  ;;  %v13263_v45 = vcombine.high %v1505_v34, %v1513_v35 }
 0x1f4   :  { %7073 = vmatprep.subr.bf16.mxu0 %v13103_v61  ;;  %7237 = vmatprep.subr.bf16.mxu1 %v13105_v62  ;;  %v13201_v61 = vcombine.high %v1442_v54, %v1450_v56  ;;  %v1457_v62 = vld [vmem:[#allocation8 + $0x1600] sm:$0xff] }
 0x1f7   :  { %7074 = vmatpush1.bf16.msra.mxu0 %v13102_v4  ;;  %7238 = vmatpush1.bf16.msra.mxu1 %v13104_v5  ;;  %v13200_v4 = vcombine.low %v1442_v54, %v1450_v56  ;;  %v13215_v5 = vcombine.high %v1457_v62, %v1465_v63  ;;  %v13262_v54 = vcombine.low %v1505_v34, %v1513_v35  ;;  %v1586_v34 = vld [vmem:[#allocation8 + $0x1a08] sm:$0xff] }
 0x1f8   :  { %7075 = vmatprep.subr.bf16.mxu0 %v13119_v37  ;;  %7239 = vmatprep.subr.bf16.mxu1 %v13121_v7  ;;  %v13217_v37 = vcombine.high %v1458_v1, %v1466_v2  ;;  %v1473_v7 = vld [vmem:[#allocation8 + $0x1680] sm:$0xff]  ;;  %v1594_v35 = vld [vmem:[#allocation8 + $0x1a48] sm:$0xff] }
 0x1fb   :  { %7076 = vmatpush1.bf16.msra.mxu0 %v13118_v12  ;;  %7240 = vmatpush1.bf16.msra.mxu1 %v13120_v18  ;;  %v13214_v12 = vcombine.low %v1457_v62, %v1465_v63  ;;  %v13216_v18 = vcombine.low %v1458_v1, %v1466_v2  ;;  %v1546_v62 = vld [vmem:[#allocation8 + $0x18c8] sm:$0xff] }
 0x1fc   :  { %7077 = vmatprep.subr.bf16.mxu0 %v13135_v6  ;;  %7241 = vmatprep.subr.bf16.mxu1 %v13137_v19  ;;  %v13231_v6 = vcombine.high %v1473_v7, %v1481_v8  ;;  %v13233_v19 = vcombine.high %v1474_v9, %v1482_v10 }
 0x1ff   :  { %7078 = vmatpush1.bf16.msra.mxu0 %v13134_v25  ;;  %7242 = vmatpush1.bf16.msra.mxu1 %v13136_v27  ;;  %v15602_v25 = vsub.s32 7, %v15537_v13  ;;  %v232_v27 = vrot.slane %v15542_v15, %v15599_v11  ;;  %v13246_v15 = vcombine.low %v1489_v21, %v1497_v22  ;;  %v1577_v21 = vld [vmem:[#allocation8 + $0x19c0] sm:$0xff]  ;;  %v1570_v22 = vld [vmem:[#allocation8 + $0x1988] sm:$0xff] }
 0x200   :  { %7079 = vmatprep.subr.bf16.mxu0 %v13151_v28  ;;  %7243 = vmatprep.subr.bf16.mxu1 %v13153_v29  ;;  %v13230_v28 = vcombine.low %v1473_v7, %v1481_v8  ;;  %v13232_v29 = vcombine.low %v1474_v9, %v1482_v10  ;;  %v1554_v7 = vld [vmem:[#allocation8 + $0x1908] sm:$0xff] }
 0x201   :  { %v690_v0 = vadd.f32 %v15570_v40, %v232_v27  ;;  %v1562_v8 = vld [vmem:[#allocation8 + $0x1948] sm:$0xff] }
 0x202   :  { %v13312_v27 = vcombine.low %v1554_v7, %v1562_v8 }
 0x203   :  { %7080 = vmatpush1.bf16.msra.mxu0 %v13150_v36  ;;  %7244 = vmatpush1.bf16.msra.mxu1 %v13152_v39  ;;  %v1506_v36 = vld [vmem:[#allocation8 + $0x1788] sm:$0xff]  ;;  %v741_v52 = vmax.f32 %v690_v0, 0.0  ;;  %v13345_v0 = vcombine.high %v1586_v34, %v1594_v35 }
 0x204   :  { %7081 = vmatprep.subr.bf16.mxu0 %v13167_v41  ;;  %7245 = vmatprep.subr.bf16.mxu1 %v13169_v42  ;;  %v1514_v39 = vld [vmem:[#allocation8 + $0x17c8] sm:$0xff]  ;;  %v15606_v41 = vld [vmem:[#allocation7] sm:$0xff] }
 0x205   :  { %v244_v42 = vrot.slane %v15606_v41, %v15602_v25  ;;  %v13265_v46 = vcombine.high %v1506_v36, %v1514_v39  ;;  %v13264_v56 = vcombine.low %v1506_v36, %v1514_v39  ;;  %v15612_v1 = vpack.c.bf16 %v741_v52, %v741_v52  ;;  %v1625_v52 = vld [vmem:[#allocation8 + $0x1b40] sm:$0xff] }
 0x206   :  { %v13328_v39 = vcombine.low %v1570_v22, %v1578_v23 }
 0x207   :  { %7082 = vmatpush1.bf16.msra.mxu0 %v13166_v47  ;;  %7246 = vmatpush1.bf16.msra.mxu1 %v13168_v48  ;;  %v1521_v47 = vld [vmem:[#allocation8 + $0x1800] sm:$0xff]  ;;  %v733_v51 = vadd.f32 %v15576_v59, %v244_v42 }
 0x208   :  { %7083 = vmatprep.subr.bf16.mxu0 %v13183_v49  ;;  %7247 = vmatprep.subr.bf16.mxu1 %v13185_v50  ;;  %v1529_v48 = vld [vmem:[#allocation8 + $0x1840] sm:$0xff]  ;;  %v1522_v49 = vld [vmem:[#allocation8 + $0x1808] sm:$0xff] }
 0x209   :  { %v1530_v50 = vld [vmem:[#allocation8 + $0x1848] sm:$0xff]  ;;  %v13279_v40 = vcombine.high %v1521_v47, %v1529_v48  ;;  %v744_v63 = vmax.f32 %v733_v51, 0.0  ;;  %v13278_v2 = vcombine.low %v1521_v47, %v1529_v48  ;;  %v13344_v48 = vcombine.low %v1586_v34, %v1594_v35  ;;  %v1617_v51 = vld [vmem:[#allocation8 + $0x1b00] sm:$0xff] }
 0x20a   :  { %v13280_v59 = vcombine.low %v1522_v49, %v1530_v50  ;;  %v1689_v34 = vld [vmem:[#allocation8 + $0x1d40] sm:$0xff]  ;;  %v1682_v35 = vld [vmem:[#allocation8 + $0x1d08] sm:$0xff] }
 0x20b   :  { %7084 = vmatpush1.bf16.msra.mxu0 %v13182_v57  ;;  %7248 = vmatpush1.bf16.msra.mxu1 %v13184_v58  ;;  %v13281_v57 = vcombine.high %v1522_v49, %v1530_v50  ;;  %v1537_v58 = vld [vmem:[#allocation8 + $0x1880] sm:$0xff]  ;;  %v15614_v9 = vpack.c.bf16 %v744_v63, %v744_v63  ;;  %v1634_v63 = vld [vmem:[#allocation8 + $0x1b88] sm:$0xff] }
 0x20c   :  { %7085 = vmatprep.subr.bf16.mxu0 %v13199_v60  ;;  %7249 = vmatprep.subr.bf16.mxu1 %v13201_v61  ;;  %v1545_v60 = vld [vmem:[#allocation8 + $0x18c0] sm:$0xff]  ;;  %v1538_v61 = vld [vmem:[#allocation8 + $0x1888] sm:$0xff] }
 0x20d   :  { %v13294_v10 = vcombine.low %v1537_v58, %v1545_v60 }
 0x20f   :  { %7086 = vmatpush1.bf16.msra.mxu0 %v13198_v3  ;;  %7250 = vmatpush1.bf16.msra.mxu1 %v13200_v4  ;;  %v13295_v3 = vcombine.high %v1537_v58, %v1545_v60  ;;  %v13297_v4 = vcombine.high %v1538_v61, %v1546_v62  ;;  %v13375_v58 = vcombine.high %v1617_v51, %v1625_v52 }
 0x210   :  { %7087 = vmatprep.subr.bf16.mxu0 %v13215_v5  ;;  %7251 = vmatprep.subr.bf16.mxu1 %v13217_v37  ;;  %v1553_v5 = vld [vmem:[#allocation8 + $0x1900] sm:$0xff] }
 0x211   :  { %v1561_v37 = vld [vmem:[#allocation8 + $0x1940] sm:$0xff] }
 0x212   :  { %v13310_v24 = vcombine.low %v1553_v5, %v1561_v37 }
 0x213   :  { %7088 = vmatpush1.bf16.msra.mxu0 %v13214_v12  ;;  %7252 = vmatpush1.bf16.msra.mxu1 %v13216_v18  ;;  %v13296_v12 = vcombine.low %v1538_v61, %v1546_v62  ;;  %v13311_v18 = vcombine.high %v1553_v5, %v1561_v37  ;;  %v1633_v61 = vld [vmem:[#allocation8 + $0x1b80] sm:$0xff] }
 0x214   :  { %7089 = vmatprep.subr.bf16.mxu0 %v13231_v6  ;;  %7253 = vmatprep.subr.bf16.mxu1 %v13233_v19  ;;  %v13313_v6 = vcombine.high %v1554_v7, %v1562_v8  ;;  %v1569_v19 = vld [vmem:[#allocation8 + $0x1980] sm:$0xff]  ;;  %v1650_v8 = vld [vmem:[#allocation8 + $0x1c08] sm:$0xff] }
 0x215   :  { %v13326_v36 = vcombine.low %v1569_v19, %v1577_v21  ;;  %v1641_v62 = vld [vmem:[#allocation8 + $0x1bc0] sm:$0xff] }
 0x216   :  { %v1649_v37 = vld [vmem:[#allocation8 + $0x1c00] sm:$0xff] }
 0x217   :  { %7090 = vmatpush1.bf16.msra.mxu0 %v13230_v28  ;;  %7254 = vmatpush1.bf16.msra.mxu1 %v13232_v29  ;;  %v13327_v28 = vcombine.high %v1569_v19, %v1577_v21  ;;  %v13329_v29 = vcombine.high %v1570_v22, %v1578_v23  ;;  %v1657_v7 = vld [vmem:[#allocation8 + $0x1c40] sm:$0xff]  ;;  %v1666_v23 = vld [vmem:[#allocation8 + $0x1c88] sm:$0xff] }
 0x218   :  { %7091 = vmatprep.subr.bf16.mxu0 %v13247_v31  ;;  %7255 = vmatprep.subr.bf16.mxu1 %v13249_v32  ;;  %v1585_v31 = vld [vmem:[#allocation8 + $0x1a00] sm:$0xff] }
 0x219   :  { %v1593_v32 = vld [vmem:[#allocation8 + $0x1a40] sm:$0xff] }
 0x21a   :  { %v13343_v42 = vcombine.high %v1585_v31, %v1593_v32  ;;  %v13342_v47 = vcombine.low %v1585_v31, %v1593_v32  ;;  %v1665_v21 = vld [vmem:[#allocation8 + $0x1c80] sm:$0xff] }
 0x21b   :  { %7092 = vmatpush1.bf16.msra.mxu0 %v13246_v15  ;;  %7256 = vmatpush1.bf16.msra.mxu1 %v13248_v44  ;;  %v1601_v15 = vld [vmem:[#allocation8 + $0x1a80] sm:$0xff] }
 0x21c   :  { %7093 = vmatprep.subr.bf16.mxu0 %v13263_v45  ;;  %7257 = vmatprep.subr.bf16.mxu1 %v13265_v46  ;;  %v1609_v44 = vld [vmem:[#allocation8 + $0x1ac0] sm:$0xff]  ;;  %v1602_v45 = vld [vmem:[#allocation8 + $0x1a88] sm:$0xff] }
 0x21d   :  { %v1610_v46 = vld [vmem:[#allocation8 + $0x1ac8] sm:$0xff]  ;;  %v13359_v49 = vcombine.high %v1601_v15, %v1609_v44  ;;  %v1673_v22 = vld [vmem:[#allocation8 + $0x1cc0] sm:$0xff] }
 0x21e   :  { %v13361_v50 = vcombine.high %v1602_v45, %v1610_v46  ;;  %v1681_v32 = vld [vmem:[#allocation8 + $0x1d00] sm:$0xff] }
 0x21f   :  { %7094 = vmatpush1.bf16.msra.mxu0 %v13262_v54  ;;  %7258 = vmatpush1.bf16.msra.mxu1 %v13264_v56  ;;  %v1618_v54 = vld [vmem:[#allocation8 + $0x1b08] sm:$0xff] }
 0x220   :  { %7104 = vmatprep.subr.bf16.mxu0 %v13279_v40  ;;  %7268 = vmatprep.subr.bf16.mxu1 %v13281_v57  ;;  %v1626_v56 = vld [vmem:[#allocation8 + $0x1b48] sm:$0xff]  ;;  %v13358_v40 = vcombine.low %v1601_v15, %v1609_v44  ;;  %v13360_v57 = vcombine.low %v1602_v45, %v1610_v46  ;;  %v1697_v44 = vld [vmem:[#allocation8 + $0x1d80] sm:$0xff] }
 0x221   :  { %v13377_v60 = vcombine.high %v1618_v54, %v1626_v56  ;;  %v1705_v45 = vld [vmem:[#allocation8 + $0x1dc0] sm:$0xff]  ;;  %v1698_v46 = vld [vmem:[#allocation8 + $0x1d88] sm:$0xff] }
 0x222   :  { %7096 = vmatmul.mubr.bf16.vlgmr.msra.gmra.mrb[8].mxu0 %v15612_v1  ;;  %7260 = vmatmul.mubr.bf16.vlgmr.msra.gmra.mrb[8].mxu1 %v15612_v1 }
 0x223   :  { %7105 = vmatpush1.bf16.msra.mxu0 %v13278_v2  ;;  %7269 = vmatpush1.bf16.msra.mxu1 %v13280_v59  ;;  %v1642_v2 = vld [vmem:[#allocation8 + $0x1bc8] sm:$0xff]  ;;  %v13374_v59 = vcombine.low %v1617_v51, %v1625_v52  ;;  %v1713_v52 = vld [vmem:[#allocation8 + $0x1e00] sm:$0xff] }
 0x224   :  { %7106 = vmatprep.subr.bf16.mxu0 %v13295_v3  ;;  %7270 = vmatprep.subr.bf16.mxu1 %v13297_v4  ;;  %v13376_v3 = vcombine.low %v1618_v54, %v1626_v56  ;;  %v13391_v4 = vcombine.high %v1633_v61, %v1641_v62  ;;  %v13393_v5 = vcombine.high %v1634_v63, %v1642_v2  ;;  %v1721_v54 = vld [vmem:[#allocation8 + $0x1e40] sm:$0xff]  ;;  %v1714_v56 = vld [vmem:[#allocation8 + $0x1e08] sm:$0xff] }
 0x225   :  { %7136 = vmatprep.mubr.bf16.mxu0 %v15614_v9  ;;  %7300 = vmatprep.mubr.bf16.mxu1 %v15614_v9 }
 0x227   :  { %7107 = vmatpush1.bf16.msra.mxu0 %v13294_v10  ;;  %7271 = vmatpush1.bf16.msra.mxu1 %v13296_v12  ;;  %v1658_v10 = vld [vmem:[#allocation8 + $0x1c48] sm:$0xff]  ;;  %v13390_v12 = vcombine.low %v1633_v61, %v1641_v62  ;;  %v1729_v62 = vld [vmem:[#allocation8 + $0x1e80] sm:$0xff] }
 0x228   :  { %7108 = vmatprep.subr.bf16.mxu0 %v13311_v18  ;;  %7272 = vmatprep.subr.bf16.mxu1 %v13313_v6  ;;  %v13392_v18 = vcombine.low %v1634_v63, %v1642_v2  ;;  %v13407_v6 = vcombine.high %v1649_v37, %v1657_v7  ;;  %v13409_v19 = vcombine.high %v1650_v8, %v1658_v10  ;;  %v1737_v63 = vld [vmem:[#allocation8 + $0x1ec0] sm:$0xff]  ;;  %v1730_v2 = vld [vmem:[#allocation8 + $0x1e88] sm:$0xff] }
 0x22b   :  { %7109 = vmatpush1.bf16.msra.mxu0 %v13310_v24  ;;  %7273 = vmatpush1.bf16.msra.mxu1 %v13312_v27  ;;  %v1674_v24 = vld [vmem:[#allocation8 + $0x1cc8] sm:$0xff]  ;;  %v13406_v27 = vcombine.low %v1649_v37, %v1657_v7  ;;  %v13487_v37 = vcombine.high %v1729_v62, %v1737_v63 }
 0x22c   :  { %7110 = vmatprep.subr.bf16.mxu0 %v13327_v28  ;;  %7274 = vmatprep.subr.bf16.mxu1 %v13329_v29  ;;  %v13408_v28 = vcombine.low %v1650_v8, %v1658_v10  ;;  %v13423_v29 = vcombine.high %v1665_v21, %v1673_v22  ;;  %v13425_v31 = vcombine.high %v1666_v23, %v1674_v24  ;;  %v1745_v8 = vld [vmem:[#allocation8 + $0x1f00] sm:$0xff] }
 0x22d   :  { %v1753_v10 = vld [vmem:[#allocation8 + $0x1f40] sm:$0xff] }
 0x22f   :  { %7111 = vmatpush1.bf16.msra.mxu0 %v13326_v36  ;;  %7275 = vmatpush1.bf16.msra.mxu1 %v13328_v39  ;;  %v1690_v36 = vld [vmem:[#allocation8 + $0x1d48] sm:$0xff]  ;;  %v13422_v39 = vcombine.low %v1665_v21, %v1673_v22  ;;  %v13503_v22 = vcombine.high %v1745_v8, %v1753_v10 }
 0x230   :  { %7112 = vmatprep.subr.bf16.mxu0 %v13343_v42  ;;  %7276 = vmatprep.subr.bf16.mxu1 %v13345_v0  ;;  %v13424_v42 = vcombine.low %v1666_v23, %v1674_v24  ;;  %v13439_v0 = vcombine.high %v1681_v32, %v1689_v34  ;;  %v13441_v15 = vcombine.high %v1682_v35, %v1690_v36  ;;  %v1761_v23 = vld [vmem:[#allocation8 + $0x1f80] sm:$0xff] }
 0x231   :  { %v1769_v24 = vld [vmem:[#allocation8 + $0x1fc0] sm:$0xff] }
 0x233   :  { %7113 = vmatpush1.bf16.msra.mxu0 %v13342_v47  ;;  %7277 = vmatpush1.bf16.msra.mxu1 %v13344_v48  ;;  %v1706_v47 = vld [vmem:[#allocation8 + $0x1dc8] sm:$0xff]  ;;  %v13438_v48 = vcombine.low %v1681_v32, %v1689_v34  ;;  %v13519_v34 = vcombine.high %v1761_v23, %v1769_v24 }
 0x234   :  { %7114 = vmatprep.subr.bf16.mxu0 %v13359_v49  ;;  %7278 = vmatprep.subr.bf16.mxu1 %v13361_v50  ;;  %v13440_v49 = vcombine.low %v1682_v35, %v1690_v36  ;;  %v13455_v50 = vcombine.high %v1697_v44, %v1705_v45  ;;  %v13457_v51 = vcombine.high %v1698_v46, %v1706_v47  ;;  %v755_v36 = vld [vmem:[#allocation8 + $0x10] sm:$0xff] }
 0x237   :  { %7115 = vmatpush1.bf16.msra.mxu0 %v13358_v40  ;;  %7279 = vmatpush1.bf16.msra.mxu1 %v13360_v57  ;;  %v1722_v40 = vld [vmem:[#allocation8 + $0x1e48] sm:$0xff]  ;;  %v13454_v57 = vcombine.low %v1697_v44, %v1705_v45 }
 0x238   :  { %7116 = vmatprep.subr.bf16.mxu0 %v13375_v58  ;;  %7280 = vmatprep.subr.bf16.mxu1 %v13377_v60  ;;  %v13456_v58 = vcombine.low %v1698_v46, %v1706_v47  ;;  %v13471_v60 = vcombine.high %v1713_v52, %v1721_v54  ;;  %v13473_v61 = vcombine.high %v1714_v56, %v1722_v40  ;;  %v771_v47 = vld [vmem:[#allocation8 + $0x90] sm:$0xff] }
 0x23b   :  { %7117 = vmatpush1.bf16.msra.mxu0 %v13374_v59  ;;  %7281 = vmatpush1.bf16.msra.mxu1 %v13376_v3  ;;  %v1738_v59 = vld [vmem:[#allocation8 + $0x1ec8] sm:$0xff]  ;;  %v13470_v3 = vcombine.low %v1713_v52, %v1721_v54 }
 0x23c   :  { %7118 = vmatprep.subr.bf16.mxu0 %v13391_v4  ;;  %7282 = vmatprep.subr.bf16.mxu1 %v13393_v5  ;;  %v13472_v4 = vcombine.low %v1714_v56, %v1722_v40  ;;  %v15621_v5 = vsub.s32 6, %v15537_v13  ;;  %v13489_v7 = vcombine.high %v1730_v2, %v1738_v59  ;;  %v787_v40 = vld [vmem:[#allocation8 + $0x110] sm:$0xff] }
 0x23e   :  { %v240_v21 = vrot.slane %v15606_v41, %v15621_v5  ;;  %v763_v41 = vld [vmem:[#allocation8 + $0x50] sm:$0xff] }
 0x23f   :  { %7119 = vmatpush1.bf16.msra.mxu0 %v13390_v12  ;;  %7283 = vmatpush1.bf16.msra.mxu1 %v13392_v18  ;;  %v1746_v12 = vld [vmem:[#allocation8 + $0x1f08] sm:$0xff]  ;;  %v12515_v45 = vcombine.high %v755_v36, %v763_v41 }
 0x240   :  { %7120 = vmatprep.subr.bf16.mxu0 %v13407_v6  ;;  %7284 = vmatprep.subr.bf16.mxu1 %v13409_v19  ;;  %v1754_v18 = vld [vmem:[#allocation8 + $0x1f48] sm:$0xff]  ;;  %v13486_v6 = vcombine.low %v1729_v62, %v1737_v63  ;;  %v13488_v19 = vcombine.low %v1730_v2, %v1738_v59  ;;  %v731_v32 = vadd.f32 %v15574_v55, %v240_v21  ;;  %v772_v55 = vld [vmem:[#allocation8 + $0x98] sm:$0xff]  ;;  %v803_v59 = vld [vmem:[#allocation8 + $0x190] sm:$0xff] }
 0x241   :  { %v13505_v13 = vcombine.high %v1746_v12, %v1754_v18  ;;  %v828_v21 = vld [vmem:[#allocation8 + $0x258] sm:$0xff] }
 0x242   :  { %v743_v44 = vmax.f32 %v731_v32, 0.0 }
 0x243   :  { %7121 = vmatpush1.bf16.msra.mxu0 %v13406_v27  ;;  %7285 = vmatpush1.bf16.msra.mxu1 %v13408_v28  ;;  %v1762_v27 = vld [vmem:[#allocation8 + $0x1f88] sm:$0xff] }
 0x244   :  { %7122 = vmatprep.subr.bf16.mxu0 %v13423_v29  ;;  %7286 = vmatprep.subr.bf16.mxu1 %v13425_v31  ;;  %v1770_v28 = vld [vmem:[#allocation8 + $0x1fc8] sm:$0xff]  ;;  %v13502_v29 = vcombine.low %v1745_v8, %v1753_v10  ;;  %v13504_v31 = vcombine.low %v1746_v12, %v1754_v18  ;;  %v819_v18 = vld [vmem:[#allocation8 + $0x210] sm:$0xff] }
 0x245   :  { %v13521_v35 = vcombine.high %v1762_v27, %v1770_v28 }
 0x247   :  { %7123 = vmatpush1.bf16.msra.mxu0 %v13422_v39  ;;  %7287 = vmatpush1.bf16.msra.mxu1 %v13424_v42  ;;  %v756_v39 = vld [vmem:[#allocation8 + $0x18] sm:$0xff] }
 0x248   :  { %7124 = vmatprep.subr.bf16.mxu0 %v13439_v0  ;;  %7288 = vmatprep.subr.bf16.mxu1 %v13441_v15  ;;  %v764_v42 = vld [vmem:[#allocation8 + $0x58] sm:$0xff]  ;;  %v13518_v0 = vcombine.low %v1761_v23, %v1769_v24  ;;  %v13520_v15 = vcombine.low %v1762_v27, %v1770_v28  ;;  %v835_v27 = vld [vmem:[#allocation8 + $0x290] sm:$0xff] }
 0x249   :  { %v12517_v46 = vcombine.high %v756_v39, %v764_v42  ;;  %v12516_v52 = vcombine.low %v756_v39, %v764_v42  ;;  %v843_v28 = vld [vmem:[#allocation8 + $0x2d0] sm:$0xff]  ;;  %v852_v42 = vld [vmem:[#allocation8 + $0x318] sm:$0xff] }
 0x24a   :  { %v859_v39 = vld [vmem:[#allocation8 + $0x350] sm:$0xff] }
 0x24b   :  { %7125 = vmatpush1.bf16.msra.mxu0 %v13438_v48  ;;  %7289 = vmatpush1.bf16.msra.mxu1 %v13440_v49  ;;  %v779_v48 = vld [vmem:[#allocation8 + $0xd0] sm:$0xff]  ;;  %v780_v49 = vld [vmem:[#allocation8 + $0xd8] sm:$0xff] }
 0x24c   :  { %7126 = vmatprep.subr.bf16.mxu0 %v13455_v50  ;;  %7290 = vmatprep.subr.bf16.mxu1 %v13457_v51  ;;  %v12514_v50 = vcombine.low %v755_v36, %v763_v41  ;;  %v15626_v51 = vpack.c.bf16 %v743_v44, %v743_v44  ;;  %v12531_v54 = vcombine.high %v771_v47, %v779_v48  ;;  %v851_v41 = vld [vmem:[#allocation8 + $0x310] sm:$0xff] }
 0x24d   :  { %v12533_v56 = vcombine.high %v772_v55, %v780_v49  ;;  %v12532_v62 = vcombine.low %v772_v55, %v780_v49  ;;  %v868_v55 = vld [vmem:[#allocation8 + $0x398] sm:$0xff] }
 0x24e   :  { %v876_v49 = vld [vmem:[#allocation8 + $0x3d8] sm:$0xff] }
 0x24f   :  { %7127 = vmatpush1.bf16.msra.mxu0 %v13454_v57  ;;  %7291 = vmatpush1.bf16.msra.mxu1 %v13456_v58  ;;  %v795_v57 = vld [vmem:[#allocation8 + $0x150] sm:$0xff]  ;;  %v788_v58 = vld [vmem:[#allocation8 + $0x118] sm:$0xff] }
 0x250   :  { %7128 = vmatprep.subr.bf16.mxu0 %v13471_v60  ;;  %7292 = vmatprep.subr.bf16.mxu1 %v13473_v61  ;;  %v796_v60 = vld [vmem:[#allocation8 + $0x158] sm:$0xff]  ;;  %v12530_v61 = vcombine.low %v771_v47, %v779_v48  ;;  %v12547_v63 = vcombine.high %v787_v40, %v795_v57  ;;  %v867_v47 = vld [vmem:[#allocation8 + $0x390] sm:$0xff] }
 0x251   :  { %v12549_v2 = vcombine.high %v788_v58, %v796_v60  ;;  %v12548_v8 = vcombine.low %v788_v58, %v796_v60  ;;  %v875_v48 = vld [vmem:[#allocation8 + $0x3d0] sm:$0xff]  ;;  %v884_v58 = vld [vmem:[#allocation8 + $0x418] sm:$0xff] }
 0x252   :  { %v892_v60 = vld [vmem:[#allocation8 + $0x458] sm:$0xff] }
 0x253   :  { %7129 = vmatpush1.bf16.msra.mxu0 %v13470_v3  ;;  %7293 = vmatpush1.bf16.msra.mxu1 %v13472_v4  ;;  %v811_v3 = vld [vmem:[#allocation8 + $0x1d0] sm:$0xff]  ;;  %v804_v4 = vld [vmem:[#allocation8 + $0x198] sm:$0xff] }
 0x254   :  { %7130 = vmatprep.subr.bf16.mxu0 %v13487_v37  ;;  %7294 = vmatprep.subr.bf16.mxu1 %v13489_v7  ;;  %v812_v37 = vld [vmem:[#allocation8 + $0x1d8] sm:$0xff]  ;;  %v12546_v7 = vcombine.low %v787_v40, %v795_v57  ;;  %v12563_v10 = vcombine.high %v803_v59, %v811_v3  ;;  %v883_v40 = vld [vmem:[#allocation8 + $0x410] sm:$0xff] }
 0x255   :  { %v12565_v12 = vcombine.high %v804_v4, %v812_v37  ;;  %v891_v57 = vld [vmem:[#allocation8 + $0x450] sm:$0xff] }
 0x257   :  { %7131 = vmatpush1.bf16.msra.mxu0 %v13486_v6  ;;  %7295 = vmatpush1.bf16.msra.mxu1 %v13488_v19  ;;  %v827_v6 = vld [vmem:[#allocation8 + $0x250] sm:$0xff]  ;;  %v820_v19 = vld [vmem:[#allocation8 + $0x218] sm:$0xff] }
 0x258   :  { %7132 = vmatprep.subr.bf16.mxu0 %v13503_v22  ;;  %7296 = vmatprep.subr.bf16.mxu1 %v13505_v13  ;;  %v12562_v22 = vcombine.low %v803_v59, %v811_v3  ;;  %v12564_v13 = vcombine.low %v804_v4, %v812_v37  ;;  %v12579_v23 = vcombine.high %v819_v18, %v827_v6  ;;  %v899_v59 = vld [vmem:[#allocation8 + $0x490] sm:$0xff]  ;;  %v900_v4 = vld [vmem:[#allocation8 + $0x498] sm:$0xff] }
 0x259   :  { %v12581_v24 = vcombine.high %v820_v19, %v828_v21  ;;  %v12578_v32 = vcombine.low %v819_v18, %v827_v6  ;;  %v907_v3 = vld [vmem:[#allocation8 + $0x4d0] sm:$0xff]  ;;  %v908_v37 = vld [vmem:[#allocation8 + $0x4d8] sm:$0xff] }
 0x25a   :  { %v915_v18 = vld [vmem:[#allocation8 + $0x510] sm:$0xff] }
 0x25b   :  { %7133 = vmatpush1.bf16.msra.mxu0 %v13502_v29  ;;  %7297 = vmatpush1.bf16.msra.mxu1 %v13504_v31  ;;  %v836_v29 = vld [vmem:[#allocation8 + $0x298] sm:$0xff]  ;;  %v923_v6 = vld [vmem:[#allocation8 + $0x550] sm:$0xff] }
 0x25c   :  { %7134 = vmatprep.subr.bf16.mxu0 %v13519_v34  ;;  %7298 = vmatprep.subr.bf16.mxu1 %v13521_v35  ;;  %v844_v31 = vld [vmem:[#allocation8 + $0x2d8] sm:$0xff]  ;;  %v12580_v34 = vcombine.low %v820_v19, %v828_v21  ;;  %v12595_v35 = vcombine.high %v835_v27, %v843_v28 }
 0x25d   :  { %v12597_v36 = vcombine.high %v836_v29, %v844_v31  ;;  %v12596_v44 = vcombine.low %v836_v29, %v844_v31  ;;  %v916_v19 = vld [vmem:[#allocation8 + $0x518] sm:$0xff] }
 0x25e   :  { %v924_v21 = vld [vmem:[#allocation8 + $0x558] sm:$0xff] }
 0x25f   :  { %7135 = vmatpush1.bf16.msra.mxu0 %v13518_v0  ;;  %7299 = vmatpush1.bf16.msra.mxu1 %v13520_v15  ;;  %v860_v0 = vld [vmem:[#allocation8 + $0x358] sm:$0xff]  ;;  %v12594_v15 = vcombine.low %v835_v27, %v843_v28  ;;  %v931_v27 = vld [vmem:[#allocation8 + $0x590] sm:$0xff] }
 0x260   :  { %7309 = vmatprep.subr.bf16.mxu0 %v12515_v45  ;;  %7473 = vmatprep.subr.bf16.mxu1 %v12517_v46  ;;  %v12611_v45 = vcombine.high %v851_v41, %v859_v39  ;;  %v12613_v46 = vcombine.high %v852_v42, %v860_v0  ;;  %v939_v28 = vld [vmem:[#allocation8 + $0x5d0] sm:$0xff]  ;;  %v932_v29 = vld [vmem:[#allocation8 + $0x598] sm:$0xff] }
 0x261   :  { %v940_v31 = vld [vmem:[#allocation8 + $0x5d8] sm:$0xff] }
 0x262   :  { %7137 = vmatmul.mubr.bf16.vlgmr.msra.gmra.mrb[8].mxu0 %v15626_v51  ;;  %7301 = vmatmul.mubr.bf16.vlgmr.msra.gmra.mrb[8].mxu1 %v15626_v51 }
 0x263   :  { %7310 = vmatpush1.bf16.msra.mxu0 %v12514_v50  ;;  %7341 = vmatprep.mubr.bf16.mxu0 %v15556_v33  ;;  %v12610_v50 = vcombine.low %v851_v41, %v859_v39  ;;  %v947_v41 = vld [vmem:[#allocation8 + $0x610] sm:$0xff] }
 0x264   :  { %7474 = vmatpush1.bf16.msra.mxu1 %v12516_v52  ;;  %7505 = vmatprep.mubr.bf16.mxu1 %v15556_v33  ;;  %v12612_v52 = vcombine.low %v852_v42, %v860_v0  ;;  %v955_v39 = vld [vmem:[#allocation8 + $0x650] sm:$0xff]  ;;  %v948_v42 = vld [vmem:[#allocation8 + $0x618] sm:$0xff] }
 0x265   :  { %7311 = vmatprep.subr.bf16.mxu0 %v12531_v54  ;;  %7475 = vmatprep.subr.bf16.mxu1 %v12533_v56  ;;  %v12627_v54 = vcombine.high %v867_v47, %v875_v48  ;;  %v12629_v56 = vcombine.high %v868_v55, %v876_v49  ;;  %v956_v0 = vld [vmem:[#allocation8 + $0x658] sm:$0xff] }
 0x267   :  { %7312 = vmatpush1.bf16.msra.mxu0 %v12530_v61  ;;  %v12626_v61 = vcombine.low %v867_v47, %v875_v48  ;;  %v963_v47 = vld [vmem:[#allocation8 + $0x690] sm:$0xff] }
 0x268   :  { %7476 = vmatpush1.bf16.msra.mxu1 %v12532_v62  ;;  %7313 = vmatprep.subr.bf16.mxu0 %v12547_v63  ;;  %v12628_v62 = vcombine.low %v868_v55, %v876_v49  ;;  %v12643_v63 = vcombine.high %v883_v40, %v891_v57  ;;  %v971_v48 = vld [vmem:[#allocation8 + $0x6d0] sm:$0xff]  ;;  %v964_v55 = vld [vmem:[#allocation8 + $0x698] sm:$0xff] }
 0x269   :  { %7477 = vmatprep.subr.bf16.mxu1 %v12549_v2  ;;  %v12645_v2 = vcombine.high %v884_v58, %v892_v60  ;;  %v972_v49 = vld [vmem:[#allocation8 + $0x6d8] sm:$0xff] }
 0x26b   :  { %7314 = vmatpush1.bf16.msra.mxu0 %v12546_v7  ;;  %v12642_v7 = vcombine.low %v883_v40, %v891_v57  ;;  %v979_v40 = vld [vmem:[#allocation8 + $0x710] sm:$0xff] }
 0x26c   :  { %7478 = vmatpush1.bf16.msra.mxu1 %v12548_v8  ;;  %7315 = vmatprep.subr.bf16.mxu0 %v12563_v10  ;;  %v12644_v8 = vcombine.low %v884_v58, %v892_v60  ;;  %v12659_v10 = vcombine.high %v899_v59, %v907_v3  ;;  %v987_v57 = vld [vmem:[#allocation8 + $0x750] sm:$0xff]  ;;  %v980_v58 = vld [vmem:[#allocation8 + $0x718] sm:$0xff] }
 0x26d   :  { %7479 = vmatprep.subr.bf16.mxu1 %v12565_v12  ;;  %v12661_v12 = vcombine.high %v900_v4, %v908_v37  ;;  %v988_v60 = vld [vmem:[#allocation8 + $0x758] sm:$0xff] }
 0x26f   :  { %7316 = vmatpush1.bf16.msra.mxu0 %v12562_v22  ;;  %v12658_v22 = vcombine.low %v899_v59, %v907_v3  ;;  %v995_v59 = vld [vmem:[#allocation8 + $0x790] sm:$0xff] }
 0x270   :  { %7480 = vmatpush1.bf16.msra.mxu1 %v12564_v13  ;;  %7317 = vmatprep.subr.bf16.mxu0 %v12579_v23  ;;  %v12660_v13 = vcombine.low %v900_v4, %v908_v37  ;;  %v12675_v23 = vcombine.high %v915_v18, %v923_v6  ;;  %v1003_v3 = vld [vmem:[#allocation8 + $0x7d0] sm:$0xff]  ;;  %v996_v4 = vld [vmem:[#allocation8 + $0x798] sm:$0xff] }
 0x271   :  { %7481 = vmatprep.subr.bf16.mxu1 %v12581_v24  ;;  %v12677_v24 = vcombine.high %v916_v19, %v924_v21  ;;  %v1004_v37 = vld [vmem:[#allocation8 + $0x7d8] sm:$0xff] }
 0x273   :  { %7318 = vmatpush1.bf16.msra.mxu0 %v12578_v32  ;;  %v12674_v32 = vcombine.low %v915_v18, %v923_v6  ;;  %v1011_v18 = vld [vmem:[#allocation8 + $0x810] sm:$0xff] }
 0x274   :  { %7482 = vmatpush1.bf16.msra.mxu1 %v12580_v34  ;;  %7319 = vmatprep.subr.bf16.mxu0 %v12595_v35  ;;  %v12676_v34 = vcombine.low %v916_v19, %v924_v21  ;;  %v12691_v35 = vcombine.high %v931_v27, %v939_v28  ;;  %v1019_v6 = vld [vmem:[#allocation8 + $0x850] sm:$0xff]  ;;  %v1012_v19 = vld [vmem:[#allocation8 + $0x818] sm:$0xff] }
 0x275   :  { %7483 = vmatprep.subr.bf16.mxu1 %v12597_v36  ;;  %v12693_v36 = vcombine.high %v932_v29, %v940_v31  ;;  %v1020_v21 = vld [vmem:[#allocation8 + $0x858] sm:$0xff] }
 0x277   :  { %7320 = vmatpush1.bf16.msra.mxu0 %v12594_v15  ;;  %v12690_v15 = vcombine.low %v931_v27, %v939_v28  ;;  %v1027_v27 = vld [vmem:[#allocation8 + $0x890] sm:$0xff] }
 0x278   :  { %7484 = vmatpush1.bf16.msra.mxu1 %v12596_v44  ;;  %7321 = vmatprep.subr.bf16.mxu0 %v12611_v45  ;;  %v12692_v44 = vcombine.low %v932_v29, %v940_v31  ;;  %v12707_v45 = vcombine.high %v947_v41, %v955_v39  ;;  %v1035_v28 = vld [vmem:[#allocation8 + $0x8d0] sm:$0xff]  ;;  %v12770_v29 = vcombine.low %v1011_v18, %v1019_v6  ;;  %v1028_v31 = vld [vmem:[#allocation8 + $0x898] sm:$0xff] }
 0x279   :  { %7485 = vmatprep.subr.bf16.mxu1 %v12613_v46  ;;  %v12709_v46 = vcombine.high %v948_v42, %v956_v0 }
 0x27b   :  { %7322 = vmatpush1.bf16.msra.mxu0 %v12610_v50  ;;  %v12706_v50 = vcombine.low %v947_v41, %v955_v39  ;;  %v1051_v41 = vld [vmem:[#allocation8 + $0x950] sm:$0xff] }
 0x27c   :  { %7486 = vmatpush1.bf16.msra.mxu1 %v12612_v52  ;;  %7323 = vmatprep.subr.bf16.mxu0 %v12627_v54  ;;  %v12708_v52 = vcombine.low %v948_v42, %v956_v0  ;;  %v12723_v54 = vcombine.high %v963_v47, %v971_v48  ;;  %v1044_v42 = vld [vmem:[#allocation8 + $0x918] sm:$0xff] }
 0x27d   :  { %7487 = vmatprep.subr.bf16.mxu1 %v12629_v56  ;;  %v12725_v56 = vcombine.high %v964_v55, %v972_v49  ;;  %v1052_v0 = vld [vmem:[#allocation8 + $0x958] sm:$0xff] }
 0x27f   :  { %7324 = vmatpush1.bf16.msra.mxu0 %v12626_v61  ;;  %v12722_v61 = vcombine.low %v963_v47, %v971_v48  ;;  %v1059_v47 = vld [vmem:[#allocation8 + $0x990] sm:$0xff] }
 0x280   :  { %7488 = vmatpush1.bf16.msra.mxu1 %v12628_v62  ;;  %7325 = vmatprep.subr.bf16.mxu0 %v12643_v63  ;;  %v12724_v62 = vcombine.low %v964_v55, %v972_v49  ;;  %v12739_v63 = vcombine.high %v979_v40, %v987_v57  ;;  %v1067_v48 = vld [vmem:[#allocation8 + $0x9d0] sm:$0xff]  ;;  %v1060_v55 = vld [vmem:[#allocation8 + $0x998] sm:$0xff] }
 0x281   :  { %7489 = vmatprep.subr.bf16.mxu1 %v12645_v2  ;;  %v12741_v2 = vcombine.high %v980_v58, %v988_v60  ;;  %v1068_v49 = vld [vmem:[#allocation8 + $0x9d8] sm:$0xff] }
 0x283   :  { %7326 = vmatpush1.bf16.msra.mxu0 %v12642_v7  ;;  %v12738_v7 = vcombine.low %v979_v40, %v987_v57  ;;  %v1075_v40 = vld [vmem:[#allocation8 + $0xa10] sm:$0xff] }
 0x284   :  { %7490 = vmatpush1.bf16.msra.mxu1 %v12644_v8  ;;  %7327 = vmatprep.subr.bf16.mxu0 %v12659_v10  ;;  %v12740_v8 = vcombine.low %v980_v58, %v988_v60  ;;  %v12755_v10 = vcombine.high %v995_v59, %v1003_v3  ;;  %v1083_v57 = vld [vmem:[#allocation8 + $0xa50] sm:$0xff]  ;;  %v1076_v58 = vld [vmem:[#allocation8 + $0xa18] sm:$0xff] }
 0x285   :  { %7491 = vmatprep.subr.bf16.mxu1 %v12661_v12  ;;  %v12757_v12 = vcombine.high %v996_v4, %v1004_v37  ;;  %v1084_v60 = vld [vmem:[#allocation8 + $0xa58] sm:$0xff] }
 0x287   :  { %7328 = vmatpush1.bf16.msra.mxu0 %v12658_v22  ;;  %v12754_v22 = vcombine.low %v995_v59, %v1003_v3  ;;  %v1091_v59 = vld [vmem:[#allocation8 + $0xa90] sm:$0xff] }
 0x288   :  { %7492 = vmatpush1.bf16.msra.mxu1 %v12660_v13  ;;  %7329 = vmatprep.subr.bf16.mxu0 %v12675_v23  ;;  %v12756_v13 = vcombine.low %v996_v4, %v1004_v37  ;;  %v12771_v23 = vcombine.high %v1011_v18, %v1019_v6  ;;  %v1099_v3 = vld [vmem:[#allocation8 + $0xad0] sm:$0xff]  ;;  %v1092_v4 = vld [vmem:[#allocation8 + $0xa98] sm:$0xff] }
 0x289   :  { %7493 = vmatprep.subr.bf16.mxu1 %v12677_v24  ;;  %v12773_v24 = vcombine.high %v1012_v19, %v1020_v21  ;;  %v1100_v37 = vld [vmem:[#allocation8 + $0xad8] sm:$0xff]  ;;  %v1107_v18 = vld [vmem:[#allocation8 + $0xb10] sm:$0xff] }
 0x28a   :  { %v1115_v6 = vld [vmem:[#allocation8 + $0xb50] sm:$0xff] }
 0x28b   :  { %7330 = vmatpush1.bf16.msra.mxu0 %v12674_v32  ;;  %v1036_v32 = vld [vmem:[#allocation8 + $0x8d8] sm:$0xff] }
 0x28c   :  { %7494 = vmatpush1.bf16.msra.mxu1 %v12676_v34  ;;  %7331 = vmatprep.subr.bf16.mxu0 %v12691_v35  ;;  %v12772_v34 = vcombine.low %v1012_v19, %v1020_v21  ;;  %v12787_v35 = vcombine.high %v1027_v27, %v1035_v28  ;;  %v12789_v39 = vcombine.high %v1028_v31, %v1036_v32  ;;  %v1108_v19 = vld [vmem:[#allocation8 + $0xb18] sm:$0xff] }
 0x28d   :  { %7495 = vmatprep.subr.bf16.mxu1 %v12693_v36  ;;  %v1043_v36 = vld [vmem:[#allocation8 + $0x910] sm:$0xff]  ;;  %v1116_v21 = vld [vmem:[#allocation8 + $0xb58] sm:$0xff] }
 0x28f   :  { %7332 = vmatpush1.bf16.msra.mxu0 %v12690_v15  ;;  %v12786_v15 = vcombine.low %v1027_v27, %v1035_v28  ;;  %v1123_v27 = vld [vmem:[#allocation8 + $0xb90] sm:$0xff] }
 0x290   :  { %7496 = vmatpush1.bf16.msra.mxu1 %v12692_v44  ;;  %7333 = vmatprep.subr.bf16.mxu0 %v12707_v45  ;;  %v12788_v44 = vcombine.low %v1028_v31, %v1036_v32  ;;  %v12803_v45 = vcombine.high %v1043_v36, %v1051_v41  ;;  %v1131_v28 = vld [vmem:[#allocation8 + $0xbd0] sm:$0xff]  ;;  %v1132_v31 = vld [vmem:[#allocation8 + $0xbd8] sm:$0xff]  ;;  %v12866_v32 = vcombine.low %v1107_v18, %v1115_v6 }
 0x291   :  { %7497 = vmatprep.subr.bf16.mxu1 %v12709_v46  ;;  %v12805_v46 = vcombine.high %v1044_v42, %v1052_v0 }
 0x293   :  { %7334 = vmatpush1.bf16.msra.mxu0 %v12706_v50  ;;  %v12802_v50 = vcombine.low %v1043_v36, %v1051_v41  ;;  %v1139_v41 = vld [vmem:[#allocation8 + $0xc10] sm:$0xff] }
 0x294   :  { %7498 = vmatpush1.bf16.msra.mxu1 %v12708_v52  ;;  %7335 = vmatprep.subr.bf16.mxu0 %v12723_v54  ;;  %v12804_v52 = vcombine.low %v1044_v42, %v1052_v0  ;;  %v12819_v54 = vcombine.high %v1059_v47, %v1067_v48  ;;  %v1140_v42 = vld [vmem:[#allocation8 + $0xc18] sm:$0xff] }
 0x295   :  { %7499 = vmatprep.subr.bf16.mxu1 %v12725_v56  ;;  %v12821_v56 = vcombine.high %v1060_v55, %v1068_v49  ;;  %v1148_v0 = vld [vmem:[#allocation8 + $0xc58] sm:$0xff] }
 0x297   :  { %7336 = vmatpush1.bf16.msra.mxu0 %v12722_v61  ;;  %v12818_v61 = vcombine.low %v1059_v47, %v1067_v48  ;;  %v1155_v47 = vld [vmem:[#allocation8 + $0xc90] sm:$0xff] }
 0x298   :  { %7500 = vmatpush1.bf16.msra.mxu1 %v12724_v62  ;;  %7337 = vmatprep.subr.bf16.mxu0 %v12739_v63  ;;  %v12820_v62 = vcombine.low %v1060_v55, %v1068_v49  ;;  %v12835_v63 = vcombine.high %v1075_v40, %v1083_v57  ;;  %v1163_v48 = vld [vmem:[#allocation8 + $0xcd0] sm:$0xff]  ;;  %v1156_v55 = vld [vmem:[#allocation8 + $0xc98] sm:$0xff] }
 0x299   :  { %7501 = vmatprep.subr.bf16.mxu1 %v12741_v2  ;;  %v12837_v2 = vcombine.high %v1076_v58, %v1084_v60  ;;  %v1164_v49 = vld [vmem:[#allocation8 + $0xcd8] sm:$0xff] }
 0x29b   :  { %7338 = vmatpush1.bf16.msra.mxu0 %v12738_v7  ;;  %v12834_v7 = vcombine.low %v1075_v40, %v1083_v57  ;;  %v1171_v40 = vld [vmem:[#allocation8 + $0xd10] sm:$0xff] }
 0x29c   :  { %7502 = vmatpush1.bf16.msra.mxu1 %v12740_v8  ;;  %7339 = vmatprep.subr.bf16.mxu0 %v12755_v10  ;;  %v12836_v8 = vcombine.low %v1076_v58, %v1084_v60  ;;  %v12851_v10 = vcombine.high %v1091_v59, %v1099_v3  ;;  %v1179_v57 = vld [vmem:[#allocation8 + $0xd50] sm:$0xff]  ;;  %v1172_v58 = vld [vmem:[#allocation8 + $0xd18] sm:$0xff] }
 0x29d   :  { %7503 = vmatprep.subr.bf16.mxu1 %v12757_v12  ;;  %v12853_v12 = vcombine.high %v1092_v4, %v1100_v37  ;;  %v1180_v60 = vld [vmem:[#allocation8 + $0xd58] sm:$0xff] }
 0x29f   :  { %7340 = vmatpush1.bf16.msra.mxu0 %v12754_v22  ;;  %v12850_v22 = vcombine.low %v1091_v59, %v1099_v3  ;;  %v1187_v59 = vld [vmem:[#allocation8 + $0xd90] sm:$0xff] }
 0x2a0   :  { %7504 = vmatpush1.bf16.msra.mxu1 %v12756_v13  ;;  %7350 = vmatprep.subr.bf16.mxu0 %v12771_v23  ;;  %v12852_v13 = vcombine.low %v1092_v4, %v1100_v37  ;;  %v12867_v23 = vcombine.high %v1107_v18, %v1115_v6  ;;  %v1195_v3 = vld [vmem:[#allocation8 + $0xdd0] sm:$0xff]  ;;  %v1188_v4 = vld [vmem:[#allocation8 + $0xd98] sm:$0xff] }
 0x2a1   :  { %7514 = vmatprep.subr.bf16.mxu1 %v12773_v24  ;;  %v12869_v24 = vcombine.high %v1108_v19, %v1116_v21  ;;  %v1196_v37 = vld [vmem:[#allocation8 + $0xdd8] sm:$0xff]  ;;  %v1203_v18 = vld [vmem:[#allocation8 + $0xe10] sm:$0xff] }
 0x2a2   :  { %7342 = vmatmul.mubr.bf16.vlgmr.msra.gmra.mrb[12].mxu0 %v15560_v38  ;;  %v1211_v6 = vld [vmem:[#allocation8 + $0xe50] sm:$0xff] }
 0x2a3   :  { %7506 = vmatmul.mubr.bf16.vlgmr.msra.gmra.mrb[12].mxu1 %v15560_v38  ;;  %7351 = vmatpush1.bf16.msra.mxu0 %v12770_v29  ;;  %v1124_v29 = vld [vmem:[#allocation8 + $0xb98] sm:$0xff] }
 0x2a4   :  { %7382 = vmatprep.mubr.bf16.mxu0 %v15566_v53  ;;  %7515 = vmatpush1.bf16.msra.mxu1 %v12772_v34  ;;  %v12868_v34 = vcombine.low %v1108_v19, %v1116_v21  ;;  %v12885_v36 = vcombine.high %v1124_v29, %v1132_v31  ;;  %v1204_v19 = vld [vmem:[#allocation8 + $0xe18] sm:$0xff] }
 0x2a5   :  { %7546 = vmatprep.mubr.bf16.mxu1 %v15566_v53  ;;  %7352 = vmatprep.subr.bf16.mxu0 %v12787_v35  ;;  %v12883_v35 = vcombine.high %v1123_v27, %v1131_v28  ;;  %v1212_v21 = vld [vmem:[#allocation8 + $0xe58] sm:$0xff] }
 0x2a6   :  { %7516 = vmatprep.subr.bf16.mxu1 %v12789_v39  ;;  %v1147_v39 = vld [vmem:[#allocation8 + $0xc50] sm:$0xff] }
 0x2a7   :  { %7353 = vmatpush1.bf16.msra.mxu0 %v12786_v15  ;;  %v12882_v15 = vcombine.low %v1123_v27, %v1131_v28  ;;  %v1219_v27 = vld [vmem:[#allocation8 + $0xe90] sm:$0xff] }
 0x2a8   :  { %7517 = vmatpush1.bf16.msra.mxu1 %v12788_v44  ;;  %7354 = vmatprep.subr.bf16.mxu0 %v12803_v45  ;;  %v12884_v44 = vcombine.low %v1124_v29, %v1132_v31  ;;  %v12899_v45 = vcombine.high %v1139_v41, %v1147_v39  ;;  %v1227_v28 = vld [vmem:[#allocation8 + $0xed0] sm:$0xff]  ;;  %v1220_v29 = vld [vmem:[#allocation8 + $0xe98] sm:$0xff] }
 0x2a9   :  { %7518 = vmatprep.subr.bf16.mxu1 %v12805_v46  ;;  %v12901_v46 = vcombine.high %v1140_v42, %v1148_v0  ;;  %v1228_v31 = vld [vmem:[#allocation8 + $0xed8] sm:$0xff] }
 0x2ab   :  { %7355 = vmatpush1.bf16.msra.mxu0 %v12802_v50  ;;  %v12898_v50 = vcombine.low %v1139_v41, %v1147_v39  ;;  %v1235_v41 = vld [vmem:[#allocation8 + $0xf10] sm:$0xff] }
 0x2ac   :  { %7519 = vmatpush1.bf16.msra.mxu1 %v12804_v52  ;;  %7356 = vmatprep.subr.bf16.mxu0 %v12819_v54  ;;  %v12900_v52 = vcombine.low %v1140_v42, %v1148_v0  ;;  %v12915_v54 = vcombine.high %v1155_v47, %v1163_v48  ;;  %v1243_v39 = vld [vmem:[#allocation8 + $0xf50] sm:$0xff]  ;;  %v1236_v42 = vld [vmem:[#allocation8 + $0xf18] sm:$0xff] }
 0x2ad   :  { %7520 = vmatprep.subr.bf16.mxu1 %v12821_v56  ;;  %v12917_v56 = vcombine.high %v1156_v55, %v1164_v49  ;;  %v1244_v0 = vld [vmem:[#allocation8 + $0xf58] sm:$0xff] }
 0x2af   :  { %7357 = vmatpush1.bf16.msra.mxu0 %v12818_v61  ;;  %v12914_v61 = vcombine.low %v1155_v47, %v1163_v48  ;;  %v1251_v47 = vld [vmem:[#allocation8 + $0xf90] sm:$0xff] }
 0x2b0   :  { %7521 = vmatpush1.bf16.msra.mxu1 %v12820_v62  ;;  %7358 = vmatprep.subr.bf16.mxu0 %v12835_v63  ;;  %v12916_v62 = vcombine.low %v1156_v55, %v1164_v49  ;;  %v12931_v63 = vcombine.high %v1171_v40, %v1179_v57  ;;  %v1259_v48 = vld [vmem:[#allocation8 + $0xfd0] sm:$0xff]  ;;  %v1252_v55 = vld [vmem:[#allocation8 + $0xf98] sm:$0xff] }
 0x2b1   :  { %7522 = vmatprep.subr.bf16.mxu1 %v12837_v2  ;;  %v12933_v2 = vcombine.high %v1172_v58, %v1180_v60  ;;  %v1260_v49 = vld [vmem:[#allocation8 + $0xfd8] sm:$0xff] }
 0x2b3   :  { %7359 = vmatpush1.bf16.msra.mxu0 %v12834_v7  ;;  %v12930_v7 = vcombine.low %v1171_v40, %v1179_v57  ;;  %v1267_v40 = vld [vmem:[#allocation8 + $0x1010] sm:$0xff] }
 0x2b4   :  { %7523 = vmatpush1.bf16.msra.mxu1 %v12836_v8  ;;  %7360 = vmatprep.subr.bf16.mxu0 %v12851_v10  ;;  %v12932_v8 = vcombine.low %v1172_v58, %v1180_v60  ;;  %v12947_v10 = vcombine.high %v1187_v59, %v1195_v3  ;;  %v1275_v57 = vld [vmem:[#allocation8 + $0x1050] sm:$0xff]  ;;  %v1268_v58 = vld [vmem:[#allocation8 + $0x1018] sm:$0xff] }
 0x2b5   :  { %7524 = vmatprep.subr.bf16.mxu1 %v12853_v12  ;;  %v12949_v12 = vcombine.high %v1188_v4, %v1196_v37  ;;  %v1276_v60 = vld [vmem:[#allocation8 + $0x1058] sm:$0xff] }
 0x2b7   :  { %7361 = vmatpush1.bf16.msra.mxu0 %v12850_v22  ;;  %v12946_v22 = vcombine.low %v1187_v59, %v1195_v3  ;;  %v1283_v59 = vld [vmem:[#allocation8 + $0x1090] sm:$0xff] }
 0x2b8   :  { %7525 = vmatpush1.bf16.msra.mxu1 %v12852_v13  ;;  %7362 = vmatprep.subr.bf16.mxu0 %v12867_v23  ;;  %v12948_v13 = vcombine.low %v1188_v4, %v1196_v37  ;;  %v12963_v23 = vcombine.high %v1203_v18, %v1211_v6  ;;  %v1291_v3 = vld [vmem:[#allocation8 + $0x10d0] sm:$0xff]  ;;  %v13026_v4 = vcombine.low %v1267_v40, %v1275_v57  ;;  %v1284_v37 = vld [vmem:[#allocation8 + $0x1098] sm:$0xff] }
 0x2b9   :  { %7526 = vmatprep.subr.bf16.mxu1 %v12869_v24  ;;  %v12965_v24 = vcombine.high %v1204_v19, %v1212_v21 }
 0x2bb   :  { %7363 = vmatpush1.bf16.msra.mxu0 %v12866_v32  ;;  %v12962_v32 = vcombine.low %v1203_v18, %v1211_v6  ;;  %v1307_v18 = vld [vmem:[#allocation8 + $0x1150] sm:$0xff] }
 0x2bc   :  { %7527 = vmatpush1.bf16.msra.mxu1 %v12868_v34  ;;  %7364 = vmatprep.subr.bf16.mxu0 %v12883_v35  ;;  %v12964_v34 = vcombine.low %v1204_v19, %v1212_v21  ;;  %v12979_v35 = vcombine.high %v1219_v27, %v1227_v28  ;;  %v1300_v19 = vld [vmem:[#allocation8 + $0x1118] sm:$0xff] }
 0x2bd   :  { %7528 = vmatprep.subr.bf16.mxu1 %v12885_v36  ;;  %v12981_v36 = vcombine.high %v1220_v29, %v1228_v31  ;;  %v1308_v21 = vld [vmem:[#allocation8 + $0x1158] sm:$0xff] }
 0x2bf   :  { %7365 = vmatpush1.bf16.msra.mxu0 %v12882_v15  ;;  %v12978_v15 = vcombine.low %v1219_v27, %v1227_v28  ;;  %v1315_v27 = vld [vmem:[#allocation8 + $0x1190] sm:$0xff] }
 0x2c0   :  { %7529 = vmatpush1.bf16.msra.mxu1 %v12884_v44  ;;  %7366 = vmatprep.subr.bf16.mxu0 %v12899_v45  ;;  %v12980_v44 = vcombine.low %v1220_v29, %v1228_v31  ;;  %v12995_v45 = vcombine.high %v1235_v41, %v1243_v39  ;;  %v1323_v28 = vld [vmem:[#allocation8 + $0x11d0] sm:$0xff]  ;;  %v1316_v29 = vld [vmem:[#allocation8 + $0x1198] sm:$0xff] }
 0x2c1   :  { %7530 = vmatprep.subr.bf16.mxu1 %v12901_v46  ;;  %v12997_v46 = vcombine.high %v1236_v42, %v1244_v0  ;;  %v1324_v31 = vld [vmem:[#allocation8 + $0x11d8] sm:$0xff] }
 0x2c3   :  { %7367 = vmatpush1.bf16.msra.mxu0 %v12898_v50  ;;  %v12994_v50 = vcombine.low %v1235_v41, %v1243_v39  ;;  %v1331_v41 = vld [vmem:[#allocation8 + $0x1210] sm:$0xff] }
 0x2c4   :  { %7531 = vmatpush1.bf16.msra.mxu1 %v12900_v52  ;;  %7368 = vmatprep.subr.bf16.mxu0 %v12915_v54  ;;  %v12996_v52 = vcombine.low %v1236_v42, %v1244_v0  ;;  %v13011_v54 = vcombine.high %v1251_v47, %v1259_v48  ;;  %v1339_v39 = vld [vmem:[#allocation8 + $0x1250] sm:$0xff]  ;;  %v1332_v42 = vld [vmem:[#allocation8 + $0x1218] sm:$0xff] }
 0x2c5   :  { %7532 = vmatprep.subr.bf16.mxu1 %v12917_v56  ;;  %v13013_v56 = vcombine.high %v1252_v55, %v1260_v49  ;;  %v1340_v0 = vld [vmem:[#allocation8 + $0x1258] sm:$0xff] }
 0x2c7   :  { %7369 = vmatpush1.bf16.msra.mxu0 %v12914_v61  ;;  %v13010_v61 = vcombine.low %v1251_v47, %v1259_v48  ;;  %v1347_v47 = vld [vmem:[#allocation8 + $0x1290] sm:$0xff] }
 0x2c8   :  { %7533 = vmatpush1.bf16.msra.mxu1 %v12916_v62  ;;  %7370 = vmatprep.subr.bf16.mxu0 %v12931_v63  ;;  %v13012_v62 = vcombine.low %v1252_v55, %v1260_v49  ;;  %v13027_v63 = vcombine.high %v1267_v40, %v1275_v57  ;;  %v1355_v48 = vld [vmem:[#allocation8 + $0x12d0] sm:$0xff]  ;;  %v1348_v55 = vld [vmem:[#allocation8 + $0x1298] sm:$0xff] }
 0x2c9   :  { %7534 = vmatprep.subr.bf16.mxu1 %v12933_v2  ;;  %v13029_v2 = vcombine.high %v1268_v58, %v1276_v60  ;;  %v1356_v49 = vld [vmem:[#allocation8 + $0x12d8] sm:$0xff]  ;;  %v1363_v40 = vld [vmem:[#allocation8 + $0x1310] sm:$0xff] }
 0x2ca   :  { %v1371_v57 = vld [vmem:[#allocation8 + $0x1350] sm:$0xff] }
 0x2cb   :  { %7371 = vmatpush1.bf16.msra.mxu0 %v12930_v7  ;;  %v1292_v7 = vld [vmem:[#allocation8 + $0x10d8] sm:$0xff] }
 0x2cc   :  { %7535 = vmatpush1.bf16.msra.mxu1 %v12932_v8  ;;  %7372 = vmatprep.subr.bf16.mxu0 %v12947_v10  ;;  %v13028_v8 = vcombine.low %v1268_v58, %v1276_v60  ;;  %v13043_v10 = vcombine.high %v1283_v59, %v1291_v3  ;;  %v13045_v6 = vcombine.high %v1284_v37, %v1292_v7  ;;  %v1364_v58 = vld [vmem:[#allocation8 + $0x1318] sm:$0xff] }
 0x2cd   :  { %7536 = vmatprep.subr.bf16.mxu1 %v12949_v12  ;;  %v1299_v12 = vld [vmem:[#allocation8 + $0x1110] sm:$0xff]  ;;  %v1372_v60 = vld [vmem:[#allocation8 + $0x1358] sm:$0xff] }
 0x2cf   :  { %7373 = vmatpush1.bf16.msra.mxu0 %v12946_v22  ;;  %v13042_v22 = vcombine.low %v1283_v59, %v1291_v3  ;;  %v1379_v59 = vld [vmem:[#allocation8 + $0x1390] sm:$0xff] }
 0x2d0   :  { %7537 = vmatpush1.bf16.msra.mxu1 %v12948_v13  ;;  %7374 = vmatprep.subr.bf16.mxu0 %v12963_v23  ;;  %v13044_v13 = vcombine.low %v1284_v37, %v1292_v7  ;;  %v13059_v23 = vcombine.high %v1299_v12, %v1307_v18  ;;  %v1387_v3 = vld [vmem:[#allocation8 + $0x13d0] sm:$0xff]  ;;  %v1388_v37 = vld [vmem:[#allocation8 + $0x13d8] sm:$0xff]  ;;  %v13122_v7 = vcombine.low %v1363_v40, %v1371_v57 }
 0x2d1   :  { %7538 = vmatprep.subr.bf16.mxu1 %v12965_v24  ;;  %v13061_v24 = vcombine.high %v1300_v19, %v1308_v21 }
 0x2d3   :  { %7375 = vmatpush1.bf16.msra.mxu0 %v12962_v32  ;;  %v13058_v32 = vcombine.low %v1299_v12, %v1307_v18  ;;  %v1395_v18 = vld [vmem:[#allocation8 + $0x1410] sm:$0xff] }
 0x2d4   :  { %7539 = vmatpush1.bf16.msra.mxu1 %v12964_v34  ;;  %7376 = vmatprep.subr.bf16.mxu0 %v12979_v35  ;;  %v13060_v34 = vcombine.low %v1300_v19, %v1308_v21  ;;  %v13075_v35 = vcombine.high %v1315_v27, %v1323_v28  ;;  %v1396_v19 = vld [vmem:[#allocation8 + $0x1418] sm:$0xff] }
 0x2d5   :  { %7540 = vmatprep.subr.bf16.mxu1 %v12981_v36  ;;  %v13077_v36 = vcombine.high %v1316_v29, %v1324_v31  ;;  %v1404_v21 = vld [vmem:[#allocation8 + $0x1458] sm:$0xff] }
 0x2d7   :  { %7377 = vmatpush1.bf16.msra.mxu0 %v12978_v15  ;;  %v13074_v15 = vcombine.low %v1315_v27, %v1323_v28  ;;  %v1411_v27 = vld [vmem:[#allocation8 + $0x1490] sm:$0xff] }
 0x2d8   :  { %7541 = vmatpush1.bf16.msra.mxu1 %v12980_v44  ;;  %7378 = vmatprep.subr.bf16.mxu0 %v12995_v45  ;;  %v13076_v44 = vcombine.low %v1316_v29, %v1324_v31  ;;  %v13091_v45 = vcombine.high %v1331_v41, %v1339_v39  ;;  %v1419_v28 = vld [vmem:[#allocation8 + $0x14d0] sm:$0xff]  ;;  %v1412_v29 = vld [vmem:[#allocation8 + $0x1498] sm:$0xff] }
 0x2d9   :  { %7542 = vmatprep.subr.bf16.mxu1 %v12997_v46  ;;  %v13093_v46 = vcombine.high %v1332_v42, %v1340_v0  ;;  %v1420_v31 = vld [vmem:[#allocation8 + $0x14d8] sm:$0xff] }
 0x2db   :  { %7379 = vmatpush1.bf16.msra.mxu0 %v12994_v50  ;;  %v13090_v50 = vcombine.low %v1331_v41, %v1339_v39  ;;  %v1427_v41 = vld [vmem:[#allocation8 + $0x1510] sm:$0xff] }
 0x2dc   :  { %7543 = vmatpush1.bf16.msra.mxu1 %v12996_v52  ;;  %7380 = vmatprep.subr.bf16.mxu0 %v13011_v54  ;;  %v13092_v52 = vcombine.low %v1332_v42, %v1340_v0  ;;  %v13107_v54 = vcombine.high %v1347_v47, %v1355_v48  ;;  %v1435_v39 = vld [vmem:[#allocation8 + $0x1550] sm:$0xff]  ;;  %v1428_v42 = vld [vmem:[#allocation8 + $0x1518] sm:$0xff] }
 0x2dd   :  { %7544 = vmatprep.subr.bf16.mxu1 %v13013_v56  ;;  %v13109_v56 = vcombine.high %v1348_v55, %v1356_v49  ;;  %v1436_v0 = vld [vmem:[#allocation8 + $0x1558] sm:$0xff] }
 0x2df   :  { %7381 = vmatpush1.bf16.msra.mxu0 %v13010_v61  ;;  %v13106_v61 = vcombine.low %v1347_v47, %v1355_v48  ;;  %v1443_v47 = vld [vmem:[#allocation8 + $0x1590] sm:$0xff] }
 0x2e0   :  { %7545 = vmatpush1.bf16.msra.mxu1 %v13012_v62  ;;  %7391 = vmatprep.subr.bf16.mxu0 %v13027_v63  ;;  %v13108_v62 = vcombine.low %v1348_v55, %v1356_v49  ;;  %v13123_v63 = vcombine.high %v1363_v40, %v1371_v57  ;;  %v1451_v48 = vld [vmem:[#allocation8 + $0x15d0] sm:$0xff]  ;;  %v1444_v55 = vld [vmem:[#allocation8 + $0x1598] sm:$0xff] }
 0x2e1   :  { %7555 = vmatprep.subr.bf16.mxu1 %v13029_v2  ;;  %v13125_v2 = vcombine.high %v1364_v58, %v1372_v60  ;;  %v1452_v49 = vld [vmem:[#allocation8 + $0x15d8] sm:$0xff]  ;;  %v1459_v40 = vld [vmem:[#allocation8 + $0x1610] sm:$0xff] }
 0x2e2   :  { %7383 = vmatmul.mubr.bf16.vlgmr.msra.gmra.mrb[12].mxu0 %v15590_v17  ;;  %v1467_v57 = vld [vmem:[#allocation8 + $0x1650] sm:$0xff] }
 0x2e3   :  { %7547 = vmatmul.mubr.bf16.vlgmr.msra.gmra.mrb[12].mxu1 %v15590_v17  ;;  %7392 = vmatpush1.bf16.msra.mxu0 %v13026_v4  ;;  %v1380_v4 = vld [vmem:[#allocation8 + $0x1398] sm:$0xff] }
 0x2e4   :  { %7423 = vmatprep.mubr.bf16.mxu0 %v15592_v26  ;;  %7556 = vmatpush1.bf16.msra.mxu1 %v13028_v8  ;;  %v13124_v8 = vcombine.low %v1364_v58, %v1372_v60  ;;  %v13141_v12 = vcombine.high %v1380_v4, %v1388_v37  ;;  %v1460_v58 = vld [vmem:[#allocation8 + $0x1618] sm:$0xff] }
 0x2e5   :  { %7587 = vmatprep.mubr.bf16.mxu1 %v15592_v26  ;;  %7393 = vmatprep.subr.bf16.mxu0 %v13043_v10  ;;  %v13139_v10 = vcombine.high %v1379_v59, %v1387_v3  ;;  %v1468_v60 = vld [vmem:[#allocation8 + $0x1658] sm:$0xff] }
 0x2e6   :  { %7557 = vmatprep.subr.bf16.mxu1 %v13045_v6  ;;  %v1403_v6 = vld [vmem:[#allocation8 + $0x1450] sm:$0xff] }
 0x2e7   :  { %7394 = vmatpush1.bf16.msra.mxu0 %v13042_v22  ;;  %v13138_v22 = vcombine.low %v1379_v59, %v1387_v3  ;;  %v1475_v59 = vld [vmem:[#allocation8 + $0x1690] sm:$0xff] }
 0x2e8   :  { %7558 = vmatpush1.bf16.msra.mxu1 %v13044_v13  ;;  %7395 = vmatprep.subr.bf16.mxu0 %v13059_v23  ;;  %v13140_v13 = vcombine.low %v1380_v4, %v1388_v37  ;;  %v13155_v23 = vcombine.high %v1395_v18, %v1403_v6  ;;  %v1483_v3 = vld [vmem:[#allocation8 + $0x16d0] sm:$0xff]  ;;  %v1476_v4 = vld [vmem:[#allocation8 + $0x1698] sm:$0xff] }
 0x2e9   :  { %7559 = vmatprep.subr.bf16.mxu1 %v13061_v24  ;;  %v13157_v24 = vcombine.high %v1396_v19, %v1404_v21  ;;  %v1484_v37 = vld [vmem:[#allocation8 + $0x16d8] sm:$0xff] }
 0x2eb   :  { %7396 = vmatpush1.bf16.msra.mxu0 %v13058_v32  ;;  %v13154_v32 = vcombine.low %v1395_v18, %v1403_v6  ;;  %v1491_v18 = vld [vmem:[#allocation8 + $0x1710] sm:$0xff] }
 0x2ec   :  { %7560 = vmatpush1.bf16.msra.mxu1 %v13060_v34  ;;  %7397 = vmatprep.subr.bf16.mxu0 %v13075_v35  ;;  %v13156_v34 = vcombine.low %v1396_v19, %v1404_v21  ;;  %v13171_v35 = vcombine.high %v1411_v27, %v1419_v28  ;;  %v1499_v6 = vld [vmem:[#allocation8 + $0x1750] sm:$0xff]  ;;  %v1492_v19 = vld [vmem:[#allocation8 + $0x1718] sm:$0xff] }
 0x2ed   :  { %7561 = vmatprep.subr.bf16.mxu1 %v13077_v36  ;;  %v13173_v36 = vcombine.high %v1412_v29, %v1420_v31  ;;  %v1500_v21 = vld [vmem:[#allocation8 + $0x1758] sm:$0xff] }
 0x2ef   :  { %7398 = vmatpush1.bf16.msra.mxu0 %v13074_v15  ;;  %v13170_v15 = vcombine.low %v1411_v27, %v1419_v28  ;;  %v1507_v27 = vld [vmem:[#allocation8 + $0x1790] sm:$0xff] }
 0x2f0   :  { %7562 = vmatpush1.bf16.msra.mxu1 %v13076_v44  ;;  %7399 = vmatprep.subr.bf16.mxu0 %v13091_v45  ;;  %v13172_v44 = vcombine.low %v1412_v29, %v1420_v31  ;;  %v13187_v45 = vcombine.high %v1427_v41, %v1435_v39  ;;  %v1515_v28 = vld [vmem:[#allocation8 + $0x17d0] sm:$0xff]  ;;  %v1508_v29 = vld [vmem:[#allocation8 + $0x1798] sm:$0xff] }
 0x2f1   :  { %7563 = vmatprep.subr.bf16.mxu1 %v13093_v46  ;;  %v13189_v46 = vcombine.high %v1428_v42, %v1436_v0  ;;  %v1516_v31 = vld [vmem:[#allocation8 + $0x17d8] sm:$0xff] }
 0x2f3   :  { %7400 = vmatpush1.bf16.msra.mxu0 %v13090_v50  ;;  %v13186_v50 = vcombine.low %v1427_v41, %v1435_v39  ;;  %v1523_v41 = vld [vmem:[#allocation8 + $0x1810] sm:$0xff] }
 0x2f4   :  { %7564 = vmatpush1.bf16.msra.mxu1 %v13092_v52  ;;  %7401 = vmatprep.subr.bf16.mxu0 %v13107_v54  ;;  %v13188_v52 = vcombine.low %v1428_v42, %v1436_v0  ;;  %v13203_v54 = vcombine.high %v1443_v47, %v1451_v48  ;;  %v1531_v39 = vld [vmem:[#allocation8 + $0x1850] sm:$0xff]  ;;  %v1524_v42 = vld [vmem:[#allocation8 + $0x1818] sm:$0xff] }
 0x2f5   :  { %7565 = vmatprep.subr.bf16.mxu1 %v13109_v56  ;;  %v13205_v56 = vcombine.high %v1444_v55, %v1452_v49  ;;  %v1532_v0 = vld [vmem:[#allocation8 + $0x1858] sm:$0xff] }
 0x2f7   :  { %7402 = vmatpush1.bf16.msra.mxu0 %v13106_v61  ;;  %v13202_v61 = vcombine.low %v1443_v47, %v1451_v48  ;;  %v1539_v47 = vld [vmem:[#allocation8 + $0x1890] sm:$0xff] }
 0x2f8   :  { %7566 = vmatpush1.bf16.msra.mxu1 %v13108_v62  ;;  %7403 = vmatprep.subr.bf16.mxu0 %v13123_v63  ;;  %v13204_v62 = vcombine.low %v1444_v55, %v1452_v49  ;;  %v13219_v63 = vcombine.high %v1459_v40, %v1467_v57  ;;  %v1547_v48 = vld [vmem:[#allocation8 + $0x18d0] sm:$0xff]  ;;  %v13282_v55 = vcombine.low %v1523_v41, %v1531_v39  ;;  %v1540_v49 = vld [vmem:[#allocation8 + $0x1898] sm:$0xff] }
 0x2f9   :  { %7567 = vmatprep.subr.bf16.mxu1 %v13125_v2  ;;  %v13221_v2 = vcombine.high %v1460_v58, %v1468_v60 }
 0x2fb   :  { %7404 = vmatpush1.bf16.msra.mxu0 %v13122_v7  ;;  %v13218_v7 = vcombine.low %v1459_v40, %v1467_v57  ;;  %v1563_v40 = vld [vmem:[#allocation8 + $0x1950] sm:$0xff] }
 0x2fc   :  { %7568 = vmatpush1.bf16.msra.mxu1 %v13124_v8  ;;  %7405 = vmatprep.subr.bf16.mxu0 %v13139_v10  ;;  %v13220_v8 = vcombine.low %v1460_v58, %v1468_v60  ;;  %v13235_v10 = vcombine.high %v1475_v59, %v1483_v3  ;;  %v1556_v58 = vld [vmem:[#allocation8 + $0x1918] sm:$0xff] }
 0x2fd   :  { %7569 = vmatprep.subr.bf16.mxu1 %v13141_v12  ;;  %v13237_v12 = vcombine.high %v1476_v4, %v1484_v37  ;;  %v1564_v60 = vld [vmem:[#allocation8 + $0x1958] sm:$0xff] }
 0x2ff   :  { %7406 = vmatpush1.bf16.msra.mxu0 %v13138_v22  ;;  %v13234_v22 = vcombine.low %v1475_v59, %v1483_v3  ;;  %v1571_v59 = vld [vmem:[#allocation8 + $0x1990] sm:$0xff] }
 0x300   :  { %7570 = vmatpush1.bf16.msra.mxu1 %v13140_v13  ;;  %7407 = vmatprep.subr.bf16.mxu0 %v13155_v23  ;;  %v13236_v13 = vcombine.low %v1476_v4, %v1484_v37  ;;  %v13251_v23 = vcombine.high %v1491_v18, %v1499_v6  ;;  %v1579_v3 = vld [vmem:[#allocation8 + $0x19d0] sm:$0xff]  ;;  %v1572_v4 = vld [vmem:[#allocation8 + $0x1998] sm:$0xff] }
 0x301   :  { %7571 = vmatprep.subr.bf16.mxu1 %v13157_v24  ;;  %v13253_v24 = vcombine.high %v1492_v19, %v1500_v21  ;;  %v1580_v37 = vld [vmem:[#allocation8 + $0x19d8] sm:$0xff] }
 0x303   :  { %7408 = vmatpush1.bf16.msra.mxu0 %v13154_v32  ;;  %v13250_v32 = vcombine.low %v1491_v18, %v1499_v6  ;;  %v1587_v18 = vld [vmem:[#allocation8 + $0x1a10] sm:$0xff] }
 0x304   :  { %7572 = vmatpush1.bf16.msra.mxu1 %v13156_v34  ;;  %7409 = vmatprep.subr.bf16.mxu0 %v13171_v35  ;;  %v13252_v34 = vcombine.low %v1492_v19, %v1500_v21  ;;  %v13267_v35 = vcombine.high %v1507_v27, %v1515_v28  ;;  %v1595_v6 = vld [vmem:[#allocation8 + $0x1a50] sm:$0xff]  ;;  %v1588_v19 = vld [vmem:[#allocation8 + $0x1a18] sm:$0xff] }
 0x305   :  { %7573 = vmatprep.subr.bf16.mxu1 %v13173_v36  ;;  %v13269_v36 = vcombine.high %v1508_v29, %v1516_v31  ;;  %v1596_v21 = vld [vmem:[#allocation8 + $0x1a58] sm:$0xff] }
 0x307   :  { %7410 = vmatpush1.bf16.msra.mxu0 %v13170_v15  ;;  %v13266_v15 = vcombine.low %v1507_v27, %v1515_v28  ;;  %v1603_v27 = vld [vmem:[#allocation8 + $0x1a90] sm:$0xff] }
 0x308   :  { %7574 = vmatpush1.bf16.msra.mxu1 %v13172_v44  ;;  %7411 = vmatprep.subr.bf16.mxu0 %v13187_v45  ;;  %v13268_v44 = vcombine.low %v1508_v29, %v1516_v31  ;;  %v13283_v45 = vcombine.high %v1523_v41, %v1531_v39  ;;  %v1611_v28 = vld [vmem:[#allocation8 + $0x1ad0] sm:$0xff]  ;;  %v1604_v29 = vld [vmem:[#allocation8 + $0x1a98] sm:$0xff] }
 0x309   :  { %7575 = vmatprep.subr.bf16.mxu1 %v13189_v46  ;;  %v13285_v46 = vcombine.high %v1524_v42, %v1532_v0  ;;  %v1612_v31 = vld [vmem:[#allocation8 + $0x1ad8] sm:$0xff]  ;;  %v1619_v41 = vld [vmem:[#allocation8 + $0x1b10] sm:$0xff] }
 0x30a   :  { %v1627_v39 = vld [vmem:[#allocation8 + $0x1b50] sm:$0xff] }
 0x30b   :  { %7412 = vmatpush1.bf16.msra.mxu0 %v13186_v50  ;;  %v1548_v50 = vld [vmem:[#allocation8 + $0x18d8] sm:$0xff] }
 0x30c   :  { %7576 = vmatpush1.bf16.msra.mxu1 %v13188_v52  ;;  %7413 = vmatprep.subr.bf16.mxu0 %v13203_v54  ;;  %v13284_v52 = vcombine.low %v1524_v42, %v1532_v0  ;;  %v13299_v54 = vcombine.high %v1539_v47, %v1547_v48  ;;  %v13301_v57 = vcombine.high %v1540_v49, %v1548_v50  ;;  %v1620_v42 = vld [vmem:[#allocation8 + $0x1b18] sm:$0xff] }
 0x30d   :  { %7577 = vmatprep.subr.bf16.mxu1 %v13205_v56  ;;  %v1555_v56 = vld [vmem:[#allocation8 + $0x1910] sm:$0xff]  ;;  %v1628_v0 = vld [vmem:[#allocation8 + $0x1b58] sm:$0xff] }
 0x30f   :  { %7414 = vmatpush1.bf16.msra.mxu0 %v13202_v61  ;;  %v13298_v61 = vcombine.low %v1539_v47, %v1547_v48  ;;  %v13381_v48 = vcombine.high %v1620_v42, %v1628_v0 }
 0x310   :  { %7578 = vmatpush1.bf16.msra.mxu1 %v13204_v62  ;;  %7415 = vmatprep.subr.bf16.mxu0 %v13219_v63  ;;  %v13300_v62 = vcombine.low %v1540_v49, %v1548_v50  ;;  %v13315_v63 = vcombine.high %v1555_v56, %v1563_v40  ;;  %v1643_v49 = vld [vmem:[#allocation8 + $0x1bd0] sm:$0xff] }
 0x311   :  { %7579 = vmatprep.subr.bf16.mxu1 %v13221_v2  ;;  %v13317_v2 = vcombine.high %v1556_v58, %v1564_v60 }
 0x313   :  { %7416 = vmatpush1.bf16.msra.mxu0 %v13218_v7  ;;  %v13314_v7 = vcombine.low %v1555_v56, %v1563_v40  ;;  %v1644_v56 = vld [vmem:[#allocation8 + $0x1bd8] sm:$0xff] }
 0x314   :  { %7580 = vmatpush1.bf16.msra.mxu1 %v13220_v8  ;;  %7417 = vmatprep.subr.bf16.mxu0 %v13235_v10  ;;  %v13316_v8 = vcombine.low %v1556_v58, %v1564_v60  ;;  %v13331_v10 = vcombine.high %v1571_v59, %v1579_v3  ;;  %v13378_v58 = vcombine.low %v1619_v41, %v1627_v39 }
 0x315   :  { %7581 = vmatprep.subr.bf16.mxu1 %v13237_v12  ;;  %v13333_v12 = vcombine.high %v1572_v4, %v1580_v37 }
 0x317   :  { %7418 = vmatpush1.bf16.msra.mxu0 %v13234_v22  ;;  %v13330_v22 = vcombine.low %v1571_v59, %v1579_v3  ;;  %v1651_v59 = vld [vmem:[#allocation8 + $0x1c10] sm:$0xff] }
 0x318   :  { %7582 = vmatpush1.bf16.msra.mxu1 %v13236_v13  ;;  %7419 = vmatprep.subr.bf16.mxu0 %v13251_v23  ;;  %v13332_v13 = vcombine.low %v1572_v4, %v1580_v37  ;;  %v13347_v23 = vcombine.high %v1587_v18, %v1595_v6  ;;  %v1659_v3 = vld [vmem:[#allocation8 + $0x1c50] sm:$0xff]  ;;  %v1652_v4 = vld [vmem:[#allocation8 + $0x1c18] sm:$0xff] }
 0x319   :  { %7583 = vmatprep.subr.bf16.mxu1 %v13253_v24  ;;  %v13349_v24 = vcombine.high %v1588_v19, %v1596_v21  ;;  %v1660_v37 = vld [vmem:[#allocation8 + $0x1c58] sm:$0xff] }
 0x31b   :  { %7420 = vmatpush1.bf16.msra.mxu0 %v13250_v32  ;;  %v13346_v32 = vcombine.low %v1587_v18, %v1595_v6  ;;  %v1667_v18 = vld [vmem:[#allocation8 + $0x1c90] sm:$0xff] }
 0x31c   :  { %7584 = vmatpush1.bf16.msra.mxu1 %v13252_v34  ;;  %7421 = vmatprep.subr.bf16.mxu0 %v13267_v35  ;;  %v13348_v34 = vcombine.low %v1588_v19, %v1596_v21  ;;  %v13363_v35 = vcombine.high %v1603_v27, %v1611_v28  ;;  %v1675_v6 = vld [vmem:[#allocation8 + $0x1cd0] sm:$0xff]  ;;  %v1668_v19 = vld [vmem:[#allocation8 + $0x1c98] sm:$0xff] }
 0x31d   :  { %7585 = vmatprep.subr.bf16.mxu1 %v13269_v36  ;;  %v13365_v36 = vcombine.high %v1604_v29, %v1612_v31  ;;  %v1676_v21 = vld [vmem:[#allocation8 + $0x1cd8] sm:$0xff] }
 0x31f   :  { %7422 = vmatpush1.bf16.msra.mxu0 %v13266_v15  ;;  %v13362_v15 = vcombine.low %v1603_v27, %v1611_v28  ;;  %v1683_v27 = vld [vmem:[#allocation8 + $0x1d10] sm:$0xff] }
 0x320   :  { %7586 = vmatpush1.bf16.msra.mxu1 %v13268_v44  ;;  %7432 = vmatprep.subr.bf16.mxu0 %v13283_v45  ;;  %v13364_v44 = vcombine.low %v1604_v29, %v1612_v31  ;;  %v13379_v45 = vcombine.high %v1619_v41, %v1627_v39  ;;  %v1691_v28 = vld [vmem:[#allocation8 + $0x1d50] sm:$0xff]  ;;  %v1684_v29 = vld [vmem:[#allocation8 + $0x1d18] sm:$0xff] }
 0x321   :  { %7596 = vmatprep.subr.bf16.mxu1 %v13285_v46  ;;  %v1692_v31 = vld [vmem:[#allocation8 + $0x1d58] sm:$0xff]  ;;  %v1699_v41 = vld [vmem:[#allocation8 + $0x1d90] sm:$0xff] }
 0x322   :  { %7424 = vmatmul.mubr.bf16.vlgmr.msra.gmra.mrb[12].mxu0 %v15612_v1  ;;  %v1707_v39 = vld [vmem:[#allocation8 + $0x1dd0] sm:$0xff] }
 0x323   :  { %7588 = vmatmul.mubr.bf16.vlgmr.msra.gmra.mrb[12].mxu1 %v15612_v1  ;;  %7433 = vmatpush1.bf16.msra.mxu0 %v13282_v55  ;;  %v1635_v55 = vld [vmem:[#allocation8 + $0x1b90] sm:$0xff] }
 0x324   :  { %7464 = vmatprep.mubr.bf16.mxu0 %v15614_v9  ;;  %7597 = vmatpush1.bf16.msra.mxu1 %v13284_v52 }
 0x325   :  { %7628 = vmatprep.mubr.bf16.mxu1 %v15614_v9  ;;  %7434 = vmatprep.subr.bf16.mxu0 %v13299_v54  ;;  %v1636_v54 = vld [vmem:[#allocation8 + $0x1b98] sm:$0xff] }
 0x326   :  { %7598 = vmatprep.subr.bf16.mxu1 %v13301_v57 }
 0x327   :  { %7435 = vmatpush1.bf16.msra.mxu0 %v13298_v61 }
 0x328   :  { %7599 = vmatpush1.bf16.msra.mxu1 %v13300_v62  ;;  %7436 = vmatprep.subr.bf16.mxu0 %v13315_v63  ;;  %v13380_v62 = vcombine.low %v1620_v42, %v1628_v0  ;;  %v13395_v63 = vcombine.high %v1635_v55, %v1643_v49  ;;  %v1700_v42 = vld [vmem:[#allocation8 + $0x1d98] sm:$0xff] }
 0x329   :  { %7600 = vmatprep.subr.bf16.mxu1 %v13317_v2  ;;  %v13397_v2 = vcombine.high %v1636_v54, %v1644_v56  ;;  %v1708_v0 = vld [vmem:[#allocation8 + $0x1dd8] sm:$0xff] }
 0x32b   :  { %7437 = vmatpush1.bf16.msra.mxu0 %v13314_v7  ;;  %v13394_v7 = vcombine.low %v1635_v55, %v1643_v49  ;;  %v1715_v55 = vld [vmem:[#allocation8 + $0x1e10] sm:$0xff] }
 0x32c   :  { %7601 = vmatpush1.bf16.msra.mxu1 %v13316_v8  ;;  %7438 = vmatprep.subr.bf16.mxu0 %v13331_v10  ;;  %v13396_v8 = vcombine.low %v1636_v54, %v1644_v56  ;;  %v13411_v10 = vcombine.high %v1651_v59, %v1659_v3  ;;  %v1723_v49 = vld [vmem:[#allocation8 + $0x1e50] sm:$0xff]  ;;  %v1716_v54 = vld [vmem:[#allocation8 + $0x1e18] sm:$0xff] }
 0x32d   :  { %7602 = vmatprep.subr.bf16.mxu1 %v13333_v12  ;;  %v13413_v12 = vcombine.high %v1652_v4, %v1660_v37  ;;  %v1724_v56 = vld [vmem:[#allocation8 + $0x1e58] sm:$0xff] }
 0x32f   :  { %7439 = vmatpush1.bf16.msra.mxu0 %v13330_v22  ;;  %v13410_v22 = vcombine.low %v1651_v59, %v1659_v3  ;;  %v13474_v59 = vcombine.low %v1715_v55, %v1723_v49  ;;  %v13476_v3 = vcombine.low %v1716_v54, %v1724_v56 }
 0x330   :  { %7603 = vmatpush1.bf16.msra.mxu1 %v13332_v13  ;;  %7440 = vmatprep.subr.bf16.mxu0 %v13347_v23  ;;  %v13412_v13 = vcombine.low %v1652_v4, %v1660_v37  ;;  %v13427_v23 = vcombine.high %v1667_v18, %v1675_v6 }
 0x331   :  { %7604 = vmatprep.subr.bf16.mxu1 %v13349_v24  ;;  %v13429_v24 = vcombine.high %v1668_v19, %v1676_v21 }
 0x333   :  { %7441 = vmatpush1.bf16.msra.mxu0 %v13346_v32  ;;  %v13426_v32 = vcombine.low %v1667_v18, %v1675_v6 }
 0x334   :  { %7605 = vmatpush1.bf16.msra.mxu1 %v13348_v34  ;;  %7442 = vmatprep.subr.bf16.mxu0 %v13363_v35  ;;  %v13428_v34 = vcombine.low %v1668_v19, %v1676_v21  ;;  %v13443_v35 = vcombine.high %v1683_v27, %v1691_v28 }
 0x335   :  { %v15644_v46 = vpop.f32.mrb[8].mxu0  ;;  %v15646_v47 = vpop.f32.mrb[8].mxu1  ;;  %7606 = vmatprep.subr.bf16.mxu1 %v13365_v36  ;;  %v13445_v36 = vcombine.high %v1684_v29, %v1692_v31 }
 0x336   :  { %v15648_v50 = vpop.f32.mrb[9].mxu0  ;;  %v15650_v52 = vpop.f32.mrb[9].mxu1 }
 0x337   :  { %v7142_v40 = vpop.f32.mrb[10].mxu0  ;;  %v7306_v57 = vpop.f32.mrb[10].mxu1  ;;  %7443 = vmatpush1.bf16.msra.mxu0 %v13362_v15  ;;  %v13442_v15 = vcombine.low %v1683_v27, %v1691_v28 }
 0x338   :  { %7607 = vmatpush1.bf16.msra.mxu1 %v13364_v44  ;;  %v7143_v60 = vpop.f32.mrb[11].mxu0  ;;  %v7307_v61 = vpop.f32.mrb[11].mxu1  ;;  %7444 = vmatprep.subr.bf16.mxu0 %v13379_v45  ;;  %v13444_v44 = vcombine.low %v1684_v29, %v1692_v31  ;;  %v13459_v45 = vcombine.high %v1699_v41, %v1707_v39  ;;  %v13458_v40 = vcombine.low %v1699_v41, %v1707_v39 }
 0x339   :  { %7608 = vmatprep.subr.bf16.mxu1 %v13381_v48  ;;  %v13461_v48 = vcombine.high %v1700_v42, %v1708_v0  ;;  %v13460_v57 = vcombine.low %v1700_v42, %v1708_v0  ;;  %v13477_v60 = vcombine.high %v1716_v54, %v1724_v56  ;;  %v1731_v61 = vld [vmem:[#allocation8 + $0x1e90] sm:$0xff]  ;;  %v789_v56 = vld [vmem:[#allocation8 + $0x120] sm:$0xff] }
 0x33b   :  { %7445 = vmatpush1.bf16.msra.mxu0 %v13378_v58  ;;  %v13475_v58 = vcombine.high %v1715_v55, %v1723_v49  ;;  %v782_v55 = vld [vmem:[#allocation8 + $0xe8] sm:$0xff] }
 0x33c   :  { %7609 = vmatpush1.bf16.msra.mxu1 %v13380_v62  ;;  %7446 = vmatprep.subr.bf16.mxu0 %v13395_v63  ;;  %v1739_v62 = vld [vmem:[#allocation8 + $0x1ed0] sm:$0xff]  ;;  %v1732_v63 = vld [vmem:[#allocation8 + $0x1e98] sm:$0xff] }
 0x33d   :  { %7610 = vmatprep.subr.bf16.mxu1 %v13397_v2  ;;  %v1740_v2 = vld [vmem:[#allocation8 + $0x1ed8] sm:$0xff]  ;;  %v13491_v4 = vcombine.high %v1731_v61, %v1739_v62  ;;  %v13490_v18 = vcombine.low %v1731_v61, %v1739_v62 }
 0x33e   :  { %v13493_v37 = vcombine.high %v1732_v63, %v1740_v2  ;;  %v13492_v6 = vcombine.low %v1732_v63, %v1740_v2 }
 0x33f   :  { %7447 = vmatpush1.bf16.msra.mxu0 %v13394_v7  ;;  %v1747_v7 = vld [vmem:[#allocation8 + $0x1f10] sm:$0xff] }
 0x340   :  { %7611 = vmatpush1.bf16.msra.mxu1 %v13396_v8  ;;  %7448 = vmatprep.subr.bf16.mxu0 %v13411_v10  ;;  %v1755_v8 = vld [vmem:[#allocation8 + $0x1f50] sm:$0xff]  ;;  %v1748_v10 = vld [vmem:[#allocation8 + $0x1f18] sm:$0xff] }
 0x341   :  { %7612 = vmatprep.subr.bf16.mxu1 %v13413_v12  ;;  %v1756_v12 = vld [vmem:[#allocation8 + $0x1f58] sm:$0xff]  ;;  %v13507_v19 = vcombine.high %v1747_v7, %v1755_v8  ;;  %v13506_v27 = vcombine.low %v1747_v7, %v1755_v8 }
 0x342   :  { %v13509_v21 = vcombine.high %v1748_v10, %v1756_v12  ;;  %v13508_v28 = vcombine.low %v1748_v10, %v1756_v12 }
 0x343   :  { %7449 = vmatpush1.bf16.msra.mxu0 %v13410_v22  ;;  %v1763_v22 = vld [vmem:[#allocation8 + $0x1f90] sm:$0xff] }
 0x344   :  { %7613 = vmatpush1.bf16.msra.mxu1 %v13412_v13  ;;  %7450 = vmatprep.subr.bf16.mxu0 %v13427_v23  ;;  %v1771_v13 = vld [vmem:[#allocation8 + $0x1fd0] sm:$0xff]  ;;  %v1764_v23 = vld [vmem:[#allocation8 + $0x1f98] sm:$0xff] }
 0x345   :  { %7614 = vmatprep.subr.bf16.mxu1 %v13429_v24  ;;  %v1772_v24 = vld [vmem:[#allocation8 + $0x1fd8] sm:$0xff]  ;;  %v13523_v29 = vcombine.high %v1763_v22, %v1771_v13  ;;  %v13522_v41 = vcombine.low %v1763_v22, %v1771_v13 }
 0x346   :  { %v13525_v31 = vcombine.high %v1764_v23, %v1772_v24  ;;  %v13524_v39 = vcombine.low %v1764_v23, %v1772_v24 }
 0x347   :  { %7451 = vmatpush1.bf16.msra.mxu0 %v13426_v32  ;;  %v757_v32 = vld [vmem:[#allocation8 + $0x20] sm:$0xff] }
 0x348   :  { %7615 = vmatpush1.bf16.msra.mxu1 %v13428_v34  ;;  %7452 = vmatprep.subr.bf16.mxu0 %v13443_v35  ;;  %v765_v34 = vld [vmem:[#allocation8 + $0x60] sm:$0xff]  ;;  %v758_v35 = vld [vmem:[#allocation8 + $0x28] sm:$0xff] }
 0x349   :  { %7616 = vmatprep.subr.bf16.mxu1 %v13445_v36  ;;  %v766_v36 = vld [vmem:[#allocation8 + $0x68] sm:$0xff]  ;;  %v12519_v42 = vcombine.high %v757_v32, %v765_v34 }
 0x34a   :  { %v12521_v0 = vcombine.high %v758_v35, %v766_v36  ;;  %v12520_v49 = vcombine.low %v758_v35, %v766_v36 }
 0x34b   :  { %7453 = vmatpush1.bf16.msra.mxu0 %v13442_v15  ;;  %v773_v15 = vld [vmem:[#allocation8 + $0xa0] sm:$0xff] }
 0x34c   :  { %7617 = vmatpush1.bf16.msra.mxu1 %v13444_v44  ;;  %7454 = vmatprep.subr.bf16.mxu0 %v13459_v45  ;;  %v781_v44 = vld [vmem:[#allocation8 + $0xe0] sm:$0xff]  ;;  %v12518_v45 = vcombine.low %v757_v32, %v765_v34 }
 0x34d   :  { %7618 = vmatprep.subr.bf16.mxu1 %v13461_v48  ;;  %v774_v48 = vld [vmem:[#allocation8 + $0xa8] sm:$0xff]  ;;  %v12535_v54 = vcombine.high %v773_v15, %v781_v44  ;;  %v12534_v61 = vcombine.low %v773_v15, %v781_v44 }
 0x34e   :  { %v12536_v62 = vcombine.low %v774_v48, %v782_v55 }
 0x34f   :  { %7455 = vmatpush1.bf16.msra.mxu0 %v13458_v40  ;;  %v797_v40 = vld [vmem:[#allocation8 + $0x160] sm:$0xff] }
 0x350   :  { %7619 = vmatpush1.bf16.msra.mxu1 %v13460_v57  ;;  %7456 = vmatprep.subr.bf16.mxu0 %v13475_v58  ;;  %v12537_v57 = vcombine.high %v774_v48, %v782_v55  ;;  %v790_v58 = vld [vmem:[#allocation8 + $0x128] sm:$0xff]  ;;  %v12551_v63 = vcombine.high %v789_v56, %v797_v40  ;;  %v12550_v7 = vcombine.low %v789_v56, %v797_v40  ;;  %v869_v55 = vld [vmem:[#allocation8 + $0x3a0] sm:$0xff] }
 0x351   :  { %7620 = vmatprep.subr.bf16.mxu1 %v13477_v60  ;;  %v798_v60 = vld [vmem:[#allocation8 + $0x168] sm:$0xff] }
 0x352   :  { %v12553_v2 = vcombine.high %v790_v58, %v798_v60  ;;  %v12552_v8 = vcombine.low %v790_v58, %v798_v60  ;;  %v878_v56 = vld [vmem:[#allocation8 + $0x3e8] sm:$0xff] }
 0x353   :  { %7457 = vmatpush1.bf16.msra.mxu0 %v13474_v59  ;;  %v805_v59 = vld [vmem:[#allocation8 + $0x1a0] sm:$0xff] }
 0x354   :  { %7621 = vmatpush1.bf16.msra.mxu1 %v13476_v3  ;;  %7458 = vmatprep.subr.bf16.mxu0 %v13491_v4  ;;  %v813_v3 = vld [vmem:[#allocation8 + $0x1e0] sm:$0xff]  ;;  %v806_v4 = vld [vmem:[#allocation8 + $0x1a8] sm:$0xff] }
 0x355   :  { %7622 = vmatprep.subr.bf16.mxu1 %v13493_v37  ;;  %v814_v37 = vld [vmem:[#allocation8 + $0x1e8] sm:$0xff]  ;;  %v12567_v10 = vcombine.high %v805_v59, %v813_v3  ;;  %v12566_v22 = vcombine.low %v805_v59, %v813_v3 }
 0x356   :  { %v12569_v12 = vcombine.high %v806_v4, %v814_v37  ;;  %v12568_v13 = vcombine.low %v806_v4, %v814_v37 }
 0x357   :  { %7459 = vmatpush1.bf16.msra.mxu0 %v13490_v18  ;;  %v821_v18 = vld [vmem:[#allocation8 + $0x220] sm:$0xff] }
 0x358   :  { %7623 = vmatpush1.bf16.msra.mxu1 %v13492_v6  ;;  %7460 = vmatprep.subr.bf16.mxu0 %v13507_v19  ;;  %v829_v6 = vld [vmem:[#allocation8 + $0x260] sm:$0xff]  ;;  %v822_v19 = vld [vmem:[#allocation8 + $0x228] sm:$0xff] }
 0x359   :  { %7624 = vmatprep.subr.bf16.mxu1 %v13509_v21  ;;  %v830_v21 = vld [vmem:[#allocation8 + $0x268] sm:$0xff]  ;;  %v12583_v23 = vcombine.high %v821_v18, %v829_v6  ;;  %v12582_v32 = vcombine.low %v821_v18, %v829_v6 }
 0x35a   :  { %v12585_v24 = vcombine.high %v822_v19, %v830_v21  ;;  %v12584_v34 = vcombine.low %v822_v19, %v830_v21 }
 0x35b   :  { %7461 = vmatpush1.bf16.msra.mxu0 %v13506_v27  ;;  %v837_v27 = vld [vmem:[#allocation8 + $0x2a0] sm:$0xff] }
 0x35c   :  { %7625 = vmatpush1.bf16.msra.mxu1 %v13508_v28  ;;  %7462 = vmatprep.subr.bf16.mxu0 %v13523_v29  ;;  %v845_v28 = vld [vmem:[#allocation8 + $0x2e0] sm:$0xff]  ;;  %v838_v29 = vld [vmem:[#allocation8 + $0x2a8] sm:$0xff] }
 0x35d   :  { %7626 = vmatprep.subr.bf16.mxu1 %v13525_v31  ;;  %v846_v31 = vld [vmem:[#allocation8 + $0x2e8] sm:$0xff]  ;;  %v12599_v35 = vcombine.high %v837_v27, %v845_v28  ;;  %v12598_v15 = vcombine.low %v837_v27, %v845_v28 }
 0x35e   :  { %v12601_v36 = vcombine.high %v838_v29, %v846_v31  ;;  %v12600_v44 = vcombine.low %v838_v29, %v846_v31 }
 0x35f   :  { %7463 = vmatpush1.bf16.msra.mxu0 %v13522_v41  ;;  %v853_v41 = vld [vmem:[#allocation8 + $0x320] sm:$0xff] }
 0x360   :  { %7627 = vmatpush1.bf16.msra.mxu1 %v13524_v39  ;;  %7637 = vmatprep.subr.bf16.mxu0 %v12519_v42  ;;  %v861_v39 = vld [vmem:[#allocation8 + $0x360] sm:$0xff]  ;;  %v854_v42 = vld [vmem:[#allocation8 + $0x328] sm:$0xff] }
 0x361   :  { %7801 = vmatprep.subr.bf16.mxu1 %v12521_v0  ;;  %v862_v0 = vld [vmem:[#allocation8 + $0x368] sm:$0xff]  ;;  %v12614_v40 = vcombine.low %v853_v41, %v861_v39 }
 0x362   :  { %7465 = vmatmul.mubr.bf16.vlgmr.msra.gmra.mrb[12].mxu0 %v15626_v51  ;;  %v12617_v48 = vcombine.high %v854_v42, %v862_v0 }
 0x363   :  { %7629 = vmatmul.mubr.bf16.vlgmr.msra.gmra.mrb[12].mxu1 %v15626_v51  ;;  %7638 = vmatpush1.bf16.msra.mxu0 %v12518_v45  ;;  %v12615_v45 = vcombine.high %v853_v41, %v861_v39 }
 0x364   :  { %7669 = vmatprep.mubr.bf16.mxu0 %v15556_v33  ;;  %7802 = vmatpush1.bf16.msra.mxu1 %v12520_v49  ;;  %v877_v49 = vld [vmem:[#allocation8 + $0x3e0] sm:$0xff] }
 0x365   :  { %7833 = vmatprep.mubr.bf16.mxu1 %v15556_v33  ;;  %7639 = vmatprep.subr.bf16.mxu0 %v12535_v54  ;;  %v870_v54 = vld [vmem:[#allocation8 + $0x3a8] sm:$0xff]  ;;  %v12631_v58 = vcombine.high %v869_v55, %v877_v49  ;;  %v12630_v59 = vcombine.low %v869_v55, %v877_v49 }
 0x366   :  { %7803 = vmatprep.subr.bf16.mxu1 %v12537_v57  ;;  %v12616_v57 = vcombine.low %v854_v42, %v862_v0  ;;  %v12633_v60 = vcombine.high %v870_v54, %v878_v56  ;;  %v12632_v3 = vcombine.low %v870_v54, %v878_v56 }
 0x367   :  { %7640 = vmatpush1.bf16.msra.mxu0 %v12534_v61  ;;  %v885_v61 = vld [vmem:[#allocation8 + $0x420] sm:$0xff] }
 0x368   :  { %7804 = vmatpush1.bf16.msra.mxu1 %v12536_v62  ;;  %7641 = vmatprep.subr.bf16.mxu0 %v12551_v63  ;;  %v893_v62 = vld [vmem:[#allocation8 + $0x460] sm:$0xff]  ;;  %v886_v63 = vld [vmem:[#allocation8 + $0x428] sm:$0xff] }
 0x369   :  { %7805 = vmatprep.subr.bf16.mxu1 %v12553_v2  ;;  %v894_v2 = vld [vmem:[#allocation8 + $0x468] sm:$0xff]  ;;  %v12647_v4 = vcombine.high %v885_v61, %v893_v62  ;;  %v12646_v18 = vcombine.low %v885_v61, %v893_v62 }
 0x36a   :  { %v12649_v37 = vcombine.high %v886_v63, %v894_v2  ;;  %v12648_v6 = vcombine.low %v886_v63, %v894_v2 }
 0x36b   :  { %7642 = vmatpush1.bf16.msra.mxu0 %v12550_v7  ;;  %v901_v7 = vld [vmem:[#allocation8 + $0x4a0] sm:$0xff] }
 0x36c   :  { %7806 = vmatpush1.bf16.msra.mxu1 %v12552_v8  ;;  %7643 = vmatprep.subr.bf16.mxu0 %v12567_v10  ;;  %v909_v8 = vld [vmem:[#allocation8 + $0x4e0] sm:$0xff]  ;;  %v902_v10 = vld [vmem:[#allocation8 + $0x4a8] sm:$0xff] }
 0x36d   :  { %7807 = vmatprep.subr.bf16.mxu1 %v12569_v12  ;;  %v910_v12 = vld [vmem:[#allocation8 + $0x4e8] sm:$0xff]  ;;  %v12663_v19 = vcombine.high %v901_v7, %v909_v8  ;;  %v12662_v27 = vcombine.low %v901_v7, %v909_v8 }
 0x36e   :  { %v12665_v21 = vcombine.high %v902_v10, %v910_v12  ;;  %v12664_v28 = vcombine.low %v902_v10, %v910_v12 }
 0x36f   :  { %7644 = vmatpush1.bf16.msra.mxu0 %v12566_v22  ;;  %v917_v22 = vld [vmem:[#allocation8 + $0x520] sm:$0xff] }
 0x370   :  { %7808 = vmatpush1.bf16.msra.mxu1 %v12568_v13  ;;  %7645 = vmatprep.subr.bf16.mxu0 %v12583_v23  ;;  %v925_v13 = vld [vmem:[#allocation8 + $0x560] sm:$0xff]  ;;  %v918_v23 = vld [vmem:[#allocation8 + $0x528] sm:$0xff] }
 0x371   :  { %7809 = vmatprep.subr.bf16.mxu1 %v12585_v24  ;;  %v926_v24 = vld [vmem:[#allocation8 + $0x568] sm:$0xff]  ;;  %v12679_v29 = vcombine.high %v917_v22, %v925_v13  ;;  %v12678_v41 = vcombine.low %v917_v22, %v925_v13 }
 0x372   :  { %v12681_v31 = vcombine.high %v918_v23, %v926_v24  ;;  %v12680_v39 = vcombine.low %v918_v23, %v926_v24 }
 0x373   :  { %7646 = vmatpush1.bf16.msra.mxu0 %v12582_v32  ;;  %v933_v32 = vld [vmem:[#allocation8 + $0x5a0] sm:$0xff] }
 0x374   :  { %7810 = vmatpush1.bf16.msra.mxu1 %v12584_v34  ;;  %7647 = vmatprep.subr.bf16.mxu0 %v12599_v35  ;;  %v941_v34 = vld [vmem:[#allocation8 + $0x5e0] sm:$0xff]  ;;  %v934_v35 = vld [vmem:[#allocation8 + $0x5a8] sm:$0xff] }
 0x375   :  { %7811 = vmatprep.subr.bf16.mxu1 %v12601_v36  ;;  %v942_v36 = vld [vmem:[#allocation8 + $0x5e8] sm:$0xff]  ;;  %v12695_v42 = vcombine.high %v933_v32, %v941_v34  ;;  %v12694_v55 = vcombine.low %v933_v32, %v941_v34 }
 0x376   :  { %v12697_v0 = vcombine.high %v934_v35, %v942_v36  ;;  %v12696_v49 = vcombine.low %v934_v35, %v942_v36 }
 0x377   :  { %7648 = vmatpush1.bf16.msra.mxu0 %v12598_v15  ;;  %v949_v15 = vld [vmem:[#allocation8 + $0x620] sm:$0xff] }
 0x378   :  { %7812 = vmatpush1.bf16.msra.mxu1 %v12600_v44  ;;  %7649 = vmatprep.subr.bf16.mxu0 %v12615_v45  ;;  %v957_v44 = vld [vmem:[#allocation8 + $0x660] sm:$0xff]  ;;  %v950_v45 = vld [vmem:[#allocation8 + $0x628] sm:$0xff] }
 0x379   :  { %7813 = vmatprep.subr.bf16.mxu1 %v12617_v48  ;;  %v958_v48 = vld [vmem:[#allocation8 + $0x668] sm:$0xff]  ;;  %v12711_v54 = vcombine.high %v949_v15, %v957_v44  ;;  %v12710_v61 = vcombine.low %v949_v15, %v957_v44 }
 0x37a   :  { %v12713_v56 = vcombine.high %v950_v45, %v958_v48  ;;  %v12712_v62 = vcombine.low %v950_v45, %v958_v48  ;;  %v1038_v15 = vld [vmem:[#allocation8 + $0x8e8] sm:$0xff]  ;;  %v1045_v48 = vld [vmem:[#allocation8 + $0x920] sm:$0xff] }
 0x37b   :  { %7650 = vmatpush1.bf16.msra.mxu0 %v12614_v40  ;;  %v965_v40 = vld [vmem:[#allocation8 + $0x6a0] sm:$0xff] }
 0x37c   :  { %7814 = vmatpush1.bf16.msra.mxu1 %v12616_v57  ;;  %7651 = vmatprep.subr.bf16.mxu0 %v12631_v58  ;;  %v973_v57 = vld [vmem:[#allocation8 + $0x6e0] sm:$0xff]  ;;  %v966_v58 = vld [vmem:[#allocation8 + $0x6a8] sm:$0xff] }
 0x37d   :  { %7815 = vmatprep.subr.bf16.mxu1 %v12633_v60  ;;  %v974_v60 = vld [vmem:[#allocation8 + $0x6e8] sm:$0xff]  ;;  %v12727_v63 = vcombine.high %v965_v40, %v973_v57  ;;  %v12726_v7 = vcombine.low %v965_v40, %v973_v57 }
 0x37e   :  { %v12729_v2 = vcombine.high %v966_v58, %v974_v60  ;;  %v12728_v8 = vcombine.low %v966_v58, %v974_v60 }
 0x37f   :  { %7652 = vmatpush1.bf16.msra.mxu0 %v12630_v59  ;;  %v981_v59 = vld [vmem:[#allocation8 + $0x720] sm:$0xff] }
 0x380   :  { %7816 = vmatpush1.bf16.msra.mxu1 %v12632_v3  ;;  %7653 = vmatprep.subr.bf16.mxu0 %v12647_v4  ;;  %v989_v3 = vld [vmem:[#allocation8 + $0x760] sm:$0xff]  ;;  %v982_v4 = vld [vmem:[#allocation8 + $0x728] sm:$0xff] }
 0x381   :  { %7817 = vmatprep.subr.bf16.mxu1 %v12649_v37  ;;  %v990_v37 = vld [vmem:[#allocation8 + $0x768] sm:$0xff]  ;;  %v12743_v10 = vcombine.high %v981_v59, %v989_v3  ;;  %v12742_v22 = vcombine.low %v981_v59, %v989_v3 }
 0x382   :  { %v12745_v12 = vcombine.high %v982_v4, %v990_v37  ;;  %v12744_v13 = vcombine.low %v982_v4, %v990_v37 }
 0x383   :  { %7654 = vmatpush1.bf16.msra.mxu0 %v12646_v18  ;;  %v997_v18 = vld [vmem:[#allocation8 + $0x7a0] sm:$0xff] }
 0x384   :  { %7818 = vmatpush1.bf16.msra.mxu1 %v12648_v6  ;;  %7655 = vmatprep.subr.bf16.mxu0 %v12663_v19  ;;  %v1005_v6 = vld [vmem:[#allocation8 + $0x7e0] sm:$0xff]  ;;  %v998_v19 = vld [vmem:[#allocation8 + $0x7a8] sm:$0xff] }
 0x385   :  { %7819 = vmatprep.subr.bf16.mxu1 %v12665_v21  ;;  %v1006_v21 = vld [vmem:[#allocation8 + $0x7e8] sm:$0xff]  ;;  %v12759_v23 = vcombine.high %v997_v18, %v1005_v6  ;;  %v12758_v32 = vcombine.low %v997_v18, %v1005_v6 }
 0x386   :  { %v12761_v24 = vcombine.high %v998_v19, %v1006_v21  ;;  %v12760_v34 = vcombine.low %v998_v19, %v1006_v21 }
 0x387   :  { %7656 = vmatpush1.bf16.msra.mxu0 %v12662_v27  ;;  %v1013_v27 = vld [vmem:[#allocation8 + $0x820] sm:$0xff] }
 0x388   :  { %7820 = vmatpush1.bf16.msra.mxu1 %v12664_v28  ;;  %7657 = vmatprep.subr.bf16.mxu0 %v12679_v29  ;;  %v1021_v28 = vld [vmem:[#allocation8 + $0x860] sm:$0xff]  ;;  %v1014_v29 = vld [vmem:[#allocation8 + $0x828] sm:$0xff] }
 0x389   :  { %7821 = vmatprep.subr.bf16.mxu1 %v12681_v31  ;;  %v1022_v31 = vld [vmem:[#allocation8 + $0x868] sm:$0xff]  ;;  %v12775_v35 = vcombine.high %v1013_v27, %v1021_v28 }
 0x38a   :  { %v12777_v36 = vcombine.high %v1014_v29, %v1022_v31  ;;  %v12776_v44 = vcombine.low %v1014_v29, %v1022_v31 }
 0x38b   :  { %7658 = vmatpush1.bf16.msra.mxu0 %v12678_v41  ;;  %v1029_v41 = vld [vmem:[#allocation8 + $0x8a0] sm:$0xff] }
 0x38c   :  { %7822 = vmatpush1.bf16.msra.mxu1 %v12680_v39  ;;  %7659 = vmatprep.subr.bf16.mxu0 %v12695_v42  ;;  %v1037_v39 = vld [vmem:[#allocation8 + $0x8e0] sm:$0xff]  ;;  %v12774_v42 = vcombine.low %v1013_v27, %v1021_v28 }
 0x38d   :  { %7823 = vmatprep.subr.bf16.mxu1 %v12697_v0  ;;  %v1030_v0 = vld [vmem:[#allocation8 + $0x8a8] sm:$0xff]  ;;  %v12791_v45 = vcombine.high %v1029_v41, %v1037_v39  ;;  %v12790_v40 = vcombine.low %v1029_v41, %v1037_v39 }
 0x38e   :  { %v12792_v57 = vcombine.low %v1030_v0, %v1038_v15 }
 0x38f   :  { %7660 = vmatpush1.bf16.msra.mxu0 %v12694_v55  ;;  %v1053_v55 = vld [vmem:[#allocation8 + $0x960] sm:$0xff] }
 0x390   :  { %7824 = vmatpush1.bf16.msra.mxu1 %v12696_v49  ;;  %7661 = vmatprep.subr.bf16.mxu0 %v12711_v54  ;;  %v12793_v49 = vcombine.high %v1030_v0, %v1038_v15  ;;  %v1046_v54 = vld [vmem:[#allocation8 + $0x928] sm:$0xff]  ;;  %v12807_v58 = vcombine.high %v1045_v48, %v1053_v55  ;;  %v12806_v59 = vcombine.low %v1045_v48, %v1053_v55  ;;  %v1125_v15 = vld [vmem:[#allocation8 + $0xba0] sm:$0xff] }
 0x391   :  { %7825 = vmatprep.subr.bf16.mxu1 %v12713_v56  ;;  %v1054_v56 = vld [vmem:[#allocation8 + $0x968] sm:$0xff] }
 0x392   :  { %v12809_v60 = vcombine.high %v1046_v54, %v1054_v56  ;;  %v12808_v3 = vcombine.low %v1046_v54, %v1054_v56  ;;  %v1134_v48 = vld [vmem:[#allocation8 + $0xbe8] sm:$0xff] }
 0x393   :  { %7662 = vmatpush1.bf16.msra.mxu0 %v12710_v61  ;;  %v1061_v61 = vld [vmem:[#allocation8 + $0x9a0] sm:$0xff] }
 0x394   :  { %7826 = vmatpush1.bf16.msra.mxu1 %v12712_v62  ;;  %7663 = vmatprep.subr.bf16.mxu0 %v12727_v63  ;;  %v1069_v62 = vld [vmem:[#allocation8 + $0x9e0] sm:$0xff]  ;;  %v1062_v63 = vld [vmem:[#allocation8 + $0x9a8] sm:$0xff] }
 0x395   :  { %7827 = vmatprep.subr.bf16.mxu1 %v12729_v2  ;;  %v1070_v2 = vld [vmem:[#allocation8 + $0x9e8] sm:$0xff]  ;;  %v12823_v4 = vcombine.high %v1061_v61, %v1069_v62  ;;  %v12822_v18 = vcombine.low %v1061_v61, %v1069_v62 }
 0x396   :  { %v12825_v37 = vcombine.high %v1062_v63, %v1070_v2  ;;  %v12824_v6 = vcombine.low %v1062_v63, %v1070_v2 }
 0x397   :  { %7664 = vmatpush1.bf16.msra.mxu0 %v12726_v7  ;;  %v1077_v7 = vld [vmem:[#allocation8 + $0xa20] sm:$0xff] }
 0x398   :  { %7828 = vmatpush1.bf16.msra.mxu1 %v12728_v8  ;;  %7665 = vmatprep.subr.bf16.mxu0 %v12743_v10  ;;  %v1085_v8 = vld [vmem:[#allocation8 + $0xa60] sm:$0xff]  ;;  %v1078_v10 = vld [vmem:[#allocation8 + $0xa28] sm:$0xff] }
 0x399   :  { %7829 = vmatprep.subr.bf16.mxu1 %v12745_v12  ;;  %v1086_v12 = vld [vmem:[#allocation8 + $0xa68] sm:$0xff]  ;;  %v12839_v19 = vcombine.high %v1077_v7, %v1085_v8  ;;  %v12838_v27 = vcombine.low %v1077_v7, %v1085_v8 }
 0x39a   :  { %v12841_v21 = vcombine.high %v1078_v10, %v1086_v12  ;;  %v12840_v28 = vcombine.low %v1078_v10, %v1086_v12 }
 0x39b   :  { %7666 = vmatpush1.bf16.msra.mxu0 %v12742_v22  ;;  %v1093_v22 = vld [vmem:[#allocation8 + $0xaa0] sm:$0xff] }
 0x39c   :  { %7830 = vmatpush1.bf16.msra.mxu1 %v12744_v13  ;;  %7667 = vmatprep.subr.bf16.mxu0 %v12759_v23  ;;  %v1101_v13 = vld [vmem:[#allocation8 + $0xae0] sm:$0xff]  ;;  %v1094_v23 = vld [vmem:[#allocation8 + $0xaa8] sm:$0xff] }
 0x39d   :  { %7831 = vmatprep.subr.bf16.mxu1 %v12761_v24  ;;  %v1102_v24 = vld [vmem:[#allocation8 + $0xae8] sm:$0xff]  ;;  %v12855_v29 = vcombine.high %v1093_v22, %v1101_v13  ;;  %v12854_v41 = vcombine.low %v1093_v22, %v1101_v13 }
 0x39e   :  { %v12857_v31 = vcombine.high %v1094_v23, %v1102_v24  ;;  %v12856_v39 = vcombine.low %v1094_v23, %v1102_v24 }
 0x39f   :  { %7668 = vmatpush1.bf16.msra.mxu0 %v12758_v32  ;;  %v1109_v32 = vld [vmem:[#allocation8 + $0xb20] sm:$0xff] }
 0x3a0   :  { %7832 = vmatpush1.bf16.msra.mxu1 %v12760_v34  ;;  %7678 = vmatprep.subr.bf16.mxu0 %v12775_v35  ;;  %v1117_v34 = vld [vmem:[#allocation8 + $0xb60] sm:$0xff]  ;;  %v1110_v35 = vld [vmem:[#allocation8 + $0xb28] sm:$0xff] }
 0x3a1   :  { %7842 = vmatprep.subr.bf16.mxu1 %v12777_v36  ;;  %v1118_v36 = vld [vmem:[#allocation8 + $0xb68] sm:$0xff]  ;;  %v12870_v55 = vcombine.low %v1109_v32, %v1117_v34 }
 0x3a2   :  { %7670 = vmatmul.mubr.bf16.vlgmr.msra.gmra.mrb[16].mxu0 %v15560_v38  ;;  %v12873_v0 = vcombine.high %v1110_v35, %v1118_v36 }
 0x3a3   :  { %7834 = vmatmul.mubr.bf16.vlgmr.msra.gmra.mrb[16].mxu1 %v15560_v38  ;;  %7679 = vmatpush1.bf16.msra.mxu0 %v12774_v42  ;;  %v12871_v42 = vcombine.high %v1109_v32, %v1117_v34 }
 0x3a4   :  { %7710 = vmatprep.mubr.bf16.mxu0 %v15566_v53  ;;  %7843 = vmatpush1.bf16.msra.mxu1 %v12776_v44  ;;  %v1133_v44 = vld [vmem:[#allocation8 + $0xbe0] sm:$0xff] }
 0x3a5   :  { %7874 = vmatprep.mubr.bf16.mxu1 %v15566_v53  ;;  %7680 = vmatprep.subr.bf16.mxu0 %v12791_v45  ;;  %v1126_v45 = vld [vmem:[#allocation8 + $0xba8] sm:$0xff]  ;;  %v12887_v54 = vcombine.high %v1125_v15, %v1133_v44  ;;  %v12886_v61 = vcombine.low %v1125_v15, %v1133_v44 }
 0x3a6   :  { %7844 = vmatprep.subr.bf16.mxu1 %v12793_v49  ;;  %v12872_v49 = vcombine.low %v1110_v35, %v1118_v36  ;;  %v12889_v56 = vcombine.high %v1126_v45, %v1134_v48  ;;  %v12888_v62 = vcombine.low %v1126_v45, %v1134_v48 }
 0x3a7   :  { %7681 = vmatpush1.bf16.msra.mxu0 %v12790_v40  ;;  %v1141_v40 = vld [vmem:[#allocation8 + $0xc20] sm:$0xff] }
 0x3a8   :  { %7845 = vmatpush1.bf16.msra.mxu1 %v12792_v57  ;;  %7682 = vmatprep.subr.bf16.mxu0 %v12807_v58  ;;  %v1149_v57 = vld [vmem:[#allocation8 + $0xc60] sm:$0xff]  ;;  %v1142_v58 = vld [vmem:[#allocation8 + $0xc28] sm:$0xff] }
 0x3a9   :  { %7846 = vmatprep.subr.bf16.mxu1 %v12809_v60  ;;  %v1150_v60 = vld [vmem:[#allocation8 + $0xc68] sm:$0xff]  ;;  %v12903_v63 = vcombine.high %v1141_v40, %v1149_v57  ;;  %v12902_v7 = vcombine.low %v1141_v40, %v1149_v57 }
 0x3aa   :  { %v12905_v2 = vcombine.high %v1142_v58, %v1150_v60  ;;  %v12904_v8 = vcombine.low %v1142_v58, %v1150_v60 }
 0x3ab   :  { %7683 = vmatpush1.bf16.msra.mxu0 %v12806_v59  ;;  %v1157_v59 = vld [vmem:[#allocation8 + $0xca0] sm:$0xff] }
 0x3ac   :  { %7847 = vmatpush1.bf16.msra.mxu1 %v12808_v3  ;;  %7684 = vmatprep.subr.bf16.mxu0 %v12823_v4  ;;  %v1165_v3 = vld [vmem:[#allocation8 + $0xce0] sm:$0xff]  ;;  %v1158_v4 = vld [vmem:[#allocation8 + $0xca8] sm:$0xff] }
 0x3ad   :  { %7848 = vmatprep.subr.bf16.mxu1 %v12825_v37  ;;  %v1166_v37 = vld [vmem:[#allocation8 + $0xce8] sm:$0xff]  ;;  %v12919_v10 = vcombine.high %v1157_v59, %v1165_v3  ;;  %v12918_v22 = vcombine.low %v1157_v59, %v1165_v3 }
 0x3ae   :  { %v12921_v12 = vcombine.high %v1158_v4, %v1166_v37  ;;  %v12920_v13 = vcombine.low %v1158_v4, %v1166_v37 }
 0x3af   :  { %7685 = vmatpush1.bf16.msra.mxu0 %v12822_v18  ;;  %v1173_v18 = vld [vmem:[#allocation8 + $0xd20] sm:$0xff] }
 0x3b0   :  { %7849 = vmatpush1.bf16.msra.mxu1 %v12824_v6  ;;  %7686 = vmatprep.subr.bf16.mxu0 %v12839_v19  ;;  %v1181_v6 = vld [vmem:[#allocation8 + $0xd60] sm:$0xff]  ;;  %v1174_v19 = vld [vmem:[#allocation8 + $0xd28] sm:$0xff] }
 0x3b1   :  { %7850 = vmatprep.subr.bf16.mxu1 %v12841_v21  ;;  %v1182_v21 = vld [vmem:[#allocation8 + $0xd68] sm:$0xff]  ;;  %v12935_v23 = vcombine.high %v1173_v18, %v1181_v6  ;;  %v12934_v32 = vcombine.low %v1173_v18, %v1181_v6 }
 0x3b2   :  { %v12937_v24 = vcombine.high %v1174_v19, %v1182_v21  ;;  %v12936_v34 = vcombine.low %v1174_v19, %v1182_v21 }
 0x3b3   :  { %7687 = vmatpush1.bf16.msra.mxu0 %v12838_v27  ;;  %v1189_v27 = vld [vmem:[#allocation8 + $0xda0] sm:$0xff] }
 0x3b4   :  { %7851 = vmatpush1.bf16.msra.mxu1 %v12840_v28  ;;  %7688 = vmatprep.subr.bf16.mxu0 %v12855_v29  ;;  %v1197_v28 = vld [vmem:[#allocation8 + $0xde0] sm:$0xff]  ;;  %v1190_v29 = vld [vmem:[#allocation8 + $0xda8] sm:$0xff] }
 0x3b5   :  { %7852 = vmatprep.subr.bf16.mxu1 %v12857_v31  ;;  %v1198_v31 = vld [vmem:[#allocation8 + $0xde8] sm:$0xff]  ;;  %v12951_v35 = vcombine.high %v1189_v27, %v1197_v28  ;;  %v12950_v15 = vcombine.low %v1189_v27, %v1197_v28 }
 0x3b6   :  { %v12953_v36 = vcombine.high %v1190_v29, %v1198_v31  ;;  %v12952_v44 = vcombine.low %v1190_v29, %v1198_v31 }
 0x3b7   :  { %7689 = vmatpush1.bf16.msra.mxu0 %v12854_v41  ;;  %v1205_v41 = vld [vmem:[#allocation8 + $0xe20] sm:$0xff] }
 0x3b8   :  { %7853 = vmatpush1.bf16.msra.mxu1 %v12856_v39  ;;  %7690 = vmatprep.subr.bf16.mxu0 %v12871_v42  ;;  %v1213_v39 = vld [vmem:[#allocation8 + $0xe60] sm:$0xff]  ;;  %v1206_v42 = vld [vmem:[#allocation8 + $0xe28] sm:$0xff] }
 0x3b9   :  { %7854 = vmatprep.subr.bf16.mxu1 %v12873_v0  ;;  %v1214_v0 = vld [vmem:[#allocation8 + $0xe68] sm:$0xff]  ;;  %v12967_v45 = vcombine.high %v1205_v41, %v1213_v39  ;;  %v12966_v40 = vcombine.low %v1205_v41, %v1213_v39 }
 0x3ba   :  { %v12969_v48 = vcombine.high %v1206_v42, %v1214_v0  ;;  %v12968_v57 = vcombine.low %v1206_v42, %v1214_v0  ;;  %v1294_v41 = vld [vmem:[#allocation8 + $0x10e8] sm:$0xff]  ;;  %v1301_v0 = vld [vmem:[#allocation8 + $0x1120] sm:$0xff] }
 0x3bb   :  { %7691 = vmatpush1.bf16.msra.mxu0 %v12870_v55  ;;  %v1221_v55 = vld [vmem:[#allocation8 + $0xea0] sm:$0xff] }
 0x3bc   :  { %7855 = vmatpush1.bf16.msra.mxu1 %v12872_v49  ;;  %7692 = vmatprep.subr.bf16.mxu0 %v12887_v54  ;;  %v1229_v49 = vld [vmem:[#allocation8 + $0xee0] sm:$0xff]  ;;  %v1222_v54 = vld [vmem:[#allocation8 + $0xea8] sm:$0xff] }
 0x3bd   :  { %7856 = vmatprep.subr.bf16.mxu1 %v12889_v56  ;;  %v1230_v56 = vld [vmem:[#allocation8 + $0xee8] sm:$0xff]  ;;  %v12983_v58 = vcombine.high %v1221_v55, %v1229_v49  ;;  %v12982_v59 = vcombine.low %v1221_v55, %v1229_v49 }
 0x3be   :  { %v12985_v60 = vcombine.high %v1222_v54, %v1230_v56  ;;  %v12984_v3 = vcombine.low %v1222_v54, %v1230_v56 }
 0x3bf   :  { %7693 = vmatpush1.bf16.msra.mxu0 %v12886_v61  ;;  %v1237_v61 = vld [vmem:[#allocation8 + $0xf20] sm:$0xff] }
 0x3c0   :  { %7857 = vmatpush1.bf16.msra.mxu1 %v12888_v62  ;;  %7694 = vmatprep.subr.bf16.mxu0 %v12903_v63  ;;  %v1245_v62 = vld [vmem:[#allocation8 + $0xf60] sm:$0xff]  ;;  %v1238_v63 = vld [vmem:[#allocation8 + $0xf28] sm:$0xff] }
 0x3c1   :  { %7858 = vmatprep.subr.bf16.mxu1 %v12905_v2  ;;  %v1246_v2 = vld [vmem:[#allocation8 + $0xf68] sm:$0xff]  ;;  %v12999_v4 = vcombine.high %v1237_v61, %v1245_v62  ;;  %v12998_v18 = vcombine.low %v1237_v61, %v1245_v62 }
 0x3c2   :  { %v13001_v37 = vcombine.high %v1238_v63, %v1246_v2  ;;  %v13000_v6 = vcombine.low %v1238_v63, %v1246_v2 }
 0x3c3   :  { %7695 = vmatpush1.bf16.msra.mxu0 %v12902_v7  ;;  %v1253_v7 = vld [vmem:[#allocation8 + $0xfa0] sm:$0xff] }
 0x3c4   :  { %7859 = vmatpush1.bf16.msra.mxu1 %v12904_v8  ;;  %7696 = vmatprep.subr.bf16.mxu0 %v12919_v10  ;;  %v1261_v8 = vld [vmem:[#allocation8 + $0xfe0] sm:$0xff]  ;;  %v1254_v10 = vld [vmem:[#allocation8 + $0xfa8] sm:$0xff] }
 0x3c5   :  { %7860 = vmatprep.subr.bf16.mxu1 %v12921_v12  ;;  %v1262_v12 = vld [vmem:[#allocation8 + $0xfe8] sm:$0xff]  ;;  %v13015_v19 = vcombine.high %v1253_v7, %v1261_v8  ;;  %v13014_v27 = vcombine.low %v1253_v7, %v1261_v8 }
 0x3c6   :  { %v13017_v21 = vcombine.high %v1254_v10, %v1262_v12  ;;  %v13016_v28 = vcombine.low %v1254_v10, %v1262_v12 }
 0x3c7   :  { %7697 = vmatpush1.bf16.msra.mxu0 %v12918_v22  ;;  %v1269_v22 = vld [vmem:[#allocation8 + $0x1020] sm:$0xff] }
 0x3c8   :  { %7861 = vmatpush1.bf16.msra.mxu1 %v12920_v13  ;;  %7698 = vmatprep.subr.bf16.mxu0 %v12935_v23  ;;  %v1277_v13 = vld [vmem:[#allocation8 + $0x1060] sm:$0xff]  ;;  %v1270_v23 = vld [vmem:[#allocation8 + $0x1028] sm:$0xff] }
 0x3c9   :  { %7862 = vmatprep.subr.bf16.mxu1 %v12937_v24  ;;  %v1278_v24 = vld [vmem:[#allocation8 + $0x1068] sm:$0xff]  ;;  %v13031_v29 = vcombine.high %v1269_v22, %v1277_v13 }
 0x3ca   :  { %v13033_v31 = vcombine.high %v1270_v23, %v1278_v24  ;;  %v13032_v39 = vcombine.low %v1270_v23, %v1278_v24 }
 0x3cb   :  { %7699 = vmatpush1.bf16.msra.mxu0 %v12934_v32  ;;  %v1285_v32 = vld [vmem:[#allocation8 + $0x10a0] sm:$0xff] }
 0x3cc   :  { %7863 = vmatpush1.bf16.msra.mxu1 %v12936_v34  ;;  %7700 = vmatprep.subr.bf16.mxu0 %v12951_v35  ;;  %v1293_v34 = vld [vmem:[#allocation8 + $0x10e0] sm:$0xff]  ;;  %v13030_v35 = vcombine.low %v1269_v22, %v1277_v13 }
 0x3cd   :  { %7864 = vmatprep.subr.bf16.mxu1 %v12953_v36  ;;  %v1286_v36 = vld [vmem:[#allocation8 + $0x10a8] sm:$0xff]  ;;  %v13047_v42 = vcombine.high %v1285_v32, %v1293_v34  ;;  %v13046_v55 = vcombine.low %v1285_v32, %v1293_v34 }
 0x3ce   :  { %v13048_v49 = vcombine.low %v1286_v36, %v1294_v41 }
 0x3cf   :  { %7701 = vmatpush1.bf16.msra.mxu0 %v12950_v15  ;;  %v1309_v15 = vld [vmem:[#allocation8 + $0x1160] sm:$0xff] }
 0x3d0   :  { %7865 = vmatpush1.bf16.msra.mxu1 %v12952_v44  ;;  %7702 = vmatprep.subr.bf16.mxu0 %v12967_v45  ;;  %v13049_v44 = vcombine.high %v1286_v36, %v1294_v41  ;;  %v1302_v45 = vld [vmem:[#allocation8 + $0x1128] sm:$0xff]  ;;  %v13063_v54 = vcombine.high %v1301_v0, %v1309_v15  ;;  %v13062_v61 = vcombine.low %v1301_v0, %v1309_v15  ;;  %v1381_v41 = vld [vmem:[#allocation8 + $0x13a0] sm:$0xff] }
 0x3d1   :  { %7866 = vmatprep.subr.bf16.mxu1 %v12969_v48  ;;  %v1310_v48 = vld [vmem:[#allocation8 + $0x1168] sm:$0xff] }
 0x3d2   :  { %v13065_v56 = vcombine.high %v1302_v45, %v1310_v48  ;;  %v13064_v62 = vcombine.low %v1302_v45, %v1310_v48  ;;  %v1390_v0 = vld [vmem:[#allocation8 + $0x13e8] sm:$0xff] }
 0x3d3   :  { %7703 = vmatpush1.bf16.msra.mxu0 %v12966_v40  ;;  %v1317_v40 = vld [vmem:[#allocation8 + $0x11a0] sm:$0xff] }
 0x3d4   :  { %7867 = vmatpush1.bf16.msra.mxu1 %v12968_v57  ;;  %7704 = vmatprep.subr.bf16.mxu0 %v12983_v58  ;;  %v1325_v57 = vld [vmem:[#allocation8 + $0x11e0] sm:$0xff]  ;;  %v1318_v58 = vld [vmem:[#allocation8 + $0x11a8] sm:$0xff] }
 0x3d5   :  { %7868 = vmatprep.subr.bf16.mxu1 %v12985_v60  ;;  %v1326_v60 = vld [vmem:[#allocation8 + $0x11e8] sm:$0xff]  ;;  %v13079_v63 = vcombine.high %v1317_v40, %v1325_v57  ;;  %v13078_v7 = vcombine.low %v1317_v40, %v1325_v57 }
 0x3d6   :  { %v13081_v2 = vcombine.high %v1318_v58, %v1326_v60  ;;  %v13080_v8 = vcombine.low %v1318_v58, %v1326_v60 }
 0x3d7   :  { %7705 = vmatpush1.bf16.msra.mxu0 %v12982_v59  ;;  %v1333_v59 = vld [vmem:[#allocation8 + $0x1220] sm:$0xff] }
 0x3d8   :  { %7869 = vmatpush1.bf16.msra.mxu1 %v12984_v3  ;;  %7706 = vmatprep.subr.bf16.mxu0 %v12999_v4  ;;  %v1341_v3 = vld [vmem:[#allocation8 + $0x1260] sm:$0xff]  ;;  %v1334_v4 = vld [vmem:[#allocation8 + $0x1228] sm:$0xff] }
 0x3d9   :  { %7870 = vmatprep.subr.bf16.mxu1 %v13001_v37  ;;  %v1342_v37 = vld [vmem:[#allocation8 + $0x1268] sm:$0xff]  ;;  %v13095_v10 = vcombine.high %v1333_v59, %v1341_v3  ;;  %v13094_v22 = vcombine.low %v1333_v59, %v1341_v3 }
 0x3da   :  { %v13097_v12 = vcombine.high %v1334_v4, %v1342_v37  ;;  %v13096_v13 = vcombine.low %v1334_v4, %v1342_v37 }
 0x3db   :  { %7707 = vmatpush1.bf16.msra.mxu0 %v12998_v18  ;;  %v1349_v18 = vld [vmem:[#allocation8 + $0x12a0] sm:$0xff] }
 0x3dc   :  { %7871 = vmatpush1.bf16.msra.mxu1 %v13000_v6  ;;  %7708 = vmatprep.subr.bf16.mxu0 %v13015_v19  ;;  %v1357_v6 = vld [vmem:[#allocation8 + $0x12e0] sm:$0xff]  ;;  %v1350_v19 = vld [vmem:[#allocation8 + $0x12a8] sm:$0xff] }
 0x3dd   :  { %7872 = vmatprep.subr.bf16.mxu1 %v13017_v21  ;;  %v1358_v21 = vld [vmem:[#allocation8 + $0x12e8] sm:$0xff]  ;;  %v13111_v23 = vcombine.high %v1349_v18, %v1357_v6  ;;  %v13110_v32 = vcombine.low %v1349_v18, %v1357_v6 }
 0x3de   :  { %v13113_v24 = vcombine.high %v1350_v19, %v1358_v21  ;;  %v13112_v34 = vcombine.low %v1350_v19, %v1358_v21 }
 0x3df   :  { %7709 = vmatpush1.bf16.msra.mxu0 %v13014_v27  ;;  %v1365_v27 = vld [vmem:[#allocation8 + $0x1320] sm:$0xff] }
 0x3e0   :  { %7873 = vmatpush1.bf16.msra.mxu1 %v13016_v28  ;;  %7719 = vmatprep.subr.bf16.mxu0 %v13031_v29  ;;  %v1373_v28 = vld [vmem:[#allocation8 + $0x1360] sm:$0xff]  ;;  %v1366_v29 = vld [vmem:[#allocation8 + $0x1328] sm:$0xff] }
 0x3e1   :  { %7883 = vmatprep.subr.bf16.mxu1 %v13033_v31  ;;  %v1374_v31 = vld [vmem:[#allocation8 + $0x1368] sm:$0xff]  ;;  %v13126_v15 = vcombine.low %v1365_v27, %v1373_v28 }
 0x3e2   :  { %7711 = vmatmul.mubr.bf16.vlgmr.msra.gmra.mrb[16].mxu0 %v15590_v17  ;;  %v13129_v36 = vcombine.high %v1366_v29, %v1374_v31 }
 0x3e3   :  { %7875 = vmatmul.mubr.bf16.vlgmr.msra.gmra.mrb[16].mxu1 %v15590_v17  ;;  %7720 = vmatpush1.bf16.msra.mxu0 %v13030_v35  ;;  %v13127_v35 = vcombine.high %v1365_v27, %v1373_v28 }
 0x3e4   :  { %7751 = vmatprep.mubr.bf16.mxu0 %v15592_v26  ;;  %7884 = vmatpush1.bf16.msra.mxu1 %v13032_v39  ;;  %v1389_v39 = vld [vmem:[#allocation8 + $0x13e0] sm:$0xff] }
 0x3e5   :  { %7915 = vmatprep.mubr.bf16.mxu1 %v15592_v26  ;;  %7721 = vmatprep.subr.bf16.mxu0 %v13047_v42  ;;  %v1382_v42 = vld [vmem:[#allocation8 + $0x13a8] sm:$0xff]  ;;  %v13143_v45 = vcombine.high %v1381_v41, %v1389_v39  ;;  %v13142_v40 = vcombine.low %v1381_v41, %v1389_v39 }
 0x3e6   :  { %7885 = vmatprep.subr.bf16.mxu1 %v13049_v44  ;;  %v13128_v44 = vcombine.low %v1366_v29, %v1374_v31  ;;  %v13145_v48 = vcombine.high %v1382_v42, %v1390_v0  ;;  %v13144_v57 = vcombine.low %v1382_v42, %v1390_v0 }
 0x3e7   :  { %7722 = vmatpush1.bf16.msra.mxu0 %v13046_v55  ;;  %v1397_v55 = vld [vmem:[#allocation8 + $0x1420] sm:$0xff] }
 0x3e8   :  { %7886 = vmatpush1.bf16.msra.mxu1 %v13048_v49  ;;  %7723 = vmatprep.subr.bf16.mxu0 %v13063_v54  ;;  %v1405_v49 = vld [vmem:[#allocation8 + $0x1460] sm:$0xff]  ;;  %v1398_v54 = vld [vmem:[#allocation8 + $0x1428] sm:$0xff] }
 0x3e9   :  { %7887 = vmatprep.subr.bf16.mxu1 %v13065_v56  ;;  %v1406_v56 = vld [vmem:[#allocation8 + $0x1468] sm:$0xff]  ;;  %v13159_v58 = vcombine.high %v1397_v55, %v1405_v49  ;;  %v13158_v59 = vcombine.low %v1397_v55, %v1405_v49 }
 0x3ea   :  { %v13161_v60 = vcombine.high %v1398_v54, %v1406_v56  ;;  %v13160_v3 = vcombine.low %v1398_v54, %v1406_v56 }
 0x3eb   :  { %7724 = vmatpush1.bf16.msra.mxu0 %v13062_v61  ;;  %v1413_v61 = vld [vmem:[#allocation8 + $0x14a0] sm:$0xff] }
 0x3ec   :  { %7888 = vmatpush1.bf16.msra.mxu1 %v13064_v62  ;;  %7725 = vmatprep.subr.bf16.mxu0 %v13079_v63  ;;  %v1421_v62 = vld [vmem:[#allocation8 + $0x14e0] sm:$0xff]  ;;  %v1414_v63 = vld [vmem:[#allocation8 + $0x14a8] sm:$0xff] }
 0x3ed   :  { %7889 = vmatprep.subr.bf16.mxu1 %v13081_v2  ;;  %v1422_v2 = vld [vmem:[#allocation8 + $0x14e8] sm:$0xff]  ;;  %v13175_v4 = vcombine.high %v1413_v61, %v1421_v62  ;;  %v13174_v18 = vcombine.low %v1413_v61, %v1421_v62 }
 0x3ee   :  { %v13177_v37 = vcombine.high %v1414_v63, %v1422_v2  ;;  %v13176_v6 = vcombine.low %v1414_v63, %v1422_v2 }
 0x3ef   :  { %7726 = vmatpush1.bf16.msra.mxu0 %v13078_v7  ;;  %v1429_v7 = vld [vmem:[#allocation8 + $0x1520] sm:$0xff] }
 0x3f0   :  { %7890 = vmatpush1.bf16.msra.mxu1 %v13080_v8  ;;  %7727 = vmatprep.subr.bf16.mxu0 %v13095_v10  ;;  %v1437_v8 = vld [vmem:[#allocation8 + $0x1560] sm:$0xff]  ;;  %v1430_v10 = vld [vmem:[#allocation8 + $0x1528] sm:$0xff] }
 0x3f1   :  { %7891 = vmatprep.subr.bf16.mxu1 %v13097_v12  ;;  %v1438_v12 = vld [vmem:[#allocation8 + $0x1568] sm:$0xff]  ;;  %v13191_v19 = vcombine.high %v1429_v7, %v1437_v8  ;;  %v13190_v27 = vcombine.low %v1429_v7, %v1437_v8 }
 0x3f2   :  { %v13193_v21 = vcombine.high %v1430_v10, %v1438_v12  ;;  %v13192_v28 = vcombine.low %v1430_v10, %v1438_v12 }
 0x3f3   :  { %7728 = vmatpush1.bf16.msra.mxu0 %v13094_v22  ;;  %v1445_v22 = vld [vmem:[#allocation8 + $0x15a0] sm:$0xff] }
 0x3f4   :  { %7892 = vmatpush1.bf16.msra.mxu1 %v13096_v13  ;;  %7729 = vmatprep.subr.bf16.mxu0 %v13111_v23  ;;  %v1453_v13 = vld [vmem:[#allocation8 + $0x15e0] sm:$0xff]  ;;  %v1446_v23 = vld [vmem:[#allocation8 + $0x15a8] sm:$0xff] }
 0x3f5   :  { %7893 = vmatprep.subr.bf16.mxu1 %v13113_v24  ;;  %v1454_v24 = vld [vmem:[#allocation8 + $0x15e8] sm:$0xff]  ;;  %v13207_v29 = vcombine.high %v1445_v22, %v1453_v13  ;;  %v13206_v41 = vcombine.low %v1445_v22, %v1453_v13 }
 0x3f6   :  { %v13209_v31 = vcombine.high %v1446_v23, %v1454_v24  ;;  %v13208_v39 = vcombine.low %v1446_v23, %v1454_v24 }
 0x3f7   :  { %7730 = vmatpush1.bf16.msra.mxu0 %v13110_v32  ;;  %v1461_v32 = vld [vmem:[#allocation8 + $0x1620] sm:$0xff] }
 0x3f8   :  { %7894 = vmatpush1.bf16.msra.mxu1 %v13112_v34  ;;  %7731 = vmatprep.subr.bf16.mxu0 %v13127_v35  ;;  %v1469_v34 = vld [vmem:[#allocation8 + $0x1660] sm:$0xff]  ;;  %v1462_v35 = vld [vmem:[#allocation8 + $0x1628] sm:$0xff] }
 0x3f9   :  { %7895 = vmatprep.subr.bf16.mxu1 %v13129_v36  ;;  %v1470_v36 = vld [vmem:[#allocation8 + $0x1668] sm:$0xff]  ;;  %v13223_v42 = vcombine.high %v1461_v32, %v1469_v34  ;;  %v13222_v55 = vcombine.low %v1461_v32, %v1469_v34 }
 0x3fa   :  { %v13225_v0 = vcombine.high %v1462_v35, %v1470_v36  ;;  %v13224_v49 = vcombine.low %v1462_v35, %v1470_v36  ;;  %v1550_v32 = vld [vmem:[#allocation8 + $0x18e8] sm:$0xff]  ;;  %v1557_v36 = vld [vmem:[#allocation8 + $0x1920] sm:$0xff] }
 0x3fb   :  { %7732 = vmatpush1.bf16.msra.mxu0 %v13126_v15  ;;  %v1477_v15 = vld [vmem:[#allocation8 + $0x16a0] sm:$0xff] }
 0x3fc   :  { %7896 = vmatpush1.bf16.msra.mxu1 %v13128_v44  ;;  %7733 = vmatprep.subr.bf16.mxu0 %v13143_v45  ;;  %v1485_v44 = vld [vmem:[#allocation8 + $0x16e0] sm:$0xff]  ;;  %v1478_v45 = vld [vmem:[#allocation8 + $0x16a8] sm:$0xff] }
 0x3fd   :  { %7897 = vmatprep.subr.bf16.mxu1 %v13145_v48  ;;  %v1486_v48 = vld [vmem:[#allocation8 + $0x16e8] sm:$0xff]  ;;  %v13239_v54 = vcombine.high %v1477_v15, %v1485_v44  ;;  %v13238_v61 = vcombine.low %v1477_v15, %v1485_v44 }
 0x3fe   :  { %v13241_v56 = vcombine.high %v1478_v45, %v1486_v48  ;;  %v13240_v62 = vcombine.low %v1478_v45, %v1486_v48 }
 0x3ff   :  { %7734 = vmatpush1.bf16.msra.mxu0 %v13142_v40  ;;  %v1493_v40 = vld [vmem:[#allocation8 + $0x1720] sm:$0xff] }
 0x400   :  { %7898 = vmatpush1.bf16.msra.mxu1 %v13144_v57  ;;  %7735 = vmatprep.subr.bf16.mxu0 %v13159_v58  ;;  %v1501_v57 = vld [vmem:[#allocation8 + $0x1760] sm:$0xff]  ;;  %v1494_v58 = vld [vmem:[#allocation8 + $0x1728] sm:$0xff] }
 0x401   :  { %7899 = vmatprep.subr.bf16.mxu1 %v13161_v60  ;;  %v1502_v60 = vld [vmem:[#allocation8 + $0x1768] sm:$0xff]  ;;  %v13255_v63 = vcombine.high %v1493_v40, %v1501_v57  ;;  %v13254_v7 = vcombine.low %v1493_v40, %v1501_v57 }
 0x402   :  { %v13257_v2 = vcombine.high %v1494_v58, %v1502_v60  ;;  %v13256_v8 = vcombine.low %v1494_v58, %v1502_v60 }
 0x403   :  { %7736 = vmatpush1.bf16.msra.mxu0 %v13158_v59  ;;  %v1509_v59 = vld [vmem:[#allocation8 + $0x17a0] sm:$0xff] }
 0x404   :  { %7900 = vmatpush1.bf16.msra.mxu1 %v13160_v3  ;;  %7737 = vmatprep.subr.bf16.mxu0 %v13175_v4  ;;  %v1517_v3 = vld [vmem:[#allocation8 + $0x17e0] sm:$0xff]  ;;  %v1510_v4 = vld [vmem:[#allocation8 + $0x17a8] sm:$0xff] }
 0x405   :  { %7901 = vmatprep.subr.bf16.mxu1 %v13177_v37  ;;  %v1518_v37 = vld [vmem:[#allocation8 + $0x17e8] sm:$0xff]  ;;  %v13271_v10 = vcombine.high %v1509_v59, %v1517_v3  ;;  %v13270_v22 = vcombine.low %v1509_v59, %v1517_v3 }
 0x406   :  { %v13273_v12 = vcombine.high %v1510_v4, %v1518_v37  ;;  %v13272_v13 = vcombine.low %v1510_v4, %v1518_v37 }
 0x407   :  { %7738 = vmatpush1.bf16.msra.mxu0 %v13174_v18  ;;  %v1525_v18 = vld [vmem:[#allocation8 + $0x1820] sm:$0xff] }
 0x408   :  { %7902 = vmatpush1.bf16.msra.mxu1 %v13176_v6  ;;  %7739 = vmatprep.subr.bf16.mxu0 %v13191_v19  ;;  %v1533_v6 = vld [vmem:[#allocation8 + $0x1860] sm:$0xff]  ;;  %v1526_v19 = vld [vmem:[#allocation8 + $0x1828] sm:$0xff] }
 0x409   :  { %7903 = vmatprep.subr.bf16.mxu1 %v13193_v21  ;;  %v1534_v21 = vld [vmem:[#allocation8 + $0x1868] sm:$0xff]  ;;  %v13287_v23 = vcombine.high %v1525_v18, %v1533_v6 }
 0x40a   :  { %v13289_v24 = vcombine.high %v1526_v19, %v1534_v21  ;;  %v13288_v34 = vcombine.low %v1526_v19, %v1534_v21 }
 0x40b   :  { %7740 = vmatpush1.bf16.msra.mxu0 %v13190_v27  ;;  %v1541_v27 = vld [vmem:[#allocation8 + $0x18a0] sm:$0xff] }
 0x40c   :  { %7904 = vmatpush1.bf16.msra.mxu1 %v13192_v28  ;;  %7741 = vmatprep.subr.bf16.mxu0 %v13207_v29  ;;  %v1549_v28 = vld [vmem:[#allocation8 + $0x18e0] sm:$0xff]  ;;  %v13286_v29 = vcombine.low %v1525_v18, %v1533_v6 }
 0x40d   :  { %7905 = vmatprep.subr.bf16.mxu1 %v13209_v31  ;;  %v1542_v31 = vld [vmem:[#allocation8 + $0x18a8] sm:$0xff]  ;;  %v13303_v35 = vcombine.high %v1541_v27, %v1549_v28  ;;  %v13302_v15 = vcombine.low %v1541_v27, %v1549_v28 }
 0x40e   :  { %v13304_v44 = vcombine.low %v1542_v31, %v1550_v32 }
 0x40f   :  { %7742 = vmatpush1.bf16.msra.mxu0 %v13206_v41  ;;  %v1565_v41 = vld [vmem:[#allocation8 + $0x1960] sm:$0xff] }
 0x410   :  { %7906 = vmatpush1.bf16.msra.mxu1 %v13208_v39  ;;  %7743 = vmatprep.subr.bf16.mxu0 %v13223_v42  ;;  %v13305_v39 = vcombine.high %v1542_v31, %v1550_v32  ;;  %v1558_v42 = vld [vmem:[#allocation8 + $0x1928] sm:$0xff]  ;;  %v13319_v45 = vcombine.high %v1557_v36, %v1565_v41  ;;  %v13318_v40 = vcombine.low %v1557_v36, %v1565_v41 }
 0x411   :  { %7907 = vmatprep.subr.bf16.mxu1 %v13225_v0  ;;  %v1566_v0 = vld [vmem:[#allocation8 + $0x1968] sm:$0xff] }
 0x412   :  { %v13321_v48 = vcombine.high %v1558_v42, %v1566_v0  ;;  %v13320_v57 = vcombine.low %v1558_v42, %v1566_v0  ;;  %v1646_v42 = vld [vmem:[#allocation8 + $0x1be8] sm:$0xff] }
 0x413   :  { %7744 = vmatpush1.bf16.msra.mxu0 %v13222_v55  ;;  %v1573_v55 = vld [vmem:[#allocation8 + $0x19a0] sm:$0xff] }
 0x414   :  { %7908 = vmatpush1.bf16.msra.mxu1 %v13224_v49  ;;  %7745 = vmatprep.subr.bf16.mxu0 %v13239_v54  ;;  %v1581_v49 = vld [vmem:[#allocation8 + $0x19e0] sm:$0xff]  ;;  %v1574_v54 = vld [vmem:[#allocation8 + $0x19a8] sm:$0xff] }
 0x415   :  { %7909 = vmatprep.subr.bf16.mxu1 %v13241_v56  ;;  %v1582_v56 = vld [vmem:[#allocation8 + $0x19e8] sm:$0xff]  ;;  %v13335_v58 = vcombine.high %v1573_v55, %v1581_v49  ;;  %v13334_v59 = vcombine.low %v1573_v55, %v1581_v49 }
 0x416   :  { %v13337_v60 = vcombine.high %v1574_v54, %v1582_v56  ;;  %v13336_v3 = vcombine.low %v1574_v54, %v1582_v56 }
 0x417   :  { %7746 = vmatpush1.bf16.msra.mxu0 %v13238_v61  ;;  %v1589_v61 = vld [vmem:[#allocation8 + $0x1a20] sm:$0xff] }
 0x418   :  { %7910 = vmatpush1.bf16.msra.mxu1 %v13240_v62  ;;  %7747 = vmatprep.subr.bf16.mxu0 %v13255_v63  ;;  %v1597_v62 = vld [vmem:[#allocation8 + $0x1a60] sm:$0xff]  ;;  %v1590_v63 = vld [vmem:[#allocation8 + $0x1a28] sm:$0xff] }
 0x419   :  { %7911 = vmatprep.subr.bf16.mxu1 %v13257_v2  ;;  %v1598_v2 = vld [vmem:[#allocation8 + $0x1a68] sm:$0xff]  ;;  %v13351_v4 = vcombine.high %v1589_v61, %v1597_v62  ;;  %v13350_v18 = vcombine.low %v1589_v61, %v1597_v62 }
 0x41a   :  { %v13353_v37 = vcombine.high %v1590_v63, %v1598_v2  ;;  %v13352_v6 = vcombine.low %v1590_v63, %v1598_v2 }
 0x41b   :  { %7748 = vmatpush1.bf16.msra.mxu0 %v13254_v7  ;;  %v1605_v7 = vld [vmem:[#allocation8 + $0x1aa0] sm:$0xff] }
 0x41c   :  { %7912 = vmatpush1.bf16.msra.mxu1 %v13256_v8  ;;  %7749 = vmatprep.subr.bf16.mxu0 %v13271_v10  ;;  %v1613_v8 = vld [vmem:[#allocation8 + $0x1ae0] sm:$0xff]  ;;  %v1606_v10 = vld [vmem:[#allocation8 + $0x1aa8] sm:$0xff] }
 0x41d   :  { %7913 = vmatprep.subr.bf16.mxu1 %v13273_v12  ;;  %v1614_v12 = vld [vmem:[#allocation8 + $0x1ae8] sm:$0xff]  ;;  %v13367_v19 = vcombine.high %v1605_v7, %v1613_v8  ;;  %v13366_v27 = vcombine.low %v1605_v7, %v1613_v8 }
 0x41e   :  { %v13369_v21 = vcombine.high %v1606_v10, %v1614_v12  ;;  %v13368_v28 = vcombine.low %v1606_v10, %v1614_v12 }
 0x41f   :  { %7750 = vmatpush1.bf16.msra.mxu0 %v13270_v22  ;;  %v1621_v22 = vld [vmem:[#allocation8 + $0x1b20] sm:$0xff] }
 0x420   :  { %7914 = vmatpush1.bf16.msra.mxu1 %v13272_v13  ;;  %7760 = vmatprep.subr.bf16.mxu0 %v13287_v23  ;;  %v1629_v13 = vld [vmem:[#allocation8 + $0x1b60] sm:$0xff]  ;;  %v1622_v23 = vld [vmem:[#allocation8 + $0x1b28] sm:$0xff] }
 0x421   :  { %7924 = vmatprep.subr.bf16.mxu1 %v13289_v24  ;;  %v1630_v24 = vld [vmem:[#allocation8 + $0x1b68] sm:$0xff] }
 0x422   :  { %7752 = vmatmul.mubr.bf16.vlgmr.msra.gmra.mrb[16].mxu0 %v15612_v1  ;;  %v13385_v32 = vcombine.high %v1622_v23, %v1630_v24  ;;  %v13384_v55 = vcombine.low %v1622_v23, %v1630_v24 }
 0x423   :  { %7916 = vmatmul.mubr.bf16.vlgmr.msra.gmra.mrb[16].mxu1 %v15612_v1  ;;  %7761 = vmatpush1.bf16.msra.mxu0 %v13286_v29  ;;  %v13383_v29 = vcombine.high %v1621_v22, %v1629_v13 }
 0x424   :  { %7792 = vmatprep.mubr.bf16.mxu0 %v15614_v9  ;;  %7925 = vmatpush1.bf16.msra.mxu1 %v13288_v34  ;;  %v1637_v34 = vld [vmem:[#allocation8 + $0x1ba0] sm:$0xff] }
 0x425   :  { %7956 = vmatprep.mubr.bf16.mxu1 %v15614_v9  ;;  %7762 = vmatprep.subr.bf16.mxu0 %v13303_v35  ;;  %v1645_v35 = vld [vmem:[#allocation8 + $0x1be0] sm:$0xff] }
 0x426   :  { %7926 = vmatprep.subr.bf16.mxu1 %v13305_v39  ;;  %v1638_v39 = vld [vmem:[#allocation8 + $0x1ba8] sm:$0xff]  ;;  %v13399_v49 = vcombine.high %v1637_v34, %v1645_v35  ;;  %v13398_v61 = vcombine.low %v1637_v34, %v1645_v35 }
 0x427   :  { %7763 = vmatpush1.bf16.msra.mxu0 %v13302_v15  ;;  %v13401_v56 = vcombine.high %v1638_v39, %v1646_v42  ;;  %v13400_v62 = vcombine.low %v1638_v39, %v1646_v42 }
 0x428   :  { %7927 = vmatpush1.bf16.msra.mxu1 %v13304_v44  ;;  %7764 = vmatprep.subr.bf16.mxu0 %v13319_v45  ;;  %v13382_v44 = vcombine.low %v1621_v22, %v1629_v13 }
 0x429   :  { %7928 = vmatprep.subr.bf16.mxu1 %v13321_v48 }
 0x42b   :  { %7765 = vmatpush1.bf16.msra.mxu0 %v13318_v40  ;;  %v1653_v40 = vld [vmem:[#allocation8 + $0x1c20] sm:$0xff] }
 0x42c   :  { %7929 = vmatpush1.bf16.msra.mxu1 %v13320_v57  ;;  %7766 = vmatprep.subr.bf16.mxu0 %v13335_v58  ;;  %v1661_v57 = vld [vmem:[#allocation8 + $0x1c60] sm:$0xff]  ;;  %v1654_v58 = vld [vmem:[#allocation8 + $0x1c28] sm:$0xff] }
 0x42d   :  { %7930 = vmatprep.subr.bf16.mxu1 %v13337_v60  ;;  %v1662_v60 = vld [vmem:[#allocation8 + $0x1c68] sm:$0xff]  ;;  %v13415_v63 = vcombine.high %v1653_v40, %v1661_v57  ;;  %v13414_v7 = vcombine.low %v1653_v40, %v1661_v57  ;;  %v1733_v40 = vld [vmem:[#allocation8 + $0x1ea0] sm:$0xff] }
 0x42e   :  { %v13417_v2 = vcombine.high %v1654_v58, %v1662_v60  ;;  %v13416_v8 = vcombine.low %v1654_v58, %v1662_v60  ;;  %v1741_v57 = vld [vmem:[#allocation8 + $0x1ee0] sm:$0xff]  ;;  %v1734_v58 = vld [vmem:[#allocation8 + $0x1ea8] sm:$0xff] }
 0x42f   :  { %7767 = vmatpush1.bf16.msra.mxu0 %v13334_v59  ;;  %v1669_v59 = vld [vmem:[#allocation8 + $0x1ca0] sm:$0xff]  ;;  %v1742_v60 = vld [vmem:[#allocation8 + $0x1ee8] sm:$0xff] }
 0x430   :  { %7931 = vmatpush1.bf16.msra.mxu1 %v13336_v3  ;;  %7768 = vmatprep.subr.bf16.mxu0 %v13351_v4  ;;  %v1677_v3 = vld [vmem:[#allocation8 + $0x1ce0] sm:$0xff]  ;;  %v1670_v4 = vld [vmem:[#allocation8 + $0x1ca8] sm:$0xff] }
 0x431   :  { %7932 = vmatprep.subr.bf16.mxu1 %v13353_v37  ;;  %v1678_v37 = vld [vmem:[#allocation8 + $0x1ce8] sm:$0xff]  ;;  %v13431_v10 = vcombine.high %v1669_v59, %v1677_v3  ;;  %v13430_v22 = vcombine.low %v1669_v59, %v1677_v3  ;;  %v1749_v59 = vld [vmem:[#allocation8 + $0x1f20] sm:$0xff] }
 0x432   :  { %v13433_v12 = vcombine.high %v1670_v4, %v1678_v37  ;;  %v13432_v13 = vcombine.low %v1670_v4, %v1678_v37  ;;  %v1757_v3 = vld [vmem:[#allocation8 + $0x1f60] sm:$0xff]  ;;  %v1750_v4 = vld [vmem:[#allocation8 + $0x1f28] sm:$0xff] }
 0x433   :  { %7769 = vmatpush1.bf16.msra.mxu0 %v13350_v18  ;;  %v1685_v18 = vld [vmem:[#allocation8 + $0x1d20] sm:$0xff]  ;;  %v1758_v37 = vld [vmem:[#allocation8 + $0x1f68] sm:$0xff] }
 0x434   :  { %7933 = vmatpush1.bf16.msra.mxu1 %v13352_v6  ;;  %7770 = vmatprep.subr.bf16.mxu0 %v13367_v19  ;;  %v1693_v6 = vld [vmem:[#allocation8 + $0x1d60] sm:$0xff]  ;;  %v1686_v19 = vld [vmem:[#allocation8 + $0x1d28] sm:$0xff] }
 0x435   :  { %v15668_v31 = vpop.f32.mrb[12].mxu0  ;;  %7934 = vmatprep.subr.bf16.mxu1 %v13369_v21  ;;  %v1694_v21 = vld [vmem:[#allocation8 + $0x1d68] sm:$0xff]  ;;  %v13447_v23 = vcombine.high %v1685_v18, %v1693_v6  ;;  %v13446_v34 = vcombine.low %v1685_v18, %v1693_v6  ;;  %v1765_v18 = vld [vmem:[#allocation8 + $0x1fa0] sm:$0xff] }
 0x436   :  { %v15670_v36 = vpop.f32.mrb[12].mxu1  ;;  %v15672_v41 = vpop.f32.mrb[13].mxu0  ;;  %v13449_v24 = vcombine.high %v1686_v19, %v1694_v21  ;;  %v13448_v35 = vcombine.low %v1686_v19, %v1694_v21  ;;  %v1773_v6 = vld [vmem:[#allocation8 + $0x1fe0] sm:$0xff]  ;;  %v1766_v19 = vld [vmem:[#allocation8 + $0x1fa8] sm:$0xff] }
 0x437   :  { %v15674_v0 = vpop.f32.mrb[13].mxu1  ;;  %v7470_v15 = vpop.f32.mrb[14].mxu0  ;;  %7771 = vmatpush1.bf16.msra.mxu0 %v13366_v27  ;;  %v1701_v27 = vld [vmem:[#allocation8 + $0x1da0] sm:$0xff]  ;;  %v1774_v21 = vld [vmem:[#allocation8 + $0x1fe8] sm:$0xff] }
 0x438   :  { %v7634_v45 = vpop.f32.mrb[14].mxu1  ;;  %7935 = vmatpush1.bf16.msra.mxu1 %v13368_v28  ;;  %v7471_v48 = vpop.f32.mrb[15].mxu0  ;;  %7772 = vmatprep.subr.bf16.mxu0 %v13383_v29  ;;  %v1709_v28 = vld [vmem:[#allocation8 + $0x1de0] sm:$0xff]  ;;  %v1702_v29 = vld [vmem:[#allocation8 + $0x1da8] sm:$0xff] }
 0x439   :  { %v7635_v54 = vpop.f32.mrb[15].mxu1  ;;  %7936 = vmatprep.subr.bf16.mxu1 %v13385_v32  ;;  %v1710_v32 = vld [vmem:[#allocation8 + $0x1de8] sm:$0xff]  ;;  %v13463_v39 = vcombine.high %v1701_v27, %v1709_v28  ;;  %v1717_v15 = vld [vmem:[#allocation8 + $0x1e20] sm:$0xff] }
 0x43a   :  { %v13465_v42 = vcombine.high %v1702_v29, %v1710_v32  ;;  %v1718_v45 = vld [vmem:[#allocation8 + $0x1e28] sm:$0xff] }
 0x43b   :  { %7773 = vmatpush1.bf16.msra.mxu0 %v13382_v44  ;;  %v1725_v44 = vld [vmem:[#allocation8 + $0x1e60] sm:$0xff]  ;;  %v1726_v48 = vld [vmem:[#allocation8 + $0x1e68] sm:$0xff] }
 0x43c   :  { %7937 = vmatpush1.bf16.msra.mxu1 %v13384_v55  ;;  %7774 = vmatprep.subr.bf16.mxu0 %v13399_v49  ;;  %v13462_v55 = vcombine.low %v1701_v27, %v1709_v28  ;;  %v13464_v49 = vcombine.low %v1702_v29, %v1710_v32  ;;  %v13479_v54 = vcombine.high %v1717_v15, %v1725_v44  ;;  %v759_v27 = vld [vmem:[#allocation8 + $0x30] sm:$0xff]  ;;  %v760_v29 = vld [vmem:[#allocation8 + $0x38] sm:$0xff] }
 0x43d   :  { %7938 = vmatprep.subr.bf16.mxu1 %v13401_v56  ;;  %v13481_v56 = vcombine.high %v1718_v45, %v1726_v48  ;;  %v767_v28 = vld [vmem:[#allocation8 + $0x70] sm:$0xff]  ;;  %v768_v32 = vld [vmem:[#allocation8 + $0x78] sm:$0xff] }
 0x43f   :  { %7775 = vmatpush1.bf16.msra.mxu0 %v13398_v61  ;;  %v13478_v61 = vcombine.low %v1717_v15, %v1725_v44  ;;  %v775_v15 = vld [vmem:[#allocation8 + $0xb0] sm:$0xff] }
 0x440   :  { %7939 = vmatpush1.bf16.msra.mxu1 %v13400_v62  ;;  %7776 = vmatprep.subr.bf16.mxu0 %v13415_v63  ;;  %v13480_v62 = vcombine.low %v1718_v45, %v1726_v48  ;;  %v13495_v63 = vcombine.high %v1733_v40, %v1741_v57  ;;  %v783_v44 = vld [vmem:[#allocation8 + $0xf0] sm:$0xff]  ;;  %v12522_v45 = vcombine.low %v759_v27, %v767_v28  ;;  %v776_v48 = vld [vmem:[#allocation8 + $0xb8] sm:$0xff] }
 0x441   :  { %7940 = vmatprep.subr.bf16.mxu1 %v13417_v2  ;;  %v13497_v2 = vcombine.high %v1734_v58, %v1742_v60 }
 0x443   :  { %7777 = vmatpush1.bf16.msra.mxu0 %v13414_v7  ;;  %v13494_v7 = vcombine.low %v1733_v40, %v1741_v57  ;;  %v799_v40 = vld [vmem:[#allocation8 + $0x170] sm:$0xff] }
 0x444   :  { %7941 = vmatpush1.bf16.msra.mxu1 %v13416_v8  ;;  %7778 = vmatprep.subr.bf16.mxu0 %v13431_v10  ;;  %v13496_v8 = vcombine.low %v1734_v58, %v1742_v60  ;;  %v13511_v10 = vcombine.high %v1749_v59, %v1757_v3  ;;  %v792_v58 = vld [vmem:[#allocation8 + $0x138] sm:$0xff] }
 0x445   :  { %7942 = vmatprep.subr.bf16.mxu1 %v13433_v12  ;;  %v13513_v12 = vcombine.high %v1750_v4, %v1758_v37  ;;  %v800_v60 = vld [vmem:[#allocation8 + $0x178] sm:$0xff] }
 0x447   :  { %7779 = vmatpush1.bf16.msra.mxu0 %v13430_v22  ;;  %v13510_v22 = vcombine.low %v1749_v59, %v1757_v3  ;;  %v807_v59 = vld [vmem:[#allocation8 + $0x1b0] sm:$0xff] }
 0x448   :  { %7943 = vmatpush1.bf16.msra.mxu1 %v13432_v13  ;;  %7780 = vmatprep.subr.bf16.mxu0 %v13447_v23  ;;  %v13512_v13 = vcombine.low %v1750_v4, %v1758_v37  ;;  %v13527_v23 = vcombine.high %v1765_v18, %v1773_v6  ;;  %v815_v3 = vld [vmem:[#allocation8 + $0x1f0] sm:$0xff]  ;;  %v808_v4 = vld [vmem:[#allocation8 + $0x1b8] sm:$0xff] }
 0x449   :  { %7944 = vmatprep.subr.bf16.mxu1 %v13449_v24  ;;  %v13529_v24 = vcombine.high %v1766_v19, %v1774_v21  ;;  %v816_v37 = vld [vmem:[#allocation8 + $0x1f8] sm:$0xff] }
 0x44b   :  { %7781 = vmatpush1.bf16.msra.mxu0 %v13446_v34  ;;  %v13526_v34 = vcombine.low %v1765_v18, %v1773_v6  ;;  %v823_v18 = vld [vmem:[#allocation8 + $0x230] sm:$0xff] }
 0x44c   :  { %7945 = vmatpush1.bf16.msra.mxu1 %v13448_v35  ;;  %7782 = vmatprep.subr.bf16.mxu0 %v13463_v39  ;;  %v13528_v35 = vcombine.low %v1766_v19, %v1774_v21  ;;  %v12523_v39 = vcombine.high %v759_v27, %v767_v28  ;;  %v831_v6 = vld [vmem:[#allocation8 + $0x270] sm:$0xff]  ;;  %v824_v19 = vld [vmem:[#allocation8 + $0x238] sm:$0xff] }
 0x44d   :  { %7946 = vmatprep.subr.bf16.mxu1 %v13465_v42  ;;  %v12525_v42 = vcombine.high %v760_v29, %v768_v32  ;;  %v832_v21 = vld [vmem:[#allocation8 + $0x278] sm:$0xff]  ;;  %v847_v27 = vld [vmem:[#allocation8 + $0x2f0] sm:$0xff] }
 0x44e   :  { %v840_v28 = vld [vmem:[#allocation8 + $0x2b8] sm:$0xff] }
 0x44f   :  { %7783 = vmatpush1.bf16.msra.mxu0 %v13462_v55  ;;  %v784_v55 = vld [vmem:[#allocation8 + $0xf8] sm:$0xff] }
 0x450   :  { %7947 = vmatpush1.bf16.msra.mxu1 %v13464_v49  ;;  %7784 = vmatprep.subr.bf16.mxu0 %v13479_v54  ;;  %v12524_v49 = vcombine.low %v760_v29, %v768_v32  ;;  %v12539_v54 = vcombine.high %v775_v15, %v783_v44  ;;  %v12541_v57 = vcombine.high %v776_v48, %v784_v55  ;;  %v848_v29 = vld [vmem:[#allocation8 + $0x2f8] sm:$0xff] }
 0x451   :  { %7948 = vmatprep.subr.bf16.mxu1 %v13481_v56  ;;  %v791_v56 = vld [vmem:[#allocation8 + $0x130] sm:$0xff]  ;;  %v12586_v32 = vcombine.low %v823_v18, %v831_v6 }
 0x453   :  { %7785 = vmatpush1.bf16.msra.mxu0 %v13478_v61  ;;  %v12538_v61 = vcombine.low %v775_v15, %v783_v44  ;;  %v863_v15 = vld [vmem:[#allocation8 + $0x370] sm:$0xff]  ;;  %v856_v44 = vld [vmem:[#allocation8 + $0x338] sm:$0xff] }
 0x454   :  { %7949 = vmatpush1.bf16.msra.mxu1 %v13480_v62  ;;  %7786 = vmatprep.subr.bf16.mxu0 %v13495_v63  ;;  %v12540_v62 = vcombine.low %v776_v48, %v784_v55  ;;  %v12555_v63 = vcombine.high %v791_v56, %v799_v40  ;;  %v12604_v55 = vcombine.low %v840_v28, %v848_v29 }
 0x455   :  { %7950 = vmatprep.subr.bf16.mxu1 %v13497_v2  ;;  %v12557_v2 = vcombine.high %v792_v58, %v800_v60 }
 0x457   :  { %7787 = vmatpush1.bf16.msra.mxu0 %v13494_v7  ;;  %v12554_v7 = vcombine.low %v791_v56, %v799_v40  ;;  %v871_v56 = vld [vmem:[#allocation8 + $0x3b0] sm:$0xff] }
 0x458   :  { %7951 = vmatpush1.bf16.msra.mxu1 %v13496_v8  ;;  %7788 = vmatprep.subr.bf16.mxu0 %v13511_v10  ;;  %v12556_v8 = vcombine.low %v792_v58, %v800_v60  ;;  %v12571_v10 = vcombine.high %v807_v59, %v815_v3  ;;  %v879_v40 = vld [vmem:[#allocation8 + $0x3f0] sm:$0xff]  ;;  %v880_v58 = vld [vmem:[#allocation8 + $0x3f8] sm:$0xff] }
 0x459   :  { %7952 = vmatprep.subr.bf16.mxu1 %v13513_v12  ;;  %v12573_v12 = vcombine.high %v808_v4, %v816_v37 }
 0x45b   :  { %7789 = vmatpush1.bf16.msra.mxu0 %v13510_v22  ;;  %v12572_v22 = vcombine.low %v808_v4, %v816_v37  ;;  %v896_v4 = vld [vmem:[#allocation8 + $0x478] sm:$0xff]  ;;  %v12634_v37 = vcombine.low %v871_v56, %v879_v40 }
 0x45c   :  { %7953 = vmatpush1.bf16.msra.mxu1 %v13512_v13  ;;  %7790 = vmatprep.subr.bf16.mxu0 %v13527_v23  ;;  %v12587_v13 = vcombine.high %v823_v18, %v831_v6  ;;  %v12589_v23 = vcombine.high %v824_v19, %v832_v21  ;;  %v911_v18 = vld [vmem:[#allocation8 + $0x4f0] sm:$0xff]  ;;  %v904_v6 = vld [vmem:[#allocation8 + $0x4b8] sm:$0xff] }
 0x45d   :  { %7954 = vmatprep.subr.bf16.mxu1 %v13529_v24  ;;  %v839_v24 = vld [vmem:[#allocation8 + $0x2b0] sm:$0xff] }
 0x45e   :  { %v12602_v48 = vcombine.low %v839_v24, %v847_v27 }
 0x45f   :  { %7791 = vmatpush1.bf16.msra.mxu0 %v13526_v34  ;;  %v12588_v34 = vcombine.low %v824_v19, %v832_v21  ;;  %v912_v19 = vld [vmem:[#allocation8 + $0x4f8] sm:$0xff] }
 0x460   :  { %7955 = vmatpush1.bf16.msra.mxu1 %v13528_v35  ;;  %7965 = vmatprep.subr.bf16.mxu0 %v12523_v39  ;;  %v12603_v35 = vcombine.high %v839_v24, %v847_v27  ;;  %v12605_v39 = vcombine.high %v840_v28, %v848_v29  ;;  %v927_v24 = vld [vmem:[#allocation8 + $0x570] sm:$0xff]  ;;  %v920_v27 = vld [vmem:[#allocation8 + $0x538] sm:$0xff] }
 0x461   :  { %8129 = vmatprep.subr.bf16.mxu1 %v12525_v42  ;;  %v855_v42 = vld [vmem:[#allocation8 + $0x330] sm:$0xff]  ;;  %v928_v28 = vld [vmem:[#allocation8 + $0x578] sm:$0xff] }
 0x462   :  { %7793 = vmatmul.mubr.bf16.vlgmr.msra.gmra.mrb[16].mxu0 %v15626_v51  ;;  %v12618_v60 = vcombine.low %v855_v42, %v863_v15 }
 0x463   :  { %7957 = vmatmul.mubr.bf16.vlgmr.msra.gmra.mrb[16].mxu1 %v15626_v51  ;;  %7966 = vmatpush1.bf16.msra.mxu0 %v12522_v45  ;;  %v864_v45 = vld [vmem:[#allocation8 + $0x378] sm:$0xff] }
 0x464   :  { %7997 = vmatprep.mubr.bf16.mxu0 %v15556_v33  ;;  %8130 = vmatpush1.bf16.msra.mxu1 %v12524_v49  ;;  %v12619_v49 = vcombine.high %v855_v42, %v863_v15  ;;  %v943_v42 = vld [vmem:[#allocation8 + $0x5f0] sm:$0xff]  ;;  %v936_v15 = vld [vmem:[#allocation8 + $0x5b8] sm:$0xff] }
 0x465   :  { %8161 = vmatprep.mubr.bf16.mxu1 %v15556_v33  ;;  %7967 = vmatprep.subr.bf16.mxu0 %v12539_v54  ;;  %v12570_v33 = vcombine.low %v807_v59, %v815_v3  ;;  %v12621_v54 = vcombine.high %v856_v44, %v864_v45  ;;  %v895_v59 = vld [vmem:[#allocation8 + $0x470] sm:$0xff]  ;;  %v888_v3 = vld [vmem:[#allocation8 + $0x438] sm:$0xff] }
 0x466   :  { %8131 = vmatprep.subr.bf16.mxu1 %v12541_v57  ;;  %v872_v57 = vld [vmem:[#allocation8 + $0x3b8] sm:$0xff] }
 0x467   :  { %7968 = vmatpush1.bf16.msra.mxu0 %v12538_v61  ;;  %v12620_v61 = vcombine.low %v856_v44, %v864_v45  ;;  %v944_v44 = vld [vmem:[#allocation8 + $0x5f8] sm:$0xff] }
 0x468   :  { %8132 = vmatpush1.bf16.msra.mxu1 %v12540_v62  ;;  %7969 = vmatprep.subr.bf16.mxu0 %v12555_v63  ;;  %v12635_v62 = vcombine.high %v871_v56, %v879_v40  ;;  %v12637_v63 = vcombine.high %v872_v57, %v880_v58  ;;  %v959_v56 = vld [vmem:[#allocation8 + $0x670] sm:$0xff]  ;;  %v952_v40 = vld [vmem:[#allocation8 + $0x638] sm:$0xff] }
 0x469   :  { %8133 = vmatprep.subr.bf16.mxu1 %v12557_v2  ;;  %v887_v2 = vld [vmem:[#allocation8 + $0x430] sm:$0xff] }
 0x46a   :  { %v12650_v21 = vcombine.low %v887_v2, %v895_v59 }
 0x46b   :  { %7970 = vmatpush1.bf16.msra.mxu0 %v12554_v7  ;;  %v12636_v7 = vcombine.low %v872_v57, %v880_v58  ;;  %v960_v57 = vld [vmem:[#allocation8 + $0x678] sm:$0xff] }
 0x46c   :  { %8134 = vmatpush1.bf16.msra.mxu1 %v12556_v8  ;;  %7971 = vmatprep.subr.bf16.mxu0 %v12571_v10  ;;  %v12651_v8 = vcombine.high %v887_v2, %v895_v59  ;;  %v12653_v10 = vcombine.high %v888_v3, %v896_v4  ;;  %v975_v2 = vld [vmem:[#allocation8 + $0x6f0] sm:$0xff]  ;;  %v968_v59 = vld [vmem:[#allocation8 + $0x6b8] sm:$0xff] }
 0x46d   :  { %8135 = vmatprep.subr.bf16.mxu1 %v12573_v12  ;;  %v903_v12 = vld [vmem:[#allocation8 + $0x4b0] sm:$0xff] }
 0x46e   :  { %v12666_v29 = vcombine.low %v903_v12, %v911_v18 }
 0x46f   :  { %7972 = vmatpush1.bf16.msra.mxu0 %v12570_v33  ;;  %v12652_v33 = vcombine.low %v888_v3, %v896_v4  ;;  %v976_v3 = vld [vmem:[#allocation8 + $0x6f8] sm:$0xff] }
 0x470   :  { %8136 = vmatpush1.bf16.msra.mxu1 %v12572_v22  ;;  %7973 = vmatprep.subr.bf16.mxu0 %v12587_v13  ;;  %v12667_v22 = vcombine.high %v903_v12, %v911_v18  ;;  %v12669_v13 = vcombine.high %v904_v6, %v912_v19  ;;  %v991_v12 = vld [vmem:[#allocation8 + $0x770] sm:$0xff]  ;;  %v984_v18 = vld [vmem:[#allocation8 + $0x738] sm:$0xff] }
 0x471   :  { %8137 = vmatprep.subr.bf16.mxu1 %v12589_v23  ;;  %v919_v23 = vld [vmem:[#allocation8 + $0x530] sm:$0xff] }
 0x472   :  { %v12682_v45 = vcombine.low %v919_v23, %v927_v24 }
 0x473   :  { %7974 = vmatpush1.bf16.msra.mxu0 %v12586_v32  ;;  %v12668_v32 = vcombine.low %v904_v6, %v912_v19  ;;  %v992_v6 = vld [vmem:[#allocation8 + $0x778] sm:$0xff] }
 0x474   :  { %8138 = vmatpush1.bf16.msra.mxu1 %v12588_v34  ;;  %7975 = vmatprep.subr.bf16.mxu0 %v12603_v35  ;;  %v12683_v34 = vcombine.high %v919_v23, %v927_v24  ;;  %v12685_v35 = vcombine.high %v920_v27, %v928_v28  ;;  %v1007_v23 = vld [vmem:[#allocation8 + $0x7f0] sm:$0xff]  ;;  %v1000_v24 = vld [vmem:[#allocation8 + $0x7b8] sm:$0xff] }
 0x475   :  { %8139 = vmatprep.subr.bf16.mxu1 %v12605_v39  ;;  %v935_v39 = vld [vmem:[#allocation8 + $0x5b0] sm:$0xff] }
 0x476   :  { %v12698_v58 = vcombine.low %v935_v39, %v943_v42 }
 0x477   :  { %7976 = vmatpush1.bf16.msra.mxu0 %v12602_v48  ;;  %v12684_v48 = vcombine.low %v920_v27, %v928_v28  ;;  %v1008_v27 = vld [vmem:[#allocation8 + $0x7f8] sm:$0xff] }
 0x478   :  { %8140 = vmatpush1.bf16.msra.mxu1 %v12604_v55  ;;  %7977 = vmatprep.subr.bf16.mxu0 %v12619_v49  ;;  %v12699_v55 = vcombine.high %v935_v39, %v943_v42  ;;  %v12701_v49 = vcombine.high %v936_v15, %v944_v44  ;;  %v1023_v39 = vld [vmem:[#allocation8 + $0x870] sm:$0xff]  ;;  %v1016_v42 = vld [vmem:[#allocation8 + $0x838] sm:$0xff] }
 0x479   :  { %8141 = vmatprep.subr.bf16.mxu1 %v12621_v54  ;;  %v951_v54 = vld [vmem:[#allocation8 + $0x630] sm:$0xff] }
 0x47a   :  { %v12714_v4 = vcombine.low %v951_v54, %v959_v56 }
 0x47b   :  { %7978 = vmatpush1.bf16.msra.mxu0 %v12618_v60  ;;  %v12700_v60 = vcombine.low %v936_v15, %v944_v44  ;;  %v1024_v15 = vld [vmem:[#allocation8 + $0x878] sm:$0xff] }
 0x47c   :  { %8142 = vmatpush1.bf16.msra.mxu1 %v12620_v61  ;;  %7979 = vmatprep.subr.bf16.mxu0 %v12635_v62  ;;  %v12715_v61 = vcombine.high %v951_v54, %v959_v56  ;;  %v12717_v62 = vcombine.high %v952_v40, %v960_v57  ;;  %v1039_v54 = vld [vmem:[#allocation8 + $0x8f0] sm:$0xff] }
 0x47d   :  { %8143 = vmatprep.subr.bf16.mxu1 %v12637_v63  ;;  %v967_v63 = vld [vmem:[#allocation8 + $0x6b0] sm:$0xff] }
 0x47e   :  { %v12730_v19 = vcombine.low %v967_v63, %v975_v2 }
 0x47f   :  { %7980 = vmatpush1.bf16.msra.mxu0 %v12634_v37  ;;  %v12716_v37 = vcombine.low %v952_v40, %v960_v57  ;;  %v1032_v40 = vld [vmem:[#allocation8 + $0x8b8] sm:$0xff] }
 0x480   :  { %8144 = vmatpush1.bf16.msra.mxu1 %v12636_v7  ;;  %7981 = vmatprep.subr.bf16.mxu0 %v12651_v8  ;;  %v12731_v7 = vcombine.high %v967_v63, %v975_v2  ;;  %v12733_v8 = vcombine.high %v968_v59, %v976_v3  ;;  %v1040_v57 = vld [vmem:[#allocation8 + $0x8f8] sm:$0xff] }
 0x481   :  { %8145 = vmatprep.subr.bf16.mxu1 %v12653_v10  ;;  %v983_v10 = vld [vmem:[#allocation8 + $0x730] sm:$0xff]  ;;  %v12797_v63 = vcombine.high %v1032_v40, %v1040_v57  ;;  %v1048_v2 = vld [vmem:[#allocation8 + $0x938] sm:$0xff] }
 0x482   :  { %v12746_v28 = vcombine.low %v983_v10, %v991_v12 }
 0x483   :  { %7982 = vmatpush1.bf16.msra.mxu0 %v12650_v21  ;;  %v12732_v21 = vcombine.low %v968_v59, %v976_v3  ;;  %v1056_v59 = vld [vmem:[#allocation8 + $0x978] sm:$0xff] }
 0x484   :  { %8146 = vmatpush1.bf16.msra.mxu1 %v12652_v33  ;;  %7983 = vmatprep.subr.bf16.mxu0 %v12667_v22  ;;  %v12747_v33 = vcombine.high %v983_v10, %v991_v12  ;;  %v12749_v22 = vcombine.high %v984_v18, %v992_v6  ;;  %v1071_v10 = vld [vmem:[#allocation8 + $0x9f0] sm:$0xff]  ;;  %v1064_v12 = vld [vmem:[#allocation8 + $0x9b8] sm:$0xff] }
 0x485   :  { %8147 = vmatprep.subr.bf16.mxu1 %v12669_v13  ;;  %v999_v13 = vld [vmem:[#allocation8 + $0x7b0] sm:$0xff] }
 0x486   :  { %v12762_v44 = vcombine.low %v999_v13, %v1007_v23 }
 0x487   :  { %7984 = vmatpush1.bf16.msra.mxu0 %v12666_v29  ;;  %v12748_v29 = vcombine.low %v984_v18, %v992_v6  ;;  %v1072_v18 = vld [vmem:[#allocation8 + $0x9f8] sm:$0xff] }
 0x488   :  { %8148 = vmatpush1.bf16.msra.mxu1 %v12668_v32  ;;  %7985 = vmatprep.subr.bf16.mxu0 %v12683_v34  ;;  %v12763_v32 = vcombine.high %v999_v13, %v1007_v23  ;;  %v12765_v34 = vcombine.high %v1000_v24, %v1008_v27  ;;  %v1080_v13 = vld [vmem:[#allocation8 + $0xa38] sm:$0xff] }
 0x489   :  { %8149 = vmatprep.subr.bf16.mxu1 %v12685_v35  ;;  %v1015_v35 = vld [vmem:[#allocation8 + $0x830] sm:$0xff]  ;;  %v1088_v23 = vld [vmem:[#allocation8 + $0xa78] sm:$0xff] }
 0x48a   :  { %v12778_v56 = vcombine.low %v1015_v35, %v1023_v39 }
 0x48b   :  { %7986 = vmatpush1.bf16.msra.mxu0 %v12682_v45  ;;  %v12764_v45 = vcombine.low %v1000_v24, %v1008_v27  ;;  %v12828_v24 = vcombine.low %v1064_v12, %v1072_v18 }
 0x48c   :  { %8150 = vmatpush1.bf16.msra.mxu1 %v12684_v48  ;;  %7987 = vmatprep.subr.bf16.mxu0 %v12699_v55  ;;  %v12779_v48 = vcombine.high %v1015_v35, %v1023_v39  ;;  %v12781_v55 = vcombine.high %v1016_v42, %v1024_v15  ;;  %v1104_v35 = vld [vmem:[#allocation8 + $0xaf8] sm:$0xff] }
 0x48d   :  { %8151 = vmatprep.subr.bf16.mxu1 %v12701_v49  ;;  %v1031_v49 = vld [vmem:[#allocation8 + $0x8b0] sm:$0xff] }
 0x48e   :  { %v12794_v3 = vcombine.low %v1031_v49, %v1039_v54 }
 0x48f   :  { %7988 = vmatpush1.bf16.msra.mxu0 %v12698_v58  ;;  %v12780_v58 = vcombine.low %v1016_v42, %v1024_v15  ;;  %v12844_v42 = vcombine.low %v1080_v13, %v1088_v23 }
 0x490   :  { %8152 = vmatpush1.bf16.msra.mxu1 %v12700_v60  ;;  %7989 = vmatprep.subr.bf16.mxu0 %v12715_v61  ;;  %v12795_v60 = vcombine.high %v1031_v49, %v1039_v54  ;;  %v1047_v61 = vld [vmem:[#allocation8 + $0x930] sm:$0xff]  ;;  %v1120_v49 = vld [vmem:[#allocation8 + $0xb78] sm:$0xff] }
 0x491   :  { %8153 = vmatprep.subr.bf16.mxu1 %v12717_v62  ;;  %v1055_v62 = vld [vmem:[#allocation8 + $0x970] sm:$0xff] }
 0x492   :  { %v12810_v6 = vcombine.low %v1047_v61, %v1055_v62 }
 0x493   :  { %7990 = vmatpush1.bf16.msra.mxu0 %v12714_v4  ;;  %v12796_v4 = vcombine.low %v1032_v40, %v1040_v57 }
 0x494   :  { %8154 = vmatpush1.bf16.msra.mxu1 %v12716_v37  ;;  %7991 = vmatprep.subr.bf16.mxu0 %v12731_v7  ;;  %v12811_v37 = vcombine.high %v1047_v61, %v1055_v62  ;;  %v12813_v7 = vcombine.high %v1048_v2, %v1056_v59  ;;  %v1128_v61 = vld [vmem:[#allocation8 + $0xbb8] sm:$0xff] }
 0x495   :  { %8155 = vmatprep.subr.bf16.mxu1 %v12733_v8  ;;  %v1063_v8 = vld [vmem:[#allocation8 + $0x9b0] sm:$0xff]  ;;  %v1136_v62 = vld [vmem:[#allocation8 + $0xbf8] sm:$0xff] }
 0x497   :  { %7992 = vmatpush1.bf16.msra.mxu0 %v12730_v19  ;;  %v12827_v19 = vcombine.high %v1063_v8, %v1071_v10 }
 0x498   :  { %8156 = vmatpush1.bf16.msra.mxu1 %v12732_v21  ;;  %7993 = vmatprep.subr.bf16.mxu0 %v12747_v33  ;;  %v12829_v21 = vcombine.high %v1064_v12, %v1072_v18  ;;  %v1079_v33 = vld [vmem:[#allocation8 + $0xa30] sm:$0xff]  ;;  %v12892_v12 = vcombine.low %v1128_v61, %v1136_v62 }
 0x499   :  { %8157 = vmatprep.subr.bf16.mxu1 %v12749_v22  ;;  %v1087_v22 = vld [vmem:[#allocation8 + $0xa70] sm:$0xff] }
 0x49a   :  { %v12843_v27 = vcombine.high %v1079_v33, %v1087_v22  ;;  %v12842_v39 = vcombine.low %v1079_v33, %v1087_v22  ;;  %v1168_v33 = vld [vmem:[#allocation8 + $0xcf8] sm:$0xff] }
 0x49b   :  { %7994 = vmatpush1.bf16.msra.mxu0 %v12746_v28  ;;  %v12845_v28 = vcombine.high %v1080_v13, %v1088_v23 }
 0x49c   :  { %8158 = vmatpush1.bf16.msra.mxu1 %v12748_v29  ;;  %7995 = vmatprep.subr.bf16.mxu0 %v12763_v32  ;;  %v1095_v29 = vld [vmem:[#allocation8 + $0xab0] sm:$0xff] }
 0x49d   :  { %8159 = vmatprep.subr.bf16.mxu1 %v12765_v34  ;;  %v1103_v32 = vld [vmem:[#allocation8 + $0xaf0] sm:$0xff]  ;;  %v1096_v34 = vld [vmem:[#allocation8 + $0xab8] sm:$0xff] }
 0x49e   :  { %v12859_v15 = vcombine.high %v1095_v29, %v1103_v32  ;;  %v12858_v54 = vcombine.low %v1095_v29, %v1103_v32  ;;  %v1184_v29 = vld [vmem:[#allocation8 + $0xd78] sm:$0xff] }
 0x49f   :  { %7996 = vmatpush1.bf16.msra.mxu0 %v12762_v44  ;;  %v12861_v44 = vcombine.high %v1096_v34, %v1104_v35 }
 0x4a0   :  { %8160 = vmatpush1.bf16.msra.mxu1 %v12764_v45  ;;  %8006 = vmatprep.subr.bf16.mxu0 %v12779_v48  ;;  %v1111_v45 = vld [vmem:[#allocation8 + $0xb30] sm:$0xff] }
 0x4a1   :  { %8170 = vmatprep.subr.bf16.mxu1 %v12781_v55  ;;  %v1119_v48 = vld [vmem:[#allocation8 + $0xb70] sm:$0xff]  ;;  %v1112_v55 = vld [vmem:[#allocation8 + $0xb38] sm:$0xff] }
 0x4a2   :  { %7998 = vmatmul.mubr.bf16.vlgmr.msra.gmra.mrb[20].mxu0 %v15560_v38  ;;  %v12875_v40 = vcombine.high %v1111_v45, %v1119_v48  ;;  %v12877_v57 = vcombine.high %v1112_v55, %v1120_v49 }
 0x4a3   :  { %8162 = vmatmul.mubr.bf16.vlgmr.msra.gmra.mrb[20].mxu1 %v15560_v38  ;;  %8007 = vmatpush1.bf16.msra.mxu0 %v12778_v56  ;;  %v12812_v38 = vcombine.low %v1048_v2, %v1056_v59  ;;  %v12860_v56 = vcombine.low %v1096_v34, %v1104_v35  ;;  %v12876_v2 = vcombine.low %v1112_v55, %v1120_v49 }
 0x4a4   :  { %8038 = vmatprep.mubr.bf16.mxu0 %v15566_v53  ;;  %8171 = vmatpush1.bf16.msra.mxu1 %v12780_v58  ;;  %v1127_v58 = vld [vmem:[#allocation8 + $0xbb0] sm:$0xff] }
 0x4a5   :  { %8202 = vmatprep.mubr.bf16.mxu1 %v15566_v53  ;;  %8008 = vmatprep.subr.bf16.mxu0 %v12795_v60  ;;  %v12826_v53 = vcombine.low %v1063_v8, %v1071_v10  ;;  %v1135_v60 = vld [vmem:[#allocation8 + $0xbf0] sm:$0xff]  ;;  %v1152_v8 = vld [vmem:[#allocation8 + $0xc78] sm:$0xff] }
 0x4a6   :  { %8172 = vmatprep.subr.bf16.mxu1 %v12797_v63  ;;  %v12874_v63 = vcombine.low %v1111_v45, %v1119_v48  ;;  %v12891_v59 = vcombine.high %v1127_v58, %v1135_v60  ;;  %v12890_v10 = vcombine.low %v1127_v58, %v1135_v60  ;;  %v1200_v45 = vld [vmem:[#allocation8 + $0xdf8] sm:$0xff] }
 0x4a7   :  { %8009 = vmatpush1.bf16.msra.mxu0 %v12794_v3  ;;  %v12893_v3 = vcombine.high %v1128_v61, %v1136_v62  ;;  %v1216_v58 = vld [vmem:[#allocation8 + $0xe78] sm:$0xff] }
 0x4a8   :  { %8173 = vmatpush1.bf16.msra.mxu1 %v12796_v4  ;;  %8010 = vmatprep.subr.bf16.mxu0 %v12811_v37  ;;  %v1143_v4 = vld [vmem:[#allocation8 + $0xc30] sm:$0xff] }
 0x4a9   :  { %8174 = vmatprep.subr.bf16.mxu1 %v12813_v7  ;;  %v1151_v37 = vld [vmem:[#allocation8 + $0xc70] sm:$0xff]  ;;  %v1144_v7 = vld [vmem:[#allocation8 + $0xc38] sm:$0xff] }
 0x4aa   :  { %v12907_v18 = vcombine.high %v1143_v4, %v1151_v37  ;;  %v12906_v22 = vcombine.low %v1143_v4, %v1151_v37  ;;  %v12908_v13 = vcombine.low %v1144_v7, %v1152_v8  ;;  %v1232_v4 = vld [vmem:[#allocation8 + $0xef8] sm:$0xff] }
 0x4ab   :  { %8011 = vmatpush1.bf16.msra.mxu0 %v12810_v6  ;;  %v12909_v6 = vcombine.high %v1144_v7, %v1152_v8 }
 0x4ac   :  { %8175 = vmatpush1.bf16.msra.mxu1 %v12812_v38  ;;  %8012 = vmatprep.subr.bf16.mxu0 %v12827_v19  ;;  %v1159_v38 = vld [vmem:[#allocation8 + $0xcb0] sm:$0xff] }
 0x4ad   :  { %8176 = vmatprep.subr.bf16.mxu1 %v12829_v21  ;;  %v1167_v19 = vld [vmem:[#allocation8 + $0xcf0] sm:$0xff]  ;;  %v1160_v21 = vld [vmem:[#allocation8 + $0xcb8] sm:$0xff] }
 0x4ae   :  { %v12923_v23 = vcombine.high %v1159_v38, %v1167_v19  ;;  %v12922_v32 = vcombine.low %v1159_v38, %v1167_v19  ;;  %v12924_v34 = vcombine.low %v1160_v21, %v1168_v33  ;;  %v1248_v38 = vld [vmem:[#allocation8 + $0xf78] sm:$0xff] }
 0x4af   :  { %8013 = vmatpush1.bf16.msra.mxu0 %v12826_v53  ;;  %v12925_v53 = vcombine.high %v1160_v21, %v1168_v33 }
 0x4b0   :  { %8177 = vmatpush1.bf16.msra.mxu1 %v12828_v24  ;;  %8014 = vmatprep.subr.bf16.mxu0 %v12843_v27  ;;  %v1175_v24 = vld [vmem:[#allocation8 + $0xd30] sm:$0xff] }
 0x4b1   :  { %8178 = vmatprep.subr.bf16.mxu1 %v12845_v28  ;;  %v1183_v27 = vld [vmem:[#allocation8 + $0xd70] sm:$0xff]  ;;  %v1176_v28 = vld [vmem:[#allocation8 + $0xd38] sm:$0xff] }
 0x4b2   :  { %v12939_v35 = vcombine.high %v1175_v24, %v1183_v27  ;;  %v12938_v48 = vcombine.low %v1175_v24, %v1183_v27  ;;  %v12940_v55 = vcombine.low %v1176_v28, %v1184_v29  ;;  %v1264_v24 = vld [vmem:[#allocation8 + $0xff8] sm:$0xff] }
 0x4b3   :  { %8015 = vmatpush1.bf16.msra.mxu0 %v12842_v39  ;;  %v12941_v39 = vcombine.high %v1176_v28, %v1184_v29 }
 0x4b4   :  { %8179 = vmatpush1.bf16.msra.mxu1 %v12844_v42  ;;  %8016 = vmatprep.subr.bf16.mxu0 %v12859_v15  ;;  %v1191_v42 = vld [vmem:[#allocation8 + $0xdb0] sm:$0xff] }
 0x4b5   :  { %8180 = vmatprep.subr.bf16.mxu1 %v12861_v44  ;;  %v1199_v15 = vld [vmem:[#allocation8 + $0xdf0] sm:$0xff]  ;;  %v1192_v44 = vld [vmem:[#allocation8 + $0xdb8] sm:$0xff] }
 0x4b6   :  { %v12955_v49 = vcombine.high %v1191_v42, %v1199_v15  ;;  %v12954_v60 = vcombine.low %v1191_v42, %v1199_v15  ;;  %v12956_v61 = vcombine.low %v1192_v44, %v1200_v45  ;;  %v1280_v42 = vld [vmem:[#allocation8 + $0x1078] sm:$0xff] }
 0x4b7   :  { %8017 = vmatpush1.bf16.msra.mxu0 %v12858_v54  ;;  %v12957_v54 = vcombine.high %v1192_v44, %v1200_v45 }
 0x4b8   :  { %8181 = vmatpush1.bf16.msra.mxu1 %v12860_v56  ;;  %8018 = vmatprep.subr.bf16.mxu0 %v12875_v40  ;;  %v1207_v56 = vld [vmem:[#allocation8 + $0xe30] sm:$0xff] }
 0x4b9   :  { %8182 = vmatprep.subr.bf16.mxu1 %v12877_v57  ;;  %v1215_v40 = vld [vmem:[#allocation8 + $0xe70] sm:$0xff]  ;;  %v1208_v57 = vld [vmem:[#allocation8 + $0xe38] sm:$0xff] }
 0x4ba   :  { %v12971_v62 = vcombine.high %v1207_v56, %v1215_v40  ;;  %v12970_v37 = vcombine.low %v1207_v56, %v1215_v40  ;;  %v12972_v7 = vcombine.low %v1208_v57, %v1216_v58  ;;  %v1288_v56 = vld [vmem:[#allocation8 + $0x10b8] sm:$0xff] }
 0x4bb   :  { %8019 = vmatpush1.bf16.msra.mxu0 %v12874_v63  ;;  %v12973_v63 = vcombine.high %v1208_v57, %v1216_v58  ;;  %v1296_v40 = vld [vmem:[#allocation8 + $0x10f8] sm:$0xff] }
 0x4bc   :  { %8183 = vmatpush1.bf16.msra.mxu1 %v12876_v2  ;;  %8020 = vmatprep.subr.bf16.mxu0 %v12891_v59  ;;  %v1223_v2 = vld [vmem:[#allocation8 + $0xeb0] sm:$0xff] }
 0x4bd   :  { %8184 = vmatprep.subr.bf16.mxu1 %v12893_v3  ;;  %v1231_v59 = vld [vmem:[#allocation8 + $0xef0] sm:$0xff]  ;;  %v1224_v3 = vld [vmem:[#allocation8 + $0xeb8] sm:$0xff] }
 0x4be   :  { %v12987_v8 = vcombine.high %v1223_v2, %v1231_v59  ;;  %v12986_v19 = vcombine.low %v1223_v2, %v1231_v59  ;;  %v12988_v21 = vcombine.low %v1224_v3, %v1232_v4  ;;  %v1312_v2 = vld [vmem:[#allocation8 + $0x1178] sm:$0xff] }
 0x4bf   :  { %8021 = vmatpush1.bf16.msra.mxu0 %v12890_v10  ;;  %v12989_v10 = vcombine.high %v1224_v3, %v1232_v4  ;;  %v13052_v3 = vcombine.low %v1288_v56, %v1296_v40 }
 0x4c0   :  { %8185 = vmatpush1.bf16.msra.mxu1 %v12892_v12  ;;  %8022 = vmatprep.subr.bf16.mxu0 %v12907_v18  ;;  %v1239_v12 = vld [vmem:[#allocation8 + $0xf30] sm:$0xff] }
 0x4c1   :  { %8186 = vmatprep.subr.bf16.mxu1 %v12909_v6  ;;  %v1247_v18 = vld [vmem:[#allocation8 + $0xf70] sm:$0xff]  ;;  %v1240_v6 = vld [vmem:[#allocation8 + $0xf38] sm:$0xff] }
 0x4c2   :  { %v13003_v33 = vcombine.high %v1239_v12, %v1247_v18  ;;  %v13002_v27 = vcombine.low %v1239_v12, %v1247_v18  ;;  %v13004_v28 = vcombine.low %v1240_v6, %v1248_v38  ;;  %v1328_v12 = vld [vmem:[#allocation8 + $0x11f8] sm:$0xff] }
 0x4c3   :  { %8023 = vmatpush1.bf16.msra.mxu0 %v12906_v22  ;;  %v13005_v22 = vcombine.high %v1240_v6, %v1248_v38 }
 0x4c4   :  { %8187 = vmatpush1.bf16.msra.mxu1 %v12908_v13  ;;  %8024 = vmatprep.subr.bf16.mxu0 %v12923_v23  ;;  %v1255_v13 = vld [vmem:[#allocation8 + $0xfb0] sm:$0xff] }
 0x4c5   :  { %8188 = vmatprep.subr.bf16.mxu1 %v12925_v53  ;;  %v1263_v23 = vld [vmem:[#allocation8 + $0xff0] sm:$0xff]  ;;  %v1256_v53 = vld [vmem:[#allocation8 + $0xfb8] sm:$0xff] }
 0x4c6   :  { %v13019_v29 = vcombine.high %v1255_v13, %v1263_v23  ;;  %v13018_v15 = vcombine.low %v1255_v13, %v1263_v23  ;;  %v13020_v44 = vcombine.low %v1256_v53, %v1264_v24 }
 0x4c7   :  { %8025 = vmatpush1.bf16.msra.mxu0 %v12922_v32  ;;  %v13021_v32 = vcombine.high %v1256_v53, %v1264_v24  ;;  %v1351_v24 = vld [vmem:[#allocation8 + $0x12b0] sm:$0xff] }
 0x4c8   :  { %8189 = vmatpush1.bf16.msra.mxu1 %v12924_v34  ;;  %8026 = vmatprep.subr.bf16.mxu0 %v12939_v35  ;;  %v1271_v34 = vld [vmem:[#allocation8 + $0x1030] sm:$0xff] }
 0x4c9   :  { %8190 = vmatprep.subr.bf16.mxu1 %v12941_v39  ;;  %v1279_v35 = vld [vmem:[#allocation8 + $0x1070] sm:$0xff]  ;;  %v1272_v39 = vld [vmem:[#allocation8 + $0x1038] sm:$0xff] }
 0x4ca   :  { %v13035_v45 = vcombine.high %v1271_v34, %v1279_v35  ;;  %v13036_v57 = vcombine.low %v1272_v39, %v1280_v42 }
 0x4cb   :  { %8027 = vmatpush1.bf16.msra.mxu0 %v12938_v48  ;;  %v13037_v48 = vcombine.high %v1272_v39, %v1280_v42  ;;  %v1367_v42 = vld [vmem:[#allocation8 + $0x1330] sm:$0xff] }
 0x4cc   :  { %8191 = vmatpush1.bf16.msra.mxu1 %v12940_v55  ;;  %8028 = vmatprep.subr.bf16.mxu0 %v12955_v49  ;;  %v1287_v55 = vld [vmem:[#allocation8 + $0x10b0] sm:$0xff] }
 0x4cd   :  { %8192 = vmatprep.subr.bf16.mxu1 %v12957_v54  ;;  %v1295_v49 = vld [vmem:[#allocation8 + $0x10f0] sm:$0xff]  ;;  %v13034_v54 = vcombine.low %v1271_v34, %v1279_v35 }
 0x4ce   :  { %v13051_v58 = vcombine.high %v1287_v55, %v1295_v49  ;;  %v13050_v59 = vcombine.low %v1287_v55, %v1295_v49 }
 0x4cf   :  { %8029 = vmatpush1.bf16.msra.mxu0 %v12954_v60  ;;  %v1303_v60 = vld [vmem:[#allocation8 + $0x1130] sm:$0xff] }
 0x4d0   :  { %8193 = vmatpush1.bf16.msra.mxu1 %v12956_v61  ;;  %8030 = vmatprep.subr.bf16.mxu0 %v12971_v62  ;;  %v1311_v61 = vld [vmem:[#allocation8 + $0x1170] sm:$0xff]  ;;  %v13053_v62 = vcombine.high %v1288_v56, %v1296_v40 }
 0x4d1   :  { %8194 = vmatprep.subr.bf16.mxu1 %v12973_v63  ;;  %v1304_v63 = vld [vmem:[#allocation8 + $0x1138] sm:$0xff]  ;;  %v13067_v4 = vcombine.high %v1303_v60, %v1311_v61  ;;  %v13066_v18 = vcombine.low %v1303_v60, %v1311_v61  ;;  %v1383_v56 = vld [vmem:[#allocation8 + $0x13b0] sm:$0xff] }
 0x4d2   :  { %v1391_v40 = vld [vmem:[#allocation8 + $0x13f0] sm:$0xff] }
 0x4d3   :  { %8031 = vmatpush1.bf16.msra.mxu0 %v12970_v37  ;;  %v13069_v37 = vcombine.high %v1304_v63, %v1312_v2 }
 0x4d4   :  { %8195 = vmatpush1.bf16.msra.mxu1 %v12972_v7  ;;  %8032 = vmatprep.subr.bf16.mxu0 %v12987_v8  ;;  %v1319_v7 = vld [vmem:[#allocation8 + $0x11b0] sm:$0xff] }
 0x4d5   :  { %8196 = vmatprep.subr.bf16.mxu1 %v12989_v10  ;;  %v1327_v8 = vld [vmem:[#allocation8 + $0x11f0] sm:$0xff]  ;;  %v1320_v10 = vld [vmem:[#allocation8 + $0x11b8] sm:$0xff] }
 0x4d6   :  { %v13083_v6 = vcombine.high %v1319_v7, %v1327_v8  ;;  %v13085_v38 = vcombine.high %v1320_v10, %v1328_v12  ;;  %v13084_v13 = vcombine.low %v1320_v10, %v1328_v12  ;;  %v1415_v12 = vld [vmem:[#allocation8 + $0x14b0] sm:$0xff] }
 0x4d7   :  { %8033 = vmatpush1.bf16.msra.mxu0 %v12986_v19  ;;  %v1335_v19 = vld [vmem:[#allocation8 + $0x1230] sm:$0xff] }
 0x4d8   :  { %8197 = vmatpush1.bf16.msra.mxu1 %v12988_v21  ;;  %8034 = vmatprep.subr.bf16.mxu0 %v13003_v33  ;;  %v1343_v21 = vld [vmem:[#allocation8 + $0x1270] sm:$0xff]  ;;  %v1336_v33 = vld [vmem:[#allocation8 + $0x1238] sm:$0xff] }
 0x4d9   :  { %8198 = vmatprep.subr.bf16.mxu1 %v13005_v22  ;;  %v1344_v22 = vld [vmem:[#allocation8 + $0x1278] sm:$0xff]  ;;  %v13099_v23 = vcombine.high %v1335_v19, %v1343_v21 }
 0x4da   :  { %v13101_v53 = vcombine.high %v1336_v33, %v1344_v22  ;;  %v13100_v34 = vcombine.low %v1336_v33, %v1344_v22  ;;  %v1431_v22 = vld [vmem:[#allocation8 + $0x1530] sm:$0xff] }
 0x4db   :  { %8035 = vmatpush1.bf16.msra.mxu0 %v13002_v27  ;;  %v1359_v27 = vld [vmem:[#allocation8 + $0x12f0] sm:$0xff] }
 0x4dc   :  { %8199 = vmatpush1.bf16.msra.mxu1 %v13004_v28  ;;  %8036 = vmatprep.subr.bf16.mxu0 %v13019_v29  ;;  %v1352_v28 = vld [vmem:[#allocation8 + $0x12b8] sm:$0xff]  ;;  %v13115_v35 = vcombine.high %v1351_v24, %v1359_v27 }
 0x4dd   :  { %8200 = vmatprep.subr.bf16.mxu1 %v13021_v32  ;;  %v1360_v29 = vld [vmem:[#allocation8 + $0x12f8] sm:$0xff]  ;;  %v13098_v32 = vcombine.low %v1335_v19, %v1343_v21 }
 0x4de   :  { %v13117_v39 = vcombine.high %v1352_v28, %v1360_v29  ;;  %v13116_v55 = vcombine.low %v1352_v28, %v1360_v29  ;;  %v1447_v29 = vld [vmem:[#allocation8 + $0x15b0] sm:$0xff] }
 0x4df   :  { %8037 = vmatpush1.bf16.msra.mxu0 %v13018_v15  ;;  %v1375_v15 = vld [vmem:[#allocation8 + $0x1370] sm:$0xff] }
 0x4e0   :  { %8201 = vmatpush1.bf16.msra.mxu1 %v13020_v44  ;;  %8047 = vmatprep.subr.bf16.mxu0 %v13035_v45  ;;  %v1368_v44 = vld [vmem:[#allocation8 + $0x1338] sm:$0xff]  ;;  %v13131_v49 = vcombine.high %v1367_v42, %v1375_v15  ;;  %v13130_v60 = vcombine.low %v1367_v42, %v1375_v15 }
 0x4e1   :  { %8211 = vmatprep.subr.bf16.mxu1 %v13037_v48  ;;  %v1376_v45 = vld [vmem:[#allocation8 + $0x1378] sm:$0xff]  ;;  %v13114_v48 = vcombine.low %v1351_v24, %v1359_v27 }
 0x4e2   :  { %8039 = vmatmul.mubr.bf16.vlgmr.msra.gmra.mrb[20].mxu0 %v15590_v17  ;;  %v13132_v61 = vcombine.low %v1368_v44, %v1376_v45 }
 0x4e3   :  { %8203 = vmatmul.mubr.bf16.vlgmr.msra.gmra.mrb[20].mxu1 %v15590_v17  ;;  %8048 = vmatpush1.bf16.msra.mxu0 %v13034_v54  ;;  %v13068_v17 = vcombine.low %v1304_v63, %v1312_v2  ;;  %v13133_v54 = vcombine.high %v1368_v44, %v1376_v45  ;;  %v1399_v2 = vld [vmem:[#allocation8 + $0x1430] sm:$0xff] }
 0x4e4   :  { %8079 = vmatprep.mubr.bf16.mxu0 %v15592_v26  ;;  %8212 = vmatpush1.bf16.msra.mxu1 %v13036_v57  ;;  %v1384_v57 = vld [vmem:[#allocation8 + $0x13b8] sm:$0xff]  ;;  %v1463_v45 = vld [vmem:[#allocation8 + $0x1630] sm:$0xff] }
 0x4e5   :  { %8243 = vmatprep.mubr.bf16.mxu1 %v15592_v26  ;;  %8049 = vmatprep.subr.bf16.mxu0 %v13051_v58  ;;  %v13082_v26 = vcombine.low %v1319_v7, %v1327_v8  ;;  %v1392_v58 = vld [vmem:[#allocation8 + $0x13f8] sm:$0xff] }
 0x4e6   :  { %8213 = vmatprep.subr.bf16.mxu1 %v13053_v62  ;;  %v13147_v62 = vcombine.high %v1383_v56, %v1391_v40  ;;  %v13149_v63 = vcombine.high %v1384_v57, %v1392_v58  ;;  %v13148_v7 = vcombine.low %v1384_v57, %v1392_v58  ;;  %v1479_v58 = vld [vmem:[#allocation8 + $0x16b0] sm:$0xff] }
 0x4e7   :  { %8050 = vmatpush1.bf16.msra.mxu0 %v13050_v59  ;;  %v1407_v59 = vld [vmem:[#allocation8 + $0x1470] sm:$0xff] }
 0x4e8   :  { %8214 = vmatpush1.bf16.msra.mxu1 %v13052_v3  ;;  %8051 = vmatprep.subr.bf16.mxu0 %v13067_v4  ;;  %v1400_v3 = vld [vmem:[#allocation8 + $0x1438] sm:$0xff]  ;;  %v13163_v8 = vcombine.high %v1399_v2, %v1407_v59 }
 0x4e9   :  { %8215 = vmatprep.subr.bf16.mxu1 %v13069_v37  ;;  %v1408_v4 = vld [vmem:[#allocation8 + $0x1478] sm:$0xff]  ;;  %v13146_v37 = vcombine.low %v1383_v56, %v1391_v40 }
 0x4ea   :  { %v13165_v10 = vcombine.high %v1400_v3, %v1408_v4  ;;  %v13164_v19 = vcombine.low %v1400_v3, %v1408_v4  ;;  %v1495_v4 = vld [vmem:[#allocation8 + $0x1730] sm:$0xff] }
 0x4eb   :  { %8052 = vmatpush1.bf16.msra.mxu0 %v13066_v18  ;;  %v1423_v18 = vld [vmem:[#allocation8 + $0x14f0] sm:$0xff] }
 0x4ec   :  { %8216 = vmatpush1.bf16.msra.mxu1 %v13068_v17  ;;  %8053 = vmatprep.subr.bf16.mxu0 %v13083_v6  ;;  %v1416_v17 = vld [vmem:[#allocation8 + $0x14b8] sm:$0xff]  ;;  %v13179_v21 = vcombine.high %v1415_v12, %v1423_v18 }
 0x4ed   :  { %8217 = vmatprep.subr.bf16.mxu1 %v13085_v38  ;;  %v1424_v6 = vld [vmem:[#allocation8 + $0x14f8] sm:$0xff]  ;;  %v13162_v38 = vcombine.low %v1399_v2, %v1407_v59 }
 0x4ee   :  { %v13181_v33 = vcombine.high %v1416_v17, %v1424_v6  ;;  %v13180_v24 = vcombine.low %v1416_v17, %v1424_v6  ;;  %v1511_v6 = vld [vmem:[#allocation8 + $0x17b0] sm:$0xff] }
 0x4ef   :  { %8054 = vmatpush1.bf16.msra.mxu0 %v13082_v26  ;;  %v1439_v26 = vld [vmem:[#allocation8 + $0x1570] sm:$0xff] }
 0x4f0   :  { %8218 = vmatpush1.bf16.msra.mxu1 %v13084_v13  ;;  %8055 = vmatprep.subr.bf16.mxu0 %v13099_v23  ;;  %v1432_v13 = vld [vmem:[#allocation8 + $0x1538] sm:$0xff]  ;;  %v13195_v27 = vcombine.high %v1431_v22, %v1439_v26 }
 0x4f1   :  { %8219 = vmatprep.subr.bf16.mxu1 %v13101_v53  ;;  %v1440_v23 = vld [vmem:[#allocation8 + $0x1578] sm:$0xff]  ;;  %v13178_v53 = vcombine.low %v1415_v12, %v1423_v18 }
 0x4f2   :  { %v13197_v28 = vcombine.high %v1432_v13, %v1440_v23  ;;  %v13196_v42 = vcombine.low %v1432_v13, %v1440_v23  ;;  %v1527_v23 = vld [vmem:[#allocation8 + $0x1830] sm:$0xff] }
 0x4f3   :  { %8056 = vmatpush1.bf16.msra.mxu0 %v13098_v32  ;;  %v1455_v32 = vld [vmem:[#allocation8 + $0x15f0] sm:$0xff] }
 0x4f4   :  { %8220 = vmatpush1.bf16.msra.mxu1 %v13100_v34  ;;  %8057 = vmatprep.subr.bf16.mxu0 %v13115_v35  ;;  %v1448_v34 = vld [vmem:[#allocation8 + $0x15b8] sm:$0xff]  ;;  %v13211_v15 = vcombine.high %v1447_v29, %v1455_v32 }
 0x4f5   :  { %8221 = vmatprep.subr.bf16.mxu1 %v13117_v39  ;;  %v1456_v35 = vld [vmem:[#allocation8 + $0x15f8] sm:$0xff]  ;;  %v13194_v39 = vcombine.low %v1431_v22, %v1439_v26 }
 0x4f6   :  { %v13213_v44 = vcombine.high %v1448_v34, %v1456_v35  ;;  %v13212_v56 = vcombine.low %v1448_v34, %v1456_v35  ;;  %v1543_v35 = vld [vmem:[#allocation8 + $0x18b0] sm:$0xff] }
 0x4f7   :  { %8058 = vmatpush1.bf16.msra.mxu0 %v13114_v48  ;;  %v1471_v48 = vld [vmem:[#allocation8 + $0x1670] sm:$0xff] }
 0x4f8   :  { %8222 = vmatpush1.bf16.msra.mxu1 %v13116_v55  ;;  %8059 = vmatprep.subr.bf16.mxu0 %v13131_v49  ;;  %v1464_v55 = vld [vmem:[#allocation8 + $0x1638] sm:$0xff]  ;;  %v13227_v40 = vcombine.high %v1463_v45, %v1471_v48 }
 0x4f9   :  { %8223 = vmatprep.subr.bf16.mxu1 %v13133_v54  ;;  %v1472_v49 = vld [vmem:[#allocation8 + $0x1678] sm:$0xff]  ;;  %v13210_v54 = vcombine.low %v1447_v29, %v1455_v32 }
 0x4fa   :  { %v13229_v57 = vcombine.high %v1464_v55, %v1472_v49  ;;  %v13228_v2 = vcombine.low %v1464_v55, %v1472_v49  ;;  %v1559_v55 = vld [vmem:[#allocation8 + $0x1930] sm:$0xff] }
 0x4fb   :  { %8060 = vmatpush1.bf16.msra.mxu0 %v13130_v60  ;;  %v1487_v60 = vld [vmem:[#allocation8 + $0x16f0] sm:$0xff] }
 0x4fc   :  { %8224 = vmatpush1.bf16.msra.mxu1 %v13132_v61  ;;  %8061 = vmatprep.subr.bf16.mxu0 %v13147_v62  ;;  %v1480_v61 = vld [vmem:[#allocation8 + $0x16b8] sm:$0xff]  ;;  %v13243_v59 = vcombine.high %v1479_v58, %v1487_v60  ;;  %v1567_v49 = vld [vmem:[#allocation8 + $0x1970] sm:$0xff] }
 0x4fd   :  { %8225 = vmatprep.subr.bf16.mxu1 %v13149_v63  ;;  %v1488_v62 = vld [vmem:[#allocation8 + $0x16f8] sm:$0xff]  ;;  %v13226_v63 = vcombine.low %v1463_v45, %v1471_v48 }
 0x4fe   :  { %v13245_v3 = vcombine.high %v1480_v61, %v1488_v62  ;;  %v13244_v12 = vcombine.low %v1480_v61, %v1488_v62  ;;  %v1575_v62 = vld [vmem:[#allocation8 + $0x19b0] sm:$0xff] }
 0x4ff   :  { %8062 = vmatpush1.bf16.msra.mxu0 %v13146_v37  ;;  %v1503_v37 = vld [vmem:[#allocation8 + $0x1770] sm:$0xff] }
 0x500   :  { %8226 = vmatpush1.bf16.msra.mxu1 %v13148_v7  ;;  %8063 = vmatprep.subr.bf16.mxu0 %v13163_v8  ;;  %v1496_v7 = vld [vmem:[#allocation8 + $0x1738] sm:$0xff]  ;;  %v13259_v18 = vcombine.high %v1495_v4, %v1503_v37 }
 0x501   :  { %8227 = vmatprep.subr.bf16.mxu1 %v13165_v10  ;;  %v1504_v8 = vld [vmem:[#allocation8 + $0x1778] sm:$0xff]  ;;  %v13242_v10 = vcombine.low %v1479_v58, %v1487_v60  ;;  %v13323_v60 = vcombine.high %v1559_v55, %v1567_v49 }
 0x502   :  { %v13261_v17 = vcombine.high %v1496_v7, %v1504_v8  ;;  %v13260_v22 = vcombine.low %v1496_v7, %v1504_v8  ;;  %v1591_v7 = vld [vmem:[#allocation8 + $0x1a30] sm:$0xff] }
 0x503   :  { %8064 = vmatpush1.bf16.msra.mxu0 %v13162_v38  ;;  %v1519_v38 = vld [vmem:[#allocation8 + $0x17f0] sm:$0xff] }
 0x504   :  { %8228 = vmatpush1.bf16.msra.mxu1 %v13164_v19  ;;  %8065 = vmatprep.subr.bf16.mxu0 %v13179_v21  ;;  %v1512_v19 = vld [vmem:[#allocation8 + $0x17b8] sm:$0xff]  ;;  %v13275_v26 = vcombine.high %v1511_v6, %v1519_v38  ;;  %v1599_v8 = vld [vmem:[#allocation8 + $0x1a70] sm:$0xff] }
 0x505   :  { %8229 = vmatprep.subr.bf16.mxu1 %v13181_v33  ;;  %v1520_v21 = vld [vmem:[#allocation8 + $0x17f8] sm:$0xff]  ;;  %v13258_v33 = vcombine.low %v1495_v4, %v1503_v37 }
 0x506   :  { %v13277_v13 = vcombine.high %v1512_v19, %v1520_v21  ;;  %v13276_v29 = vcombine.low %v1512_v19, %v1520_v21  ;;  %v1615_v19 = vld [vmem:[#allocation8 + $0x1af0] sm:$0xff]  ;;  %v1608_v21 = vld [vmem:[#allocation8 + $0x1ab8] sm:$0xff] }
 0x507   :  { %8066 = vmatpush1.bf16.msra.mxu0 %v13178_v53  ;;  %v1535_v53 = vld [vmem:[#allocation8 + $0x1870] sm:$0xff] }
 0x508   :  { %8230 = vmatpush1.bf16.msra.mxu1 %v13180_v24  ;;  %8067 = vmatprep.subr.bf16.mxu0 %v13195_v27  ;;  %v1528_v24 = vld [vmem:[#allocation8 + $0x1838] sm:$0xff]  ;;  %v13291_v32 = vcombine.high %v1527_v23, %v1535_v53 }
 0x509   :  { %8231 = vmatprep.subr.bf16.mxu1 %v13197_v28  ;;  %v1536_v27 = vld [vmem:[#allocation8 + $0x1878] sm:$0xff]  ;;  %v13274_v28 = vcombine.low %v1511_v6, %v1519_v38  ;;  %v1607_v38 = vld [vmem:[#allocation8 + $0x1ab0] sm:$0xff] }
 0x50a   :  { %v13293_v34 = vcombine.high %v1528_v24, %v1536_v27  ;;  %v13292_v45 = vcombine.low %v1528_v24, %v1536_v27  ;;  %v1631_v24 = vld [vmem:[#allocation8 + $0x1b70] sm:$0xff]  ;;  %v1624_v27 = vld [vmem:[#allocation8 + $0x1b38] sm:$0xff] }
 0x50b   :  { %8068 = vmatpush1.bf16.msra.mxu0 %v13194_v39  ;;  %v1551_v39 = vld [vmem:[#allocation8 + $0x18f0] sm:$0xff] }
 0x50c   :  { %8232 = vmatpush1.bf16.msra.mxu1 %v13196_v42  ;;  %8069 = vmatprep.subr.bf16.mxu0 %v13211_v15  ;;  %v13290_v42 = vcombine.low %v1527_v23, %v1535_v53  ;;  %v1544_v15 = vld [vmem:[#allocation8 + $0x18b8] sm:$0xff]  ;;  %v13307_v48 = vcombine.high %v1543_v35, %v1551_v39  ;;  %v1623_v53 = vld [vmem:[#allocation8 + $0x1b30] sm:$0xff] }
 0x50d   :  { %8233 = vmatprep.subr.bf16.mxu1 %v13213_v44  ;;  %v1552_v44 = vld [vmem:[#allocation8 + $0x18f8] sm:$0xff] }
 0x50e   :  { %v13308_v58 = vcombine.low %v1544_v15, %v1552_v44 }
 0x50f   :  { %8070 = vmatpush1.bf16.msra.mxu0 %v13210_v54  ;;  %v13309_v54 = vcombine.high %v1544_v15, %v1552_v44  ;;  %v1647_v15 = vld [vmem:[#allocation8 + $0x1bf0] sm:$0xff] }
 0x510   :  { %8234 = vmatpush1.bf16.msra.mxu1 %v13212_v56  ;;  %8071 = vmatprep.subr.bf16.mxu0 %v13227_v40  ;;  %v1560_v56 = vld [vmem:[#allocation8 + $0x1938] sm:$0xff] }
 0x511   :  { %8235 = vmatprep.subr.bf16.mxu1 %v13229_v57  ;;  %v1568_v40 = vld [vmem:[#allocation8 + $0x1978] sm:$0xff]  ;;  %v13306_v57 = vcombine.low %v1543_v35, %v1551_v39 }
 0x512   :  { %v13325_v61 = vcombine.high %v1560_v56, %v1568_v40 }
 0x513   :  { %8072 = vmatpush1.bf16.msra.mxu0 %v13226_v63  ;;  %v1583_v63 = vld [vmem:[#allocation8 + $0x19f0] sm:$0xff] }
 0x514   :  { %8236 = vmatpush1.bf16.msra.mxu1 %v13228_v2  ;;  %8073 = vmatprep.subr.bf16.mxu0 %v13243_v59  ;;  %v1576_v2 = vld [vmem:[#allocation8 + $0x19b8] sm:$0xff]  ;;  %v13339_v4 = vcombine.high %v1575_v62, %v1583_v63 }
 0x515   :  { %8237 = vmatprep.subr.bf16.mxu1 %v13245_v3  ;;  %v1584_v59 = vld [vmem:[#allocation8 + $0x19f8] sm:$0xff]  ;;  %v13322_v3 = vcombine.low %v1559_v55, %v1567_v49 }
 0x516   :  { %v13341_v37 = vcombine.high %v1576_v2, %v1584_v59  ;;  %v1648_v55 = vld [vmem:[#allocation8 + $0x1bf8] sm:$0xff] }
 0x517   :  { %8074 = vmatpush1.bf16.msra.mxu0 %v13242_v10  ;;  %v1592_v10 = vld [vmem:[#allocation8 + $0x1a38] sm:$0xff] }
 0x518   :  { %8238 = vmatpush1.bf16.msra.mxu1 %v13244_v12  ;;  %8075 = vmatprep.subr.bf16.mxu0 %v13259_v18  ;;  %v1600_v12 = vld [vmem:[#allocation8 + $0x1a78] sm:$0xff]  ;;  %v13340_v18 = vcombine.low %v1576_v2, %v1584_v59  ;;  %v1663_v2 = vld [vmem:[#allocation8 + $0x1c70] sm:$0xff] }
 0x519   :  { %8239 = vmatprep.subr.bf16.mxu1 %v13261_v17  ;;  %v13355_v17 = vcombine.high %v1591_v7, %v1599_v8  ;;  %v13357_v6 = vcombine.high %v1592_v10, %v1600_v12  ;;  %v1656_v59 = vld [vmem:[#allocation8 + $0x1c38] sm:$0xff] }
 0x51b   :  { %8076 = vmatpush1.bf16.msra.mxu0 %v13258_v33  ;;  %v1616_v33 = vld [vmem:[#allocation8 + $0x1af8] sm:$0xff] }
 0x51c   :  { %8240 = vmatpush1.bf16.msra.mxu1 %v13260_v22  ;;  %8077 = vmatprep.subr.bf16.mxu0 %v13275_v26  ;;  %v13354_v22 = vcombine.low %v1591_v7, %v1599_v8  ;;  %v13356_v26 = vcombine.low %v1592_v10, %v1600_v12  ;;  %v13373_v23 = vcombine.high %v1608_v21, %v1616_v33  ;;  %v1671_v8 = vld [vmem:[#allocation8 + $0x1cb0] sm:$0xff]  ;;  %v1672_v12 = vld [vmem:[#allocation8 + $0x1cb8] sm:$0xff] }
 0x51d   :  { %8241 = vmatprep.subr.bf16.mxu1 %v13277_v13  ;;  %v13371_v13 = vcombine.high %v1607_v38, %v1615_v19  ;;  %v1679_v10 = vld [vmem:[#allocation8 + $0x1cf0] sm:$0xff] }
 0x51f   :  { %8078 = vmatpush1.bf16.msra.mxu0 %v13274_v28  ;;  %v1632_v28 = vld [vmem:[#allocation8 + $0x1b78] sm:$0xff] }
 0x520   :  { %8242 = vmatpush1.bf16.msra.mxu1 %v13276_v29  ;;  %8088 = vmatprep.subr.bf16.mxu0 %v13291_v32  ;;  %v13370_v29 = vcombine.low %v1607_v38, %v1615_v19  ;;  %v13372_v32 = vcombine.low %v1608_v21, %v1616_v33  ;;  %v13389_v39 = vcombine.high %v1624_v27, %v1632_v28  ;;  %v1687_v19 = vld [vmem:[#allocation8 + $0x1d30] sm:$0xff]  ;;  %v1688_v33 = vld [vmem:[#allocation8 + $0x1d38] sm:$0xff] }
 0x521   :  { %8252 = vmatprep.subr.bf16.mxu1 %v13293_v34  ;;  %v13387_v34 = vcombine.high %v1623_v53, %v1631_v24  ;;  %v1695_v21 = vld [vmem:[#allocation8 + $0x1d70] sm:$0xff] }
 0x522   :  { %8080 = vmatmul.mubr.bf16.vlgmr.msra.gmra.mrb[20].mxu0 %v15612_v1 }
 0x523   :  { %8244 = vmatmul.mubr.bf16.vlgmr.msra.gmra.mrb[20].mxu1 %v15612_v1  ;;  %8089 = vmatpush1.bf16.msra.mxu0 %v13290_v42  ;;  %v13324_v1 = vcombine.low %v1560_v56, %v1568_v40  ;;  %v1639_v42 = vld [vmem:[#allocation8 + $0x1bb0] sm:$0xff]  ;;  %v13386_v56 = vcombine.low %v1623_v53, %v1631_v24 }
 0x524   :  { %8120 = vmatprep.mubr.bf16.mxu0 %v15614_v9  ;;  %8253 = vmatpush1.bf16.msra.mxu1 %v13292_v45  ;;  %v1703_v24 = vld [vmem:[#allocation8 + $0x1db0] sm:$0xff] }
 0x525   :  { %8284 = vmatprep.mubr.bf16.mxu1 %v15614_v9  ;;  %8090 = vmatprep.subr.bf16.mxu0 %v13307_v48  ;;  %v13338_v9 = vcombine.low %v1575_v62, %v1583_v63  ;;  %v1640_v48 = vld [vmem:[#allocation8 + $0x1bb8] sm:$0xff]  ;;  %v1655_v63 = vld [vmem:[#allocation8 + $0x1c30] sm:$0xff] }
 0x526   :  { %8254 = vmatprep.subr.bf16.mxu1 %v13309_v54  ;;  %v13405_v62 = vcombine.high %v1640_v48, %v1648_v55 }
 0x527   :  { %8091 = vmatpush1.bf16.msra.mxu0 %v13306_v57 }
 0x528   :  { %8255 = vmatpush1.bf16.msra.mxu1 %v13308_v58  ;;  %8092 = vmatprep.subr.bf16.mxu0 %v13323_v60  ;;  %v13388_v58 = vcombine.low %v1624_v27, %v1632_v28  ;;  %v13403_v60 = vcombine.high %v1639_v42, %v1647_v15  ;;  %v1711_v27 = vld [vmem:[#allocation8 + $0x1df0] sm:$0xff]  ;;  %v1704_v28 = vld [vmem:[#allocation8 + $0x1db8] sm:$0xff] }
 0x529   :  { %8256 = vmatprep.subr.bf16.mxu1 %v13325_v61 }
 0x52b   :  { %8093 = vmatpush1.bf16.msra.mxu0 %v13322_v3  ;;  %v1664_v3 = vld [vmem:[#allocation8 + $0x1c78] sm:$0xff] }
 0x52c   :  { %8257 = vmatpush1.bf16.msra.mxu1 %v13324_v1  ;;  %8094 = vmatprep.subr.bf16.mxu0 %v13339_v4  ;;  %v13402_v1 = vcombine.low %v1639_v42, %v1647_v15  ;;  %v13404_v4 = vcombine.low %v1640_v48, %v1648_v55  ;;  %v13421_v7 = vcombine.high %v1656_v59, %v1664_v3  ;;  %v1719_v15 = vld [vmem:[#allocation8 + $0x1e30] sm:$0xff]  ;;  %v1720_v55 = vld [vmem:[#allocation8 + $0x1e38] sm:$0xff] }
 0x52d   :  { %8258 = vmatprep.subr.bf16.mxu1 %v13341_v37  ;;  %v13419_v37 = vcombine.high %v1655_v63, %v1663_v2  ;;  %v1727_v48 = vld [vmem:[#allocation8 + $0x1e70] sm:$0xff] }
 0x52f   :  { %8095 = vmatpush1.bf16.msra.mxu0 %v13338_v9  ;;  %v1680_v9 = vld [vmem:[#allocation8 + $0x1cf8] sm:$0xff] }
 0x530   :  { %8259 = vmatpush1.bf16.msra.mxu1 %v13340_v18  ;;  %8096 = vmatprep.subr.bf16.mxu0 %v13355_v17  ;;  %v13418_v18 = vcombine.low %v1655_v63, %v1663_v2  ;;  %v13420_v17 = vcombine.low %v1656_v59, %v1664_v3  ;;  %v13437_v38 = vcombine.high %v1672_v12, %v1680_v9  ;;  %v1744_v63 = vld [vmem:[#allocation8 + $0x1ef8] sm:$0xff] }
 0x531   :  { %8260 = vmatprep.subr.bf16.mxu1 %v13357_v6  ;;  %v13435_v6 = vcombine.high %v1671_v8, %v1679_v10  ;;  %v13482_v2 = vcombine.low %v1719_v15, %v1727_v48 }
 0x533   :  { %8097 = vmatpush1.bf16.msra.mxu0 %v13354_v22  ;;  %v1696_v22 = vld [vmem:[#allocation8 + $0x1d78] sm:$0xff] }
 0x534   :  { %8261 = vmatpush1.bf16.msra.mxu1 %v13356_v26  ;;  %8098 = vmatprep.subr.bf16.mxu0 %v13371_v13  ;;  %v13434_v26 = vcombine.low %v1671_v8, %v1679_v10  ;;  %v13436_v13 = vcombine.low %v1672_v12, %v1680_v9  ;;  %v13453_v53 = vcombine.high %v1688_v33, %v1696_v22  ;;  %v1760_v8 = vld [vmem:[#allocation8 + $0x1f78] sm:$0xff]  ;;  %v15700_v10 = vld [vmem:[#allocation10] sm:$0xff] }
 0x535   :  { %v15692_v35 = vpop.f32.mrb[16].mxu0  ;;  %8262 = vmatprep.subr.bf16.mxu1 %v13373_v23  ;;  %v13451_v23 = vcombine.high %v1687_v19, %v1695_v21 }
 0x536   :  { %v15694_v44 = vpop.f32.mrb[16].mxu1  ;;  %v15696_v45 = vpop.f32.mrb[17].mxu0 }
 0x537   :  { %v15698_v49 = vpop.f32.mrb[17].mxu1  ;;  %v7798_v54 = vpop.f32.mrb[18].mxu0  ;;  %8099 = vmatpush1.bf16.msra.mxu0 %v13370_v29  ;;  %v1712_v29 = vld [vmem:[#allocation8 + $0x1df8] sm:$0xff] }
 0x538   :  { %v7962_v40 = vpop.f32.mrb[18].mxu1  ;;  %8263 = vmatpush1.bf16.msra.mxu1 %v13372_v32  ;;  %v7799_v57 = vpop.f32.mrb[19].mxu0  ;;  %8100 = vmatprep.subr.bf16.mxu0 %v13387_v34  ;;  %v13450_v32 = vcombine.low %v1687_v19, %v1695_v21  ;;  %v13452_v34 = vcombine.low %v1688_v33, %v1696_v22  ;;  %v13469_v42 = vcombine.high %v1704_v28, %v1712_v29  ;;  %v1728_v54 = vld [vmem:[#allocation8 + $0x1e78] sm:$0xff] }
 0x539   :  { %v7963_v61 = vpop.f32.mrb[19].mxu1  ;;  %8264 = vmatprep.subr.bf16.mxu1 %v13389_v39  ;;  %v13467_v39 = vcombine.high %v1703_v24, %v1711_v27  ;;  %v13468_v40 = vcombine.low %v1704_v28, %v1712_v29  ;;  %v13483_v57 = vcombine.high %v1719_v15, %v1727_v48  ;;  %v13484_v59 = vcombine.low %v1720_v55, %v1728_v54  ;;  %v1768_v21 = vld [vmem:[#allocation8 + $0x1fb8] sm:$0xff]  ;;  %v14315_v28 = vld [vmem:[#allocation11 + $0x4] ss:$16 sps:$4 sm:$0xff]   ;;  %v14319_v48 = vld [vmem:[#allocation11 + $0x20] ss:$16 sps:$4 sm:$0xff]  }
 0x53a   :  { %v1743_v61 = vld [vmem:[#allocation8 + $0x1ef0] sm:$0xff]  ;;  %v1788_v19 = vrot.slane %v15700_v10, %v15545_v16  ;;  %v1776_v33 = vld [vmem:[#allocation8 + $0x1ff8] sm:$0xff] }
 0x53b   :  { %8101 = vmatpush1.bf16.msra.mxu0 %v13386_v56  ;;  %v13466_v56 = vcombine.low %v1703_v24, %v1711_v27  ;;  %v13532_v27 = vcombine.low %v1768_v21, %v1776_v33  ;;  %v14318_v29 = vld [vmem:[#allocation11 + $0xc] ss:$16 sps:$4 sm:$0xff]  }
 0x53c   :  { %8265 = vmatpush1.bf16.msra.mxu1 %v13388_v58  ;;  %8102 = vmatprep.subr.bf16.mxu0 %v13403_v60  ;;  %v13485_v58 = vcombine.high %v1720_v55, %v1728_v54  ;;  %v1735_v60 = vld [vmem:[#allocation8 + $0x1eb0] sm:$0xff]  ;;  %v14322_v55 = vld [vmem:[#allocation11 + $0x28] ss:$16 sps:$4 sm:$0xff]  }
 0x53d   :  { %8266 = vmatprep.subr.bf16.mxu1 %v13405_v62  ;;  %v1736_v62 = vld [vmem:[#allocation8 + $0x1eb8] sm:$0xff]  ;;  %v13499_v3 = vcombine.high %v1735_v60, %v1743_v61  ;;  %v13498_v12 = vcombine.low %v1735_v60, %v1743_v61  ;;  %v14327_v54 = vld [vmem:[#allocation11 + $0x44] ss:$16 sps:$4 sm:$0xff]  }
 0x53e   :  { %v13500_v9 = vcombine.low %v1736_v62, %v1744_v63  ;;  %v14336_v60 = vld [vmem:[#allocation11 + $0x6c] ss:$16 sps:$4 sm:$0xff]   ;;  %v14334_v61 = vld [vmem:[#allocation11 + $0x68] ss:$16 sps:$4 sm:$0xff]  }
 0x53f   :  { %8103 = vmatpush1.bf16.msra.mxu0 %v13402_v1  ;;  %v13501_v1 = vcombine.high %v1736_v62, %v1744_v63  ;;  %v14339_v62 = vld [vmem:[#allocation11 + $0x84] ss:$16 sps:$4 sm:$0xff]   ;;  %v14342_v63 = vld [vmem:[#allocation11 + $0x8c] ss:$16 sps:$4 sm:$0xff]  }
 0x540   :  { %8267 = vmatpush1.bf16.msra.mxu1 %v13404_v4  ;;  %8104 = vmatprep.subr.bf16.mxu0 %v13419_v37  ;;  %v1751_v4 = vld [vmem:[#allocation8 + $0x1f30] sm:$0xff] }
 0x541   :  { %8268 = vmatprep.subr.bf16.mxu1 %v13421_v7  ;;  %v1759_v37 = vld [vmem:[#allocation8 + $0x1f70] sm:$0xff]  ;;  %v1752_v7 = vld [vmem:[#allocation8 + $0x1f38] sm:$0xff] }
 0x542   :  { %v13514_v22 = vcombine.low %v1751_v4, %v1759_v37 }
 0x543   :  { %8105 = vmatpush1.bf16.msra.mxu0 %v13418_v18  ;;  %v13515_v18 = vcombine.high %v1751_v4, %v1759_v37  ;;  %v14343_v4 = vld [vmem:[#allocation11 + $0xa0] ss:$16 sps:$4 sm:$0xff]   ;;  %v14346_v37 = vld [vmem:[#allocation11 + $0xa8] ss:$16 sps:$4 sm:$0xff]  }
 0x544   :  { %8269 = vmatpush1.bf16.msra.mxu1 %v13420_v17  ;;  %8106 = vmatprep.subr.bf16.mxu0 %v13435_v6  ;;  %v13517_v17 = vcombine.high %v1752_v7, %v1760_v8  ;;  %v1767_v6 = vld [vmem:[#allocation8 + $0x1fb0] sm:$0xff] }
 0x545   :  { %8270 = vmatprep.subr.bf16.mxu1 %v13437_v38  ;;  %v1775_v38 = vld [vmem:[#allocation8 + $0x1ff0] sm:$0xff] }
 0x546   :  { %v13530_v24 = vcombine.low %v1767_v6, %v1775_v38 }
 0x547   :  { %8107 = vmatpush1.bf16.msra.mxu0 %v13434_v26  ;;  %v13516_v26 = vcombine.low %v1752_v7, %v1760_v8  ;;  %v14351_v7 = vld [vmem:[#allocation11 + $0xc4] ss:$16 sps:$4 sm:$0xff]   ;;  %v14354_v8 = vld [vmem:[#allocation11 + $0xcc] ss:$16 sps:$4 sm:$0xff]  }
 0x548   :  { %8271 = vmatpush1.bf16.msra.mxu1 %v13436_v13  ;;  %8108 = vmatprep.subr.bf16.mxu0 %v13451_v23  ;;  %v13531_v13 = vcombine.high %v1767_v6, %v1775_v38  ;;  %v13533_v23 = vcombine.high %v1768_v21, %v1776_v33  ;;  %v14355_v6 = vld [vmem:[#allocation11 + $0xe0] ss:$16 sps:$4 sm:$0xff]   ;;  %v14358_v38 = vld [vmem:[#allocation11 + $0xe8] ss:$16 sps:$4 sm:$0xff]   ;;  %v14366_v21 = vld [vmem:[#allocation11 + $0x10c] ss:$16 sps:$4 sm:$0xff]  }
 0x549   :  { %8272 = vmatprep.subr.bf16.mxu1 %v13453_v53  ;;  %v14124_v53 = vadd.f32 %v15648_v50, %v1788_v19  ;;  %v14324_v50 = vld [vmem:[#allocation11 + $0x2c] ss:$16 sps:$4 sm:$0xff]   ;;  %v14363_v19 = vld [vmem:[#allocation11 + $0x104] ss:$16 sps:$4 sm:$0xff]   ;;  %v14361_v33 = vld [vmem:[#allocation11 + $0x100] ss:$16 sps:$4 sm:$0xff]  }
 0x54b   :  { %8109 = vmatpush1.bf16.msra.mxu0 %v13450_v32  ;;  %v8294_v32 = vmax.f32 %v14124_v53, 0.0  ;;  %v14370_v53 = vld [vmem:[#allocation11 + $0x128] ss:$16 sps:$4 sm:$0xff]  }
 0x54c   :  { %8273 = vmatpush1.bf16.msra.mxu1 %v13452_v34  ;;  %8110 = vmatprep.subr.bf16.mxu0 %v13467_v39  ;;  %v14313_v34 = vld [vmem:[#allocation11] ss:$16 sps:$4 sm:$0xff]   ;;  %v14316_v39 = vld [vmem:[#allocation11 + $0x8] ss:$16 sps:$4 sm:$0xff]  }
 0x54d   :  { %8274 = vmatprep.subr.bf16.mxu1 %v13469_v42  ;;  %v14321_v42 = vld [vmem:[#allocation11 + $0x24] ss:$16 sps:$4 sm:$0xff]   ;;  %v8310_v15 = vpack.c.bf16 %v8294_v32, %v8294_v32 }
 0x54e   :  { %v14381_v32 = vld [vmem:[#allocation11 + $0x164] ss:$16 sps:$4 sm:$0xff]  }
 0x54f   :  { %8111 = vmatpush1.bf16.msra.mxu0 %v13466_v56  ;;  %v14330_v56 = vld [vmem:[#allocation11 + $0x4c] ss:$16 sps:$4 sm:$0xff]  }
 0x550   :  { %8275 = vmatpush1.bf16.msra.mxu1 %v13468_v40  ;;  %8112 = vmatprep.subr.bf16.mxu0 %v13483_v57  ;;  %v14325_v40 = vld [vmem:[#allocation11 + $0x40] ss:$16 sps:$4 sm:$0xff]   ;;  %v14328_v57 = vld [vmem:[#allocation11 + $0x48] ss:$16 sps:$4 sm:$0xff]  }
 0x551   :  { %8276 = vmatprep.subr.bf16.mxu1 %v13485_v58  ;;  %v14333_v58 = vld [vmem:[#allocation11 + $0x64] ss:$16 sps:$4 sm:$0xff]  }
 0x553   :  { %8113 = vmatpush1.bf16.msra.mxu0 %v13482_v2  ;;  %v14337_v2 = vld [vmem:[#allocation11 + $0x80] ss:$16 sps:$4 sm:$0xff]  }
 0x554   :  { %8277 = vmatpush1.bf16.msra.mxu1 %v13484_v59  ;;  %8114 = vmatprep.subr.bf16.mxu0 %v13499_v3  ;;  %v14340_v59 = vld [vmem:[#allocation11 + $0x88] ss:$16 sps:$4 sm:$0xff]   ;;  %v14345_v3 = vld [vmem:[#allocation11 + $0xa4] ss:$16 sps:$4 sm:$0xff]  }
 0x555   :  { %8278 = vmatprep.subr.bf16.mxu1 %v13501_v1  ;;  %v14348_v1 = vld [vmem:[#allocation11 + $0xac] ss:$16 sps:$4 sm:$0xff]  }
 0x557   :  { %8115 = vmatpush1.bf16.msra.mxu0 %v13498_v12  ;;  %v14349_v12 = vld [vmem:[#allocation11 + $0xc0] ss:$16 sps:$4 sm:$0xff]  }
 0x558   :  { %8279 = vmatpush1.bf16.msra.mxu1 %v13500_v9  ;;  %8116 = vmatprep.subr.bf16.mxu0 %v13515_v18  ;;  %v14352_v9 = vld [vmem:[#allocation11 + $0xc8] ss:$16 sps:$4 sm:$0xff]   ;;  %v14357_v18 = vld [vmem:[#allocation11 + $0xe4] ss:$16 sps:$4 sm:$0xff]  }
 0x559   :  { %8280 = vmatprep.subr.bf16.mxu1 %v13517_v17  ;;  %v14360_v17 = vld [vmem:[#allocation11 + $0xec] ss:$16 sps:$4 sm:$0xff]  }
 0x55b   :  { %8117 = vmatpush1.bf16.msra.mxu0 %v13514_v22  ;;  %v14364_v22 = vld [vmem:[#allocation11 + $0x108] ss:$16 sps:$4 sm:$0xff]  }
 0x55c   :  { %8281 = vmatpush1.bf16.msra.mxu1 %v13516_v26  ;;  %8118 = vmatprep.subr.bf16.mxu0 %v13531_v13  ;;  %v14369_v26 = vld [vmem:[#allocation11 + $0x124] ss:$16 sps:$4 sm:$0xff]   ;;  %v14372_v13 = vld [vmem:[#allocation11 + $0x12c] ss:$16 sps:$4 sm:$0xff]  }
 0x55d   :  { %8282 = vmatprep.subr.bf16.mxu1 %v13533_v23  ;;  %v14367_v23 = vld [vmem:[#allocation11 + $0x120] ss:$16 sps:$4 sm:$0xff]  }
 0x55f   :  { %8119 = vmatpush1.bf16.msra.mxu0 %v13530_v24  ;;  %v14375_v24 = vld [vmem:[#allocation11 + $0x144] ss:$16 sps:$4 sm:$0xff]  }
 0x560   :  { %8283 = vmatpush1.bf16.msra.mxu1 %v13532_v27  ;;  %11419 = vmatprep.subr.bf16.mxu0 %v14315_v28  ;;  %v14378_v27 = vld [vmem:[#allocation11 + $0x14c] ss:$16 sps:$4 sm:$0xff]   ;;  %v14373_v28 = vld [vmem:[#allocation11 + $0x140] ss:$16 sps:$4 sm:$0xff]  }
 0x561   :  { %11747 = vmatprep.subr.bf16.mxu1 %v14318_v29  ;;  %v14376_v29 = vld [vmem:[#allocation11 + $0x148] ss:$16 sps:$4 sm:$0xff]  }
 0x562   :  { %8121 = vmatmul.mubr.bf16.vlgmr.msra.gmra.mrb[20].mxu0 %v15626_v51 }
 0x563   :  { %8285 = vmatmul.mubr.bf16.vlgmr.msra.gmra.mrb[20].mxu1 %v15626_v51  ;;  %11420 = vmatpush1.bf16.msra.mxu0 %v14313_v34  ;;  %v14331_v51 = vld [vmem:[#allocation11 + $0x60] ss:$16 sps:$4 sm:$0xff]   ;;  %v14384_v34 = vld [vmem:[#allocation11 + $0x16c] ss:$16 sps:$4 sm:$0xff]  }
 0x564   :  { %11451 = vmatprep.mubr.bf16.mxu0 %v8310_v15  ;;  %11748 = vmatpush1.bf16.msra.mxu1 %v14316_v39  ;;  %v14379_v39 = vld [vmem:[#allocation11 + $0x160] ss:$16 sps:$4 sm:$0xff]  }
 0x565   :  { %11779 = vmatprep.mubr.bf16.mxu1 %v8310_v15  ;;  %11421 = vmatprep.subr.bf16.mxu0 %v14321_v42  ;;  %v14382_v42 = vld [vmem:[#allocation11 + $0x168] ss:$16 sps:$4 sm:$0xff]   ;;  %v14387_v15 = vld [vmem:[#allocation11 + $0x184] ss:$16 sps:$4 sm:$0xff]  }
 0x566   :  { %11749 = vmatprep.subr.bf16.mxu1 %v14324_v50  ;;  %v14390_v50 = vld [vmem:[#allocation11 + $0x18c] ss:$16 sps:$4 sm:$0xff]  }
 0x567   :  { %11422 = vmatpush1.bf16.msra.mxu0 %v14319_v48  ;;  %v14385_v48 = vld [vmem:[#allocation11 + $0x180] ss:$16 sps:$4 sm:$0xff]  }
 0x568   :  { %11750 = vmatpush1.bf16.msra.mxu1 %v14322_v55  ;;  %11423 = vmatprep.subr.bf16.mxu0 %v14327_v54  ;;  %v14388_v55 = vld [vmem:[#allocation11 + $0x188] ss:$16 sps:$4 sm:$0xff]   ;;  %v14393_v54 = vld [vmem:[#allocation11 + $0x1a4] ss:$16 sps:$4 sm:$0xff]  }
 0x569   :  { %11751 = vmatprep.subr.bf16.mxu1 %v14330_v56  ;;  %v14396_v56 = vld [vmem:[#allocation11 + $0x1ac] ss:$16 sps:$4 sm:$0xff]  }
 0x56b   :  { %11424 = vmatpush1.bf16.msra.mxu0 %v14325_v40  ;;  %v14391_v40 = vld [vmem:[#allocation11 + $0x1a0] ss:$16 sps:$4 sm:$0xff]  }
 0x56c   :  { %11752 = vmatpush1.bf16.msra.mxu1 %v14328_v57  ;;  %11425 = vmatprep.subr.bf16.mxu0 %v14333_v58  ;;  %v1784_v57 = vrot.slane %v15700_v10, %v15540_v14  ;;  %v14394_v58 = vld [vmem:[#allocation11 + $0x1a8] ss:$16 sps:$4 sm:$0xff]  }
 0x56d   :  { %11753 = vmatprep.subr.bf16.mxu1 %v14336_v60  ;;  %v14399_v60 = vld [vmem:[#allocation11 + $0x1c4] ss:$16 sps:$4 sm:$0xff]  }
 0x56f   :  { %11426 = vmatpush1.bf16.msra.mxu0 %v14331_v51  ;;  %v14402_v51 = vld [vmem:[#allocation11 + $0x1cc] ss:$16 sps:$4 sm:$0xff]  }
 0x570   :  { %11754 = vmatpush1.bf16.msra.mxu1 %v14334_v61  ;;  %11427 = vmatprep.subr.bf16.mxu0 %v14339_v62  ;;  %v1796_v61 = vrot.slane %v15700_v10, %v15552_v20  ;;  %v14397_v62 = vld [vmem:[#allocation11 + $0x1c0] ss:$16 sps:$4 sm:$0xff]  }
 0x571   :  { %11755 = vmatprep.subr.bf16.mxu1 %v14342_v63  ;;  %v14123_v63 = vadd.f32 %v15644_v46, %v1784_v57  ;;  %v14409_v46 = vld [vmem:[#allocation11 + $0x200] ss:$16 sps:$4 sm:$0xff]   ;;  %v14456_v57 = vld [vmem:[#allocation11 + $0x2ec] ss:$16 sps:$4 sm:$0xff]  }
 0x573   :  { %11428 = vmatpush1.bf16.msra.mxu0 %v14337_v2  ;;  %v14400_v2 = vld [vmem:[#allocation11 + $0x1c8] ss:$16 sps:$4 sm:$0xff]  }
 0x574   :  { %11756 = vmatpush1.bf16.msra.mxu1 %v14340_v59  ;;  %11429 = vmatprep.subr.bf16.mxu0 %v14345_v3  ;;  %v14405_v59 = vld [vmem:[#allocation11 + $0x1e4] ss:$16 sps:$4 sm:$0xff]   ;;  %v14408_v3 = vld [vmem:[#allocation11 + $0x1ec] ss:$16 sps:$4 sm:$0xff]  }
 0x575   :  { %11757 = vmatprep.subr.bf16.mxu1 %v14348_v1  ;;  %v14126_v1 = vadd.f32 %v15650_v52, %v1796_v61  ;;  %v14420_v52 = vld [vmem:[#allocation11 + $0x22c] ss:$16 sps:$4 sm:$0xff]  }
 0x576   :  { %v14462_v61 = vld [vmem:[#allocation11 + $0x30c] ss:$16 sps:$4 sm:$0xff]  }
 0x577   :  { %11430 = vmatpush1.bf16.msra.mxu0 %v14343_v4  ;;  %v14403_v4 = vld [vmem:[#allocation11 + $0x1e0] ss:$16 sps:$4 sm:$0xff]  }
 0x578   :  { %11758 = vmatpush1.bf16.msra.mxu1 %v14346_v37  ;;  %11431 = vmatprep.subr.bf16.mxu0 %v14351_v7  ;;  %v8293_v37 = vmax.f32 %v14123_v63, 0.0  ;;  %v14406_v7 = vld [vmem:[#allocation11 + $0x1e8] ss:$16 sps:$4 sm:$0xff]  }
 0x579   :  { %11759 = vmatprep.subr.bf16.mxu1 %v14354_v8  ;;  %v14411_v8 = vld [vmem:[#allocation11 + $0x204] ss:$16 sps:$4 sm:$0xff]   ;;  %v14460_v63 = vld [vmem:[#allocation11 + $0x308] ss:$16 sps:$4 sm:$0xff]  }
 0x57b   :  { %11432 = vmatpush1.bf16.msra.mxu0 %v14349_v12  ;;  %v14414_v12 = vld [vmem:[#allocation11 + $0x20c] ss:$16 sps:$4 sm:$0xff]  }
 0x57c   :  { %11760 = vmatpush1.bf16.msra.mxu1 %v14352_v9  ;;  %11433 = vmatprep.subr.bf16.mxu0 %v14357_v18  ;;  %v8296_v9 = vmax.f32 %v14126_v1, 0.0  ;;  %v8309_v18 = vpack.c.bf16 %v8293_v37, %v8293_v37  ;;  %v14466_v1 = vld [vmem:[#allocation11 + $0x328] ss:$16 sps:$4 sm:$0xff]   ;;  %v14474_v37 = vld [vmem:[#allocation11 + $0x34c] ss:$16 sps:$4 sm:$0xff]  }
 0x57d   :  { %11761 = vmatprep.subr.bf16.mxu1 %v14360_v17  ;;  %v14412_v17 = vld [vmem:[#allocation11 + $0x208] ss:$16 sps:$4 sm:$0xff]  }
 0x57f   :  { %11434 = vmatpush1.bf16.msra.mxu0 %v14355_v6  ;;  %v14417_v6 = vld [vmem:[#allocation11 + $0x224] ss:$16 sps:$4 sm:$0xff]  }
 0x580   :  { %11762 = vmatpush1.bf16.msra.mxu1 %v14358_v38  ;;  %11435 = vmatprep.subr.bf16.mxu0 %v14363_v19  ;;  %v8312_v38 = vpack.c.bf16 %v8296_v9, %v8296_v9  ;;  %v14415_v19 = vld [vmem:[#allocation11 + $0x220] ss:$16 sps:$4 sm:$0xff]   ;;  %v14480_v9 = vld [vmem:[#allocation11 + $0x36c] ss:$16 sps:$4 sm:$0xff]  }
 0x581   :  { %11763 = vmatprep.subr.bf16.mxu1 %v14366_v21  ;;  %v14418_v21 = vld [vmem:[#allocation11 + $0x228] ss:$16 sps:$4 sm:$0xff]  }
 0x583   :  { %11436 = vmatpush1.bf16.msra.mxu0 %v14361_v33  ;;  %v14423_v33 = vld [vmem:[#allocation11 + $0x244] ss:$16 sps:$4 sm:$0xff]  }
 0x584   :  { %11764 = vmatpush1.bf16.msra.mxu1 %v14364_v22  ;;  %11437 = vmatprep.subr.bf16.mxu0 %v14369_v26  ;;  %v14426_v22 = vld [vmem:[#allocation11 + $0x24c] ss:$16 sps:$4 sm:$0xff]   ;;  %v14421_v26 = vld [vmem:[#allocation11 + $0x240] ss:$16 sps:$4 sm:$0xff]  }
 0x585   :  { %11765 = vmatprep.subr.bf16.mxu1 %v14372_v13  ;;  %v14424_v13 = vld [vmem:[#allocation11 + $0x248] ss:$16 sps:$4 sm:$0xff]  }
 0x587   :  { %11438 = vmatpush1.bf16.msra.mxu0 %v14367_v23  ;;  %v14429_v23 = vld [vmem:[#allocation11 + $0x264] ss:$16 sps:$4 sm:$0xff]  }
 0x588   :  { %11766 = vmatpush1.bf16.msra.mxu1 %v14370_v53  ;;  %11439 = vmatprep.subr.bf16.mxu0 %v14375_v24  ;;  %v14432_v53 = vld [vmem:[#allocation11 + $0x26c] ss:$16 sps:$4 sm:$0xff]   ;;  %v14427_v24 = vld [vmem:[#allocation11 + $0x260] ss:$16 sps:$4 sm:$0xff]  }
 0x589   :  { %11767 = vmatprep.subr.bf16.mxu1 %v14378_v27  ;;  %v14430_v27 = vld [vmem:[#allocation11 + $0x268] ss:$16 sps:$4 sm:$0xff]  }
 0x58b   :  { %11440 = vmatpush1.bf16.msra.mxu0 %v14373_v28  ;;  %v14435_v28 = vld [vmem:[#allocation11 + $0x284] ss:$16 sps:$4 sm:$0xff]  }
 0x58c   :  { %11768 = vmatpush1.bf16.msra.mxu1 %v14376_v29  ;;  %11441 = vmatprep.subr.bf16.mxu0 %v14381_v32  ;;  %v14438_v29 = vld [vmem:[#allocation11 + $0x28c] ss:$16 sps:$4 sm:$0xff]   ;;  %v14433_v32 = vld [vmem:[#allocation11 + $0x280] ss:$16 sps:$4 sm:$0xff]  }
 0x58d   :  { %11769 = vmatprep.subr.bf16.mxu1 %v14384_v34  ;;  %v14436_v34 = vld [vmem:[#allocation11 + $0x288] ss:$16 sps:$4 sm:$0xff]  }
 0x58f   :  { %11442 = vmatpush1.bf16.msra.mxu0 %v14379_v39  ;;  %v14441_v39 = vld [vmem:[#allocation11 + $0x2a4] ss:$16 sps:$4 sm:$0xff]  }
 0x590   :  { %11770 = vmatpush1.bf16.msra.mxu1 %v14382_v42  ;;  %11443 = vmatprep.subr.bf16.mxu0 %v14387_v15  ;;  %v14444_v42 = vld [vmem:[#allocation11 + $0x2ac] ss:$16 sps:$4 sm:$0xff]   ;;  %v14439_v15 = vld [vmem:[#allocation11 + $0x2a0] ss:$16 sps:$4 sm:$0xff]  }
 0x591   :  { %11771 = vmatprep.subr.bf16.mxu1 %v14390_v50  ;;  %v14442_v50 = vld [vmem:[#allocation11 + $0x2a8] ss:$16 sps:$4 sm:$0xff]  }
 0x593   :  { %11444 = vmatpush1.bf16.msra.mxu0 %v14385_v48  ;;  %v14447_v48 = vld [vmem:[#allocation11 + $0x2c4] ss:$16 sps:$4 sm:$0xff]  }
 0x594   :  { %11772 = vmatpush1.bf16.msra.mxu1 %v14388_v55  ;;  %11445 = vmatprep.subr.bf16.mxu0 %v14393_v54  ;;  %v14450_v55 = vld [vmem:[#allocation11 + $0x2cc] ss:$16 sps:$4 sm:$0xff]   ;;  %v14445_v54 = vld [vmem:[#allocation11 + $0x2c0] ss:$16 sps:$4 sm:$0xff]  }
 0x595   :  { %11773 = vmatprep.subr.bf16.mxu1 %v14396_v56  ;;  %v14448_v56 = vld [vmem:[#allocation11 + $0x2c8] ss:$16 sps:$4 sm:$0xff]  }
 0x597   :  { %11446 = vmatpush1.bf16.msra.mxu0 %v14391_v40  ;;  %v14453_v40 = vld [vmem:[#allocation11 + $0x2e4] ss:$16 sps:$4 sm:$0xff]  }
 0x598   :  { %11774 = vmatpush1.bf16.msra.mxu1 %v14394_v58  ;;  %11447 = vmatprep.subr.bf16.mxu0 %v14399_v60  ;;  %v14451_v58 = vld [vmem:[#allocation11 + $0x2e0] ss:$16 sps:$4 sm:$0xff]   ;;  %v14454_v60 = vld [vmem:[#allocation11 + $0x2e8] ss:$16 sps:$4 sm:$0xff]  }
 0x599   :  { %11775 = vmatprep.subr.bf16.mxu1 %v14402_v51  ;;  %v14459_v51 = vld [vmem:[#allocation11 + $0x304] ss:$16 sps:$4 sm:$0xff]  }
 0x59b   :  { %11448 = vmatpush1.bf16.msra.mxu0 %v14397_v62  ;;  %v14457_v62 = vld [vmem:[#allocation11 + $0x300] ss:$16 sps:$4 sm:$0xff]  }
 0x59c   :  { %11776 = vmatpush1.bf16.msra.mxu1 %v14400_v2  ;;  %11449 = vmatprep.subr.bf16.mxu0 %v14405_v59  ;;  %v14465_v2 = vld [vmem:[#allocation11 + $0x324] ss:$16 sps:$4 sm:$0xff]   ;;  %v14468_v59 = vld [vmem:[#allocation11 + $0x32c] ss:$16 sps:$4 sm:$0xff]  }
 0x59d   :  { %11777 = vmatprep.subr.bf16.mxu1 %v14408_v3  ;;  %v14463_v3 = vld [vmem:[#allocation11 + $0x320] ss:$16 sps:$4 sm:$0xff]  }
 0x59f   :  { %11450 = vmatpush1.bf16.msra.mxu0 %v14403_v4  ;;  %v14471_v4 = vld [vmem:[#allocation11 + $0x344] ss:$16 sps:$4 sm:$0xff]  }
 0x5a0   :  { %11778 = vmatpush1.bf16.msra.mxu1 %v14406_v7  ;;  %11460 = vmatprep.subr.bf16.mxu0 %v14411_v8  ;;  %v14469_v7 = vld [vmem:[#allocation11 + $0x340] ss:$16 sps:$4 sm:$0xff]   ;;  %v14472_v8 = vld [vmem:[#allocation11 + $0x348] ss:$16 sps:$4 sm:$0xff]  }
 0x5a1   :  { %11788 = vmatprep.subr.bf16.mxu1 %v14414_v12  ;;  %v14477_v12 = vld [vmem:[#allocation11 + $0x364] ss:$16 sps:$4 sm:$0xff]  }
 0x5a2   :  { %11452 = vmatmul.mubr.bf16.vlgmr.msra.gmra.mrb[24].mxu0 %v8309_v18 }
 0x5a3   :  { %11780 = vmatmul.mubr.bf16.vlgmr.msra.gmra.mrb[24].mxu1 %v8309_v18  ;;  %11461 = vmatpush1.bf16.msra.mxu0 %v14409_v46  ;;  %v14475_v46 = vld [vmem:[#allocation11 + $0x360] ss:$16 sps:$4 sm:$0xff]   ;;  %v14478_v18 = vld [vmem:[#allocation11 + $0x368] ss:$16 sps:$4 sm:$0xff]  }
 0x5a4   :  { %11492 = vmatprep.mubr.bf16.mxu0 %v8312_v38  ;;  %11789 = vmatpush1.bf16.msra.mxu1 %v14412_v17  ;;  %v14483_v17 = vld [vmem:[#allocation11 + $0x384] ss:$16 sps:$4 sm:$0xff]  }
 0x5a5   :  { %11820 = vmatprep.mubr.bf16.mxu1 %v8312_v38  ;;  %11462 = vmatprep.subr.bf16.mxu0 %v14417_v6  ;;  %v14486_v6 = vld [vmem:[#allocation11 + $0x38c] ss:$16 sps:$4 sm:$0xff]   ;;  %v14481_v38 = vld [vmem:[#allocation11 + $0x380] ss:$16 sps:$4 sm:$0xff]  }
 0x5a6   :  { %11790 = vmatprep.subr.bf16.mxu1 %v14420_v52  ;;  %v14484_v52 = vld [vmem:[#allocation11 + $0x388] ss:$16 sps:$4 sm:$0xff]  }
 0x5a7   :  { %11463 = vmatpush1.bf16.msra.mxu0 %v14415_v19  ;;  %v14489_v19 = vld [vmem:[#allocation11 + $0x3a4] ss:$16 sps:$4 sm:$0xff]  }
 0x5a8   :  { %11791 = vmatpush1.bf16.msra.mxu1 %v14418_v21  ;;  %11464 = vmatprep.subr.bf16.mxu0 %v14423_v33  ;;  %v14492_v21 = vld [vmem:[#allocation11 + $0x3ac] ss:$16 sps:$4 sm:$0xff]   ;;  %v14487_v33 = vld [vmem:[#allocation11 + $0x3a0] ss:$16 sps:$4 sm:$0xff]  }
 0x5a9   :  { %11792 = vmatprep.subr.bf16.mxu1 %v14426_v22  ;;  %v1792_v22 = vrot.slane %v15700_v10, %v15579_v30 }
 0x5ab   :  { %11465 = vmatpush1.bf16.msra.mxu0 %v14421_v26  ;;  %v14490_v26 = vld [vmem:[#allocation11 + $0x3a8] ss:$16 sps:$4 sm:$0xff]  }
 0x5ac   :  { %11793 = vmatpush1.bf16.msra.mxu1 %v14424_v13  ;;  %11466 = vmatprep.subr.bf16.mxu0 %v14429_v23  ;;  %v14495_v13 = vld [vmem:[#allocation11 + $0x3c4] ss:$16 sps:$4 sm:$0xff]   ;;  %v14498_v23 = vld [vmem:[#allocation11 + $0x3cc] ss:$16 sps:$4 sm:$0xff]  }
 0x5ad   :  { %11794 = vmatprep.subr.bf16.mxu1 %v14432_v53  ;;  %v1804_v53 = vrot.slane %v15700_v10, %v15582_v43 }
 0x5af   :  { %11467 = vmatpush1.bf16.msra.mxu0 %v14427_v24  ;;  %v14493_v24 = vld [vmem:[#allocation11 + $0x3c0] ss:$16 sps:$4 sm:$0xff]  }
 0x5b0   :  { %11795 = vmatpush1.bf16.msra.mxu1 %v14430_v27  ;;  %11468 = vmatprep.subr.bf16.mxu0 %v14435_v28  ;;  %v14125_v27 = vadd.f32 %v15646_v47, %v1792_v22  ;;  %v14496_v28 = vld [vmem:[#allocation11 + $0x3c8] ss:$16 sps:$4 sm:$0xff]   ;;  %v14505_v47 = vld [vmem:[#allocation11 + $0x400] ss:$16 sps:$4 sm:$0xff]  }
 0x5b1   :  { %11796 = vmatprep.subr.bf16.mxu1 %v14438_v29  ;;  %v14501_v29 = vld [vmem:[#allocation11 + $0x3e4] ss:$16 sps:$4 sm:$0xff]   ;;  %v14550_v22 = vld [vmem:[#allocation11 + $0x4e8] ss:$16 sps:$4 sm:$0xff]  }
 0x5b3   :  { %11469 = vmatpush1.bf16.msra.mxu0 %v14433_v32  ;;  %v14504_v32 = vld [vmem:[#allocation11 + $0x3ec] ss:$16 sps:$4 sm:$0xff]  }
 0x5b4   :  { %11797 = vmatpush1.bf16.msra.mxu1 %v14436_v34  ;;  %11470 = vmatprep.subr.bf16.mxu0 %v14441_v39  ;;  %v14128_v34 = vadd.f32 %v15672_v41, %v1804_v53  ;;  %v14499_v39 = vld [vmem:[#allocation11 + $0x3e0] ss:$16 sps:$4 sm:$0xff]   ;;  %v14516_v41 = vld [vmem:[#allocation11 + $0x42c] ss:$16 sps:$4 sm:$0xff]   ;;  %v14556_v53 = vld [vmem:[#allocation11 + $0x508] ss:$16 sps:$4 sm:$0xff]  }
 0x5b5   :  { %11798 = vmatprep.subr.bf16.mxu1 %v14444_v42  ;;  %v8295_v42 = vmax.f32 %v14125_v27, 0.0  ;;  %v14564_v27 = vld [vmem:[#allocation11 + $0x52c] ss:$16 sps:$4 sm:$0xff]  }
 0x5b7   :  { %11471 = vmatpush1.bf16.msra.mxu0 %v14439_v15  ;;  %v14502_v15 = vld [vmem:[#allocation11 + $0x3e8] ss:$16 sps:$4 sm:$0xff]  }
 0x5b8   :  { %11799 = vmatpush1.bf16.msra.mxu1 %v14442_v50  ;;  %11472 = vmatprep.subr.bf16.mxu0 %v14447_v48  ;;  %v14507_v50 = vld [vmem:[#allocation11 + $0x404] ss:$16 sps:$4 sm:$0xff]   ;;  %v14510_v48 = vld [vmem:[#allocation11 + $0x40c] ss:$16 sps:$4 sm:$0xff]  }
 0x5b9   :  { %11800 = vmatprep.subr.bf16.mxu1 %v14450_v55  ;;  %v8298_v55 = vmax.f32 %v14128_v34, 0.0  ;;  %v14570_v34 = vld [vmem:[#allocation11 + $0x54c] ss:$16 sps:$4 sm:$0xff]  }
 0x5bb   :  { %11473 = vmatpush1.bf16.msra.mxu0 %v14445_v54  ;;  %v8311_v54 = vpack.c.bf16 %v8295_v42, %v8295_v42  ;;  %v14568_v42 = vld [vmem:[#allocation11 + $0x548] ss:$16 sps:$4 sm:$0xff]  }
 0x5bc   :  { %11801 = vmatpush1.bf16.msra.mxu1 %v14448_v56  ;;  %11474 = vmatprep.subr.bf16.mxu0 %v14453_v40  ;;  %v14508_v56 = vld [vmem:[#allocation11 + $0x408] ss:$16 sps:$4 sm:$0xff]   ;;  %v14513_v40 = vld [vmem:[#allocation11 + $0x424] ss:$16 sps:$4 sm:$0xff]  }
 0x5bd   :  { %11802 = vmatprep.subr.bf16.mxu1 %v14456_v57  ;;  %v8314_v57 = vpack.c.bf16 %v8298_v55, %v8298_v55  ;;  %v14574_v55 = vld [vmem:[#allocation11 + $0x568] ss:$16 sps:$4 sm:$0xff]  }
 0x5bf   :  { %11475 = vmatpush1.bf16.msra.mxu0 %v14451_v58  ;;  %v14511_v58 = vld [vmem:[#allocation11 + $0x420] ss:$16 sps:$4 sm:$0xff]  }
 0x5c0   :  { %11803 = vmatpush1.bf16.msra.mxu1 %v14454_v60  ;;  %11476 = vmatprep.subr.bf16.mxu0 %v14459_v51  ;;  %v14514_v60 = vld [vmem:[#allocation11 + $0x428] ss:$16 sps:$4 sm:$0xff]   ;;  %v14519_v51 = vld [vmem:[#allocation11 + $0x444] ss:$16 sps:$4 sm:$0xff]  }
 0x5c1   :  { %11804 = vmatprep.subr.bf16.mxu1 %v14462_v61  ;;  %v14522_v61 = vld [vmem:[#allocation11 + $0x44c] ss:$16 sps:$4 sm:$0xff]  }
 0x5c3   :  { %11477 = vmatpush1.bf16.msra.mxu0 %v14457_v62  ;;  %v14517_v62 = vld [vmem:[#allocation11 + $0x440] ss:$16 sps:$4 sm:$0xff]  }
 0x5c4   :  { %11805 = vmatpush1.bf16.msra.mxu1 %v14460_v63  ;;  %11478 = vmatprep.subr.bf16.mxu0 %v14465_v2  ;;  %v14520_v63 = vld [vmem:[#allocation11 + $0x448] ss:$16 sps:$4 sm:$0xff]   ;;  %v14525_v2 = vld [vmem:[#allocation11 + $0x464] ss:$16 sps:$4 sm:$0xff]  }
 0x5c5   :  { %11806 = vmatprep.subr.bf16.mxu1 %v14468_v59  ;;  %v14528_v59 = vld [vmem:[#allocation11 + $0x46c] ss:$16 sps:$4 sm:$0xff]  }
 0x5c7   :  { %11479 = vmatpush1.bf16.msra.mxu0 %v14463_v3  ;;  %v14523_v3 = vld [vmem:[#allocation11 + $0x460] ss:$16 sps:$4 sm:$0xff]  }
 0x5c8   :  { %11807 = vmatpush1.bf16.msra.mxu1 %v14466_v1  ;;  %11480 = vmatprep.subr.bf16.mxu0 %v14471_v4  ;;  %v14526_v1 = vld [vmem:[#allocation11 + $0x468] ss:$16 sps:$4 sm:$0xff]   ;;  %v14531_v4 = vld [vmem:[#allocation11 + $0x484] ss:$16 sps:$4 sm:$0xff]  }
 0x5c9   :  { %11808 = vmatprep.subr.bf16.mxu1 %v14474_v37  ;;  %v14534_v37 = vld [vmem:[#allocation11 + $0x48c] ss:$16 sps:$4 sm:$0xff]  }
 0x5cb   :  { %11481 = vmatpush1.bf16.msra.mxu0 %v14469_v7  ;;  %v14529_v7 = vld [vmem:[#allocation11 + $0x480] ss:$16 sps:$4 sm:$0xff]  }
 0x5cc   :  { %11809 = vmatpush1.bf16.msra.mxu1 %v14472_v8  ;;  %11482 = vmatprep.subr.bf16.mxu0 %v14477_v12  ;;  %v14532_v8 = vld [vmem:[#allocation11 + $0x488] ss:$16 sps:$4 sm:$0xff]   ;;  %v14537_v12 = vld [vmem:[#allocation11 + $0x4a4] ss:$16 sps:$4 sm:$0xff]  }
 0x5cd   :  { %11810 = vmatprep.subr.bf16.mxu1 %v14480_v9  ;;  %v14540_v9 = vld [vmem:[#allocation11 + $0x4ac] ss:$16 sps:$4 sm:$0xff]  }
 0x5cf   :  { %11483 = vmatpush1.bf16.msra.mxu0 %v14475_v46  ;;  %v14535_v46 = vld [vmem:[#allocation11 + $0x4a0] ss:$16 sps:$4 sm:$0xff]  }
 0x5d0   :  { %11811 = vmatpush1.bf16.msra.mxu1 %v14478_v18  ;;  %11484 = vmatprep.subr.bf16.mxu0 %v14483_v17  ;;  %v14538_v18 = vld [vmem:[#allocation11 + $0x4a8] ss:$16 sps:$4 sm:$0xff]   ;;  %v14543_v17 = vld [vmem:[#allocation11 + $0x4c4] ss:$16 sps:$4 sm:$0xff]  }
 0x5d1   :  { %11812 = vmatprep.subr.bf16.mxu1 %v14486_v6  ;;  %v14546_v6 = vld [vmem:[#allocation11 + $0x4cc] ss:$16 sps:$4 sm:$0xff]  }
 0x5d3   :  { %11485 = vmatpush1.bf16.msra.mxu0 %v14481_v38  ;;  %v14541_v38 = vld [vmem:[#allocation11 + $0x4c0] ss:$16 sps:$4 sm:$0xff]  }
 0x5d4   :  { %11813 = vmatpush1.bf16.msra.mxu1 %v14484_v52  ;;  %11486 = vmatprep.subr.bf16.mxu0 %v14489_v19  ;;  %v14544_v52 = vld [vmem:[#allocation11 + $0x4c8] ss:$16 sps:$4 sm:$0xff]   ;;  %v14549_v19 = vld [vmem:[#allocation11 + $0x4e4] ss:$16 sps:$4 sm:$0xff]  }
 0x5d5   :  { %11814 = vmatprep.subr.bf16.mxu1 %v14492_v21  ;;  %v14552_v21 = vld [vmem:[#allocation11 + $0x4ec] ss:$16 sps:$4 sm:$0xff]  }
 0x5d7   :  { %11487 = vmatpush1.bf16.msra.mxu0 %v14487_v33  ;;  %v14547_v33 = vld [vmem:[#allocation11 + $0x4e0] ss:$16 sps:$4 sm:$0xff]  }
 0x5d8   :  { %11815 = vmatpush1.bf16.msra.mxu1 %v14490_v26  ;;  %11488 = vmatprep.subr.bf16.mxu0 %v14495_v13  ;;  %v14555_v26 = vld [vmem:[#allocation11 + $0x504] ss:$16 sps:$4 sm:$0xff]   ;;  %v14558_v13 = vld [vmem:[#allocation11 + $0x50c] ss:$16 sps:$4 sm:$0xff]  }
 0x5d9   :  { %11816 = vmatprep.subr.bf16.mxu1 %v14498_v23  ;;  %v14553_v23 = vld [vmem:[#allocation11 + $0x500] ss:$16 sps:$4 sm:$0xff]  }
 0x5db   :  { %11489 = vmatpush1.bf16.msra.mxu0 %v14493_v24  ;;  %v14561_v24 = vld [vmem:[#allocation11 + $0x524] ss:$16 sps:$4 sm:$0xff]  }
 0x5dc   :  { %11817 = vmatpush1.bf16.msra.mxu1 %v14496_v28  ;;  %11490 = vmatprep.subr.bf16.mxu0 %v14501_v29  ;;  %v14559_v28 = vld [vmem:[#allocation11 + $0x520] ss:$16 sps:$4 sm:$0xff]   ;;  %v14562_v29 = vld [vmem:[#allocation11 + $0x528] ss:$16 sps:$4 sm:$0xff]  }
 0x5dd   :  { %11818 = vmatprep.subr.bf16.mxu1 %v14504_v32  ;;  %v14567_v32 = vld [vmem:[#allocation11 + $0x544] ss:$16 sps:$4 sm:$0xff]  }
 0x5df   :  { %11491 = vmatpush1.bf16.msra.mxu0 %v14499_v39  ;;  %v14565_v39 = vld [vmem:[#allocation11 + $0x540] ss:$16 sps:$4 sm:$0xff]  }
 0x5e0   :  { %11819 = vmatpush1.bf16.msra.mxu1 %v14502_v15  ;;  %11501 = vmatprep.subr.bf16.mxu0 %v14507_v50  ;;  %v14573_v15 = vld [vmem:[#allocation11 + $0x564] ss:$16 sps:$4 sm:$0xff]   ;;  %v14576_v50 = vld [vmem:[#allocation11 + $0x56c] ss:$16 sps:$4 sm:$0xff]  }
 0x5e1   :  { %11829 = vmatprep.subr.bf16.mxu1 %v14510_v48  ;;  %v14571_v48 = vld [vmem:[#allocation11 + $0x560] ss:$16 sps:$4 sm:$0xff]  }
 0x5e2   :  { %11493 = vmatmul.mubr.bf16.vlgmr.msra.gmra.mrb[24].mxu0 %v8311_v54 }
 0x5e3   :  { %11821 = vmatmul.mubr.bf16.vlgmr.msra.gmra.mrb[24].mxu1 %v8311_v54  ;;  %11502 = vmatpush1.bf16.msra.mxu0 %v14505_v47  ;;  %v14579_v47 = vld [vmem:[#allocation11 + $0x584] ss:$16 sps:$4 sm:$0xff]   ;;  %v14582_v54 = vld [vmem:[#allocation11 + $0x58c] ss:$16 sps:$4 sm:$0xff]  }
 0x5e4   :  { %11533 = vmatprep.mubr.bf16.mxu0 %v8314_v57  ;;  %11830 = vmatpush1.bf16.msra.mxu1 %v14508_v56  ;;  %v14577_v56 = vld [vmem:[#allocation11 + $0x580] ss:$16 sps:$4 sm:$0xff]  }
 0x5e5   :  { %11861 = vmatprep.mubr.bf16.mxu1 %v8314_v57  ;;  %11503 = vmatprep.subr.bf16.mxu0 %v14513_v40  ;;  %v14580_v40 = vld [vmem:[#allocation11 + $0x588] ss:$16 sps:$4 sm:$0xff]   ;;  %v14585_v57 = vld [vmem:[#allocation11 + $0x5a4] ss:$16 sps:$4 sm:$0xff]  }
 0x5e6   :  { %11831 = vmatprep.subr.bf16.mxu1 %v14516_v41  ;;  %v14588_v41 = vld [vmem:[#allocation11 + $0x5ac] ss:$16 sps:$4 sm:$0xff]  }
 0x5e7   :  { %11504 = vmatpush1.bf16.msra.mxu0 %v14511_v58  ;;  %v14583_v58 = vld [vmem:[#allocation11 + $0x5a0] ss:$16 sps:$4 sm:$0xff]  }
 0x5e8   :  { %11832 = vmatpush1.bf16.msra.mxu1 %v14514_v60  ;;  %11505 = vmatprep.subr.bf16.mxu0 %v14519_v51  ;;  %v1800_v60 = vrot.slane %v15700_v10, %v15599_v11  ;;  %v14586_v51 = vld [vmem:[#allocation11 + $0x5a8] ss:$16 sps:$4 sm:$0xff]  }
 0x5e9   :  { %11833 = vmatprep.subr.bf16.mxu1 %v14522_v61  ;;  %v14591_v61 = vld [vmem:[#allocation11 + $0x5c4] ss:$16 sps:$4 sm:$0xff]  }
 0x5eb   :  { %11506 = vmatpush1.bf16.msra.mxu0 %v14517_v62  ;;  %v14594_v62 = vld [vmem:[#allocation11 + $0x5cc] ss:$16 sps:$4 sm:$0xff]  }
 0x5ec   :  { %11834 = vmatpush1.bf16.msra.mxu1 %v14520_v63  ;;  %11507 = vmatprep.subr.bf16.mxu0 %v14525_v2  ;;  %v1812_v63 = vrot.slane %v15700_v10, %v15602_v25  ;;  %v14589_v2 = vld [vmem:[#allocation11 + $0x5c0] ss:$16 sps:$4 sm:$0xff]   ;;  %v14606_v10 = vld [vmem:[#allocation11 + $0x60c] ss:$16 sps:$4 sm:$0xff]  }
 0x5ed   :  { %11835 = vmatprep.subr.bf16.mxu1 %v14528_v59  ;;  %v14127_v59 = vadd.f32 %v15668_v31, %v1800_v60  ;;  %v14601_v31 = vld [vmem:[#allocation11 + $0x600] ss:$16 sps:$4 sm:$0xff]   ;;  %v14640_v60 = vld [vmem:[#allocation11 + $0x6c8] ss:$16 sps:$4 sm:$0xff]  }
 0x5ef   :  { %11508 = vmatpush1.bf16.msra.mxu0 %v14523_v3  ;;  %v14592_v3 = vld [vmem:[#allocation11 + $0x5c8] ss:$16 sps:$4 sm:$0xff]  }
 0x5f0   :  { %11836 = vmatpush1.bf16.msra.mxu1 %v14526_v1  ;;  %11509 = vmatprep.subr.bf16.mxu0 %v14531_v4  ;;  %v14597_v1 = vld [vmem:[#allocation11 + $0x5e4] ss:$16 sps:$4 sm:$0xff]   ;;  %v14600_v4 = vld [vmem:[#allocation11 + $0x5ec] ss:$16 sps:$4 sm:$0xff]  }
 0x5f1   :  { %11837 = vmatprep.subr.bf16.mxu1 %v14534_v37  ;;  %v14130_v37 = vadd.f32 %v15674_v0, %v1812_v63  ;;  %v14612_v0 = vld [vmem:[#allocation11 + $0x62c] ss:$16 sps:$4 sm:$0xff]   ;;  %v14643_v63 = vld [vmem:[#allocation11 + $0x6e0] ss:$16 sps:$4 sm:$0xff]  }
 0x5f3   :  { %11510 = vmatpush1.bf16.msra.mxu0 %v14529_v7  ;;  %v14595_v7 = vld [vmem:[#allocation11 + $0x5e0] ss:$16 sps:$4 sm:$0xff]  }
 0x5f4   :  { %11838 = vmatpush1.bf16.msra.mxu1 %v14532_v8  ;;  %11511 = vmatprep.subr.bf16.mxu0 %v14537_v12  ;;  %v8297_v8 = vmax.f32 %v14127_v59, 0.0  ;;  %v14598_v12 = vld [vmem:[#allocation11 + $0x5e8] ss:$16 sps:$4 sm:$0xff]   ;;  %v14651_v59 = vld [vmem:[#allocation11 + $0x704] ss:$16 sps:$4 sm:$0xff]  }
 0x5f5   :  { %11839 = vmatprep.subr.bf16.mxu1 %v14540_v9  ;;  %v14603_v9 = vld [vmem:[#allocation11 + $0x604] ss:$16 sps:$4 sm:$0xff]  }
 0x5f7   :  { %11512 = vmatpush1.bf16.msra.mxu0 %v14535_v46  ;;  %v8300_v46 = vmax.f32 %v14130_v37, 0.0  ;;  %v14657_v37 = vld [vmem:[#allocation11 + $0x724] ss:$16 sps:$4 sm:$0xff]  }
 0x5f8   :  { %11840 = vmatpush1.bf16.msra.mxu1 %v14538_v18  ;;  %11513 = vmatprep.subr.bf16.mxu0 %v14543_v17  ;;  %v8313_v18 = vpack.c.bf16 %v8297_v8, %v8297_v8  ;;  %v14604_v17 = vld [vmem:[#allocation11 + $0x608] ss:$16 sps:$4 sm:$0xff]   ;;  %v14655_v8 = vld [vmem:[#allocation11 + $0x720] ss:$16 sps:$4 sm:$0xff]  }
 0x5f9   :  { %11841 = vmatprep.subr.bf16.mxu1 %v14546_v6  ;;  %v14609_v6 = vld [vmem:[#allocation11 + $0x624] ss:$16 sps:$4 sm:$0xff]  }
 0x5fb   :  { %11514 = vmatpush1.bf16.msra.mxu0 %v14541_v38  ;;  %v8316_v38 = vpack.c.bf16 %v8300_v46, %v8300_v46  ;;  %v14661_v46 = vld [vmem:[#allocation11 + $0x740] ss:$16 sps:$4 sm:$0xff]  }
 0x5fc   :  { %11842 = vmatpush1.bf16.msra.mxu1 %v14544_v52  ;;  %11515 = vmatprep.subr.bf16.mxu0 %v14549_v19  ;;  %v14607_v52 = vld [vmem:[#allocation11 + $0x620] ss:$16 sps:$4 sm:$0xff]   ;;  %v14610_v19 = vld [vmem:[#allocation11 + $0x628] ss:$16 sps:$4 sm:$0xff]  }
 0x5fd   :  { %11843 = vmatprep.subr.bf16.mxu1 %v14552_v21  ;;  %v14615_v21 = vld [vmem:[#allocation11 + $0x644] ss:$16 sps:$4 sm:$0xff]  }
 0x5ff   :  { %11516 = vmatpush1.bf16.msra.mxu0 %v14547_v33  ;;  %v14618_v33 = vld [vmem:[#allocation11 + $0x64c] ss:$16 sps:$4 sm:$0xff]  }
 0x600   :  { %11844 = vmatpush1.bf16.msra.mxu1 %v14550_v22  ;;  %11517 = vmatprep.subr.bf16.mxu0 %v14555_v26  ;;  %v14613_v22 = vld [vmem:[#allocation11 + $0x640] ss:$16 sps:$4 sm:$0xff]   ;;  %v14616_v26 = vld [vmem:[#allocation11 + $0x648] ss:$16 sps:$4 sm:$0xff]  }
 0x601   :  { %11845 = vmatprep.subr.bf16.mxu1 %v14558_v13  ;;  %v14621_v13 = vld [vmem:[#allocation11 + $0x664] ss:$16 sps:$4 sm:$0xff]  }
 0x603   :  { %11518 = vmatpush1.bf16.msra.mxu0 %v14553_v23  ;;  %v14624_v23 = vld [vmem:[#allocation11 + $0x66c] ss:$16 sps:$4 sm:$0xff]  }
 0x604   :  { %11846 = vmatpush1.bf16.msra.mxu1 %v14556_v53  ;;  %11519 = vmatprep.subr.bf16.mxu0 %v14561_v24  ;;  %v14619_v53 = vld [vmem:[#allocation11 + $0x660] ss:$16 sps:$4 sm:$0xff]   ;;  %v14622_v24 = vld [vmem:[#allocation11 + $0x668] ss:$16 sps:$4 sm:$0xff]  }
 0x605   :  { %11847 = vmatprep.subr.bf16.mxu1 %v14564_v27  ;;  %v14627_v27 = vld [vmem:[#allocation11 + $0x684] ss:$16 sps:$4 sm:$0xff]  }
 0x607   :  { %11520 = vmatpush1.bf16.msra.mxu0 %v14559_v28  ;;  %v14630_v28 = vld [vmem:[#allocation11 + $0x68c] ss:$16 sps:$4 sm:$0xff]  }
 0x608   :  { %11848 = vmatpush1.bf16.msra.mxu1 %v14562_v29  ;;  %11521 = vmatprep.subr.bf16.mxu0 %v14567_v32  ;;  %v14625_v29 = vld [vmem:[#allocation11 + $0x680] ss:$16 sps:$4 sm:$0xff]   ;;  %v14628_v32 = vld [vmem:[#allocation11 + $0x688] ss:$16 sps:$4 sm:$0xff]  }
 0x609   :  { %11849 = vmatprep.subr.bf16.mxu1 %v14570_v34  ;;  %v14633_v34 = vld [vmem:[#allocation11 + $0x6a4] ss:$16 sps:$4 sm:$0xff]  }
 0x60b   :  { %11522 = vmatpush1.bf16.msra.mxu0 %v14565_v39  ;;  %v14636_v39 = vld [vmem:[#allocation11 + $0x6ac] ss:$16 sps:$4 sm:$0xff]  }
 0x60c   :  { %11850 = vmatpush1.bf16.msra.mxu1 %v14568_v42  ;;  %11523 = vmatprep.subr.bf16.mxu0 %v14573_v15  ;;  %v14631_v42 = vld [vmem:[#allocation11 + $0x6a0] ss:$16 sps:$4 sm:$0xff]   ;;  %v14634_v15 = vld [vmem:[#allocation11 + $0x6a8] ss:$16 sps:$4 sm:$0xff]  }
 0x60d   :  { %11851 = vmatprep.subr.bf16.mxu1 %v14576_v50  ;;  %v14639_v50 = vld [vmem:[#allocation11 + $0x6c4] ss:$16 sps:$4 sm:$0xff]  }
 0x60f   :  { %11524 = vmatpush1.bf16.msra.mxu0 %v14571_v48 }
 0x610   :  { %11852 = vmatpush1.bf16.msra.mxu1 %v14574_v55  ;;  %11525 = vmatprep.subr.bf16.mxu0 %v14579_v47  ;;  %v14642_v55 = vld [vmem:[#allocation11 + $0x6cc] ss:$16 sps:$4 sm:$0xff]  }
 0x611   :  { %11853 = vmatprep.subr.bf16.mxu1 %v14582_v54 }
 0x613   :  { %11526 = vmatpush1.bf16.msra.mxu0 %v14577_v56 }
 0x614   :  { %11854 = vmatpush1.bf16.msra.mxu1 %v14580_v40  ;;  %11527 = vmatprep.subr.bf16.mxu0 %v14585_v57  ;;  %v14637_v57 = vld [vmem:[#allocation11 + $0x6c0] ss:$16 sps:$4 sm:$0xff]  }
 0x615   :  { %11855 = vmatprep.subr.bf16.mxu1 %v14588_v41 }
 0x617   :  { %11528 = vmatpush1.bf16.msra.mxu0 %v14583_v58 }
 0x618   :  { %11856 = vmatpush1.bf16.msra.mxu1 %v14586_v51  ;;  %11529 = vmatprep.subr.bf16.mxu0 %v14591_v61  ;;  %v14645_v51 = vld [vmem:[#allocation11 + $0x6e4] ss:$16 sps:$4 sm:$0xff]  }
 0x619   :  { %11857 = vmatprep.subr.bf16.mxu1 %v14594_v62  ;;  %v14648_v62 = vld [vmem:[#allocation11 + $0x6ec] ss:$16 sps:$4 sm:$0xff]  }
 0x61b   :  { %11530 = vmatpush1.bf16.msra.mxu0 %v14589_v2  ;;  %v14646_v2 = vld [vmem:[#allocation11 + $0x6e8] ss:$16 sps:$4 sm:$0xff]  }
 0x61c   :  { %11858 = vmatpush1.bf16.msra.mxu1 %v14592_v3  ;;  %11531 = vmatprep.subr.bf16.mxu0 %v14597_v1  ;;  %v14654_v3 = vld [vmem:[#allocation11 + $0x70c] ss:$16 sps:$4 sm:$0xff]   ;;  %v14649_v1 = vld [vmem:[#allocation11 + $0x700] ss:$16 sps:$4 sm:$0xff]  }
 0x61d   :  { %11859 = vmatprep.subr.bf16.mxu1 %v14600_v4  ;;  %v14652_v4 = vld [vmem:[#allocation11 + $0x708] ss:$16 sps:$4 sm:$0xff]  }
 0x61f   :  { %11532 = vmatpush1.bf16.msra.mxu0 %v14595_v7  ;;  %v14660_v7 = vld [vmem:[#allocation11 + $0x72c] ss:$16 sps:$4 sm:$0xff]  }
 0x620   :  { %11860 = vmatpush1.bf16.msra.mxu1 %v14598_v12  ;;  %11542 = vmatprep.subr.bf16.mxu0 %v14603_v9  ;;  %v14658_v12 = vld [vmem:[#allocation11 + $0x728] ss:$16 sps:$4 sm:$0xff]   ;;  %v14663_v9 = vld [vmem:[#allocation11 + $0x744] ss:$16 sps:$4 sm:$0xff]  }
 0x621   :  { %11870 = vmatprep.subr.bf16.mxu1 %v14606_v10  ;;  %v14666_v10 = vld [vmem:[#allocation11 + $0x74c] ss:$16 sps:$4 sm:$0xff]  }
 0x622   :  { %11534 = vmatmul.mubr.bf16.vlgmr.msra.gmra.mrb[24].mxu0 %v8313_v18 }
 0x623   :  { %11862 = vmatmul.mubr.bf16.vlgmr.msra.gmra.mrb[24].mxu1 %v8313_v18  ;;  %11543 = vmatpush1.bf16.msra.mxu0 %v14601_v31  ;;  %v14664_v31 = vld [vmem:[#allocation11 + $0x748] ss:$16 sps:$4 sm:$0xff]   ;;  %v14669_v18 = vld [vmem:[#allocation11 + $0x764] ss:$16 sps:$4 sm:$0xff]  }
 0x624   :  { %11574 = vmatprep.mubr.bf16.mxu0 %v8316_v38  ;;  %11871 = vmatpush1.bf16.msra.mxu1 %v14604_v17  ;;  %v14672_v17 = vld [vmem:[#allocation11 + $0x76c] ss:$16 sps:$4 sm:$0xff]  }
 0x625   :  { %11902 = vmatprep.mubr.bf16.mxu1 %v8316_v38  ;;  %11544 = vmatprep.subr.bf16.mxu0 %v14609_v6  ;;  %v14667_v6 = vld [vmem:[#allocation11 + $0x760] ss:$16 sps:$4 sm:$0xff]   ;;  %v14670_v38 = vld [vmem:[#allocation11 + $0x768] ss:$16 sps:$4 sm:$0xff]  }
 0x626   :  { %11872 = vmatprep.subr.bf16.mxu1 %v14612_v0  ;;  %v14675_v0 = vld [vmem:[#allocation11 + $0x784] ss:$16 sps:$4 sm:$0xff]  }
 0x627   :  { %11545 = vmatpush1.bf16.msra.mxu0 %v14607_v52  ;;  %v14678_v52 = vld [vmem:[#allocation11 + $0x78c] ss:$16 sps:$4 sm:$0xff]  }
 0x628   :  { %11873 = vmatpush1.bf16.msra.mxu1 %v14610_v19  ;;  %11546 = vmatprep.subr.bf16.mxu0 %v14615_v21  ;;  %v14673_v19 = vld [vmem:[#allocation11 + $0x780] ss:$16 sps:$4 sm:$0xff]   ;;  %v14676_v21 = vld [vmem:[#allocation11 + $0x788] ss:$16 sps:$4 sm:$0xff]  }
 0x629   :  { %11874 = vmatprep.subr.bf16.mxu1 %v14618_v33  ;;  %v14681_v33 = vld [vmem:[#allocation11 + $0x7a4] ss:$16 sps:$4 sm:$0xff]  }
 0x62b   :  { %11547 = vmatpush1.bf16.msra.mxu0 %v14613_v22  ;;  %v14684_v22 = vld [vmem:[#allocation11 + $0x7ac] ss:$16 sps:$4 sm:$0xff]  }
 0x62c   :  { %11875 = vmatpush1.bf16.msra.mxu1 %v14616_v26  ;;  %11548 = vmatprep.subr.bf16.mxu0 %v14621_v13  ;;  %v15733_v26 = vld [vmem:[#allocation10 + $0x8] sm:$0xff]  ;;  %v14679_v13 = vld [vmem:[#allocation11 + $0x7a0] ss:$16 sps:$4 sm:$0xff]  }
 0x62d   :  { %11876 = vmatprep.subr.bf16.mxu1 %v14624_v23  ;;  %v15114_v23 = vld [vmem:[#allocation10] sm:$0xff] }
 0x62f   :  { %11549 = vmatpush1.bf16.msra.mxu0 %v14619_v53  ;;  %v1808_v53 = vrot.slane %v15114_v23, %v15621_v5  ;;  %v14739_v23 = vld [vmem:[#allocation11 + $0x8e0] ss:$16 sps:$4 sm:$0xff]  }
 0x630   :  { %11877 = vmatpush1.bf16.msra.mxu1 %v14622_v24  ;;  %11550 = vmatprep.subr.bf16.mxu0 %v14627_v27  ;;  %v14682_v24 = vld [vmem:[#allocation11 + $0x7a8] ss:$16 sps:$4 sm:$0xff]   ;;  %v14687_v27 = vld [vmem:[#allocation11 + $0x7c4] ss:$16 sps:$4 sm:$0xff]  }
 0x631   :  { %11878 = vmatprep.subr.bf16.mxu1 %v14630_v28  ;;  %v14690_v28 = vld [vmem:[#allocation11 + $0x7cc] ss:$16 sps:$4 sm:$0xff]  }
 0x633   :  { %11551 = vmatpush1.bf16.msra.mxu0 %v14625_v29  ;;  %v1820_v29 = vrot.slane %v15733_v26, %v15545_v16 }
 0x634   :  { %11879 = vmatpush1.bf16.msra.mxu1 %v14628_v32  ;;  %11552 = vmatprep.subr.bf16.mxu0 %v14633_v34  ;;  %v14685_v32 = vld [vmem:[#allocation11 + $0x7c0] ss:$16 sps:$4 sm:$0xff]   ;;  %v14129_v34 = vadd.f32 %v15670_v36, %v1808_v53  ;;  %v14742_v53 = vld [vmem:[#allocation11 + $0x8e8] ss:$16 sps:$4 sm:$0xff]  }
 0x635   :  { %v15725_v48 = vpop.f32.mrb[20].mxu0  ;;  %11880 = vmatprep.subr.bf16.mxu1 %v14636_v39  ;;  %v14688_v39 = vld [vmem:[#allocation11 + $0x7c8] ss:$16 sps:$4 sm:$0xff]   ;;  %v14697_v36 = vld [vmem:[#allocation11 + $0x800] ss:$16 sps:$4 sm:$0xff]  }
 0x636   :  { %v15727_v47 = vpop.f32.mrb[20].mxu1  ;;  %v15729_v54 = vpop.f32.mrb[21].mxu0 }
 0x637   :  { %v15731_v56 = vpop.f32.mrb[21].mxu1  ;;  %v8126_v40 = vpop.f32.mrb[22].mxu0  ;;  %11553 = vmatpush1.bf16.msra.mxu0 %v14631_v42  ;;  %v14693_v42 = vld [vmem:[#allocation11 + $0x7e4] ss:$16 sps:$4 sm:$0xff]  }
 0x638   :  { %v8290_v41 = vpop.f32.mrb[22].mxu1  ;;  %11881 = vmatpush1.bf16.msra.mxu1 %v14634_v15  ;;  %v8127_v58 = vpop.f32.mrb[23].mxu0  ;;  %11554 = vmatprep.subr.bf16.mxu0 %v14639_v50  ;;  %v14696_v15 = vld [vmem:[#allocation11 + $0x7ec] ss:$16 sps:$4 sm:$0xff]   ;;  %v14132_v50 = vadd.f32 %v15696_v45, %v1820_v29  ;;  %v8299_v40 = vmax.f32 %v14129_v34, 0.0 }
 0x639   :  { %v8291_v61 = vpop.f32.mrb[23].mxu1  ;;  %11882 = vmatprep.subr.bf16.mxu1 %v14642_v55  ;;  %v14691_v55 = vld [vmem:[#allocation11 + $0x7e0] ss:$16 sps:$4 sm:$0xff]   ;;  %v14699_v41 = vld [vmem:[#allocation11 + $0x804] ss:$16 sps:$4 sm:$0xff]  }
 0x63a   :  { %v14702_v58 = vld [vmem:[#allocation11 + $0x80c] ss:$16 sps:$4 sm:$0xff]   ;;  %v14700_v61 = vld [vmem:[#allocation11 + $0x808] ss:$16 sps:$4 sm:$0xff]  }
 0x63b   :  { %11555 = vmatpush1.bf16.msra.mxu0 %v14637_v57  ;;  %v14694_v57 = vld [vmem:[#allocation11 + $0x7e8] ss:$16 sps:$4 sm:$0xff]   ;;  %v14708_v45 = vld [vmem:[#allocation11 + $0x82c] ss:$16 sps:$4 sm:$0xff]  }
 0x63c   :  { %11883 = vmatpush1.bf16.msra.mxu1 %v14640_v60  ;;  %11556 = vmatprep.subr.bf16.mxu0 %v14645_v51  ;;  %v8302_v60 = vmax.f32 %v14132_v50, 0.0  ;;  %v8315_v51 = vpack.c.bf16 %v8299_v40, %v8299_v40  ;;  %v14748_v29 = vld [vmem:[#allocation11 + $0x908] ss:$16 sps:$4 sm:$0xff]   ;;  %v14756_v34 = vld [vmem:[#allocation11 + $0x92c] ss:$16 sps:$4 sm:$0xff]  }
 0x63d   :  { %11884 = vmatprep.subr.bf16.mxu1 %v14648_v62  ;;  %v14705_v62 = vld [vmem:[#allocation11 + $0x824] ss:$16 sps:$4 sm:$0xff]   ;;  %v14762_v50 = vld [vmem:[#allocation11 + $0x94c] ss:$16 sps:$4 sm:$0xff]   ;;  %v14760_v40 = vld [vmem:[#allocation11 + $0x948] ss:$16 sps:$4 sm:$0xff]  }
 0x63f   :  { %11557 = vmatpush1.bf16.msra.mxu0 %v14643_v63  ;;  %v8318_v63 = vpack.c.bf16 %v8302_v60, %v8302_v60  ;;  %v14766_v60 = vld [vmem:[#allocation11 + $0x968] ss:$16 sps:$4 sm:$0xff]  }
 0x640   :  { %11885 = vmatpush1.bf16.msra.mxu1 %v14646_v2  ;;  %11558 = vmatprep.subr.bf16.mxu0 %v14651_v59  ;;  %v14703_v2 = vld [vmem:[#allocation11 + $0x820] ss:$16 sps:$4 sm:$0xff]   ;;  %v14706_v59 = vld [vmem:[#allocation11 + $0x828] ss:$16 sps:$4 sm:$0xff]  }
 0x641   :  { %11886 = vmatprep.subr.bf16.mxu1 %v14654_v3  ;;  %v14711_v3 = vld [vmem:[#allocation11 + $0x844] ss:$16 sps:$4 sm:$0xff]  }
 0x643   :  { %11559 = vmatpush1.bf16.msra.mxu0 %v14649_v1  ;;  %v14714_v1 = vld [vmem:[#allocation11 + $0x84c] ss:$16 sps:$4 sm:$0xff]  }
 0x644   :  { %11887 = vmatpush1.bf16.msra.mxu1 %v14652_v4  ;;  %11560 = vmatprep.subr.bf16.mxu0 %v14657_v37  ;;  %v14709_v4 = vld [vmem:[#allocation11 + $0x840] ss:$16 sps:$4 sm:$0xff]   ;;  %v14712_v37 = vld [vmem:[#allocation11 + $0x848] ss:$16 sps:$4 sm:$0xff]  }
 0x645   :  { %11888 = vmatprep.subr.bf16.mxu1 %v14660_v7  ;;  %v14717_v7 = vld [vmem:[#allocation11 + $0x864] ss:$16 sps:$4 sm:$0xff]  }
 0x647   :  { %11561 = vmatpush1.bf16.msra.mxu0 %v14655_v8  ;;  %v14720_v8 = vld [vmem:[#allocation11 + $0x86c] ss:$16 sps:$4 sm:$0xff]  }
 0x648   :  { %11889 = vmatpush1.bf16.msra.mxu1 %v14658_v12  ;;  %11562 = vmatprep.subr.bf16.mxu0 %v14663_v9  ;;  %v14715_v12 = vld [vmem:[#allocation11 + $0x860] ss:$16 sps:$4 sm:$0xff]   ;;  %v14718_v9 = vld [vmem:[#allocation11 + $0x868] ss:$16 sps:$4 sm:$0xff]  }
 0x649   :  { %11890 = vmatprep.subr.bf16.mxu1 %v14666_v10  ;;  %v14723_v10 = vld [vmem:[#allocation11 + $0x884] ss:$16 sps:$4 sm:$0xff]  }
 0x64b   :  { %11563 = vmatpush1.bf16.msra.mxu0 %v14661_v46  ;;  %v14726_v46 = vld [vmem:[#allocation11 + $0x88c] ss:$16 sps:$4 sm:$0xff]  }
 0x64c   :  { %11891 = vmatpush1.bf16.msra.mxu1 %v14664_v31  ;;  %11564 = vmatprep.subr.bf16.mxu0 %v14669_v18  ;;  %v14721_v31 = vld [vmem:[#allocation11 + $0x880] ss:$16 sps:$4 sm:$0xff]   ;;  %v14724_v18 = vld [vmem:[#allocation11 + $0x888] ss:$16 sps:$4 sm:$0xff]  }
 0x64d   :  { %11892 = vmatprep.subr.bf16.mxu1 %v14672_v17  ;;  %v14729_v17 = vld [vmem:[#allocation11 + $0x8a4] ss:$16 sps:$4 sm:$0xff]  }
 0x64f   :  { %11565 = vmatpush1.bf16.msra.mxu0 %v14667_v6  ;;  %v14732_v6 = vld [vmem:[#allocation11 + $0x8ac] ss:$16 sps:$4 sm:$0xff]  }
 0x650   :  { %11893 = vmatpush1.bf16.msra.mxu1 %v14670_v38  ;;  %11566 = vmatprep.subr.bf16.mxu0 %v14675_v0  ;;  %v14727_v38 = vld [vmem:[#allocation11 + $0x8a0] ss:$16 sps:$4 sm:$0xff]   ;;  %v14730_v0 = vld [vmem:[#allocation11 + $0x8a8] ss:$16 sps:$4 sm:$0xff]  }
 0x651   :  { %11894 = vmatprep.subr.bf16.mxu1 %v14678_v52  ;;  %v14735_v52 = vld [vmem:[#allocation11 + $0x8c4] ss:$16 sps:$4 sm:$0xff]  }
 0x653   :  { %11567 = vmatpush1.bf16.msra.mxu0 %v14673_v19  ;;  %v14738_v19 = vld [vmem:[#allocation11 + $0x8cc] ss:$16 sps:$4 sm:$0xff]  }
 0x654   :  { %11895 = vmatpush1.bf16.msra.mxu1 %v14676_v21  ;;  %11568 = vmatprep.subr.bf16.mxu0 %v14681_v33  ;;  %v14733_v21 = vld [vmem:[#allocation11 + $0x8c0] ss:$16 sps:$4 sm:$0xff]   ;;  %v14736_v33 = vld [vmem:[#allocation11 + $0x8c8] ss:$16 sps:$4 sm:$0xff]  }
 0x655   :  { %11896 = vmatprep.subr.bf16.mxu1 %v14684_v22  ;;  %v14741_v22 = vld [vmem:[#allocation11 + $0x8e4] ss:$16 sps:$4 sm:$0xff]  }
 0x657   :  { %11569 = vmatpush1.bf16.msra.mxu0 %v14679_v13  ;;  %v14744_v13 = vld [vmem:[#allocation11 + $0x8ec] ss:$16 sps:$4 sm:$0xff]  }
 0x658   :  { %11897 = vmatpush1.bf16.msra.mxu1 %v14682_v24  ;;  %11570 = vmatprep.subr.bf16.mxu0 %v14687_v27  ;;  %v14747_v24 = vld [vmem:[#allocation11 + $0x904] ss:$16 sps:$4 sm:$0xff]   ;;  %v14750_v27 = vld [vmem:[#allocation11 + $0x90c] ss:$16 sps:$4 sm:$0xff]  }
 0x659   :  { %11898 = vmatprep.subr.bf16.mxu1 %v14690_v28  ;;  %v14745_v28 = vld [vmem:[#allocation11 + $0x900] ss:$16 sps:$4 sm:$0xff]  }
 0x65b   :  { %11571 = vmatpush1.bf16.msra.mxu0 %v14685_v32  ;;  %v14753_v32 = vld [vmem:[#allocation11 + $0x924] ss:$16 sps:$4 sm:$0xff]  }
 0x65c   :  { %11899 = vmatpush1.bf16.msra.mxu1 %v14688_v39  ;;  %11572 = vmatprep.subr.bf16.mxu0 %v14693_v42  ;;  %v14751_v39 = vld [vmem:[#allocation11 + $0x920] ss:$16 sps:$4 sm:$0xff]   ;;  %v14754_v42 = vld [vmem:[#allocation11 + $0x928] ss:$16 sps:$4 sm:$0xff]  }
 0x65d   :  { %11900 = vmatprep.subr.bf16.mxu1 %v14696_v15  ;;  %v14759_v15 = vld [vmem:[#allocation11 + $0x944] ss:$16 sps:$4 sm:$0xff]  }
 0x65f   :  { %11573 = vmatpush1.bf16.msra.mxu0 %v14691_v55  ;;  %v14757_v55 = vld [vmem:[#allocation11 + $0x940] ss:$16 sps:$4 sm:$0xff]  }
 0x660   :  { %11901 = vmatpush1.bf16.msra.mxu1 %v14694_v57  ;;  %11583 = vmatprep.subr.bf16.mxu0 %v14699_v41  ;;  %v14765_v57 = vld [vmem:[#allocation11 + $0x964] ss:$16 sps:$4 sm:$0xff]   ;;  %v14768_v41 = vld [vmem:[#allocation11 + $0x96c] ss:$16 sps:$4 sm:$0xff]  }
 0x661   :  { %11911 = vmatprep.subr.bf16.mxu1 %v14702_v58  ;;  %v14763_v58 = vld [vmem:[#allocation11 + $0x960] ss:$16 sps:$4 sm:$0xff]  }
 0x662   :  { %11575 = vmatmul.mubr.bf16.vlgmr.msra.gmra.mrb[24].mxu0 %v8315_v51 }
 0x663   :  { %11903 = vmatmul.mubr.bf16.vlgmr.msra.gmra.mrb[24].mxu1 %v8315_v51  ;;  %11584 = vmatpush1.bf16.msra.mxu0 %v14697_v36  ;;  %v14771_v36 = vld [vmem:[#allocation11 + $0x984] ss:$16 sps:$4 sm:$0xff]   ;;  %v14774_v51 = vld [vmem:[#allocation11 + $0x98c] ss:$16 sps:$4 sm:$0xff]  }
 0x664   :  { %11615 = vmatprep.mubr.bf16.mxu0 %v8318_v63  ;;  %11912 = vmatpush1.bf16.msra.mxu1 %v14700_v61  ;;  %v14769_v61 = vld [vmem:[#allocation11 + $0x980] ss:$16 sps:$4 sm:$0xff]  }
 0x665   :  { %11943 = vmatprep.mubr.bf16.mxu1 %v8318_v63  ;;  %11585 = vmatprep.subr.bf16.mxu0 %v14705_v62  ;;  %v14772_v62 = vld [vmem:[#allocation11 + $0x988] ss:$16 sps:$4 sm:$0xff]   ;;  %v14777_v63 = vld [vmem:[#allocation11 + $0x9a4] ss:$16 sps:$4 sm:$0xff]  }
 0x666   :  { %11913 = vmatprep.subr.bf16.mxu1 %v14708_v45  ;;  %v14780_v45 = vld [vmem:[#allocation11 + $0x9ac] ss:$16 sps:$4 sm:$0xff]  }
 0x667   :  { %11586 = vmatpush1.bf16.msra.mxu0 %v14703_v2  ;;  %v14775_v2 = vld [vmem:[#allocation11 + $0x9a0] ss:$16 sps:$4 sm:$0xff]  }
 0x668   :  { %11914 = vmatpush1.bf16.msra.mxu1 %v14706_v59  ;;  %11587 = vmatprep.subr.bf16.mxu0 %v14711_v3  ;;  %v1816_v59 = vrot.slane %v15733_v26, %v15540_v14  ;;  %v14778_v3 = vld [vmem:[#allocation11 + $0x9a8] ss:$16 sps:$4 sm:$0xff]  }
 0x669   :  { %11915 = vmatprep.subr.bf16.mxu1 %v14714_v1  ;;  %v14783_v1 = vld [vmem:[#allocation11 + $0x9c4] ss:$16 sps:$4 sm:$0xff]  }
 0x66b   :  { %11588 = vmatpush1.bf16.msra.mxu0 %v14709_v4  ;;  %v14786_v4 = vld [vmem:[#allocation11 + $0x9cc] ss:$16 sps:$4 sm:$0xff]  }
 0x66c   :  { %11916 = vmatpush1.bf16.msra.mxu1 %v14712_v37  ;;  %11589 = vmatprep.subr.bf16.mxu0 %v14717_v7  ;;  %v1828_v37 = vrot.slane %v15733_v26, %v15552_v20  ;;  %v14781_v7 = vld [vmem:[#allocation11 + $0x9c0] ss:$16 sps:$4 sm:$0xff]  }
 0x66d   :  { %11917 = vmatprep.subr.bf16.mxu1 %v14720_v8  ;;  %v14131_v8 = vadd.f32 %v15692_v35, %v1816_v59  ;;  %v14793_v35 = vld [vmem:[#allocation11 + $0xa00] ss:$16 sps:$4 sm:$0xff]   ;;  %v14846_v59 = vld [vmem:[#allocation11 + $0xb0c] ss:$16 sps:$4 sm:$0xff]  }
 0x66f   :  { %11590 = vmatpush1.bf16.msra.mxu0 %v14715_v12  ;;  %v14784_v12 = vld [vmem:[#allocation11 + $0x9c8] ss:$16 sps:$4 sm:$0xff]  }
 0x670   :  { %11918 = vmatpush1.bf16.msra.mxu1 %v14718_v9  ;;  %11591 = vmatprep.subr.bf16.mxu0 %v14723_v10  ;;  %v14789_v9 = vld [vmem:[#allocation11 + $0x9e4] ss:$16 sps:$4 sm:$0xff]   ;;  %v14792_v10 = vld [vmem:[#allocation11 + $0x9ec] ss:$16 sps:$4 sm:$0xff]  }
 0x671   :  { %11919 = vmatprep.subr.bf16.mxu1 %v14726_v46  ;;  %v14134_v46 = vadd.f32 %v15698_v49, %v1828_v37  ;;  %v14804_v49 = vld [vmem:[#allocation11 + $0xa2c] ss:$16 sps:$4 sm:$0xff]  }
 0x672   :  { %v14852_v37 = vld [vmem:[#allocation11 + $0xb2c] ss:$16 sps:$4 sm:$0xff]  }
 0x673   :  { %11592 = vmatpush1.bf16.msra.mxu0 %v14721_v31  ;;  %v14787_v31 = vld [vmem:[#allocation11 + $0x9e0] ss:$16 sps:$4 sm:$0xff]  }
 0x674   :  { %11920 = vmatpush1.bf16.msra.mxu1 %v14724_v18  ;;  %11593 = vmatprep.subr.bf16.mxu0 %v14729_v17  ;;  %v8301_v18 = vmax.f32 %v14131_v8, 0.0  ;;  %v14790_v17 = vld [vmem:[#allocation11 + $0x9e8] ss:$16 sps:$4 sm:$0xff]  }
 0x675   :  { %11921 = vmatprep.subr.bf16.mxu1 %v14732_v6  ;;  %v14795_v6 = vld [vmem:[#allocation11 + $0xa04] ss:$16 sps:$4 sm:$0xff]   ;;  %v14850_v8 = vld [vmem:[#allocation11 + $0xb28] ss:$16 sps:$4 sm:$0xff]  }
 0x677   :  { %11594 = vmatpush1.bf16.msra.mxu0 %v14727_v38  ;;  %v14798_v38 = vld [vmem:[#allocation11 + $0xa0c] ss:$16 sps:$4 sm:$0xff]  }
 0x678   :  { %11922 = vmatpush1.bf16.msra.mxu1 %v14730_v0  ;;  %11595 = vmatprep.subr.bf16.mxu0 %v14735_v52  ;;  %v8304_v0 = vmax.f32 %v14134_v46, 0.0  ;;  %v8317_v52 = vpack.c.bf16 %v8301_v18, %v8301_v18  ;;  %v14856_v46 = vld [vmem:[#allocation11 + $0xb48] ss:$16 sps:$4 sm:$0xff]   ;;  %v14864_v18 = vld [vmem:[#allocation11 + $0xb6c] ss:$16 sps:$4 sm:$0xff]  }
 0x679   :  { %11923 = vmatprep.subr.bf16.mxu1 %v14738_v19  ;;  %v14796_v19 = vld [vmem:[#allocation11 + $0xa08] ss:$16 sps:$4 sm:$0xff]  }
 0x67b   :  { %11596 = vmatpush1.bf16.msra.mxu0 %v14733_v21  ;;  %v14801_v21 = vld [vmem:[#allocation11 + $0xa24] ss:$16 sps:$4 sm:$0xff]  }
 0x67c   :  { %11924 = vmatpush1.bf16.msra.mxu1 %v14736_v33  ;;  %11597 = vmatprep.subr.bf16.mxu0 %v14741_v22  ;;  %v8320_v33 = vpack.c.bf16 %v8304_v0, %v8304_v0  ;;  %v14799_v22 = vld [vmem:[#allocation11 + $0xa20] ss:$16 sps:$4 sm:$0xff]   ;;  %v14870_v0 = vld [vmem:[#allocation11 + $0xb8c] ss:$16 sps:$4 sm:$0xff]  }
 0x67d   :  { %11925 = vmatprep.subr.bf16.mxu1 %v14744_v13  ;;  %v14802_v13 = vld [vmem:[#allocation11 + $0xa28] ss:$16 sps:$4 sm:$0xff]  }
 0x67f   :  { %11598 = vmatpush1.bf16.msra.mxu0 %v14739_v23  ;;  %v14807_v23 = vld [vmem:[#allocation11 + $0xa44] ss:$16 sps:$4 sm:$0xff]  }
 0x680   :  { %11926 = vmatpush1.bf16.msra.mxu1 %v14742_v53  ;;  %11599 = vmatprep.subr.bf16.mxu0 %v14747_v24  ;;  %v14810_v53 = vld [vmem:[#allocation11 + $0xa4c] ss:$16 sps:$4 sm:$0xff]   ;;  %v14805_v24 = vld [vmem:[#allocation11 + $0xa40] ss:$16 sps:$4 sm:$0xff]  }
 0x681   :  { %11927 = vmatprep.subr.bf16.mxu1 %v14750_v27  ;;  %v14808_v27 = vld [vmem:[#allocation11 + $0xa48] ss:$16 sps:$4 sm:$0xff]  }
 0x683   :  { %11600 = vmatpush1.bf16.msra.mxu0 %v14745_v28  ;;  %v14813_v28 = vld [vmem:[#allocation11 + $0xa64] ss:$16 sps:$4 sm:$0xff]  }
 0x684   :  { %11928 = vmatpush1.bf16.msra.mxu1 %v14748_v29  ;;  %11601 = vmatprep.subr.bf16.mxu0 %v14753_v32  ;;  %v14816_v29 = vld [vmem:[#allocation11 + $0xa6c] ss:$16 sps:$4 sm:$0xff]   ;;  %v14811_v32 = vld [vmem:[#allocation11 + $0xa60] ss:$16 sps:$4 sm:$0xff]  }
 0x685   :  { %11929 = vmatprep.subr.bf16.mxu1 %v14756_v34  ;;  %v14814_v34 = vld [vmem:[#allocation11 + $0xa68] ss:$16 sps:$4 sm:$0xff]  }
 0x687   :  { %11602 = vmatpush1.bf16.msra.mxu0 %v14751_v39  ;;  %v14819_v39 = vld [vmem:[#allocation11 + $0xa84] ss:$16 sps:$4 sm:$0xff]  }
 0x688   :  { %11930 = vmatpush1.bf16.msra.mxu1 %v14754_v42  ;;  %11603 = vmatprep.subr.bf16.mxu0 %v14759_v15  ;;  %v14822_v42 = vld [vmem:[#allocation11 + $0xa8c] ss:$16 sps:$4 sm:$0xff]   ;;  %v14817_v15 = vld [vmem:[#allocation11 + $0xa80] ss:$16 sps:$4 sm:$0xff]  }
 0x689   :  { %11931 = vmatprep.subr.bf16.mxu1 %v14762_v50  ;;  %v14820_v50 = vld [vmem:[#allocation11 + $0xa88] ss:$16 sps:$4 sm:$0xff]  }
 0x68b   :  { %11604 = vmatpush1.bf16.msra.mxu0 %v14757_v55  ;;  %v14825_v55 = vld [vmem:[#allocation11 + $0xaa4] ss:$16 sps:$4 sm:$0xff]  }
 0x68c   :  { %11932 = vmatpush1.bf16.msra.mxu1 %v14760_v40  ;;  %11605 = vmatprep.subr.bf16.mxu0 %v14765_v57  ;;  %v14828_v40 = vld [vmem:[#allocation11 + $0xaac] ss:$16 sps:$4 sm:$0xff]   ;;  %v14823_v57 = vld [vmem:[#allocation11 + $0xaa0] ss:$16 sps:$4 sm:$0xff]  }
 0x68d   :  { %11933 = vmatprep.subr.bf16.mxu1 %v14768_v41  ;;  %v14826_v41 = vld [vmem:[#allocation11 + $0xaa8] ss:$16 sps:$4 sm:$0xff]  }
 0x68f   :  { %11606 = vmatpush1.bf16.msra.mxu0 %v14763_v58  ;;  %v14831_v58 = vld [vmem:[#allocation11 + $0xac4] ss:$16 sps:$4 sm:$0xff]  }
 0x690   :  { %11934 = vmatpush1.bf16.msra.mxu1 %v14766_v60  ;;  %11607 = vmatprep.subr.bf16.mxu0 %v14771_v36  ;;  %v14834_v60 = vld [vmem:[#allocation11 + $0xacc] ss:$16 sps:$4 sm:$0xff]   ;;  %v14829_v36 = vld [vmem:[#allocation11 + $0xac0] ss:$16 sps:$4 sm:$0xff]  }
 0x691   :  { %11935 = vmatprep.subr.bf16.mxu1 %v14774_v51  ;;  %v14832_v51 = vld [vmem:[#allocation11 + $0xac8] ss:$16 sps:$4 sm:$0xff]  }
 0x693   :  { %11608 = vmatpush1.bf16.msra.mxu0 %v14769_v61  ;;  %v14837_v61 = vld [vmem:[#allocation11 + $0xae4] ss:$16 sps:$4 sm:$0xff]  }
 0x694   :  { %11936 = vmatpush1.bf16.msra.mxu1 %v14772_v62  ;;  %11609 = vmatprep.subr.bf16.mxu0 %v14777_v63  ;;  %v14840_v62 = vld [vmem:[#allocation11 + $0xaec] ss:$16 sps:$4 sm:$0xff]   ;;  %v14835_v63 = vld [vmem:[#allocation11 + $0xae0] ss:$16 sps:$4 sm:$0xff]  }
 0x695   :  { %11937 = vmatprep.subr.bf16.mxu1 %v14780_v45  ;;  %v14838_v45 = vld [vmem:[#allocation11 + $0xae8] ss:$16 sps:$4 sm:$0xff]  }
 0x697   :  { %11610 = vmatpush1.bf16.msra.mxu0 %v14775_v2  ;;  %v14843_v2 = vld [vmem:[#allocation11 + $0xb04] ss:$16 sps:$4 sm:$0xff]  }
 0x698   :  { %11938 = vmatpush1.bf16.msra.mxu1 %v14778_v3  ;;  %11611 = vmatprep.subr.bf16.mxu0 %v14783_v1  ;;  %v14841_v3 = vld [vmem:[#allocation11 + $0xb00] ss:$16 sps:$4 sm:$0xff]   ;;  %v14844_v1 = vld [vmem:[#allocation11 + $0xb08] ss:$16 sps:$4 sm:$0xff]  }
 0x699   :  { %11939 = vmatprep.subr.bf16.mxu1 %v14786_v4  ;;  %v14849_v4 = vld [vmem:[#allocation11 + $0xb24] ss:$16 sps:$4 sm:$0xff]  }
 0x69b   :  { %11612 = vmatpush1.bf16.msra.mxu0 %v14781_v7  ;;  %v14847_v7 = vld [vmem:[#allocation11 + $0xb20] ss:$16 sps:$4 sm:$0xff]  }
 0x69c   :  { %11940 = vmatpush1.bf16.msra.mxu1 %v14784_v12  ;;  %11613 = vmatprep.subr.bf16.mxu0 %v14789_v9  ;;  %v14855_v12 = vld [vmem:[#allocation11 + $0xb44] ss:$16 sps:$4 sm:$0xff]   ;;  %v14858_v9 = vld [vmem:[#allocation11 + $0xb4c] ss:$16 sps:$4 sm:$0xff]  }
 0x69d   :  { %11941 = vmatprep.subr.bf16.mxu1 %v14792_v10  ;;  %v14853_v10 = vld [vmem:[#allocation11 + $0xb40] ss:$16 sps:$4 sm:$0xff]  }
 0x69f   :  { %11614 = vmatpush1.bf16.msra.mxu0 %v14787_v31  ;;  %v14861_v31 = vld [vmem:[#allocation11 + $0xb64] ss:$16 sps:$4 sm:$0xff]  }
 0x6a0   :  { %11942 = vmatpush1.bf16.msra.mxu1 %v14790_v17  ;;  %11624 = vmatprep.subr.bf16.mxu0 %v14795_v6  ;;  %v14859_v17 = vld [vmem:[#allocation11 + $0xb60] ss:$16 sps:$4 sm:$0xff]   ;;  %v14862_v6 = vld [vmem:[#allocation11 + $0xb68] ss:$16 sps:$4 sm:$0xff]  }
 0x6a1   :  { %11952 = vmatprep.subr.bf16.mxu1 %v14798_v38  ;;  %v14867_v38 = vld [vmem:[#allocation11 + $0xb84] ss:$16 sps:$4 sm:$0xff]  }
 0x6a2   :  { %11616 = vmatmul.mubr.bf16.vlgmr.msra.gmra.mrb[24].mxu0 %v8317_v52 }
 0x6a3   :  { %11944 = vmatmul.mubr.bf16.vlgmr.msra.gmra.mrb[24].mxu1 %v8317_v52  ;;  %11625 = vmatpush1.bf16.msra.mxu0 %v14793_v35  ;;  %v14865_v35 = vld [vmem:[#allocation11 + $0xb80] ss:$16 sps:$4 sm:$0xff]   ;;  %v14868_v52 = vld [vmem:[#allocation11 + $0xb88] ss:$16 sps:$4 sm:$0xff]  }
 0x6a4   :  { %11656 = vmatprep.mubr.bf16.mxu0 %v8320_v33  ;;  %11953 = vmatpush1.bf16.msra.mxu1 %v14796_v19  ;;  %v14873_v19 = vld [vmem:[#allocation11 + $0xba4] ss:$16 sps:$4 sm:$0xff]  }
 0x6a5   :  { %11984 = vmatprep.mubr.bf16.mxu1 %v8320_v33  ;;  %11626 = vmatprep.subr.bf16.mxu0 %v14801_v21  ;;  %v14876_v21 = vld [vmem:[#allocation11 + $0xbac] ss:$16 sps:$4 sm:$0xff]   ;;  %v14871_v33 = vld [vmem:[#allocation11 + $0xba0] ss:$16 sps:$4 sm:$0xff]  }
 0x6a6   :  { %11954 = vmatprep.subr.bf16.mxu1 %v14804_v49  ;;  %v1824_v49 = vrot.slane %v15733_v26, %v15579_v30 }
 0x6a7   :  { %11627 = vmatpush1.bf16.msra.mxu0 %v14799_v22  ;;  %v14874_v22 = vld [vmem:[#allocation11 + $0xba8] ss:$16 sps:$4 sm:$0xff]  }
 0x6a8   :  { %11955 = vmatpush1.bf16.msra.mxu1 %v14802_v13  ;;  %11628 = vmatprep.subr.bf16.mxu0 %v14807_v23  ;;  %v14879_v13 = vld [vmem:[#allocation11 + $0xbc4] ss:$16 sps:$4 sm:$0xff]   ;;  %v14882_v23 = vld [vmem:[#allocation11 + $0xbcc] ss:$16 sps:$4 sm:$0xff]  }
 0x6a9   :  { %11956 = vmatprep.subr.bf16.mxu1 %v14810_v53  ;;  %v1836_v53 = vrot.slane %v15733_v26, %v15582_v43  ;;  %v14894_v43 = vld [vmem:[#allocation11 + $0xc0c] ss:$16 sps:$4 sm:$0xff]  }
 0x6ab   :  { %11629 = vmatpush1.bf16.msra.mxu0 %v14805_v24  ;;  %v14877_v24 = vld [vmem:[#allocation11 + $0xbc0] ss:$16 sps:$4 sm:$0xff]  }
 0x6ac   :  { %11957 = vmatpush1.bf16.msra.mxu1 %v14808_v27  ;;  %11630 = vmatprep.subr.bf16.mxu0 %v14813_v28  ;;  %v14133_v27 = vadd.f32 %v15694_v44, %v1824_v49  ;;  %v14880_v28 = vld [vmem:[#allocation11 + $0xbc8] ss:$16 sps:$4 sm:$0xff]   ;;  %v14889_v44 = vld [vmem:[#allocation11 + $0xc00] ss:$16 sps:$4 sm:$0xff]   ;;  %v14945_v49 = vld [vmem:[#allocation11 + $0xd24] ss:$16 sps:$4 sm:$0xff]  }
 0x6ad   :  { %11958 = vmatprep.subr.bf16.mxu1 %v14816_v29  ;;  %v14885_v29 = vld [vmem:[#allocation11 + $0xbe4] ss:$16 sps:$4 sm:$0xff]  }
 0x6af   :  { %11631 = vmatpush1.bf16.msra.mxu0 %v14811_v32  ;;  %v14888_v32 = vld [vmem:[#allocation11 + $0xbec] ss:$16 sps:$4 sm:$0xff]  }
 0x6b0   :  { %11959 = vmatpush1.bf16.msra.mxu1 %v14814_v34  ;;  %11632 = vmatprep.subr.bf16.mxu0 %v14819_v39  ;;  %v14136_v34 = vadd.f32 %v15729_v54, %v1836_v53  ;;  %v14883_v39 = vld [vmem:[#allocation11 + $0xbe0] ss:$16 sps:$4 sm:$0xff]   ;;  %v14900_v54 = vld [vmem:[#allocation11 + $0xc2c] ss:$16 sps:$4 sm:$0xff]   ;;  %v14951_v53 = vld [vmem:[#allocation11 + $0xd44] ss:$16 sps:$4 sm:$0xff]  }
 0x6b1   :  { %11960 = vmatprep.subr.bf16.mxu1 %v14822_v42  ;;  %v8303_v42 = vmax.f32 %v14133_v27, 0.0  ;;  %v14949_v27 = vld [vmem:[#allocation11 + $0xd40] ss:$16 sps:$4 sm:$0xff]  }
 0x6b3   :  { %11633 = vmatpush1.bf16.msra.mxu0 %v14817_v15  ;;  %v14886_v15 = vld [vmem:[#allocation11 + $0xbe8] ss:$16 sps:$4 sm:$0xff]  }
 0x6b4   :  { %11961 = vmatpush1.bf16.msra.mxu1 %v14820_v50  ;;  %11634 = vmatprep.subr.bf16.mxu0 %v14825_v55  ;;  %v14891_v50 = vld [vmem:[#allocation11 + $0xc04] ss:$16 sps:$4 sm:$0xff]   ;;  %v8306_v55 = vmax.f32 %v14136_v34, 0.0  ;;  %v14955_v34 = vld [vmem:[#allocation11 + $0xd60] ss:$16 sps:$4 sm:$0xff]  }
 0x6b5   :  { %11962 = vmatprep.subr.bf16.mxu1 %v14828_v40  ;;  %v8319_v40 = vpack.c.bf16 %v8303_v42, %v8303_v42  ;;  %v14963_v42 = vld [vmem:[#allocation11 + $0xd84] ss:$16 sps:$4 sm:$0xff]  }
 0x6b7   :  { %11635 = vmatpush1.bf16.msra.mxu0 %v14823_v57  ;;  %v14892_v57 = vld [vmem:[#allocation11 + $0xc08] ss:$16 sps:$4 sm:$0xff]  }
 0x6b8   :  { %11963 = vmatpush1.bf16.msra.mxu1 %v14826_v41  ;;  %11636 = vmatprep.subr.bf16.mxu0 %v14831_v58  ;;  %v14897_v41 = vld [vmem:[#allocation11 + $0xc24] ss:$16 sps:$4 sm:$0xff]   ;;  %v8322_v58 = vpack.c.bf16 %v8306_v55, %v8306_v55 }
 0x6b9   :  { %11964 = vmatprep.subr.bf16.mxu1 %v14834_v60  ;;  %v14895_v60 = vld [vmem:[#allocation11 + $0xc20] ss:$16 sps:$4 sm:$0xff]   ;;  %v14969_v55 = vld [vmem:[#allocation11 + $0xda4] ss:$16 sps:$4 sm:$0xff]  }
 0x6bb   :  { %11637 = vmatpush1.bf16.msra.mxu0 %v14829_v36  ;;  %v14898_v36 = vld [vmem:[#allocation11 + $0xc28] ss:$16 sps:$4 sm:$0xff]  }
 0x6bc   :  { %11965 = vmatpush1.bf16.msra.mxu1 %v14832_v51  ;;  %11638 = vmatprep.subr.bf16.mxu0 %v14837_v61  ;;  %v14903_v51 = vld [vmem:[#allocation11 + $0xc44] ss:$16 sps:$4 sm:$0xff]   ;;  %v14906_v61 = vld [vmem:[#allocation11 + $0xc4c] ss:$16 sps:$4 sm:$0xff]  }
 0x6bd   :  { %11966 = vmatprep.subr.bf16.mxu1 %v14840_v62  ;;  %v14901_v62 = vld [vmem:[#allocation11 + $0xc40] ss:$16 sps:$4 sm:$0xff]  }
 0x6bf   :  { %11639 = vmatpush1.bf16.msra.mxu0 %v14835_v63  ;;  %v14904_v63 = vld [vmem:[#allocation11 + $0xc48] ss:$16 sps:$4 sm:$0xff]  }
 0x6c0   :  { %11967 = vmatpush1.bf16.msra.mxu1 %v14838_v45  ;;  %11640 = vmatprep.subr.bf16.mxu0 %v14843_v2  ;;  %v14909_v45 = vld [vmem:[#allocation11 + $0xc64] ss:$16 sps:$4 sm:$0xff]   ;;  %v14912_v2 = vld [vmem:[#allocation11 + $0xc6c] ss:$16 sps:$4 sm:$0xff]  }
 0x6c1   :  { %11968 = vmatprep.subr.bf16.mxu1 %v14846_v59  ;;  %v14907_v59 = vld [vmem:[#allocation11 + $0xc60] ss:$16 sps:$4 sm:$0xff]  }
 0x6c3   :  { %11641 = vmatpush1.bf16.msra.mxu0 %v14841_v3  ;;  %v14910_v3 = vld [vmem:[#allocation11 + $0xc68] ss:$16 sps:$4 sm:$0xff]  }
 0x6c4   :  { %11969 = vmatpush1.bf16.msra.mxu1 %v14844_v1  ;;  %11642 = vmatprep.subr.bf16.mxu0 %v14849_v4  ;;  %v14915_v1 = vld [vmem:[#allocation11 + $0xc84] ss:$16 sps:$4 sm:$0xff]   ;;  %v14918_v4 = vld [vmem:[#allocation11 + $0xc8c] ss:$16 sps:$4 sm:$0xff]  }
 0x6c5   :  { %11970 = vmatprep.subr.bf16.mxu1 %v14852_v37  ;;  %v14913_v37 = vld [vmem:[#allocation11 + $0xc80] ss:$16 sps:$4 sm:$0xff]  }
 0x6c7   :  { %11643 = vmatpush1.bf16.msra.mxu0 %v14847_v7  ;;  %v14916_v7 = vld [vmem:[#allocation11 + $0xc88] ss:$16 sps:$4 sm:$0xff]  }
 0x6c8   :  { %11971 = vmatpush1.bf16.msra.mxu1 %v14850_v8  ;;  %11644 = vmatprep.subr.bf16.mxu0 %v14855_v12  ;;  %v14921_v8 = vld [vmem:[#allocation11 + $0xca4] ss:$16 sps:$4 sm:$0xff]   ;;  %v14924_v12 = vld [vmem:[#allocation11 + $0xcac] ss:$16 sps:$4 sm:$0xff]  }
 0x6c9   :  { %11972 = vmatprep.subr.bf16.mxu1 %v14858_v9  ;;  %v14919_v9 = vld [vmem:[#allocation11 + $0xca0] ss:$16 sps:$4 sm:$0xff]  }
 0x6cb   :  { %11645 = vmatpush1.bf16.msra.mxu0 %v14853_v10  ;;  %v14922_v10 = vld [vmem:[#allocation11 + $0xca8] ss:$16 sps:$4 sm:$0xff]  }
 0x6cc   :  { %11973 = vmatpush1.bf16.msra.mxu1 %v14856_v46  ;;  %11646 = vmatprep.subr.bf16.mxu0 %v14861_v31  ;;  %v14927_v46 = vld [vmem:[#allocation11 + $0xcc4] ss:$16 sps:$4 sm:$0xff]   ;;  %v14930_v31 = vld [vmem:[#allocation11 + $0xccc] ss:$16 sps:$4 sm:$0xff]  }
 0x6cd   :  { %11974 = vmatprep.subr.bf16.mxu1 %v14864_v18  ;;  %v14925_v18 = vld [vmem:[#allocation11 + $0xcc0] ss:$16 sps:$4 sm:$0xff]  }
 0x6cf   :  { %11647 = vmatpush1.bf16.msra.mxu0 %v14859_v17  ;;  %v14928_v17 = vld [vmem:[#allocation11 + $0xcc8] ss:$16 sps:$4 sm:$0xff]  }
 0x6d0   :  { %11975 = vmatpush1.bf16.msra.mxu1 %v14862_v6  ;;  %11648 = vmatprep.subr.bf16.mxu0 %v14867_v38  ;;  %v14933_v6 = vld [vmem:[#allocation11 + $0xce4] ss:$16 sps:$4 sm:$0xff]   ;;  %v14936_v38 = vld [vmem:[#allocation11 + $0xcec] ss:$16 sps:$4 sm:$0xff]  }
 0x6d1   :  { %11976 = vmatprep.subr.bf16.mxu1 %v14870_v0  ;;  %v14931_v0 = vld [vmem:[#allocation11 + $0xce0] ss:$16 sps:$4 sm:$0xff]  }
 0x6d3   :  { %11649 = vmatpush1.bf16.msra.mxu0 %v14865_v35  ;;  %v14934_v35 = vld [vmem:[#allocation11 + $0xce8] ss:$16 sps:$4 sm:$0xff]  }
 0x6d4   :  { %11977 = vmatpush1.bf16.msra.mxu1 %v14868_v52  ;;  %11650 = vmatprep.subr.bf16.mxu0 %v14873_v19  ;;  %v14939_v52 = vld [vmem:[#allocation11 + $0xd04] ss:$16 sps:$4 sm:$0xff]   ;;  %v14942_v19 = vld [vmem:[#allocation11 + $0xd0c] ss:$16 sps:$4 sm:$0xff]  }
 0x6d5   :  { %11978 = vmatprep.subr.bf16.mxu1 %v14876_v21  ;;  %v14937_v21 = vld [vmem:[#allocation11 + $0xd00] ss:$16 sps:$4 sm:$0xff]  }
 0x6d7   :  { %11651 = vmatpush1.bf16.msra.mxu0 %v14871_v33  ;;  %v14940_v33 = vld [vmem:[#allocation11 + $0xd08] ss:$16 sps:$4 sm:$0xff]  }
 0x6d8   :  { %11979 = vmatpush1.bf16.msra.mxu1 %v14874_v22  ;;  %11652 = vmatprep.subr.bf16.mxu0 %v14879_v13  ;;  %v14948_v22 = vld [vmem:[#allocation11 + $0xd2c] ss:$16 sps:$4 sm:$0xff]   ;;  %v14943_v13 = vld [vmem:[#allocation11 + $0xd20] ss:$16 sps:$4 sm:$0xff]  }
 0x6d9   :  { %11980 = vmatprep.subr.bf16.mxu1 %v14882_v23  ;;  %v14946_v23 = vld [vmem:[#allocation11 + $0xd28] ss:$16 sps:$4 sm:$0xff]  }
 0x6db   :  { %11653 = vmatpush1.bf16.msra.mxu0 %v14877_v24  ;;  %v14954_v24 = vld [vmem:[#allocation11 + $0xd4c] ss:$16 sps:$4 sm:$0xff]  }
 0x6dc   :  { %11981 = vmatpush1.bf16.msra.mxu1 %v14880_v28  ;;  %11654 = vmatprep.subr.bf16.mxu0 %v14885_v29  ;;  %v14952_v28 = vld [vmem:[#allocation11 + $0xd48] ss:$16 sps:$4 sm:$0xff]   ;;  %v14957_v29 = vld [vmem:[#allocation11 + $0xd64] ss:$16 sps:$4 sm:$0xff]  }
 0x6dd   :  { %11982 = vmatprep.subr.bf16.mxu1 %v14888_v32  ;;  %v14960_v32 = vld [vmem:[#allocation11 + $0xd6c] ss:$16 sps:$4 sm:$0xff]  }
 0x6df   :  { %11655 = vmatpush1.bf16.msra.mxu0 %v14883_v39  ;;  %v14958_v39 = vld [vmem:[#allocation11 + $0xd68] ss:$16 sps:$4 sm:$0xff]  }
 0x6e0   :  { %11983 = vmatpush1.bf16.msra.mxu1 %v14886_v15  ;;  %11665 = vmatprep.subr.bf16.mxu0 %v14891_v50  ;;  %v14966_v15 = vld [vmem:[#allocation11 + $0xd8c] ss:$16 sps:$4 sm:$0xff]   ;;  %v14961_v50 = vld [vmem:[#allocation11 + $0xd80] ss:$16 sps:$4 sm:$0xff]  }
 0x6e1   :  { %11993 = vmatprep.subr.bf16.mxu1 %v14894_v43  ;;  %v14964_v43 = vld [vmem:[#allocation11 + $0xd88] ss:$16 sps:$4 sm:$0xff]  }
 0x6e2   :  { %11657 = vmatmul.mubr.bf16.vlgmr.msra.gmra.mrb[24].mxu0 %v8319_v40 }
 0x6e3   :  { %11985 = vmatmul.mubr.bf16.vlgmr.msra.gmra.mrb[24].mxu1 %v8319_v40  ;;  %11666 = vmatpush1.bf16.msra.mxu0 %v14889_v44  ;;  %v14972_v44 = vld [vmem:[#allocation11 + $0xdac] ss:$16 sps:$4 sm:$0xff]   ;;  %v14967_v40 = vld [vmem:[#allocation11 + $0xda0] ss:$16 sps:$4 sm:$0xff]  }
 0x6e4   :  { %11697 = vmatprep.mubr.bf16.mxu0 %v8322_v58  ;;  %11994 = vmatpush1.bf16.msra.mxu1 %v14892_v57  ;;  %v1832_v57 = vrot.slane %v15733_v26, %v15599_v11 }
 0x6e5   :  { %12025 = vmatprep.mubr.bf16.mxu1 %v8322_v58  ;;  %11667 = vmatprep.subr.bf16.mxu0 %v14897_v41  ;;  %v14970_v41 = vld [vmem:[#allocation11 + $0xda8] ss:$16 sps:$4 sm:$0xff]   ;;  %v14975_v58 = vld [vmem:[#allocation11 + $0xdc4] ss:$16 sps:$4 sm:$0xff]  }
 0x6e6   :  { %11995 = vmatprep.subr.bf16.mxu1 %v14900_v54  ;;  %v14978_v54 = vld [vmem:[#allocation11 + $0xdcc] ss:$16 sps:$4 sm:$0xff]  }
 0x6e7   :  { %11668 = vmatpush1.bf16.msra.mxu0 %v14895_v60  ;;  %v1844_v60 = vrot.slane %v15733_v26, %v15602_v25  ;;  %v14990_v25 = vld [vmem:[#allocation11 + $0xe0c] ss:$16 sps:$4 sm:$0xff]  }
 0x6e8   :  { %11996 = vmatpush1.bf16.msra.mxu1 %v14898_v36  ;;  %11669 = vmatprep.subr.bf16.mxu0 %v14903_v51  ;;  %v14973_v36 = vld [vmem:[#allocation11 + $0xdc0] ss:$16 sps:$4 sm:$0xff]   ;;  %v14135_v51 = vadd.f32 %v15725_v48, %v1832_v57  ;;  %v15050_v57 = vld [vmem:[#allocation11 + $0xf4c] ss:$16 sps:$4 sm:$0xff]  }
 0x6e9   :  { %11997 = vmatprep.subr.bf16.mxu1 %v14906_v61  ;;  %v14976_v61 = vld [vmem:[#allocation11 + $0xdc8] ss:$16 sps:$4 sm:$0xff]   ;;  %v14138_v11 = vadd.f32 %v15731_v56, %v1844_v60  ;;  %v14985_v48 = vld [vmem:[#allocation11 + $0xe00] ss:$16 sps:$4 sm:$0xff]   ;;  %v14996_v56 = vld [vmem:[#allocation11 + $0xe2c] ss:$16 sps:$4 sm:$0xff]  }
 0x6ea   :  { %v15056_v60 = vld [vmem:[#allocation11 + $0xf6c] ss:$16 sps:$4 sm:$0xff]  }
 0x6eb   :  { %11670 = vmatpush1.bf16.msra.mxu0 %v14901_v62  ;;  %v14981_v62 = vld [vmem:[#allocation11 + $0xde4] ss:$16 sps:$4 sm:$0xff]   ;;  %v8308_v26 = vmax.f32 %v14138_v11, 0.0  ;;  %v15060_v11 = vld [vmem:[#allocation11 + $0xf88] ss:$16 sps:$4 sm:$0xff]  }
 0x6ec   :  { %11998 = vmatpush1.bf16.msra.mxu1 %v14904_v63  ;;  %11671 = vmatprep.subr.bf16.mxu0 %v14909_v45  ;;  %v14984_v63 = vld [vmem:[#allocation11 + $0xdec] ss:$16 sps:$4 sm:$0xff]   ;;  %v14979_v45 = vld [vmem:[#allocation11 + $0xde0] ss:$16 sps:$4 sm:$0xff]  }
 0x6ed   :  { %11999 = vmatprep.subr.bf16.mxu1 %v14912_v2  ;;  %v8305_v2 = vmax.f32 %v14135_v51, 0.0  ;;  %v15054_v51 = vld [vmem:[#allocation11 + $0xf68] ss:$16 sps:$4 sm:$0xff]  }
 0x6ef   :  { %11672 = vmatpush1.bf16.msra.mxu0 %v14907_v59  ;;  %v14982_v59 = vld [vmem:[#allocation11 + $0xde8] ss:$16 sps:$4 sm:$0xff]  }
 0x6f0   :  { %12000 = vmatpush1.bf16.msra.mxu1 %v14910_v3  ;;  %11673 = vmatprep.subr.bf16.mxu0 %v14915_v1  ;;  %v14987_v3 = vld [vmem:[#allocation11 + $0xe04] ss:$16 sps:$4 sm:$0xff]   ;;  %v8321_v1 = vpack.c.bf16 %v8305_v2, %v8305_v2  ;;  %v15068_v2 = vld [vmem:[#allocation11 + $0xfac] ss:$16 sps:$4 sm:$0xff]  }
 0x6f1   :  { %12001 = vmatprep.subr.bf16.mxu1 %v14918_v4  ;;  %v14988_v4 = vld [vmem:[#allocation11 + $0xe08] ss:$16 sps:$4 sm:$0xff]  }
 0x6f3   :  { %11674 = vmatpush1.bf16.msra.mxu0 %v14913_v37  ;;  %v14993_v37 = vld [vmem:[#allocation11 + $0xe24] ss:$16 sps:$4 sm:$0xff]  }
 0x6f4   :  { %12002 = vmatpush1.bf16.msra.mxu1 %v14916_v7  ;;  %11675 = vmatprep.subr.bf16.mxu0 %v14921_v8  ;;  %v8324_v7 = vpack.c.bf16 %v8308_v26, %v8308_v26  ;;  %v14991_v8 = vld [vmem:[#allocation11 + $0xe20] ss:$16 sps:$4 sm:$0xff]   ;;  %v15066_v26 = vld [vmem:[#allocation11 + $0xfa8] ss:$16 sps:$4 sm:$0xff]  }
 0x6f5   :  { %12003 = vmatprep.subr.bf16.mxu1 %v14924_v12  ;;  %v14994_v12 = vld [vmem:[#allocation11 + $0xe28] ss:$16 sps:$4 sm:$0xff]  }
 0x6f7   :  { %11676 = vmatpush1.bf16.msra.mxu0 %v14919_v9  ;;  %v14999_v9 = vld [vmem:[#allocation11 + $0xe44] ss:$16 sps:$4 sm:$0xff]  }
 0x6f8   :  { %12004 = vmatpush1.bf16.msra.mxu1 %v14922_v10  ;;  %11677 = vmatprep.subr.bf16.mxu0 %v14927_v46  ;;  %v15002_v10 = vld [vmem:[#allocation11 + $0xe4c] ss:$16 sps:$4 sm:$0xff]   ;;  %v14997_v46 = vld [vmem:[#allocation11 + $0xe40] ss:$16 sps:$4 sm:$0xff]  }
 0x6f9   :  { %12005 = vmatprep.subr.bf16.mxu1 %v14930_v31  ;;  %v15000_v31 = vld [vmem:[#allocation11 + $0xe48] ss:$16 sps:$4 sm:$0xff]  }
 0x6fb   :  { %11678 = vmatpush1.bf16.msra.mxu0 %v14925_v18  ;;  %v15005_v18 = vld [vmem:[#allocation11 + $0xe64] ss:$16 sps:$4 sm:$0xff]  }
 0x6fc   :  { %12006 = vmatpush1.bf16.msra.mxu1 %v14928_v17  ;;  %11679 = vmatprep.subr.bf16.mxu0 %v14933_v6  ;;  %v15008_v17 = vld [vmem:[#allocation11 + $0xe6c] ss:$16 sps:$4 sm:$0xff]   ;;  %v15003_v6 = vld [vmem:[#allocation11 + $0xe60] ss:$16 sps:$4 sm:$0xff]  }
 0x6fd   :  { %12007 = vmatprep.subr.bf16.mxu1 %v14936_v38  ;;  %v15006_v38 = vld [vmem:[#allocation11 + $0xe68] ss:$16 sps:$4 sm:$0xff]  }
 0x6ff   :  { %11680 = vmatpush1.bf16.msra.mxu0 %v14931_v0  ;;  %v15011_v0 = vld [vmem:[#allocation11 + $0xe84] ss:$16 sps:$4 sm:$0xff]  }
 0x700   :  { %12008 = vmatpush1.bf16.msra.mxu1 %v14934_v35  ;;  %11681 = vmatprep.subr.bf16.mxu0 %v14939_v52  ;;  %v15014_v35 = vld [vmem:[#allocation11 + $0xe8c] ss:$16 sps:$4 sm:$0xff]   ;;  %v15009_v52 = vld [vmem:[#allocation11 + $0xe80] ss:$16 sps:$4 sm:$0xff]  }
 0x701   :  { %12009 = vmatprep.subr.bf16.mxu1 %v14942_v19  ;;  %v15012_v19 = vld [vmem:[#allocation11 + $0xe88] ss:$16 sps:$4 sm:$0xff]  }
 0x703   :  { %11682 = vmatpush1.bf16.msra.mxu0 %v14937_v21  ;;  %v15017_v21 = vld [vmem:[#allocation11 + $0xea4] ss:$16 sps:$4 sm:$0xff]  }
 0x704   :  { %12010 = vmatpush1.bf16.msra.mxu1 %v14940_v33  ;;  %11683 = vmatprep.subr.bf16.mxu0 %v14945_v49  ;;  %v15020_v33 = vld [vmem:[#allocation11 + $0xeac] ss:$16 sps:$4 sm:$0xff]   ;;  %v15015_v49 = vld [vmem:[#allocation11 + $0xea0] ss:$16 sps:$4 sm:$0xff]  }
 0x705   :  { %12011 = vmatprep.subr.bf16.mxu1 %v14948_v22  ;;  %v15018_v22 = vld [vmem:[#allocation11 + $0xea8] ss:$16 sps:$4 sm:$0xff]  }
 0x707   :  { %11684 = vmatpush1.bf16.msra.mxu0 %v14943_v13  ;;  %v15023_v13 = vld [vmem:[#allocation11 + $0xec4] ss:$16 sps:$4 sm:$0xff]  }
 0x708   :  { %12012 = vmatpush1.bf16.msra.mxu1 %v14946_v23  ;;  %11685 = vmatprep.subr.bf16.mxu0 %v14951_v53  ;;  %v15026_v23 = vld [vmem:[#allocation11 + $0xecc] ss:$16 sps:$4 sm:$0xff]   ;;  %v15021_v53 = vld [vmem:[#allocation11 + $0xec0] ss:$16 sps:$4 sm:$0xff]  }
 0x709   :  { %12013 = vmatprep.subr.bf16.mxu1 %v14954_v24  ;;  %v15024_v24 = vld [vmem:[#allocation11 + $0xec8] ss:$16 sps:$4 sm:$0xff]  }
 0x70b   :  { %11686 = vmatpush1.bf16.msra.mxu0 %v14949_v27  ;;  %v15029_v27 = vld [vmem:[#allocation11 + $0xee4] ss:$16 sps:$4 sm:$0xff]  }
 0x70c   :  { %12014 = vmatpush1.bf16.msra.mxu1 %v14952_v28  ;;  %11687 = vmatprep.subr.bf16.mxu0 %v14957_v29  ;;  %v15032_v28 = vld [vmem:[#allocation11 + $0xeec] ss:$16 sps:$4 sm:$0xff]   ;;  %v15027_v29 = vld [vmem:[#allocation11 + $0xee0] ss:$16 sps:$4 sm:$0xff]  }
 0x70d   :  { %12015 = vmatprep.subr.bf16.mxu1 %v14960_v32  ;;  %v15030_v32 = vld [vmem:[#allocation11 + $0xee8] ss:$16 sps:$4 sm:$0xff]  }
 0x70f   :  { %11688 = vmatpush1.bf16.msra.mxu0 %v14955_v34  ;;  %v15035_v34 = vld [vmem:[#allocation11 + $0xf04] ss:$16 sps:$4 sm:$0xff]  }
 0x710   :  { %12016 = vmatpush1.bf16.msra.mxu1 %v14958_v39  ;;  %11689 = vmatprep.subr.bf16.mxu0 %v14963_v42  ;;  %v15038_v39 = vld [vmem:[#allocation11 + $0xf0c] ss:$16 sps:$4 sm:$0xff]   ;;  %v15033_v42 = vld [vmem:[#allocation11 + $0xf00] ss:$16 sps:$4 sm:$0xff]  }
 0x711   :  { %12017 = vmatprep.subr.bf16.mxu1 %v14966_v15  ;;  %v15036_v15 = vld [vmem:[#allocation11 + $0xf08] ss:$16 sps:$4 sm:$0xff]  }
 0x713   :  { %11690 = vmatpush1.bf16.msra.mxu0 %v14961_v50  ;;  %v15041_v50 = vld [vmem:[#allocation11 + $0xf24] ss:$16 sps:$4 sm:$0xff]  }
 0x714   :  { %12018 = vmatpush1.bf16.msra.mxu1 %v14964_v43  ;;  %11691 = vmatprep.subr.bf16.mxu0 %v14969_v55  ;;  %v15044_v43 = vld [vmem:[#allocation11 + $0xf2c] ss:$16 sps:$4 sm:$0xff]   ;;  %v15039_v55 = vld [vmem:[#allocation11 + $0xf20] ss:$16 sps:$4 sm:$0xff]  }
 0x715   :  { %12019 = vmatprep.subr.bf16.mxu1 %v14972_v44  ;;  %v15042_v44 = vld [vmem:[#allocation11 + $0xf28] ss:$16 sps:$4 sm:$0xff]  }
 0x717   :  { %11692 = vmatpush1.bf16.msra.mxu0 %v14967_v40  ;;  %v15047_v40 = vld [vmem:[#allocation11 + $0xf44] ss:$16 sps:$4 sm:$0xff]  }
 0x718   :  { %12020 = vmatpush1.bf16.msra.mxu1 %v14970_v41  ;;  %11693 = vmatprep.subr.bf16.mxu0 %v14975_v58  ;;  %v15045_v41 = vld [vmem:[#allocation11 + $0xf40] ss:$16 sps:$4 sm:$0xff]   ;;  %v15048_v58 = vld [vmem:[#allocation11 + $0xf48] ss:$16 sps:$4 sm:$0xff]  }
 0x719   :  { %12021 = vmatprep.subr.bf16.mxu1 %v14978_v54  ;;  %v15053_v54 = vld [vmem:[#allocation11 + $0xf64] ss:$16 sps:$4 sm:$0xff]  }
 0x71b   :  { %11694 = vmatpush1.bf16.msra.mxu0 %v14973_v36  ;;  %v15051_v36 = vld [vmem:[#allocation11 + $0xf60] ss:$16 sps:$4 sm:$0xff]  }
 0x71c   :  { %12022 = vmatpush1.bf16.msra.mxu1 %v14976_v61  ;;  %11695 = vmatprep.subr.bf16.mxu0 %v14981_v62  ;;  %v15059_v61 = vld [vmem:[#allocation11 + $0xf84] ss:$16 sps:$4 sm:$0xff]   ;;  %v15062_v62 = vld [vmem:[#allocation11 + $0xf8c] ss:$16 sps:$4 sm:$0xff]  }
 0x71d   :  { %12023 = vmatprep.subr.bf16.mxu1 %v14984_v63  ;;  %v15057_v63 = vld [vmem:[#allocation11 + $0xf80] ss:$16 sps:$4 sm:$0xff]  }
 0x71f   :  { %11696 = vmatpush1.bf16.msra.mxu0 %v14979_v45  ;;  %v15065_v45 = vld [vmem:[#allocation11 + $0xfa4] ss:$16 sps:$4 sm:$0xff]  }
 0x720   :  { %12024 = vmatpush1.bf16.msra.mxu1 %v14982_v59  ;;  %11706 = vmatprep.subr.bf16.mxu0 %v14987_v3  ;;  %v15063_v59 = vld [vmem:[#allocation11 + $0xfa0] ss:$16 sps:$4 sm:$0xff]   ;;  %v15115_v3 = vld [vmem:[#allocation10 + $0x8] sm:$0xff] }
 0x721   :  { %12034 = vmatprep.subr.bf16.mxu1 %v14990_v25  ;;  %v1840_v25 = vrot.slane %v15115_v3, %v15621_v5  ;;  %v15078_v5 = vld [vmem:[#allocation11 + $0xfe8] ss:$16 sps:$4 sm:$0xff]  }
 0x722   :  { %11698 = vmatmul.mubr.bf16.vlgmr.msra.gmra.mrb[24].mxu0 %v8321_v1 }
 0x723   :  { %12026 = vmatmul.mubr.bf16.vlgmr.msra.gmra.mrb[24].mxu1 %v8321_v1  ;;  %11707 = vmatpush1.bf16.msra.mxu0 %v14985_v48  ;;  %v15071_v48 = vld [vmem:[#allocation11 + $0xfc4] ss:$16 sps:$4 sm:$0xff]   ;;  %v15074_v1 = vld [vmem:[#allocation11 + $0xfcc] ss:$16 sps:$4 sm:$0xff]  }
 0x724   :  { %11738 = vmatprep.mubr.bf16.mxu0 %v8324_v7  ;;  %12035 = vmatpush1.bf16.msra.mxu1 %v14988_v4  ;;  %v15069_v4 = vld [vmem:[#allocation11 + $0xfc0] ss:$16 sps:$4 sm:$0xff]  }
 0x725   :  { %12066 = vmatprep.mubr.bf16.mxu1 %v8324_v7  ;;  %11708 = vmatprep.subr.bf16.mxu0 %v14993_v37  ;;  %v14137_v37 = vadd.f32 %v15727_v47, %v1840_v25  ;;  %v15072_v7 = vld [vmem:[#allocation11 + $0xfc8] ss:$16 sps:$4 sm:$0xff]  }
 0x726   :  { %12036 = vmatprep.subr.bf16.mxu1 %v14996_v56  ;;  %v15077_v56 = vld [vmem:[#allocation11 + $0xfe4] ss:$16 sps:$4 sm:$0xff]  }
 0x727   :  { %11709 = vmatpush1.bf16.msra.mxu0 %v14991_v8  ;;  %v15080_v8 = vld [vmem:[#allocation11 + $0xfec] ss:$16 sps:$4 sm:$0xff]   ;;  %v15084_v47 = vld [vmem:[#allocation14 + $0x80] sm:$0xff]  }
 0x728   :  { %12037 = vmatpush1.bf16.msra.mxu1 %v14994_v12  ;;  %11710 = vmatprep.subr.bf16.mxu0 %v14999_v9  ;;  %v15075_v12 = vld [vmem:[#allocation11 + $0xfe0] ss:$16 sps:$4 sm:$0xff]   ;;  %v8307_v9 = vmax.f32 %v14137_v37, 0.0 }
 0x729   :  { %12038 = vmatprep.subr.bf16.mxu1 %v15002_v10  ;;  %v15081_v10 = vld [vmem:[#allocation14 + $0x40] sm:$0xff]  }
 0x72b   :  { %11711 = vmatpush1.bf16.msra.mxu0 %v14997_v46  ;;  %v15082_v46 = vld [vmem:[#allocation14 + $0xc0] sm:$0xff]  }
 0x72c   :  { %12039 = vmatpush1.bf16.msra.mxu1 %v15000_v31  ;;  %11712 = vmatprep.subr.bf16.mxu0 %v15005_v18  ;;  %v15083_v31 = vld [vmem:[#allocation14] sm:$0xff]   ;;  %v8323_v18 = vpack.c.bf16 %v8307_v9, %v8307_v9 }
 0x72d   :  { %12040 = vmatprep.subr.bf16.mxu1 %v15008_v17  ;;  %v15085_v17 = vld [vmem:[#allocation14 + $0x48] sm:$0xff]  }
 0x72f   :  { %11713 = vmatpush1.bf16.msra.mxu0 %v15003_v6  ;;  %v15086_v6 = vld [vmem:[#allocation14 + $0xc8] sm:$0xff]  }
 0x730   :  { %12041 = vmatpush1.bf16.msra.mxu1 %v15006_v38  ;;  %11714 = vmatprep.subr.bf16.mxu0 %v15011_v0  ;;  %v15087_v38 = vld [vmem:[#allocation14 + $0x8] sm:$0xff]  }
 0x731   :  { %12042 = vmatprep.subr.bf16.mxu1 %v15014_v35  ;;  %v15088_v0 = vld [vmem:[#allocation14 + $0x88] sm:$0xff]   ;;  %v15089_v35 = vld [vmem:[#allocation14 + $0x50] sm:$0xff]  }
 0x733   :  { %11715 = vmatpush1.bf16.msra.mxu0 %v15009_v52  ;;  %v15090_v52 = vld [vmem:[#allocation14 + $0xd0] sm:$0xff]  }
 0x734   :  { %12043 = vmatpush1.bf16.msra.mxu1 %v15012_v19  ;;  %11716 = vmatprep.subr.bf16.mxu0 %v15017_v21  ;;  %v15091_v19 = vld [vmem:[#allocation14 + $0x10] sm:$0xff]  }
 0x735   :  { %12044 = vmatprep.subr.bf16.mxu1 %v15020_v33  ;;  %v15092_v21 = vld [vmem:[#allocation14 + $0x90] sm:$0xff]   ;;  %v15093_v33 = vld [vmem:[#allocation14 + $0x58] sm:$0xff]  }
 0x737   :  { %11717 = vmatpush1.bf16.msra.mxu0 %v15015_v49  ;;  %v15094_v49 = vld [vmem:[#allocation14 + $0xd8] sm:$0xff]  }
 0x738   :  { %12045 = vmatpush1.bf16.msra.mxu1 %v15018_v22  ;;  %11718 = vmatprep.subr.bf16.mxu0 %v15023_v13  ;;  %v15095_v22 = vld [vmem:[#allocation14 + $0x18] sm:$0xff]  }
 0x739   :  { %12046 = vmatprep.subr.bf16.mxu1 %v15026_v23  ;;  %v15096_v13 = vld [vmem:[#allocation14 + $0x98] sm:$0xff]   ;;  %v15097_v23 = vld [vmem:[#allocation14 + $0x60] sm:$0xff]  }
 0x73b   :  { %11719 = vmatpush1.bf16.msra.mxu0 %v15021_v53  ;;  %v15098_v53 = vld [vmem:[#allocation14 + $0xe0] sm:$0xff]  }
 0x73c   :  { %12047 = vmatpush1.bf16.msra.mxu1 %v15024_v24  ;;  %11720 = vmatprep.subr.bf16.mxu0 %v15029_v27  ;;  %v15099_v24 = vld [vmem:[#allocation14 + $0x20] sm:$0xff]  }
 0x73d   :  { %12048 = vmatprep.subr.bf16.mxu1 %v15032_v28  ;;  %v15100_v27 = vld [vmem:[#allocation14 + $0xa0] sm:$0xff]   ;;  %v15101_v28 = vld [vmem:[#allocation14 + $0x68] sm:$0xff]  }
 0x73f   :  { %11721 = vmatpush1.bf16.msra.mxu0 %v15027_v29  ;;  %v15102_v29 = vld [vmem:[#allocation14 + $0xe8] sm:$0xff]  }
 0x740   :  { %12049 = vmatpush1.bf16.msra.mxu1 %v15030_v32  ;;  %11722 = vmatprep.subr.bf16.mxu0 %v15035_v34  ;;  %v15103_v32 = vld [vmem:[#allocation14 + $0x28] sm:$0xff]  }
 0x741   :  { %12050 = vmatprep.subr.bf16.mxu1 %v15038_v39  ;;  %v15104_v34 = vld [vmem:[#allocation14 + $0xa8] sm:$0xff]   ;;  %v15105_v39 = vld [vmem:[#allocation14 + $0x70] sm:$0xff]  }
 0x743   :  { %11723 = vmatpush1.bf16.msra.mxu0 %v15033_v42  ;;  %v15106_v42 = vld [vmem:[#allocation14 + $0xf0] sm:$0xff]  }
 0x744   :  { %12051 = vmatpush1.bf16.msra.mxu1 %v15036_v15  ;;  %11724 = vmatprep.subr.bf16.mxu0 %v15041_v50  ;;  %v15107_v15 = vld [vmem:[#allocation14 + $0x30] sm:$0xff]  }
 0x745   :  { %12052 = vmatprep.subr.bf16.mxu1 %v15044_v43  ;;  %v15108_v50 = vld [vmem:[#allocation14 + $0xb0] sm:$0xff]   ;;  %v15109_v43 = vld [vmem:[#allocation14 + $0x78] sm:$0xff]  }
 0x747   :  { %11725 = vmatpush1.bf16.msra.mxu0 %v15039_v55  ;;  %v15110_v55 = vld [vmem:[#allocation14 + $0xf8] sm:$0xff]  }
 0x748   :  { %12053 = vmatpush1.bf16.msra.mxu1 %v15042_v44  ;;  %11726 = vmatprep.subr.bf16.mxu0 %v15047_v40  ;;  %v15111_v44 = vld [vmem:[#allocation14 + $0x38] sm:$0xff]  }
 0x749   :  { %12054 = vmatprep.subr.bf16.mxu1 %v15050_v57  ;;  %v15112_v40 = vld [vmem:[#allocation14 + $0xb8] sm:$0xff]  }
 0x74a   :  { %v8837_v57 = vld [vmem:[#allocation13] sm:$0xf] }
 0x74b   :  { %11727 = vmatpush1.bf16.msra.mxu0 %v15045_v41  ;;  %v8842_v41 = vrot.slane %v8837_v57, %v15540_v14 }
 0x74c   :  { %12055 = vmatpush1.bf16.msra.mxu1 %v15048_v58  ;;  %11728 = vmatprep.subr.bf16.mxu0 %v15053_v54  ;;  %v8850_v58 = vrot.slane %v8837_v57, %v15579_v30  ;;  %v8846_v54 = vrot.slane %v8837_v57, %v15545_v16 }
 0x74d   :  { %12056 = vmatprep.subr.bf16.mxu1 %v15056_v60  ;;  %v8854_v60 = vrot.slane %v8837_v57, %v15552_v20 }
 0x74f   :  { %11729 = vmatpush1.bf16.msra.mxu0 %v15051_v36 }
 0x750   :  { %12057 = vmatpush1.bf16.msra.mxu1 %v15054_v51  ;;  %11730 = vmatprep.subr.bf16.mxu0 %v15059_v61 }
 0x751   :  { %12058 = vmatprep.subr.bf16.mxu1 %v15062_v62 }
 0x753   :  { %11731 = vmatpush1.bf16.msra.mxu0 %v15057_v63 }
 0x754   :  { %12059 = vmatpush1.bf16.msra.mxu1 %v15060_v11  ;;  %11732 = vmatprep.subr.bf16.mxu0 %v15065_v45 }
 0x755   :  { %12060 = vmatprep.subr.bf16.mxu1 %v15068_v2 }
 0x757   :  { %11733 = vmatpush1.bf16.msra.mxu0 %v15063_v59 }
 0x758   :  { %12061 = vmatpush1.bf16.msra.mxu1 %v15066_v26  ;;  %11734 = vmatprep.subr.bf16.mxu0 %v15071_v48 }
 0x759   :  { %12062 = vmatprep.subr.bf16.mxu1 %v15074_v1 }
 0x75b   :  { %11735 = vmatpush1.bf16.msra.mxu0 %v15069_v4 }
 0x75c   :  { %12063 = vmatpush1.bf16.msra.mxu1 %v15072_v7  ;;  %11736 = vmatprep.subr.bf16.mxu0 %v15077_v56 }
 0x75d   :  { %12064 = vmatprep.subr.bf16.mxu1 %v15080_v8  ;;  %v14046_v8 = vld [vmem:[#allocation16] ss:$0 sm:$0xff] }
 0x75f   :  { %11737 = vmatpush1.bf16.msra.mxu0 %v15075_v12 }
 0x760   :  { %12065 = vmatpush1.bf16.msra.mxu1 %v15078_v5  ;;  %14079 = vmatprep.subr.bf16.mxu0 %v15081_v10 }
 0x761   :  { %14101 = vmatprep.subr.bf16.mxu1 %v15082_v46 }
 0x762   :  { %11739 = vmatmul.mubr.bf16.vlgmr.msra.gmra.mrb[24].mxu0 %v8323_v18 }
 0x763   :  { %12067 = vmatmul.mubr.bf16.vlgmr.msra.gmra.mrb[24].mxu1 %v8323_v18  ;;  %14080 = vmatpush3.bf16.msra.mxu0 %v15083_v31 }
 0x764   :  { %14102 = vmatpush3.bf16.msra.mxu1 %v15084_v47  ;;  %14081 = vmatprep.subr.bf16.mxu0 %v15085_v17 }
 0x765   :  { %14103 = vmatprep.subr.bf16.mxu1 %v15086_v6 }
 0x767   :  { %14082 = vmatpush3.bf16.msra.mxu0 %v15087_v38 }
 0x768   :  { %14104 = vmatpush3.bf16.msra.mxu1 %v15088_v0  ;;  %14083 = vmatprep.subr.bf16.mxu0 %v15089_v35 }
 0x769   :  { %14105 = vmatprep.subr.bf16.mxu1 %v15090_v52 }
 0x76b   :  { %14084 = vmatpush3.bf16.msra.mxu0 %v15091_v19 }
 0x76c   :  { %14106 = vmatpush3.bf16.msra.mxu1 %v15092_v21  ;;  %14085 = vmatprep.subr.bf16.mxu0 %v15093_v33 }
 0x76d   :  { %14107 = vmatprep.subr.bf16.mxu1 %v15094_v49 }
 0x76f   :  { %14086 = vmatpush3.bf16.msra.mxu0 %v15095_v22 }
 0x770   :  { %14108 = vmatpush3.bf16.msra.mxu1 %v15096_v13  ;;  %14087 = vmatprep.subr.bf16.mxu0 %v15097_v23 }
 0x771   :  { %14109 = vmatprep.subr.bf16.mxu1 %v15098_v53 }
 0x773   :  { %14088 = vmatpush3.bf16.msra.mxu0 %v15099_v24 }
 0x774   :  { %14110 = vmatpush3.bf16.msra.mxu1 %v15100_v27  ;;  %14089 = vmatprep.subr.bf16.mxu0 %v15101_v28 }
 0x775   :  { %14111 = vmatprep.subr.bf16.mxu1 %v15102_v29 }
 0x777   :  { %14090 = vmatpush3.bf16.msra.mxu0 %v15103_v32 }
 0x778   :  { %14112 = vmatpush3.bf16.msra.mxu1 %v15104_v34  ;;  %14091 = vmatprep.subr.bf16.mxu0 %v15105_v39 }
 0x779   :  { %14113 = vmatprep.subr.bf16.mxu1 %v15106_v42 }
 0x77b   :  { %14092 = vmatpush3.bf16.msra.mxu0 %v15107_v15 }
 0x77c   :  { %14114 = vmatpush3.bf16.msra.mxu1 %v15108_v50  ;;  %14093 = vmatprep.subr.bf16.mxu0 %v15109_v43 }
 0x77d   :  { %14115 = vmatprep.subr.bf16.mxu1 %v15110_v55 }
 0x77f   :  { %14094 = vmatpush3.bf16.msra.mxu0 %v15111_v44 }
 0x780   :  { %14116 = vmatpush3.bf16.msra.mxu1 %v15112_v40 }
 0x835   :  { %v11740_v36 = vpop.f32.mrb[24].mxu0 }
 0x836   :  { %v14139_v51 = vadd.f32 %v11740_v36, %v8842_v41  ;;  %v12068_v61 = vpop.f32.mrb[24].mxu1  ;;  %v11742_v62 = vpop.f32.mrb[25].mxu0 }
 0x837   :  { %v14141_v63 = vadd.f32 %v12068_v61, %v8850_v58  ;;  %v14140_v11 = vadd.f32 %v11742_v62, %v8846_v54  ;;  %v12070_v45 = vpop.f32.mrb[25].mxu1  ;;  %v11744_v2 = vpop.f32.mrb[26].mxu0 }
 0x838   :  { %v12075_v59 = vmax.f32 %v14139_v51, 0.0  ;;  %v14142_v3 = vadd.f32 %v12070_v45, %v8854_v60  ;;  %v12072_v25 = vpop.f32.mrb[26].mxu1  ;;  %v11745_v26 = vpop.f32.mrb[27].mxu0 }
 0x839   :  { %v12077_v48 = vmax.f32 %v14141_v63, 0.0  ;;  %v12076_v14 = vmax.f32 %v14140_v11, 0.0  ;;  %v12073_v1 = vpop.f32.mrb[27].mxu1 }
 0x83a   :  { %v12078_v30 = vmax.f32 %v14142_v3, 0.0  ;;  %v12079_v16 = vpack.c.bf16 %v12075_v59, %v12075_v59 }
 0x83b   :  { %v12080_v4 = vpack.c.bf16 %v12076_v14, %v12076_v14  ;;  %v12081_v20 = vpack.c.bf16 %v12077_v48, %v12077_v48 }
 0x83c   :  { %v12082_v37 = vpack.c.bf16 %v12078_v30, %v12078_v30 }
 0x83d   :  { %12378 = vmatprep.mubr.bf16.mxu0 %v12080_v4 }
 0x83e   :  { %12418 = vmatprep.mubr.bf16.mxu1 %v12082_v37  ;;  %12379 = vmatmul.mubr.bf16.vlgmr.msra.gmra.mrb[28].mxu0 %v12079_v16 }
 0x83f   :  { %12419 = vmatmul.mubr.bf16.vlgmr.msra.gmra.mrb[28].mxu1 %v12081_v20 }
 0x911   :  { %v14095_v7 = vpop.f32.mrb[28].mxu0 }
 0x912   :  { %v14117_v56 = vpop.f32.mrb[28].mxu1  ;;  %v14096_v12 = vpop.f32.mrb[29].mxu0 }
 0x913   :  { %v14097_v9 = vadd.f32 %v14096_v12, %v14095_v7  ;;  %v14118_v5 = vpop.f32.mrb[29].mxu1  ;;  %v14098_v10 = vpop.f32.mrb[30].mxu0 }
 0x914   :  { %v14119_v46 = vadd.f32 %v14118_v5, %v14117_v56  ;;  %v14120_v31 = vpop.f32.mrb[30].mxu1  ;;  %v14099_v18 = vpop.f32.mrb[31].mxu0 }
 0x915   :  { %v12381_v47 = vadd.f32 %v14097_v9, %v14046_v8  ;;  %v14121_v17 = vpop.f32.mrb[31].mxu1 }
 0x917   :  { %v12421_v6 = vadd.f32 %v14119_v46, %v12381_v47 }
 0x919   :  { %12426 = vst [vmem:[#allocation17] sm:$0xff] %v12421_v6 }
 0x91a   :  { %15325 = shalt.err (!%p15322_p6)
}
 0x91b   :  { %s15326_s22 = scalar_lea.hbm %s15785_s9, 128 }
 0x91c   :  { %p15327_p7 = scmp.ne.s32.totalorder %s15785_s9, %s15326_s22  ;;  %p15330_p8 = scmp.lt.u32.totalorder %s15326_s22, %s15785_s9 }
 0x91e   :  { %p15332_p9 = pnand %p15330_p8, %p15327_p7 }
 0x920   :  { %15335 = shalt.err (!%p15332_p9)
}
 0x921   :  { %12436 = dma.vmem_to_hbm [thread:$0]  %s12434_s24, 128, %s15785_s9, [#allocation4]  }
 0x922   :  { %15346 = dma.done.wait [#allocation4], 128  }
 0x923   :  { %15347 = vsyncadd [#allocation4], 4294967168 }
 0x924   :  { %12440 = vsyncpa [#allocation3], 1 }
 0x925   :  { %12441 = vsyncpa [#allocation6], 1 }
 0x926   :  { %12442 = vsyncpa [#allocation9], 1 }
 0x927   :  { %12443 = vsyncpa [#allocation12], 1 }
 0x928   :  { %12444 = vsyncpa [#allocation15], 1 }
 0x929   :  { %12445 = vsyncpa [#allocation4], 1 }

</bundles_post_ra>
